<compile_context>
chip_gen: v7x
topology: tpu7x:2x2x1
jax: 0.10.0
libtpu: 0.0.40
codegen_flags: <defaults>
</compile_context>

<pallas_src>
import jax
import jax.numpy as jnp
from jax.experimental import pallas as pl
from jax.experimental.pallas import tpu as pltpu

# MXU operand dtype.  bfloat16 gives ~2-3x MXU throughput on v5e/v6e/v7x and
# halves operator VMEM/DMA bytes; accumulation is always f32 via
# preferred_element_type.  Flip to jnp.float32 to match the f32 reference to
# ~1e-4 (tolerance below adapts automatically).
MXU_DTYPE = jnp.bfloat16


# ----------------------------------------------------------------------------
# Fused decoder kernel: 3 x (upsample -> concat -> conv3x3+BN+ReLU -> conv3x3
# +BN+ReLU), batch folded into M, everything resident in VMEM.
# ----------------------------------------------------------------------------
def _stage_compute(x, skip, mwx_ref, a_ref, p_ref, bw1x_ref, bw1s_ref, bw2_ref,
                   b1_ref, b2_ref):
    # x:        (N*Hin,  Win*Cx)   previous activation, batch-stacked slab
    # skip:     (N*Hout, Wout*Cs)  skip connection, batch-stacked slab
    # mwx_ref:  (Win*Cx, Wout*Cx)  kron(Mw.T, I_Cx): W-direction bilinear interp
    # a_ref:    (3, N*Hout, N*Hin) per-dy H-interp fused with conv dy shift
    #                              (block-diagonal over batch, zero halo rows)
    # p_ref:    (3, N*Hout, N*Hout) per-dy H shift with zero rows (p[1] = I)
    # bw1x_ref: (3, Wout*Cx, Wout*Ch) banded conv1 weights, x channels (BN-scaled)
    # bw1s_ref: (3, Wout*Cs, Wout*Ch) banded conv1 weights, skip channels
    # bw2_ref:  (3, Wout*Ch, Wout*Ch) banded conv2 weights
    # b1_ref / b2_ref: (1, Wout*Ch)  BN bias (scale already folded into weights)
    rows = a_ref.shape[1]            # N * Hout  (batch folded into M)
    lanes = bw2_ref.shape[-1]        # Wout * Ch

    def mxu(a, b):
        return jnp.dot(a, b, preferred_element_type=jnp.float32)

    # W-direction bilinear upsample at the *source* H resolution (fewer rows);
    # the H interpolation is fused with the conv dy shift via a_ref below.
    xw = mxu(x.astype(MXU_DTYPE), mwx_ref[...]).astype(MXU_DTYPE)
    sk = skip.astype(MXU_DTYPE)      # cast once, reused by all three dy taps

    # conv1 (3x3, pad=1): 3 banded matmuls per input group; the channel concat
    # is folded away by splitting the weights into x / skip parts.
    acc = jnp.zeros((rows, lanes), jnp.float32)
    for dy in range(3):              # static unroll
        # x path: banded W-conv first (source rows), then H-interp + dy shift.
        xz = mxu(xw, bw1x_ref[dy]).astype(MXU_DTYPE)
        acc = acc + mxu(a_ref[dy], xz)
        # skip path: dy H-shift (identity at dy == 1), then banded W-conv.
        sks = sk if dy == 1 else mxu(p_ref[dy], sk).astype(MXU_DTYPE)
        acc = acc + mxu(sks, bw1s_ref[dy])
    y1 = jnp.maximum(acc + b1_ref[...], 0.0)           # BN bias + ReLU

    # conv2 (3x3, pad=1)
    y1c = y1.astype(MXU_DTYPE)       # cast once for the three conv2 taps
    acc2 = jnp.zeros((rows, lanes), jnp.float32)
    for dy in range(3):
        ys = y1c if dy == 1 else mxu(p_ref[dy], y1c).astype(MXU_DTYPE)
        acc2 = acc2 + mxu(ys, bw2_ref[dy])
    return jnp.maximum(acc2 + b2_ref[...], 0.0)


def _fused_decoder_kernel(
        x4_ref, s3_ref, s2_ref, s1_ref,
        mwx1_ref, a1_ref, p1_ref, w1x1_ref, w1s1_ref, w21_ref, b11_ref, b21_ref,
        mwx2_ref, a2_ref, p2_ref, w1x2_ref, w1s2_ref, w22_ref, b12_ref, b22_ref,
        mwx3_ref, a3_ref, p3_ref, w1x3_ref, w1s3_ref, w23_ref, b13_ref, b23_ref,
        o_ref):
    y = _stage_compute(x4_ref[...], s3_ref[...], mwx1_ref, a1_ref, p1_ref,
                       w1x1_ref, w1s1_ref, w21_ref, b11_ref, b21_ref)
    y = _stage_compute(y, s2_ref[...], mwx2_ref, a2_ref, p2_ref,
                       w1x2_ref, w1s2_ref, w22_ref, b12_ref, b22_ref)
    y = _stage_compute(y, s1_ref[...], mwx3_ref, a3_ref, p3_ref,
                       w1x3_ref, w1s3_ref, w23_ref, b13_ref, b23_ref)
    o_ref[...] = y.astype(o_ref.dtype)


# ----------------------------------------------------------------------------
# One-time operator precompute (hoisted out of the forward pass)
# ----------------------------------------------------------------------------
def _interp_matrix(out_size, in_size):
    """1-D linear interp matrix matching F.interpolate(bilinear, align_corners=True).

    out_size == in_size returns identity, which also covers the module's
    "no upsample" branch (the concat requires equal spatial sizes there)."""
    if out_size == in_size:
        return jnp.eye(out_size, dtype=jnp.float32)
    if out_size == 1 or in_size == 1:
        m = jnp.zeros((out_size, in_size), dtype=jnp.float32)
        return m.at[:, 0].set(1.0)
    pos = jnp.arange(out_size, dtype=jnp.float32) * (in_size - 1) / (out_size - 1)
    lo = jnp.clip(jnp.floor(pos).astype(jnp.int32), 0, in_size - 2)
    frac = pos - lo.astype(jnp.float32)
    eye = jnp.eye(in_size, dtype=jnp.float32)
    return (1.0 - frac)[:, None] * eye[lo] + frac[:, None] * eye[lo + 1]


def _banded_conv_weights(w_hwio, w_out):
    """(3,3,Cin,Cout) conv weights -> (3, w_out*Cin, w_out*Cout) banded matrices.

    bw[dy][wi*Cin+ci, wo*Cout+co] = w[dy, wi-wo+1, ci, co]  (0 outside the band),
    so in the width-unrolled slab layout (lanes = W*C)
        out = sum_dy  H_shift_dy(x) @ bw[dy]
    implements the width taps and zero width-padding of a 3x3 / pad=1 conv,
    producing a lane-dense (rows, W*Cout) result."""
    cin, cout = w_hwio.shape[2], w_hwio.shape[3]
    wi = jnp.arange(w_out)[:, None]
    wo = jnp.arange(w_out)[None, :]
    dx = wi - wo + 1                                        # (w_out, w_out)
    valid = ((dx >= 0) & (dx <= 2)).astype(w_hwio.dtype)
    dxc = jnp.clip(dx, 0, 2)
    blocks = w_hwio[:, dxc, :, :] * valid[None, :, :, None, None]
    # (dy, wi, wo, ci, co) -> (dy, wi, ci, wo, co) -> (3, w_out*Cin, w_out*Cout)
    return blocks.transpose(0, 1, 3, 2, 4).reshape(3, w_out * cin, w_out * cout)


def _stage_operators(w1, scale1, bias1, w2, scale2, bias2, *,
                     cx, cs, hin, win, hout, wout, n):
    f32 = jnp.float32
    mh_pad = jnp.pad(_interp_matrix(hout, hin), ((1, 1), (0, 0)))   # (hout+2, hin)
    ip_pad = jnp.pad(jnp.eye(hout, dtype=f32), ((1, 1), (0, 0)))    # (hout+2, hout)
    eye_n = jnp.eye(n, dtype=f32)
    # Per-dy H operators, block-diagonal over batch (batch folded into M):
    #   a[dy] = H-interp fused with the conv dy shift (zero rows = H padding)
    #   p[dy] = pure dy shift with zero edge rows (p[1] is the identity)
    a = jnp.stack([jnp.kron(eye_n, mh_pad[dy:dy + hout]) for dy in range(3)])
    p = jnp.stack([jnp.kron(eye_n, ip_pad[dy:dy + hout]) for dy in range(3)])
    # W-direction bilinear interp in the slab layout: kron(Mw.T, I_Cx).
    mwx = jnp.kron(_interp_matrix(wout, win).T, jnp.eye(cx, dtype=f32))
    # Fold BN scale into the conv output channels (epilogue = bias + ReLU).
    w1f = w1 * scale1[None, None, None, :]
    w2f = w2 * scale2[None, None, None, :]
    bw1x = _banded_conv_weights(w1f[:, :, :cx, :], wout)   # (3, wout*cx, wout*ch)
    bw1s = _banded_conv_weights(w1f[:, :, cx:, :], wout)   # (3, wout*cs, wout*ch)
    bw2 = _banded_conv_weights(w2f, wout)                  # (3, wout*ch, wout*ch)
    b1 = jnp.tile(bias1, wout)[None, :].astype(f32)        # (1, wout*ch)
    b2 = jnp.tile(bias2, wout)[None, :].astype(f32)
    cast = lambda t: t.astype(MXU_DTYPE)
    return (cast(mwx), cast(a), cast(p), cast(bw1x), cast(bw1s), cast(bw2), b1, b2)


def build_decoder_operators(params, input_shapes):
    """Build every static operator ONCE (weights are fixed at inference).

    input_shapes: NCHW shapes of (x_c4, x_c3, x_c2, x_c1)."""
    (n, c4, h4, w4), (_, c3, h3, w3), (_, c2, h2, w2), (_, c1, h1, w1) = input_shapes
    hidden = params["conv1_4"][0].shape[-1]
    ops = []
    ops += _stage_operators(*params["conv1_4"], *params["conv2_4"],
                            cx=c4, cs=c3, hin=h4, win=w4, hout=h3, wout=w3, n=n)
    ops += _stage_operators(*params["conv1_3"], *params["conv2_3"],
                            cx=hidden, cs=c2, hin=h3, win=w3, hout=h2, wout=w2, n=n)
    ops += _stage_operators(*params["conv1_2"], *params["conv2_2"],
                            cx=hidden, cs=c1, hin=h2, win=w2, hout=h1, wout=w1, n=n)
    return tuple(ops)


# ----------------------------------------------------------------------------
# Forward pass (matches SimpleDecoding.forward, BN in inference mode)
# ----------------------------------------------------------------------------
@jax.jit
def simple_decoding_forward(ops, x_c4, x_c3, x_c2, x_c1):
    # NCHW (PyTorch convention) -> batch-stacked, width-unrolled slab (N*H, W*C).
    def to_slab(t):
        b, c, h, w = t.shape
        return jnp.transpose(t, (0, 2, 3, 1)).reshape(b * h, w * c)

    n = x_c4.shape[0]
    h_out, w_out = x_c1.shape[2], x_c1.shape[3]
    lanes = ops[-1].shape[-1]                 # stage-3 bias: (1, w_out*hidden)
    hidden = lanes // w_out

    # Whole-array VMEM mapping, single grid step: the fused working set
    # (~6 MiB of bf16 operators + tiny activations) fits comfortably in VMEM
    # on all generations, so no pipelining / double buffering is needed.
    vmem = pl.BlockSpec(memory_space=pltpu.MemorySpace.VMEM)
    out = pl.pallas_call(
        _fused_decoder_kernel,
        out_shape=jax.ShapeDtypeStruct((n * h_out, lanes), jnp.float32),
        in_specs=[vmem] * (4 + len(ops)),
        out_specs=vmem,
    )(to_slab(x_c4), to_slab(x_c3), to_slab(x_c2), to_slab(x_c1), *ops)

    return jnp.transpose(out.reshape(n, h_out, w_out, hidden), (0, 3, 1, 2))


# ----------------------------------------------------------------------------
# Parameter init (deterministic, synthetic) with BN folded to scale/bias
# ----------------------------------------------------------------------------
def init_params(key, c4_dims, factor=2):
    hidden = c4_dims // factor
    c4 = c4_dims
    c3 = c4_dims // factor
    c2 = c4_dims // factor ** 2
    c1 = c4_dims // factor ** 3
    specs = [
        ("conv1_4", c4 + c3, hidden),
        ("conv2_4", hidden, hidden),
        ("conv1_3", hidden + c2, hidden),
        ("conv2_3", hidden, hidden),
        ("conv1_2", hidden + c1, hidden),
        ("conv2_2", hidden, hidden),
    ]
    params = {}
    for name, cin, cout in specs:
        key, k1, k2, k3, k4, k5 = jax.random.split(key, 6)
        w = 0.05 * jax.random.normal(k1, (3, 3, cin, cout), jnp.float32)  # HWIO
        gamma = 1.0 + 0.1 * jax.random.normal(k2, (cout,), jnp.float32)
        beta = 0.1 * jax.random.normal(k3, (cout,), jnp.float32)
        run_mean = 0.1 * jax.random.normal(k4, (cout,), jnp.float32)
        run_var = jnp.abs(jax.random.normal(k5, (cout,), jnp.float32)) + 0.5
        eps = 1e-5
        scale = gamma / jnp.sqrt(run_var + eps)
        bias = beta - run_mean * scale
        params[name] = (w, scale, bias)
    return params


# ----------------------------------------------------------------------------
# Pure-JAX reference (independent path: lax.conv + einsum upsample, f32)
# ----------------------------------------------------------------------------
def _ref_forward(params, x_c4, x_c3, x_c2, x_c1):
    def to_nhwc(t):
        return jnp.transpose(t, (0, 2, 3, 1))

    def up(x, h, w):
        mh = _interp_matrix(h, x.shape[1])
        mw = _interp_matrix(w, x.shape[2])
        y = jnp.einsum("oh,nhwc->nowc", mh, x)
        return jnp.einsum("pw,nowc->nopc", mw, y)

    def cbr(x, w, s, b):
        y = jax.lax.conv_general_dilated(
            x, w, (1, 1), "SAME", dimension_numbers=("NHWC", "HWIO", "NHWC"))
        return jnp.maximum(y * s + b, 0.0)

    x4, x3, x2, x1 = map(to_nhwc, (x_c4, x_c3, x_c2, x_c1))
    x = x4
    if x.shape[1] < x3.shape[1] or x.shape[2] < x3.shape[2]:
        x = up(x, x3.shape[1], x3.shape[2])
    x = jnp.concatenate([x, x3], -1)
    x = cbr(x, *params["conv1_4"])
    x = cbr(x, *params["conv2_4"])
    if x.shape[1] < x2.shape[1] or x.shape[2] < x2.shape[2]:
        x = up(x, x2.shape[1], x2.shape[2])
    x = jnp.concatenate([x, x2], -1)
    x = cbr(x, *params["conv1_3"])
    x = cbr(x, *params["conv2_3"])
    if x.shape[1] < x1.shape[1] or x.shape[2] < x1.shape[2]:
        x = up(x, x1.shape[1], x1.shape[2])
    x = jnp.concatenate([x, x1], -1)
    x = cbr(x, *params["conv1_2"])
    x = cbr(x, *params["conv2_2"])
    return jnp.transpose(x, (0, 3, 1, 2))


if __name__ == "__main__":
    c4_dims = 32
    factor = 2
    N = 2
    key = jax.random.PRNGKey(0)
    kp, k4, k3, k2, k1 = jax.random.split(key, 5)

    params = init_params(kp, c4_dims, factor)

    # NCHW inputs (PyTorch convention), typical FPN-like pyramid sizes.
    x_c4 = jax.random.normal(k4, (N, c4_dims, 4, 4), jnp.float32)
    x_c3 = jax.random.normal(k3, (N, c4_dims // 2, 8, 8), jnp.float32)
    x_c2 = jax.random.normal(k2, (N, c4_dims // 4, 16, 16), jnp.float32)
    x_c1 = jax.random.normal(k1, (N, c4_dims // 8, 32, 32), jnp.float32)

    # One-time operator precompute (hoisted out of the jitted forward pass).
    ops = build_decoder_operators(
        params, (x_c4.shape, x_c3.shape, x_c2.shape, x_c1.shape))

    out = jax.block_until_ready(
        simple_decoding_forward(ops, x_c4, x_c3, x_c2, x_c1))
    assert out.shape == (N, c4_dims // factor, 32, 32), out.shape

    ref = _ref_forward(params, x_c4, x_c3, x_c2, x_c1)
    err = float(jnp.max(jnp.abs(out - ref)))
    scale = float(jnp.max(jnp.abs(ref)))
    # bf16 MXU operands over 3 chained conv stages -> scale-aware tolerance.
    mult = 1e-3 if MXU_DTYPE == jnp.float32 else 2e-2
    tol = mult * (scale + 1.0)
    assert err <= tol, (err, scale, tol)

    print("KERNEL_OK")
</pallas_src>

<mosaic_0001>
module attributes {stable_mosaic.version = 11 : i64} {
  func.func @_fused_decoder_kernel(%arg0: memref<8x128xf32, #tpu.memory_space<vmem>>, %arg1: memref<16x128xf32, #tpu.memory_space<vmem>>, %arg2: memref<32x128xf32, #tpu.memory_space<vmem>>, %arg3: memref<64x128xf32, #tpu.memory_space<vmem>>, %arg4: memref<128x256xbf16, #tpu.memory_space<vmem>>, %arg5: memref<3x16x8xbf16, #tpu.memory_space<vmem>>, %arg6: memref<3x16x16xbf16, #tpu.memory_space<vmem>>, %arg7: memref<3x256x128xbf16, #tpu.memory_space<vmem>>, %arg8: memref<3x128x128xbf16, #tpu.memory_space<vmem>>, %arg9: memref<3x128x128xbf16, #tpu.memory_space<vmem>>, %arg10: memref<1x128xf32, #tpu.memory_space<vmem>>, %arg11: memref<1x128xf32, #tpu.memory_space<vmem>>, %arg12: memref<128x256xbf16, #tpu.memory_space<vmem>>, %arg13: memref<3x32x16xbf16, #tpu.memory_space<vmem>>, %arg14: memref<3x32x32xbf16, #tpu.memory_space<vmem>>, %arg15: memref<3x256x256xbf16, #tpu.memory_space<vmem>>, %arg16: memref<3x128x256xbf16, #tpu.memory_space<vmem>>, %arg17: memref<3x256x256xbf16, #tpu.memory_space<vmem>>, %arg18: memref<1x256xf32, #tpu.memory_space<vmem>>, %arg19: memref<1x256xf32, #tpu.memory_space<vmem>>, %arg20: memref<256x512xbf16, #tpu.memory_space<vmem>>, %arg21: memref<3x64x32xbf16, #tpu.memory_space<vmem>>, %arg22: memref<3x64x64xbf16, #tpu.memory_space<vmem>>, %arg23: memref<3x512x512xbf16, #tpu.memory_space<vmem>>, %arg24: memref<3x128x512xbf16, #tpu.memory_space<vmem>>, %arg25: memref<3x512x512xbf16, #tpu.memory_space<vmem>>, %arg26: memref<1x512xf32, #tpu.memory_space<vmem>>, %arg27: memref<1x512xf32, #tpu.memory_space<vmem>>, %arg28: memref<64x512xf32, #tpu.memory_space<vmem>>) attributes {dimension_semantics = [], scalar_prefetch = 0 : i64, scratch_operands = 0 : i64, tpu.core_type = #tpu.core_type<tc>} {
    %c0 = arith.constant 0 : index
    %c0_0 = arith.constant 0 : index
    %0 = vector.load %arg0[%c0, %c0_0] : memref<8x128xf32, #tpu.memory_space<vmem>>, vector<8x128xf32>
    %c0_1 = arith.constant 0 : index
    %c0_2 = arith.constant 0 : index
    %1 = vector.load %arg1[%c0_1, %c0_2] : memref<16x128xf32, #tpu.memory_space<vmem>>, vector<16x128xf32>
    %2 = arith.truncf %0 : vector<8x128xf32> to vector<8x128xbf16>
    %c0_3 = arith.constant 0 : index
    %c0_4 = arith.constant 0 : index
    %3 = vector.load %arg4[%c0_3, %c0_4] : memref<128x256xbf16, #tpu.memory_space<vmem>>, vector<128x256xbf16>
    %cst = arith.constant dense<0.000000e+00> : vector<8x256xf32>
    %4 = tpu.matmul %2, %3, %cst {dimension_numbers = #tpu.dot_dimension_numbers<[1], [0], [0], [1], [0, 0, 1, 1], [], []>} : vector<8x128xbf16>, vector<128x256xbf16>, vector<8x256xf32> -> vector<8x256xf32>
    %5 = arith.truncf %4 : vector<8x256xf32> to vector<8x256xbf16>
    %6 = arith.truncf %1 : vector<16x128xf32> to vector<16x128xbf16>
    %cst_5 = arith.constant 0.000000e+00 : f32
    %7 = vector.broadcast %cst_5 : f32 to vector<16x128xf32>
    %c0_6 = arith.constant 0 : index
    %c0_7 = arith.constant 0 : index
    %c0_8 = arith.constant 0 : index
    %8 = vector.load %arg7[%c0_6, %c0_7, %c0_8] : memref<3x256x128xbf16, #tpu.memory_space<vmem>>, vector<1x256x128xbf16>
    %9 = vector.shape_cast %8 : vector<1x256x128xbf16> to vector<256x128xbf16>
    %cst_9 = arith.constant dense<0.000000e+00> : vector<8x128xf32>
    %10 = tpu.matmul %5, %9, %cst_9 {dimension_numbers = #tpu.dot_dimension_numbers<[1], [0], [0], [1], [0, 0, 1, 1], [], []>} : vector<8x256xbf16>, vector<256x128xbf16>, vector<8x128xf32> -> vector<8x128xf32>
    %11 = arith.truncf %10 : vector<8x128xf32> to vector<8x128xbf16>
    %c0_10 = arith.constant 0 : index
    %c0_11 = arith.constant 0 : index
    %c0_12 = arith.constant 0 : index
    %12 = vector.load %arg5[%c0_10, %c0_11, %c0_12] : memref<3x16x8xbf16, #tpu.memory_space<vmem>>, vector<1x16x8xbf16>
    %13 = vector.shape_cast %12 : vector<1x16x8xbf16> to vector<16x8xbf16>
    %cst_13 = arith.constant dense<0.000000e+00> : vector<16x128xf32>
    %14 = tpu.matmul %13, %11, %cst_13 {dimension_numbers = #tpu.dot_dimension_numbers<[1], [0], [0], [1], [0, 0, 1, 1], [], []>} : vector<16x8xbf16>, vector<8x128xbf16>, vector<16x128xf32> -> vector<16x128xf32>
    %15 = arith.addf %7, %14 : vector<16x128xf32>
    %c0_14 = arith.constant 0 : index
    %c0_15 = arith.constant 0 : index
    %c0_16 = arith.constant 0 : index
    %16 = vector.load %arg6[%c0_14, %c0_15, %c0_16] : memref<3x16x16xbf16, #tpu.memory_space<vmem>>, vector<1x16x16xbf16>
    %17 = vector.shape_cast %16 : vector<1x16x16xbf16> to vector<16x16xbf16>
    %cst_17 = arith.constant dense<0.000000e+00> : vector<16x128xf32>
    %18 = tpu.matmul %17, %6, %cst_17 {dimension_numbers = #tpu.dot_dimension_numbers<[1], [0], [0], [1], [0, 0, 1, 1], [], []>} : vector<16x16xbf16>, vector<16x128xbf16>, vector<16x128xf32> -> vector<16x128xf32>
    %19 = arith.truncf %18 : vector<16x128xf32> to vector<16x128xbf16>
    %c0_18 = arith.constant 0 : index
    %c0_19 = arith.constant 0 : index
    %c0_20 = arith.constant 0 : index
    %20 = vector.load %arg8[%c0_18, %c0_19, %c0_20] : memref<3x128x128xbf16, #tpu.memory_space<vmem>>, vector<1x128x128xbf16>
    %21 = vector.shape_cast %20 : vector<1x128x128xbf16> to vector<128x128xbf16>
    %cst_21 = arith.constant dense<0.000000e+00> : vector<16x128xf32>
    %22 = tpu.matmul %19, %21, %cst_21 {dimension_numbers = #tpu.dot_dimension_numbers<[1], [0], [0], [1], [0, 0, 1, 1], [], []>} : vector<16x128xbf16>, vector<128x128xbf16>, vector<16x128xf32> -> vector<16x128xf32>
    %23 = arith.addf %15, %22 : vector<16x128xf32>
    %c1 = arith.constant 1 : index
    %c0_22 = arith.constant 0 : index
    %c0_23 = arith.constant 0 : index
    %24 = vector.load %arg7[%c1, %c0_22, %c0_23] : memref<3x256x128xbf16, #tpu.memory_space<vmem>>, vector<1x256x128xbf16>
    %25 = vector.shape_cast %24 : vector<1x256x128xbf16> to vector<256x128xbf16>
    %cst_24 = arith.constant dense<0.000000e+00> : vector<8x128xf32>
    %26 = tpu.matmul %5, %25, %cst_24 {dimension_numbers = #tpu.dot_dimension_numbers<[1], [0], [0], [1], [0, 0, 1, 1], [], []>} : vector<8x256xbf16>, vector<256x128xbf16>, vector<8x128xf32> -> vector<8x128xf32>
    %27 = arith.truncf %26 : vector<8x128xf32> to vector<8x128xbf16>
    %c1_25 = arith.constant 1 : index
    %c0_26 = arith.constant 0 : index
    %c0_27 = arith.constant 0 : index
    %28 = vector.load %arg5[%c1_25, %c0_26, %c0_27] : memref<3x16x8xbf16, #tpu.memory_space<vmem>>, vector<1x16x8xbf16>
    %29 = vector.shape_cast %28 : vector<1x16x8xbf16> to vector<16x8xbf16>
    %cst_28 = arith.constant dense<0.000000e+00> : vector<16x128xf32>
    %30 = tpu.matmul %29, %27, %cst_28 {dimension_numbers = #tpu.dot_dimension_numbers<[1], [0], [0], [1], [0, 0, 1, 1], [], []>} : vector<16x8xbf16>, vector<8x128xbf16>, vector<16x128xf32> -> vector<16x128xf32>
    %31 = arith.addf %23, %30 : vector<16x128xf32>
    %c1_29 = arith.constant 1 : index
    %c0_30 = arith.constant 0 : index
    %c0_31 = arith.constant 0 : index
    %32 = vector.load %arg8[%c1_29, %c0_30, %c0_31] : memref<3x128x128xbf16, #tpu.memory_space<vmem>>, vector<1x128x128xbf16>
    %33 = vector.shape_cast %32 : vector<1x128x128xbf16> to vector<128x128xbf16>
    %cst_32 = arith.constant dense<0.000000e+00> : vector<16x128xf32>
    %34 = tpu.matmul %6, %33, %cst_32 {dimension_numbers = #tpu.dot_dimension_numbers<[1], [0], [0], [1], [0, 0, 1, 1], [], []>} : vector<16x128xbf16>, vector<128x128xbf16>, vector<16x128xf32> -> vector<16x128xf32>
    %35 = arith.addf %31, %34 : vector<16x128xf32>
    %c2 = arith.constant 2 : index
    %c0_33 = arith.constant 0 : index
    %c0_34 = arith.constant 0 : index
    %36 = vector.load %arg7[%c2, %c0_33, %c0_34] : memref<3x256x128xbf16, #tpu.memory_space<vmem>>, vector<1x256x128xbf16>
    %37 = vector.shape_cast %36 : vector<1x256x128xbf16> to vector<256x128xbf16>
    %cst_35 = arith.constant dense<0.000000e+00> : vector<8x128xf32>
    %38 = tpu.matmul %5, %37, %cst_35 {dimension_numbers = #tpu.dot_dimension_numbers<[1], [0], [0], [1], [0, 0, 1, 1], [], []>} : vector<8x256xbf16>, vector<256x128xbf16>, vector<8x128xf32> -> vector<8x128xf32>
    %39 = arith.truncf %38 : vector<8x128xf32> to vector<8x128xbf16>
    %c2_36 = arith.constant 2 : index
    %c0_37 = arith.constant 0 : index
    %c0_38 = arith.constant 0 : index
    %40 = vector.load %arg5[%c2_36, %c0_37, %c0_38] : memref<3x16x8xbf16, #tpu.memory_space<vmem>>, vector<1x16x8xbf16>
    %41 = vector.shape_cast %40 : vector<1x16x8xbf16> to vector<16x8xbf16>
    %cst_39 = arith.constant dense<0.000000e+00> : vector<16x128xf32>
    %42 = tpu.matmul %41, %39, %cst_39 {dimension_numbers = #tpu.dot_dimension_numbers<[1], [0], [0], [1], [0, 0, 1, 1], [], []>} : vector<16x8xbf16>, vector<8x128xbf16>, vector<16x128xf32> -> vector<16x128xf32>
    %43 = arith.addf %35, %42 : vector<16x128xf32>
    %c2_40 = arith.constant 2 : index
    %c0_41 = arith.constant 0 : index
    %c0_42 = arith.constant 0 : index
    %44 = vector.load %arg6[%c2_40, %c0_41, %c0_42] : memref<3x16x16xbf16, #tpu.memory_space<vmem>>, vector<1x16x16xbf16>
    %45 = vector.shape_cast %44 : vector<1x16x16xbf16> to vector<16x16xbf16>
    %cst_43 = arith.constant dense<0.000000e+00> : vector<16x128xf32>
    %46 = tpu.matmul %45, %6, %cst_43 {dimension_numbers = #tpu.dot_dimension_numbers<[1], [0], [0], [1], [0, 0, 1, 1], [], []>} : vector<16x16xbf16>, vector<16x128xbf16>, vector<16x128xf32> -> vector<16x128xf32>
    %47 = arith.truncf %46 : vector<16x128xf32> to vector<16x128xbf16>
    %c2_44 = arith.constant 2 : index
    %c0_45 = arith.constant 0 : index
    %c0_46 = arith.constant 0 : index
    %48 = vector.load %arg8[%c2_44, %c0_45, %c0_46] : memref<3x128x128xbf16, #tpu.memory_space<vmem>>, vector<1x128x128xbf16>
    %49 = vector.shape_cast %48 : vector<1x128x128xbf16> to vector<128x128xbf16>
    %cst_47 = arith.constant dense<0.000000e+00> : vector<16x128xf32>
    %50 = tpu.matmul %47, %49, %cst_47 {dimension_numbers = #tpu.dot_dimension_numbers<[1], [0], [0], [1], [0, 0, 1, 1], [], []>} : vector<16x128xbf16>, vector<128x128xbf16>, vector<16x128xf32> -> vector<16x128xf32>
    %51 = arith.addf %43, %50 : vector<16x128xf32>
    %c0_48 = arith.constant 0 : index
    %c0_49 = arith.constant 0 : index
    %52 = vector.load %arg10[%c0_48, %c0_49] : memref<1x128xf32, #tpu.memory_space<vmem>>, vector<1x128xf32>
    %53 = vector.broadcast %52 : vector<1x128xf32> to vector<16x128xf32>
    %54 = arith.addf %51, %53 : vector<16x128xf32>
    %cst_50 = arith.constant 0.000000e+00 : f32
    %55 = vector.broadcast %cst_50 : f32 to vector<16x128xf32>
    %56 = arith.maximumf %54, %55 : vector<16x128xf32>
    %57 = arith.truncf %56 : vector<16x128xf32> to vector<16x128xbf16>
    %cst_51 = arith.constant 0.000000e+00 : f32
    %58 = vector.broadcast %cst_51 : f32 to vector<16x128xf32>
    %c0_52 = arith.constant 0 : index
    %c0_53 = arith.constant 0 : index
    %c0_54 = arith.constant 0 : index
    %59 = vector.load %arg6[%c0_52, %c0_53, %c0_54] : memref<3x16x16xbf16, #tpu.memory_space<vmem>>, vector<1x16x16xbf16>
    %60 = vector.shape_cast %59 : vector<1x16x16xbf16> to vector<16x16xbf16>
    %cst_55 = arith.constant dense<0.000000e+00> : vector<16x128xf32>
    %61 = tpu.matmul %60, %57, %cst_55 {dimension_numbers = #tpu.dot_dimension_numbers<[1], [0], [0], [1], [0, 0, 1, 1], [], []>} : vector<16x16xbf16>, vector<16x128xbf16>, vector<16x128xf32> -> vector<16x128xf32>
    %62 = arith.truncf %61 : vector<16x128xf32> to vector<16x128xbf16>
    %c0_56 = arith.constant 0 : index
    %c0_57 = arith.constant 0 : index
    %c0_58 = arith.constant 0 : index
    %63 = vector.load %arg9[%c0_56, %c0_57, %c0_58] : memref<3x128x128xbf16, #tpu.memory_space<vmem>>, vector<1x128x128xbf16>
    %64 = vector.shape_cast %63 : vector<1x128x128xbf16> to vector<128x128xbf16>
    %cst_59 = arith.constant dense<0.000000e+00> : vector<16x128xf32>
    %65 = tpu.matmul %62, %64, %cst_59 {dimension_numbers = #tpu.dot_dimension_numbers<[1], [0], [0], [1], [0, 0, 1, 1], [], []>} : vector<16x128xbf16>, vector<128x128xbf16>, vector<16x128xf32> -> vector<16x128xf32>
    %66 = arith.addf %58, %65 : vector<16x128xf32>
    %c1_60 = arith.constant 1 : index
    %c0_61 = arith.constant 0 : index
    %c0_62 = arith.constant 0 : index
    %67 = vector.load %arg9[%c1_60, %c0_61, %c0_62] : memref<3x128x128xbf16, #tpu.memory_space<vmem>>, vector<1x128x128xbf16>
    %68 = vector.shape_cast %67 : vector<1x128x128xbf16> to vector<128x128xbf16>
    %cst_63 = arith.constant dense<0.000000e+00> : vector<16x128xf32>
    %69 = tpu.matmul %57, %68, %cst_63 {dimension_numbers = #tpu.dot_dimension_numbers<[1], [0], [0], [1], [0, 0, 1, 1], [], []>} : vector<16x128xbf16>, vector<128x128xbf16>, vector<16x128xf32> -> vector<16x128xf32>
    %70 = arith.addf %66, %69 : vector<16x128xf32>
    %c2_64 = arith.constant 2 : index
    %c0_65 = arith.constant 0 : index
    %c0_66 = arith.constant 0 : index
    %71 = vector.load %arg6[%c2_64, %c0_65, %c0_66] : memref<3x16x16xbf16, #tpu.memory_space<vmem>>, vector<1x16x16xbf16>
    %72 = vector.shape_cast %71 : vector<1x16x16xbf16> to vector<16x16xbf16>
    %cst_67 = arith.constant dense<0.000000e+00> : vector<16x128xf32>
    %73 = tpu.matmul %72, %57, %cst_67 {dimension_numbers = #tpu.dot_dimension_numbers<[1], [0], [0], [1], [0, 0, 1, 1], [], []>} : vector<16x16xbf16>, vector<16x128xbf16>, vector<16x128xf32> -> vector<16x128xf32>
    %74 = arith.truncf %73 : vector<16x128xf32> to vector<16x128xbf16>
    %c2_68 = arith.constant 2 : index
    %c0_69 = arith.constant 0 : index
    %c0_70 = arith.constant 0 : index
    %75 = vector.load %arg9[%c2_68, %c0_69, %c0_70] : memref<3x128x128xbf16, #tpu.memory_space<vmem>>, vector<1x128x128xbf16>
    %76 = vector.shape_cast %75 : vector<1x128x128xbf16> to vector<128x128xbf16>
    %cst_71 = arith.constant dense<0.000000e+00> : vector<16x128xf32>
    %77 = tpu.matmul %74, %76, %cst_71 {dimension_numbers = #tpu.dot_dimension_numbers<[1], [0], [0], [1], [0, 0, 1, 1], [], []>} : vector<16x128xbf16>, vector<128x128xbf16>, vector<16x128xf32> -> vector<16x128xf32>
    %78 = arith.addf %70, %77 : vector<16x128xf32>
    %c0_72 = arith.constant 0 : index
    %c0_73 = arith.constant 0 : index
    %79 = vector.load %arg11[%c0_72, %c0_73] : memref<1x128xf32, #tpu.memory_space<vmem>>, vector<1x128xf32>
    %80 = vector.broadcast %79 : vector<1x128xf32> to vector<16x128xf32>
    %81 = arith.addf %78, %80 : vector<16x128xf32>
    %cst_74 = arith.constant 0.000000e+00 : f32
    %82 = vector.broadcast %cst_74 : f32 to vector<16x128xf32>
    %83 = arith.maximumf %81, %82 : vector<16x128xf32>
    %c0_75 = arith.constant 0 : index
    %c0_76 = arith.constant 0 : index
    %84 = vector.load %arg2[%c0_75, %c0_76] : memref<32x128xf32, #tpu.memory_space<vmem>>, vector<32x128xf32>
    %85 = arith.truncf %83 : vector<16x128xf32> to vector<16x128xbf16>
    %c0_77 = arith.constant 0 : index
    %c0_78 = arith.constant 0 : index
    %86 = vector.load %arg12[%c0_77, %c0_78] : memref<128x256xbf16, #tpu.memory_space<vmem>>, vector<128x256xbf16>
    %cst_79 = arith.constant dense<0.000000e+00> : vector<16x256xf32>
    %87 = tpu.matmul %85, %86, %cst_79 {dimension_numbers = #tpu.dot_dimension_numbers<[1], [0], [0], [1], [0, 0, 1, 1], [], []>} : vector<16x128xbf16>, vector<128x256xbf16>, vector<16x256xf32> -> vector<16x256xf32>
    %88 = arith.truncf %87 : vector<16x256xf32> to vector<16x256xbf16>
    %89 = arith.truncf %84 : vector<32x128xf32> to vector<32x128xbf16>
    %cst_80 = arith.constant 0.000000e+00 : f32
    %90 = vector.broadcast %cst_80 : f32 to vector<32x256xf32>
    %c0_81 = arith.constant 0 : index
    %c0_82 = arith.constant 0 : index
    %c0_83 = arith.constant 0 : index
    %91 = vector.load %arg15[%c0_81, %c0_82, %c0_83] : memref<3x256x256xbf16, #tpu.memory_space<vmem>>, vector<1x256x256xbf16>
    %92 = vector.shape_cast %91 : vector<1x256x256xbf16> to vector<256x256xbf16>
    %cst_84 = arith.constant dense<0.000000e+00> : vector<16x256xf32>
    %93 = tpu.matmul %88, %92, %cst_84 {dimension_numbers = #tpu.dot_dimension_numbers<[1], [0], [0], [1], [0, 0, 1, 1], [], []>} : vector<16x256xbf16>, vector<256x256xbf16>, vector<16x256xf32> -> vector<16x256xf32>
    %94 = arith.truncf %93 : vector<16x256xf32> to vector<16x256xbf16>
    %c0_85 = arith.constant 0 : index
    %c0_86 = arith.constant 0 : index
    %c0_87 = arith.constant 0 : index
    %95 = vector.load %arg13[%c0_85, %c0_86, %c0_87] : memref<3x32x16xbf16, #tpu.memory_space<vmem>>, vector<1x32x16xbf16>
    %96 = vector.shape_cast %95 : vector<1x32x16xbf16> to vector<32x16xbf16>
    %cst_88 = arith.constant dense<0.000000e+00> : vector<32x256xf32>
    %97 = tpu.matmul %96, %94, %cst_88 {dimension_numbers = #tpu.dot_dimension_numbers<[1], [0], [0], [1], [0, 0, 1, 1], [], []>} : vector<32x16xbf16>, vector<16x256xbf16>, vector<32x256xf32> -> vector<32x256xf32>
    %98 = arith.addf %90, %97 : vector<32x256xf32>
    %c0_89 = arith.constant 0 : index
    %c0_90 = arith.constant 0 : index
    %c0_91 = arith.constant 0 : index
    %99 = vector.load %arg14[%c0_89, %c0_90, %c0_91] : memref<3x32x32xbf16, #tpu.memory_space<vmem>>, vector<1x32x32xbf16>
    %100 = vector.shape_cast %99 : vector<1x32x32xbf16> to vector<32x32xbf16>
    %cst_92 = arith.constant dense<0.000000e+00> : vector<32x128xf32>
    %101 = tpu.matmul %100, %89, %cst_92 {dimension_numbers = #tpu.dot_dimension_numbers<[1], [0], [0], [1], [0, 0, 1, 1], [], []>} : vector<32x32xbf16>, vector<32x128xbf16>, vector<32x128xf32> -> vector<32x128xf32>
    %102 = arith.truncf %101 : vector<32x128xf32> to vector<32x128xbf16>
    %c0_93 = arith.constant 0 : index
    %c0_94 = arith.constant 0 : index
    %c0_95 = arith.constant 0 : index
    %103 = vector.load %arg16[%c0_93, %c0_94, %c0_95] : memref<3x128x256xbf16, #tpu.memory_space<vmem>>, vector<1x128x256xbf16>
    %104 = vector.shape_cast %103 : vector<1x128x256xbf16> to vector<128x256xbf16>
    %cst_96 = arith.constant dense<0.000000e+00> : vector<32x256xf32>
    %105 = tpu.matmul %102, %104, %cst_96 {dimension_numbers = #tpu.dot_dimension_numbers<[1], [0], [0], [1], [0, 0, 1, 1], [], []>} : vector<32x128xbf16>, vector<128x256xbf16>, vector<32x256xf32> -> vector<32x256xf32>
    %106 = arith.addf %98, %105 : vector<32x256xf32>
    %c1_97 = arith.constant 1 : index
    %c0_98 = arith.constant 0 : index
    %c0_99 = arith.constant 0 : index
    %107 = vector.load %arg15[%c1_97, %c0_98, %c0_99] : memref<3x256x256xbf16, #tpu.memory_space<vmem>>, vector<1x256x256xbf16>
    %108 = vector.shape_cast %107 : vector<1x256x256xbf16> to vector<256x256xbf16>
    %cst_100 = arith.constant dense<0.000000e+00> : vector<16x256xf32>
    %109 = tpu.matmul %88, %108, %cst_100 {dimension_numbers = #tpu.dot_dimension_numbers<[1], [0], [0], [1], [0, 0, 1, 1], [], []>} : vector<16x256xbf16>, vector<256x256xbf16>, vector<16x256xf32> -> vector<16x256xf32>
    %110 = arith.truncf %109 : vector<16x256xf32> to vector<16x256xbf16>
    %c1_101 = arith.constant 1 : index
    %c0_102 = arith.constant 0 : index
    %c0_103 = arith.constant 0 : index
    %111 = vector.load %arg13[%c1_101, %c0_102, %c0_103] : memref<3x32x16xbf16, #tpu.memory_space<vmem>>, vector<1x32x16xbf16>
    %112 = vector.shape_cast %111 : vector<1x32x16xbf16> to vector<32x16xbf16>
    %cst_104 = arith.constant dense<0.000000e+00> : vector<32x256xf32>
    %113 = tpu.matmul %112, %110, %cst_104 {dimension_numbers = #tpu.dot_dimension_numbers<[1], [0], [0], [1], [0, 0, 1, 1], [], []>} : vector<32x16xbf16>, vector<16x256xbf16>, vector<32x256xf32> -> vector<32x256xf32>
    %114 = arith.addf %106, %113 : vector<32x256xf32>
    %c1_105 = arith.constant 1 : index
    %c0_106 = arith.constant 0 : index
    %c0_107 = arith.constant 0 : index
    %115 = vector.load %arg16[%c1_105, %c0_106, %c0_107] : memref<3x128x256xbf16, #tpu.memory_space<vmem>>, vector<1x128x256xbf16>
    %116 = vector.shape_cast %115 : vector<1x128x256xbf16> to vector<128x256xbf16>
    %cst_108 = arith.constant dense<0.000000e+00> : vector<32x256xf32>
    %117 = tpu.matmul %89, %116, %cst_108 {dimension_numbers = #tpu.dot_dimension_numbers<[1], [0], [0], [1], [0, 0, 1, 1], [], []>} : vector<32x128xbf16>, vector<128x256xbf16>, vector<32x256xf32> -> vector<32x256xf32>
    %118 = arith.addf %114, %117 : vector<32x256xf32>
    %c2_109 = arith.constant 2 : index
    %c0_110 = arith.constant 0 : index
    %c0_111 = arith.constant 0 : index
    %119 = vector.load %arg15[%c2_109, %c0_110, %c0_111] : memref<3x256x256xbf16, #tpu.memory_space<vmem>>, vector<1x256x256xbf16>
    %120 = vector.shape_cast %119 : vector<1x256x256xbf16> to vector<256x256xbf16>
    %cst_112 = arith.constant dense<0.000000e+00> : vector<16x256xf32>
    %121 = tpu.matmul %88, %120, %cst_112 {dimension_numbers = #tpu.dot_dimension_numbers<[1], [0], [0], [1], [0, 0, 1, 1], [], []>} : vector<16x256xbf16>, vector<256x256xbf16>, vector<16x256xf32> -> vector<16x256xf32>
    %122 = arith.truncf %121 : vector<16x256xf32> to vector<16x256xbf16>
    %c2_113 = arith.constant 2 : index
    %c0_114 = arith.constant 0 : index
    %c0_115 = arith.constant 0 : index
    %123 = vector.load %arg13[%c2_113, %c0_114, %c0_115] : memref<3x32x16xbf16, #tpu.memory_space<vmem>>, vector<1x32x16xbf16>
    %124 = vector.shape_cast %123 : vector<1x32x16xbf16> to vector<32x16xbf16>
    %cst_116 = arith.constant dense<0.000000e+00> : vector<32x256xf32>
    %125 = tpu.matmul %124, %122, %cst_116 {dimension_numbers = #tpu.dot_dimension_numbers<[1], [0], [0], [1], [0, 0, 1, 1], [], []>} : vector<32x16xbf16>, vector<16x256xbf16>, vector<32x256xf32> -> vector<32x256xf32>
    %126 = arith.addf %118, %125 : vector<32x256xf32>
    %c2_117 = arith.constant 2 : index
    %c0_118 = arith.constant 0 : index
    %c0_119 = arith.constant 0 : index
    %127 = vector.load %arg14[%c2_117, %c0_118, %c0_119] : memref<3x32x32xbf16, #tpu.memory_space<vmem>>, vector<1x32x32xbf16>
    %128 = vector.shape_cast %127 : vector<1x32x32xbf16> to vector<32x32xbf16>
    %cst_120 = arith.constant dense<0.000000e+00> : vector<32x128xf32>
    %129 = tpu.matmul %128, %89, %cst_120 {dimension_numbers = #tpu.dot_dimension_numbers<[1], [0], [0], [1], [0, 0, 1, 1], [], []>} : vector<32x32xbf16>, vector<32x128xbf16>, vector<32x128xf32> -> vector<32x128xf32>
    %130 = arith.truncf %129 : vector<32x128xf32> to vector<32x128xbf16>
    %c2_121 = arith.constant 2 : index
    %c0_122 = arith.constant 0 : index
    %c0_123 = arith.constant 0 : index
    %131 = vector.load %arg16[%c2_121, %c0_122, %c0_123] : memref<3x128x256xbf16, #tpu.memory_space<vmem>>, vector<1x128x256xbf16>
    %132 = vector.shape_cast %131 : vector<1x128x256xbf16> to vector<128x256xbf16>
    %cst_124 = arith.constant dense<0.000000e+00> : vector<32x256xf32>
    %133 = tpu.matmul %130, %132, %cst_124 {dimension_numbers = #tpu.dot_dimension_numbers<[1], [0], [0], [1], [0, 0, 1, 1], [], []>} : vector<32x128xbf16>, vector<128x256xbf16>, vector<32x256xf32> -> vector<32x256xf32>
    %134 = arith.addf %126, %133 : vector<32x256xf32>
    %c0_125 = arith.constant 0 : index
    %c0_126 = arith.constant 0 : index
    %135 = vector.load %arg18[%c0_125, %c0_126] : memref<1x256xf32, #tpu.memory_space<vmem>>, vector<1x256xf32>
    %136 = vector.broadcast %135 : vector<1x256xf32> to vector<32x256xf32>
    %137 = arith.addf %134, %136 : vector<32x256xf32>
    %cst_127 = arith.constant 0.000000e+00 : f32
    %138 = vector.broadcast %cst_127 : f32 to vector<32x256xf32>
    %139 = arith.maximumf %137, %138 : vector<32x256xf32>
    %140 = arith.truncf %139 : vector<32x256xf32> to vector<32x256xbf16>
    %cst_128 = arith.constant 0.000000e+00 : f32
    %141 = vector.broadcast %cst_128 : f32 to vector<32x256xf32>
    %c0_129 = arith.constant 0 : index
    %c0_130 = arith.constant 0 : index
    %c0_131 = arith.constant 0 : index
    %142 = vector.load %arg14[%c0_129, %c0_130, %c0_131] : memref<3x32x32xbf16, #tpu.memory_space<vmem>>, vector<1x32x32xbf16>
    %143 = vector.shape_cast %142 : vector<1x32x32xbf16> to vector<32x32xbf16>
    %cst_132 = arith.constant dense<0.000000e+00> : vector<32x256xf32>
    %144 = tpu.matmul %143, %140, %cst_132 {dimension_numbers = #tpu.dot_dimension_numbers<[1], [0], [0], [1], [0, 0, 1, 1], [], []>} : vector<32x32xbf16>, vector<32x256xbf16>, vector<32x256xf32> -> vector<32x256xf32>
    %145 = arith.truncf %144 : vector<32x256xf32> to vector<32x256xbf16>
    %c0_133 = arith.constant 0 : index
    %c0_134 = arith.constant 0 : index
    %c0_135 = arith.constant 0 : index
    %146 = vector.load %arg17[%c0_133, %c0_134, %c0_135] : memref<3x256x256xbf16, #tpu.memory_space<vmem>>, vector<1x256x256xbf16>
    %147 = vector.shape_cast %146 : vector<1x256x256xbf16> to vector<256x256xbf16>
    %cst_136 = arith.constant dense<0.000000e+00> : vector<32x256xf32>
    %148 = tpu.matmul %145, %147, %cst_136 {dimension_numbers = #tpu.dot_dimension_numbers<[1], [0], [0], [1], [0, 0, 1, 1], [], []>} : vector<32x256xbf16>, vector<256x256xbf16>, vector<32x256xf32> -> vector<32x256xf32>
    %149 = arith.addf %141, %148 : vector<32x256xf32>
    %c1_137 = arith.constant 1 : index
    %c0_138 = arith.constant 0 : index
    %c0_139 = arith.constant 0 : index
    %150 = vector.load %arg17[%c1_137, %c0_138, %c0_139] : memref<3x256x256xbf16, #tpu.memory_space<vmem>>, vector<1x256x256xbf16>
    %151 = vector.shape_cast %150 : vector<1x256x256xbf16> to vector<256x256xbf16>
    %cst_140 = arith.constant dense<0.000000e+00> : vector<32x256xf32>
    %152 = tpu.matmul %140, %151, %cst_140 {dimension_numbers = #tpu.dot_dimension_numbers<[1], [0], [0], [1], [0, 0, 1, 1], [], []>} : vector<32x256xbf16>, vector<256x256xbf16>, vector<32x256xf32> -> vector<32x256xf32>
    %153 = arith.addf %149, %152 : vector<32x256xf32>
    %c2_141 = arith.constant 2 : index
    %c0_142 = arith.constant 0 : index
    %c0_143 = arith.constant 0 : index
    %154 = vector.load %arg14[%c2_141, %c0_142, %c0_143] : memref<3x32x32xbf16, #tpu.memory_space<vmem>>, vector<1x32x32xbf16>
    %155 = vector.shape_cast %154 : vector<1x32x32xbf16> to vector<32x32xbf16>
    %cst_144 = arith.constant dense<0.000000e+00> : vector<32x256xf32>
    %156 = tpu.matmul %155, %140, %cst_144 {dimension_numbers = #tpu.dot_dimension_numbers<[1], [0], [0], [1], [0, 0, 1, 1], [], []>} : vector<32x32xbf16>, vector<32x256xbf16>, vector<32x256xf32> -> vector<32x256xf32>
    %157 = arith.truncf %156 : vector<32x256xf32> to vector<32x256xbf16>
    %c2_145 = arith.constant 2 : index
    %c0_146 = arith.constant 0 : index
    %c0_147 = arith.constant 0 : index
    %158 = vector.load %arg17[%c2_145, %c0_146, %c0_147] : memref<3x256x256xbf16, #tpu.memory_space<vmem>>, vector<1x256x256xbf16>
    %159 = vector.shape_cast %158 : vector<1x256x256xbf16> to vector<256x256xbf16>
    %cst_148 = arith.constant dense<0.000000e+00> : vector<32x256xf32>
    %160 = tpu.matmul %157, %159, %cst_148 {dimension_numbers = #tpu.dot_dimension_numbers<[1], [0], [0], [1], [0, 0, 1, 1], [], []>} : vector<32x256xbf16>, vector<256x256xbf16>, vector<32x256xf32> -> vector<32x256xf32>
    %161 = arith.addf %153, %160 : vector<32x256xf32>
    %c0_149 = arith.constant 0 : index
    %c0_150 = arith.constant 0 : index
    %162 = vector.load %arg19[%c0_149, %c0_150] : memref<1x256xf32, #tpu.memory_space<vmem>>, vector<1x256xf32>
    %163 = vector.broadcast %162 : vector<1x256xf32> to vector<32x256xf32>
    %164 = arith.addf %161, %163 : vector<32x256xf32>
    %cst_151 = arith.constant 0.000000e+00 : f32
    %165 = vector.broadcast %cst_151 : f32 to vector<32x256xf32>
    %166 = arith.maximumf %164, %165 : vector<32x256xf32>
    %c0_152 = arith.constant 0 : index
    %c0_153 = arith.constant 0 : index
    %167 = vector.load %arg3[%c0_152, %c0_153] : memref<64x128xf32, #tpu.memory_space<vmem>>, vector<64x128xf32>
    %168 = arith.truncf %166 : vector<32x256xf32> to vector<32x256xbf16>
    %c0_154 = arith.constant 0 : index
    %c0_155 = arith.constant 0 : index
    %169 = vector.load %arg20[%c0_154, %c0_155] : memref<256x512xbf16, #tpu.memory_space<vmem>>, vector<256x512xbf16>
    %cst_156 = arith.constant dense<0.000000e+00> : vector<32x512xf32>
    %170 = tpu.matmul %168, %169, %cst_156 {dimension_numbers = #tpu.dot_dimension_numbers<[1], [0], [0], [1], [0, 0, 1, 1], [], []>} : vector<32x256xbf16>, vector<256x512xbf16>, vector<32x512xf32> -> vector<32x512xf32>
    %171 = arith.truncf %170 : vector<32x512xf32> to vector<32x512xbf16>
    %172 = arith.truncf %167 : vector<64x128xf32> to vector<64x128xbf16>
    %cst_157 = arith.constant 0.000000e+00 : f32
    %173 = vector.broadcast %cst_157 : f32 to vector<64x512xf32>
    %c0_158 = arith.constant 0 : index
    %c0_159 = arith.constant 0 : index
    %c0_160 = arith.constant 0 : index
    %174 = vector.load %arg23[%c0_158, %c0_159, %c0_160] : memref<3x512x512xbf16, #tpu.memory_space<vmem>>, vector<1x512x512xbf16>
    %175 = vector.shape_cast %174 : vector<1x512x512xbf16> to vector<512x512xbf16>
    %cst_161 = arith.constant dense<0.000000e+00> : vector<32x512xf32>
    %176 = tpu.matmul %171, %175, %cst_161 {dimension_numbers = #tpu.dot_dimension_numbers<[1], [0], [0], [1], [0, 0, 1, 1], [], []>} : vector<32x512xbf16>, vector<512x512xbf16>, vector<32x512xf32> -> vector<32x512xf32>
    %177 = arith.truncf %176 : vector<32x512xf32> to vector<32x512xbf16>
    %c0_162 = arith.constant 0 : index
    %c0_163 = arith.constant 0 : index
    %c0_164 = arith.constant 0 : index
    %178 = vector.load %arg21[%c0_162, %c0_163, %c0_164] : memref<3x64x32xbf16, #tpu.memory_space<vmem>>, vector<1x64x32xbf16>
    %179 = vector.shape_cast %178 : vector<1x64x32xbf16> to vector<64x32xbf16>
    %cst_165 = arith.constant dense<0.000000e+00> : vector<64x512xf32>
    %180 = tpu.matmul %179, %177, %cst_165 {dimension_numbers = #tpu.dot_dimension_numbers<[1], [0], [0], [1], [0, 0, 1, 1], [], []>} : vector<64x32xbf16>, vector<32x512xbf16>, vector<64x512xf32> -> vector<64x512xf32>
    %181 = arith.addf %173, %180 : vector<64x512xf32>
    %c0_166 = arith.constant 0 : index
    %c0_167 = arith.constant 0 : index
    %c0_168 = arith.constant 0 : index
    %182 = vector.load %arg22[%c0_166, %c0_167, %c0_168] : memref<3x64x64xbf16, #tpu.memory_space<vmem>>, vector<1x64x64xbf16>
    %183 = vector.shape_cast %182 : vector<1x64x64xbf16> to vector<64x64xbf16>
    %cst_169 = arith.constant dense<0.000000e+00> : vector<64x128xf32>
    %184 = tpu.matmul %183, %172, %cst_169 {dimension_numbers = #tpu.dot_dimension_numbers<[1], [0], [0], [1], [0, 0, 1, 1], [], []>} : vector<64x64xbf16>, vector<64x128xbf16>, vector<64x128xf32> -> vector<64x128xf32>
    %185 = arith.truncf %184 : vector<64x128xf32> to vector<64x128xbf16>
    %c0_170 = arith.constant 0 : index
    %c0_171 = arith.constant 0 : index
    %c0_172 = arith.constant 0 : index
    %186 = vector.load %arg24[%c0_170, %c0_171, %c0_172] : memref<3x128x512xbf16, #tpu.memory_space<vmem>>, vector<1x128x512xbf16>
    %187 = vector.shape_cast %186 : vector<1x128x512xbf16> to vector<128x512xbf16>
    %cst_173 = arith.constant dense<0.000000e+00> : vector<64x512xf32>
    %188 = tpu.matmul %185, %187, %cst_173 {dimension_numbers = #tpu.dot_dimension_numbers<[1], [0], [0], [1], [0, 0, 1, 1], [], []>} : vector<64x128xbf16>, vector<128x512xbf16>, vector<64x512xf32> -> vector<64x512xf32>
    %189 = arith.addf %181, %188 : vector<64x512xf32>
    %c1_174 = arith.constant 1 : index
    %c0_175 = arith.constant 0 : index
    %c0_176 = arith.constant 0 : index
    %190 = vector.load %arg23[%c1_174, %c0_175, %c0_176] : memref<3x512x512xbf16, #tpu.memory_space<vmem>>, vector<1x512x512xbf16>
    %191 = vector.shape_cast %190 : vector<1x512x512xbf16> to vector<512x512xbf16>
    %cst_177 = arith.constant dense<0.000000e+00> : vector<32x512xf32>
    %192 = tpu.matmul %171, %191, %cst_177 {dimension_numbers = #tpu.dot_dimension_numbers<[1], [0], [0], [1], [0, 0, 1, 1], [], []>} : vector<32x512xbf16>, vector<512x512xbf16>, vector<32x512xf32> -> vector<32x512xf32>
    %193 = arith.truncf %192 : vector<32x512xf32> to vector<32x512xbf16>
    %c1_178 = arith.constant 1 : index
    %c0_179 = arith.constant 0 : index
    %c0_180 = arith.constant 0 : index
    %194 = vector.load %arg21[%c1_178, %c0_179, %c0_180] : memref<3x64x32xbf16, #tpu.memory_space<vmem>>, vector<1x64x32xbf16>
    %195 = vector.shape_cast %194 : vector<1x64x32xbf16> to vector<64x32xbf16>
    %cst_181 = arith.constant dense<0.000000e+00> : vector<64x512xf32>
    %196 = tpu.matmul %195, %193, %cst_181 {dimension_numbers = #tpu.dot_dimension_numbers<[1], [0], [0], [1], [0, 0, 1, 1], [], []>} : vector<64x32xbf16>, vector<32x512xbf16>, vector<64x512xf32> -> vector<64x512xf32>
    %197 = arith.addf %189, %196 : vector<64x512xf32>
    %c1_182 = arith.constant 1 : index
    %c0_183 = arith.constant 0 : index
    %c0_184 = arith.constant 0 : index
    %198 = vector.load %arg24[%c1_182, %c0_183, %c0_184] : memref<3x128x512xbf16, #tpu.memory_space<vmem>>, vector<1x128x512xbf16>
    %199 = vector.shape_cast %198 : vector<1x128x512xbf16> to vector<128x512xbf16>
    %cst_185 = arith.constant dense<0.000000e+00> : vector<64x512xf32>
    %200 = tpu.matmul %172, %199, %cst_185 {dimension_numbers = #tpu.dot_dimension_numbers<[1], [0], [0], [1], [0, 0, 1, 1], [], []>} : vector<64x128xbf16>, vector<128x512xbf16>, vector<64x512xf32> -> vector<64x512xf32>
    %201 = arith.addf %197, %200 : vector<64x512xf32>
    %c2_186 = arith.constant 2 : index
    %c0_187 = arith.constant 0 : index
    %c0_188 = arith.constant 0 : index
    %202 = vector.load %arg23[%c2_186, %c0_187, %c0_188] : memref<3x512x512xbf16, #tpu.memory_space<vmem>>, vector<1x512x512xbf16>
    %203 = vector.shape_cast %202 : vector<1x512x512xbf16> to vector<512x512xbf16>
    %cst_189 = arith.constant dense<0.000000e+00> : vector<32x512xf32>
    %204 = tpu.matmul %171, %203, %cst_189 {dimension_numbers = #tpu.dot_dimension_numbers<[1], [0], [0], [1], [0, 0, 1, 1], [], []>} : vector<32x512xbf16>, vector<512x512xbf16>, vector<32x512xf32> -> vector<32x512xf32>
    %205 = arith.truncf %204 : vector<32x512xf32> to vector<32x512xbf16>
    %c2_190 = arith.constant 2 : index
    %c0_191 = arith.constant 0 : index
    %c0_192 = arith.constant 0 : index
    %206 = vector.load %arg21[%c2_190, %c0_191, %c0_192] : memref<3x64x32xbf16, #tpu.memory_space<vmem>>, vector<1x64x32xbf16>
    %207 = vector.shape_cast %206 : vector<1x64x32xbf16> to vector<64x32xbf16>
    %cst_193 = arith.constant dense<0.000000e+00> : vector<64x512xf32>
    %208 = tpu.matmul %207, %205, %cst_193 {dimension_numbers = #tpu.dot_dimension_numbers<[1], [0], [0], [1], [0, 0, 1, 1], [], []>} : vector<64x32xbf16>, vector<32x512xbf16>, vector<64x512xf32> -> vector<64x512xf32>
    %209 = arith.addf %201, %208 : vector<64x512xf32>
    %c2_194 = arith.constant 2 : index
    %c0_195 = arith.constant 0 : index
    %c0_196 = arith.constant 0 : index
    %210 = vector.load %arg22[%c2_194, %c0_195, %c0_196] : memref<3x64x64xbf16, #tpu.memory_space<vmem>>, vector<1x64x64xbf16>
    %211 = vector.shape_cast %210 : vector<1x64x64xbf16> to vector<64x64xbf16>
    %cst_197 = arith.constant dense<0.000000e+00> : vector<64x128xf32>
    %212 = tpu.matmul %211, %172, %cst_197 {dimension_numbers = #tpu.dot_dimension_numbers<[1], [0], [0], [1], [0, 0, 1, 1], [], []>} : vector<64x64xbf16>, vector<64x128xbf16>, vector<64x128xf32> -> vector<64x128xf32>
    %213 = arith.truncf %212 : vector<64x128xf32> to vector<64x128xbf16>
    %c2_198 = arith.constant 2 : index
    %c0_199 = arith.constant 0 : index
    %c0_200 = arith.constant 0 : index
    %214 = vector.load %arg24[%c2_198, %c0_199, %c0_200] : memref<3x128x512xbf16, #tpu.memory_space<vmem>>, vector<1x128x512xbf16>
    %215 = vector.shape_cast %214 : vector<1x128x512xbf16> to vector<128x512xbf16>
    %cst_201 = arith.constant dense<0.000000e+00> : vector<64x512xf32>
    %216 = tpu.matmul %213, %215, %cst_201 {dimension_numbers = #tpu.dot_dimension_numbers<[1], [0], [0], [1], [0, 0, 1, 1], [], []>} : vector<64x128xbf16>, vector<128x512xbf16>, vector<64x512xf32> -> vector<64x512xf32>
    %217 = arith.addf %209, %216 : vector<64x512xf32>
    %c0_202 = arith.constant 0 : index
    %c0_203 = arith.constant 0 : index
    %218 = vector.load %arg26[%c0_202, %c0_203] : memref<1x512xf32, #tpu.memory_space<vmem>>, vector<1x512xf32>
    %219 = vector.broadcast %218 : vector<1x512xf32> to vector<64x512xf32>
    %220 = arith.addf %217, %219 : vector<64x512xf32>
    %cst_204 = arith.constant 0.000000e+00 : f32
    %221 = vector.broadcast %cst_204 : f32 to vector<64x512xf32>
    %222 = arith.maximumf %220, %221 : vector<64x512xf32>
    %223 = arith.truncf %222 : vector<64x512xf32> to vector<64x512xbf16>
    %cst_205 = arith.constant 0.000000e+00 : f32
    %224 = vector.broadcast %cst_205 : f32 to vector<64x512xf32>
    %c0_206 = arith.constant 0 : index
    %c0_207 = arith.constant 0 : index
    %c0_208 = arith.constant 0 : index
    %225 = vector.load %arg22[%c0_206, %c0_207, %c0_208] : memref<3x64x64xbf16, #tpu.memory_space<vmem>>, vector<1x64x64xbf16>
    %226 = vector.shape_cast %225 : vector<1x64x64xbf16> to vector<64x64xbf16>
    %cst_209 = arith.constant dense<0.000000e+00> : vector<64x512xf32>
    %227 = tpu.matmul %226, %223, %cst_209 {dimension_numbers = #tpu.dot_dimension_numbers<[1], [0], [0], [1], [0, 0, 1, 1], [], []>} : vector<64x64xbf16>, vector<64x512xbf16>, vector<64x512xf32> -> vector<64x512xf32>
    %228 = arith.truncf %227 : vector<64x512xf32> to vector<64x512xbf16>
    %c0_210 = arith.constant 0 : index
    %c0_211 = arith.constant 0 : index
    %c0_212 = arith.constant 0 : index
    %229 = vector.load %arg25[%c0_210, %c0_211, %c0_212] : memref<3x512x512xbf16, #tpu.memory_space<vmem>>, vector<1x512x512xbf16>
    %230 = vector.shape_cast %229 : vector<1x512x512xbf16> to vector<512x512xbf16>
    %cst_213 = arith.constant dense<0.000000e+00> : vector<64x512xf32>
    %231 = tpu.matmul %228, %230, %cst_213 {dimension_numbers = #tpu.dot_dimension_numbers<[1], [0], [0], [1], [0, 0, 1, 1], [], []>} : vector<64x512xbf16>, vector<512x512xbf16>, vector<64x512xf32> -> vector<64x512xf32>
    %232 = arith.addf %224, %231 : vector<64x512xf32>
    %c1_214 = arith.constant 1 : index
    %c0_215 = arith.constant 0 : index
    %c0_216 = arith.constant 0 : index
    %233 = vector.load %arg25[%c1_214, %c0_215, %c0_216] : memref<3x512x512xbf16, #tpu.memory_space<vmem>>, vector<1x512x512xbf16>
    %234 = vector.shape_cast %233 : vector<1x512x512xbf16> to vector<512x512xbf16>
    %cst_217 = arith.constant dense<0.000000e+00> : vector<64x512xf32>
    %235 = tpu.matmul %223, %234, %cst_217 {dimension_numbers = #tpu.dot_dimension_numbers<[1], [0], [0], [1], [0, 0, 1, 1], [], []>} : vector<64x512xbf16>, vector<512x512xbf16>, vector<64x512xf32> -> vector<64x512xf32>
    %236 = arith.addf %232, %235 : vector<64x512xf32>
    %c2_218 = arith.constant 2 : index
    %c0_219 = arith.constant 0 : index
    %c0_220 = arith.constant 0 : index
    %237 = vector.load %arg22[%c2_218, %c0_219, %c0_220] : memref<3x64x64xbf16, #tpu.memory_space<vmem>>, vector<1x64x64xbf16>
    %238 = vector.shape_cast %237 : vector<1x64x64xbf16> to vector<64x64xbf16>
    %cst_221 = arith.constant dense<0.000000e+00> : vector<64x512xf32>
    %239 = tpu.matmul %238, %223, %cst_221 {dimension_numbers = #tpu.dot_dimension_numbers<[1], [0], [0], [1], [0, 0, 1, 1], [], []>} : vector<64x64xbf16>, vector<64x512xbf16>, vector<64x512xf32> -> vector<64x512xf32>
    %240 = arith.truncf %239 : vector<64x512xf32> to vector<64x512xbf16>
    %c2_222 = arith.constant 2 : index
    %c0_223 = arith.constant 0 : index
    %c0_224 = arith.constant 0 : index
    %241 = vector.load %arg25[%c2_222, %c0_223, %c0_224] : memref<3x512x512xbf16, #tpu.memory_space<vmem>>, vector<1x512x512xbf16>
    %242 = vector.shape_cast %241 : vector<1x512x512xbf16> to vector<512x512xbf16>
    %cst_225 = arith.constant dense<0.000000e+00> : vector<64x512xf32>
    %243 = tpu.matmul %240, %242, %cst_225 {dimension_numbers = #tpu.dot_dimension_numbers<[1], [0], [0], [1], [0, 0, 1, 1], [], []>} : vector<64x512xbf16>, vector<512x512xbf16>, vector<64x512xf32> -> vector<64x512xf32>
    %244 = arith.addf %236, %243 : vector<64x512xf32>
    %c0_226 = arith.constant 0 : index
    %c0_227 = arith.constant 0 : index
    %245 = vector.load %arg27[%c0_226, %c0_227] : memref<1x512xf32, #tpu.memory_space<vmem>>, vector<1x512xf32>
    %246 = vector.broadcast %245 : vector<1x512xf32> to vector<64x512xf32>
    %247 = arith.addf %244, %246 : vector<64x512xf32>
    %cst_228 = arith.constant 0.000000e+00 : f32
    %248 = vector.broadcast %cst_228 : f32 to vector<64x512xf32>
    %249 = arith.maximumf %247, %248 : vector<64x512xf32>
    %c0_229 = arith.constant 0 : index
    %c0_230 = arith.constant 0 : index
    %250 = vector.load %arg28[%c0_229, %c0_230] : memref<64x512xf32, #tpu.memory_space<vmem>>, vector<64x512xf32>
    tpu.vector_store %arg28[%c0_229, %c0_230], %249 {strides = array<i32>} : memref<64x512xf32, #tpu.memory_space<vmem>>, vector<64x512xf32>,
    return
  }
}

</mosaic_0001>

<bundles_post_ra>
// kernel: simple_decoding_forward.1
= control target key start
LH: loop header
LB: loop body
LE: loop exit
PB: predicated region body
PF: predicated region fallthrough
CT: control target
= control target key end

     0   :  { %s20808_s0 = inlined_call_operand.vmem [shape: f32[8,128], index: 0, kind: input, shape index: {}]   ;;  %s20809_s1 = inlined_call_operand.vmem [shape: f32[16,128], index: 1, kind: input, shape index: {}]   ;;  %s20810_s2 = inlined_call_operand.vmem [shape: f32[32,128], index: 2, kind: input, shape index: {}]   ;;  %s20811_s3 = inlined_call_operand.vmem [shape: f32[64,128], index: 3, kind: input, shape index: {}]   ;;  %s20812_s4 = inlined_call_operand.hbm [shape: bf16[128,256], index: 4, kind: input, shape index: {}]   ;;  %s20813_s5 = inlined_call_operand.vmem [shape: bf16[3,16,8], index: 5, kind: input, shape index: {}]   ;;  %s20814_s6 = inlined_call_operand.hbm [shape: bf16[3,16,16], index: 6, kind: input, shape index: {}]   ;;  %s20815_s7 = inlined_call_operand.hbm [shape: bf16[3,256,128], index: 7, kind: input, shape index: {}]   ;;  %s20816_s8 = inlined_call_operand.hbm [shape: bf16[3,128,128], index: 8, kind: input, shape index: {}]   ;;  %s20817_s9 = inlined_call_operand.hbm [shape: bf16[3,128,128], index: 9, kind: input, shape index: {}]   ;;  %s20818_s10 = inlined_call_operand.hbm [shape: f32[1,128], index: 10, kind: input, shape index: {}]   ;;  %s20819_s11 = inlined_call_operand.hbm [shape: f32[1,128], index: 11, kind: input, shape index: {}]   ;;  %s20820_s12 = inlined_call_operand.hbm [shape: bf16[128,256], index: 12, kind: input, shape index: {}]   ;;  %s20821_s13 = inlined_call_operand.vmem [shape: bf16[3,32,16], index: 13, kind: input, shape index: {}]   ;;  %s20822_s14 = inlined_call_operand.hbm [shape: bf16[3,32,32], index: 14, kind: input, shape index: {}]   ;;  %s20823_s15 = inlined_call_operand.vmem [shape: bf16[3,256,256], index: 15, kind: input, shape index: {}]   ;;  %s20824_s16 = inlined_call_operand.hbm [shape: bf16[3,128,256], index: 16, kind: input, shape index: {}]   ;;  %s20825_s17 = inlined_call_operand.vmem [shape: bf16[3,256,256], index: 17, kind: input, shape index: {}]   ;;  %s20826_s18 = inlined_call_operand.hbm [shape: f32[1,256], index: 18, kind: input, shape index: {}]   ;;  %s20827_s19 = inlined_call_operand.hbm [shape: f32[1,256], index: 19, kind: input, shape index: {}]   ;;  %s20828_s20 = inlined_call_operand.hbm [shape: bf16[256,512], index: 20, kind: input, shape index: {}]   ;;  %s20829_s21 = inlined_call_operand.vmem [shape: bf16[3,64,32], index: 21, kind: input, shape index: {}]   ;;  %s20830_s22 = inlined_call_operand.hbm [shape: bf16[3,64,64], index: 22, kind: input, shape index: {}]   ;;  %s20831_s23 = inlined_call_operand.hbm [shape: bf16[3,512,512], index: 23, kind: input, shape index: {}]   ;;  %s20832_s24 = inlined_call_operand.vmem [shape: bf16[3,128,512], index: 24, kind: input, shape index: {}]   ;;  %s20833_s25 = inlined_call_operand.hbm [shape: bf16[3,512,512], index: 25, kind: input, shape index: {}]   ;;  %s20834_s26 = inlined_call_operand.hbm [shape: f32[1,512], index: 26, kind: input, shape index: {}]   ;;  %s20835_s27 = inlined_call_operand.hbm [shape: f32[1,512], index: 27, kind: input, shape index: {}]   ;;  %s20836_s28 = inlined_call_operand.vmem [shape: f32[64,512], index: 28, kind: output, shape index: {}]  }
   0x1   :  { %20852 = sst [smem:[#allocation40_spill]] %s20808_s0 }
   0x2   :  { %20853 = sst [smem:[#allocation41_spill]] %s20809_s1 }
   0x3   :  { %20854 = sst [smem:[#allocation42_spill]] %s20810_s2 }
   0x4   :  { %20855 = sst [smem:[#allocation43_spill]] %s20811_s3 }
   0x5   :  { %20856 = sst [smem:[#allocation44_spill]] %s20812_s4 }
   0x6   :  { %20857 = sst [smem:[#allocation45_spill]] %s20813_s5 }
   0x7   :  { %20858 = sst [smem:[#allocation46_spill]] %s20814_s6 }
   0x8   :  { %20859 = sst [smem:[#allocation47_spill]] %s20815_s7 }
   0x9   :  { %20860 = sst [smem:[#allocation48_spill]] %s20816_s8 }
   0xa   :  { %20861 = sst [smem:[#allocation49_spill]] %s20817_s9 }
   0xb   :  { %20862 = sst [smem:[#allocation50_spill]] %s20818_s10 }
   0xc   :  { %20863 = sst [smem:[#allocation51_spill]] %s20819_s11 }
   0xd   :  { %20864 = sst [smem:[#allocation52_spill]] %s20820_s12 }
   0xe   :  { %20865 = sst [smem:[#allocation53_spill]] %s20829_s21 }
   0xf   :  { %20866 = sst [smem:[#allocation54_spill]] %s20832_s24 }
  0x10   :  { %20867 = sst [smem:[#allocation55_spill]] %s20836_s28 }
  0x11   :  { %33 = vsyncpa [#allocation3], 0 }
  0x12   :  { %34 = vsyncpa [#allocation5], 0 }
  0x13   :  { %35 = vsyncpa [#allocation8], 0 }
  0x14   :  { %36 = vsyncpa [#allocation11], 0 }
  0x15   :  { %37 = vsyncpa [#allocation14], 0 }
  0x16   :  { %38 = vsyncpa [#allocation17], 0 }
  0x17   :  { %39 = vsyncpa [#allocation20], 0 }
  0x18   :  { %40 = vsyncpa [#allocation23], 0 }
  0x19   :  { %41 = vsyncpa [#allocation26], 0 }
  0x1a   :  { %42 = vsyncpa [#allocation29], 0  ;;  %s18597_s8 = smov [#allocation4]   ;;  %s20868_s3 = sld [smem:[#allocation46_spill]] }
  0x1b   :  { %s70_s5 = sshll.u32 %s18597_s8, 4  ;;  %s71_s5 = int_to_ptr.vmem [resolvable:$true] %s70_s5 }
  0x20   :  { %s18181_s6 = scalar_lea.hbm %s20868_s3, 384 }
  0x21   :  { %p18182_p0 = scmp.ne.s32.totalorder %s20868_s3, %s18181_s6  ;;  %p18185_p1 = scmp.lt.u32.totalorder %s18181_s6, %s20868_s3 }
  0x23   :  { %p18187_p2 = pnand %p18185_p1, %p18182_p0 }
  0x25   :  { %18190 = shalt.err (!%p18187_p2)
}
  0x26   :  { %s18191_s2 = scalar_lea.vmem %s71_s5, 384  ;;  %p18196_p4 = scmp.lt.s32.totalorder %s71_s5, %s71_s5 }
  0x27   :  { %p18192_p3 = scmp.ne.s32.totalorder %s71_s5, %s18191_s2  ;;  %p18197_p5 = scmp.lt.s32.totalorder %s18191_s2, %s18191_s2 }
  0x29   :  { %p18198_p6 = por %p18197_p5, %p18196_p4 }
  0x2b   :  { %p18199_p7 = pnand %p18198_p6, %p18192_p3 }
  0x2d   :  { %18202 = shalt.err (!%p18199_p7)
}
  0x2e   :  { %s18598_s7 = smov 64   ;;  %s18599_s12 = smov 4  }
  0x2f   :  { %76 = dma.hbm_to_vmem [thread:$0]  %s20868_s3, 384, %s71_s5, [#allocation5], %s18598_s7, %s18598_s7, %s18599_s12  }
  0x30   :  { %s18600_s8 = smov [#allocation7]   ;;  %s18601_s30 = smov [#allocation10]  }
  0x31   :  { %s94_s9 = sshll.u32 %s18600_s8, 4  ;;  %s119_s6 = sshll.u32 %s18601_s30, 4  ;;  %s95_s9 = int_to_ptr.vmem [resolvable:$true] %s94_s9  ;;  %s120_s6 = int_to_ptr.vmem [resolvable:$true] %s119_s6 }
  0x32   :  { %s20869_s11 = sld [smem:[#allocation48_spill]] }
  0x38   :  { %s18203_s29 = scalar_lea.hbm %s20869_s11, 3072 }
  0x39   :  { %p18204_p8 = scmp.ne.s32.totalorder %s20869_s11, %s18203_s29  ;;  %p18207_p9 = scmp.lt.u32.totalorder %s18203_s29, %s20869_s11 }
  0x3b   :  { %p18209_p10 = pnand %p18207_p9, %p18204_p8 }
  0x3d   :  { %18212 = shalt.err (!%p18209_p10)
}
  0x3e   :  { %s18213_s5 = scalar_lea.vmem %s95_s9, 3072  ;;  %p18218_p12 = scmp.lt.s32.totalorder %s95_s9, %s95_s9 }
  0x3f   :  { %p18214_p11 = scmp.ne.s32.totalorder %s95_s9, %s18213_s5  ;;  %p18219_p13 = scmp.lt.s32.totalorder %s18213_s5, %s18213_s5 }
  0x41   :  { %p18220_p0 = por %p18219_p13, %p18218_p12 }
  0x43   :  { %p18221_p1 = pnand %p18220_p0, %p18214_p11 }
  0x45   :  { %18224 = shalt.err (!%p18221_p1)
}
  0x46   :  { %100 = dma.hbm_to_vmem [thread:$0]  %s20869_s11, 3072, %s95_s9, [#allocation8], %s18598_s7, %s18598_s7, %s18599_s12  }
  0x47   :  { %s20870_s24 = sld [smem:[#allocation50_spill]] }
  0x4d   :  { %s18225_s4 = scalar_lea.hbm %s20870_s24, 16 }
  0x4e   :  { %p18226_p2 = scmp.ne.s32.totalorder %s20870_s24, %s18225_s4  ;;  %p18229_p3 = scmp.lt.u32.totalorder %s18225_s4, %s20870_s24 }
  0x50   :  { %p18231_p4 = pnand %p18229_p3, %p18226_p2 }
  0x52   :  { %18234 = shalt.err (!%p18231_p4)
}
  0x53   :  { %s18235_s29 = scalar_lea.vmem %s120_s6, 16  ;;  %s18239_s2 = scalar_lea.vmem %s120_s6, 32 }
  0x54   :  { %p18236_p5 = scmp.ne.s32.totalorder %s120_s6, %s18235_s29  ;;  %p18240_p6 = scmp.lt.s32.totalorder %s120_s6, %s120_s6 }
  0x55   :  { %p18241_p7 = scmp.lt.s32.totalorder %s18239_s2, %s18235_s29 }
  0x57   :  { %p18242_p8 = por %p18241_p7, %p18240_p6 }
  0x59   :  { %p18243_p9 = pnand %p18242_p8, %p18236_p5 }
  0x5b   :  { %18246 = shalt.err (!%p18243_p9)
}
  0x5c   :  { %122 = dma.hbm_to_vmem [thread:$0]  %s20870_s24, 16, %s120_s6, [#allocation11]  }
  0x5d   :  { %s18602_s5 = smov [#allocation13]   ;;  %s18603_s1 = smov [#allocation16]  }
  0x5e   :  { %s138_s3 = sshll.u32 %s18602_s5, 4  ;;  %s166_s28 = sshll.u32 %s18603_s1, 4  ;;  %s139_s3 = int_to_ptr.vmem [resolvable:$true] %s138_s3  ;;  %s167_s28 = int_to_ptr.vmem [resolvable:$true] %s166_s28 }
  0x5f   :  { %s20871_s8 = sld [smem:[#allocation52_spill]] }
  0x65   :  { %s18247_s30 = scalar_lea.hbm %s20871_s8, 2048 }
  0x66   :  { %p18248_p10 = scmp.ne.s32.totalorder %s20871_s8, %s18247_s30  ;;  %p18251_p11 = scmp.lt.u32.totalorder %s18247_s30, %s20871_s8 }
  0x68   :  { %p18253_p12 = pnand %p18251_p11, %p18248_p10 }
  0x6a   :  { %18256 = shalt.err (!%p18253_p12)
}
  0x6b   :  { %s18257_s6 = scalar_lea.vmem %s139_s3, 2048  ;;  %p18262_p0 = scmp.lt.s32.totalorder %s139_s3, %s139_s3 }
  0x6c   :  { %p18258_p13 = scmp.ne.s32.totalorder %s139_s3, %s18257_s6  ;;  %p18263_p1 = scmp.lt.s32.totalorder %s18257_s6, %s18257_s6 }
  0x6e   :  { %p18264_p2 = por %p18263_p1, %p18262_p0 }
  0x70   :  { %p18265_p3 = pnand %p18264_p2, %p18258_p13 }
  0x72   :  { %18268 = shalt.err (!%p18265_p3)
}
  0x73   :  { %s18604_s24 = smov 128   ;;  %s18605_s9 = smov 8  }
  0x74   :  { %144 = dma.hbm_to_vmem [thread:$0]  %s20871_s8, 2048, %s139_s3, [#allocation14], %s18604_s24, %s18604_s24, %s18605_s9  }
  0x75   :  { %s18269_s4 = scalar_lea.hbm %s20824_s16, 6144 }
  0x76   :  { %p18270_p4 = scmp.ne.s32.totalorder %s20824_s16, %s18269_s4  ;;  %p18273_p5 = scmp.lt.u32.totalorder %s18269_s4, %s20824_s16 }
  0x78   :  { %p18275_p6 = pnand %p18273_p5, %p18270_p4 }
  0x7a   :  { %18278 = shalt.err (!%p18275_p6)
}
  0x7b   :  { %s18279_s2 = scalar_lea.vmem %s167_s28, 6144  ;;  %p18284_p8 = scmp.lt.s32.totalorder %s167_s28, %s167_s28 }
  0x7c   :  { %p18280_p7 = scmp.ne.s32.totalorder %s167_s28, %s18279_s2  ;;  %p18285_p9 = scmp.lt.s32.totalorder %s18279_s2, %s18279_s2 }
  0x7e   :  { %p18286_p10 = por %p18285_p9, %p18284_p8 }
  0x80   :  { %p18287_p11 = pnand %p18286_p10, %p18280_p7 }
  0x82   :  { %18290 = shalt.err (!%p18287_p11)
}
  0x83   :  { %172 = dma.hbm_to_vmem [thread:$0]  %s20824_s16, 6144, %s167_s28, [#allocation17], %s18604_s24, %s18604_s24, %s18605_s9  }
  0x84   :  { %s18606_s6 = smov [#allocation19]   ;;  %s18607_s5 = smov [#allocation22]  }
  0x85   :  { %s191_s11 = sshll.u32 %s18606_s6, 4  ;;  %s214_s1 = sshll.u32 %s18607_s5, 4  ;;  %s192_s11 = int_to_ptr.vmem [resolvable:$true] %s191_s11  ;;  %s215_s1 = int_to_ptr.vmem [resolvable:$true] %s214_s1 }
  0x86   :  { %s18291_s30 = scalar_lea.hbm %s20827_s19, 32 }
  0x87   :  { %p18292_p12 = scmp.ne.s32.totalorder %s20827_s19, %s18291_s30  ;;  %p18295_p13 = scmp.lt.u32.totalorder %s18291_s30, %s20827_s19 }
  0x89   :  { %p18297_p0 = pnand %p18295_p13, %p18292_p12 }
  0x8b   :  { %18300 = shalt.err (!%p18297_p0)
}
  0x8c   :  { %s18301_s16 = scalar_lea.vmem %s192_s11, 32  ;;  %p18306_p2 = scmp.lt.s32.totalorder %s192_s11, %s192_s11 }
  0x8d   :  { %p18302_p1 = scmp.ne.s32.totalorder %s192_s11, %s18301_s16  ;;  %p18307_p3 = scmp.lt.s32.totalorder %s18301_s16, %s18301_s16 }
  0x8f   :  { %p18308_p4 = por %p18307_p3, %p18306_p2 }
  0x91   :  { %p18309_p5 = pnand %p18308_p4, %p18302_p1 }
  0x93   :  { %18312 = shalt.err (!%p18309_p5)
}
  0x94   :  { %194 = dma.hbm_to_vmem [thread:$0]  %s20827_s19, 32, %s192_s11, [#allocation20]  }
  0x95   :  { %s18313_s5 = scalar_lea.hbm %s20830_s22, 1536 }
  0x96   :  { %p18314_p6 = scmp.ne.s32.totalorder %s20830_s22, %s18313_s5  ;;  %p18317_p7 = scmp.lt.u32.totalorder %s18313_s5, %s20830_s22 }
  0x98   :  { %p18319_p8 = pnand %p18317_p7, %p18314_p6 }
  0x9a   :  { %18322 = shalt.err (!%p18319_p8)
}
  0x9b   :  { %s18323_s0 = scalar_lea.vmem %s215_s1, 1536  ;;  %p18328_p10 = scmp.lt.s32.totalorder %s215_s1, %s215_s1 }
  0x9c   :  { %p18324_p9 = scmp.ne.s32.totalorder %s215_s1, %s18323_s0  ;;  %p18329_p11 = scmp.lt.s32.totalorder %s18323_s0, %s18323_s0 }
  0x9e   :  { %p18330_p12 = por %p18329_p11, %p18328_p10 }
  0xa0   :  { %p18331_p13 = pnand %p18330_p12, %p18324_p9 }
  0xa2   :  { %18334 = shalt.err (!%p18331_p13)
}
  0xa3   :  { %220 = dma.hbm_to_vmem [thread:$0]  %s20830_s22, 1536, %s215_s1, [#allocation23], %s18598_s7, %s18598_s7, %s18599_s12  }
  0xa4   :  { %s18608_s29 = smov [#allocation25]   ;;  %s18609_s16 = smov [#allocation2]  }
  0xa5   :  { %s240_s2 = sshll.u32 %s18608_s29, 4  ;;  %s56_s28 = sshll.u32 %s18609_s16, 4  ;;  %s241_s2 = int_to_ptr.vmem [resolvable:$true] %s240_s2  ;;  %s57_s28 = int_to_ptr.vmem [resolvable:$true] %s56_s28 }
  0xa6   :  { %s18335_s6 = scalar_lea.hbm %s20833_s25, 49152 }
  0xa7   :  { %p18336_p0 = scmp.ne.s32.totalorder %s20833_s25, %s18335_s6  ;;  %p18339_p1 = scmp.lt.u32.totalorder %s18335_s6, %s20833_s25 }
  0xa9   :  { %p18341_p2 = pnand %p18339_p1, %p18336_p0 }
  0xab   :  { %18344 = shalt.err (!%p18341_p2)
}
  0xac   :  { %s18345_s22 = scalar_lea.vmem %s241_s2, 49152  ;;  %p18350_p4 = scmp.lt.s32.totalorder %s241_s2, %s241_s2 }
  0xad   :  { %p18346_p3 = scmp.ne.s32.totalorder %s241_s2, %s18345_s22  ;;  %p18351_p5 = scmp.lt.s32.totalorder %s18345_s22, %s18345_s22 }
  0xaf   :  { %p18352_p6 = por %p18351_p5, %p18350_p4 }
  0xb1   :  { %p18353_p7 = pnand %p18352_p6, %p18346_p3 }
  0xb3   :  { %18356 = shalt.err (!%p18353_p7)
}
  0xb4   :  { %s18610_s1 = smov 256   ;;  %s18611_s10 = smov 16  }
  0xb5   :  { %246 = dma.hbm_to_vmem [thread:$0]  %s20833_s25, 49152, %s241_s2, [#allocation26], %s18610_s1, %s18610_s1, %s18611_s10  }
  0xb6   :  { %s20872_s16 = sld [smem:[#allocation44_spill]] }
  0xbc   :  { %s18357_s3 = scalar_lea.hbm %s20872_s16, 2048 }
  0xbd   :  { %p18358_p8 = scmp.ne.s32.totalorder %s20872_s16, %s18357_s3  ;;  %p18361_p9 = scmp.lt.u32.totalorder %s18357_s3, %s20872_s16 }
  0xbf   :  { %p18363_p10 = pnand %p18361_p9, %p18358_p8 }
  0xc1   :  { %18366 = shalt.err (!%p18363_p10)
}
  0xc2   :  { %s18367_s4 = scalar_lea.vmem %s57_s28, 2048  ;;  %p18372_p12 = scmp.lt.s32.totalorder %s57_s28, %s57_s28 }
  0xc3   :  { %p18368_p11 = scmp.ne.s32.totalorder %s57_s28, %s18367_s4  ;;  %p18373_p13 = scmp.lt.s32.totalorder %s18367_s4, %s18367_s4 }
  0xc5   :  { %p18374_p0 = por %p18373_p13, %p18372_p12 }
  0xc7   :  { %p18375_p1 = pnand %p18374_p0, %p18368_p11 }
  0xc9   :  { %18378 = shalt.err (!%p18375_p1)
}
  0xca   :  { %62 = dma.hbm_to_vmem [thread:$0]  %s20872_s16, 2048, %s57_s28, [#allocation3], %s18604_s24, %s18604_s24, %s18605_s9  }
  0xcb   :  { %s18612_s30 = smov [#allocation6]   ;;  %s18613_s0 = smov [#allocation9]  }
  0xcc   :  { %s82_s22 = sshll.u32 %s18612_s30, 4  ;;  %s106_s19 = sshll.u32 %s18613_s0, 4  ;;  %s83_s22 = int_to_ptr.vmem [resolvable:$true] %s82_s22  ;;  %s107_s19 = int_to_ptr.vmem [resolvable:$true] %s106_s19 }
  0xcd   :  { %s20873_s3 = sld [smem:[#allocation47_spill]] }
  0xd3   :  { %s18379_s8 = scalar_lea.hbm %s20873_s3, 6144 }
  0xd4   :  { %p18380_p2 = scmp.ne.s32.totalorder %s20873_s3, %s18379_s8  ;;  %p18383_p3 = scmp.lt.u32.totalorder %s18379_s8, %s20873_s3 }
  0xd6   :  { %p18385_p4 = pnand %p18383_p3, %p18380_p2 }
  0xd8   :  { %18388 = shalt.err (!%p18385_p4)
}
  0xd9   :  { %s18389_s24 = scalar_lea.vmem %s83_s22, 6144  ;;  %p18394_p6 = scmp.lt.s32.totalorder %s83_s22, %s83_s22 }
  0xda   :  { %p18390_p5 = scmp.ne.s32.totalorder %s83_s22, %s18389_s24  ;;  %p18395_p7 = scmp.lt.s32.totalorder %s18389_s24, %s18389_s24 }
  0xdc   :  { %p18396_p8 = por %p18395_p7, %p18394_p6 }
  0xde   :  { %p18397_p9 = pnand %p18396_p8, %p18390_p5 }
  0xe0   :  { %18400 = shalt.err (!%p18397_p9)
}
  0xe1   :  { %88 = dma.hbm_to_vmem [thread:$0]  %s20873_s3, 6144, %s83_s22, [#allocation5], %s18598_s7, %s18598_s7, %s18599_s12  }
  0xe2   :  { %s20874_s2 = sld [smem:[#allocation49_spill]] }
  0xe8   :  { %s18401_s30 = scalar_lea.hbm %s20874_s2, 3072 }
  0xe9   :  { %p18402_p10 = scmp.ne.s32.totalorder %s20874_s2, %s18401_s30  ;;  %p18405_p11 = scmp.lt.u32.totalorder %s18401_s30, %s20874_s2 }
  0xeb   :  { %p18407_p12 = pnand %p18405_p11, %p18402_p10 }
  0xed   :  { %18410 = shalt.err (!%p18407_p12)
}
  0xee   :  { %s18411_s6 = scalar_lea.vmem %s107_s19, 3072  ;;  %p18416_p0 = scmp.lt.s32.totalorder %s107_s19, %s107_s19 }
  0xef   :  { %p18412_p13 = scmp.ne.s32.totalorder %s107_s19, %s18411_s6  ;;  %p18417_p1 = scmp.lt.s32.totalorder %s18411_s6, %s18411_s6 }
  0xf1   :  { %p18418_p2 = por %p18417_p1, %p18416_p0 }
  0xf3   :  { %p18419_p3 = pnand %p18418_p2, %p18412_p13 }
  0xf5   :  { %18422 = shalt.err (!%p18419_p3)
}
  0xf6   :  { %112 = dma.hbm_to_vmem [thread:$0]  %s20874_s2, 3072, %s107_s19, [#allocation8], %s18598_s7, %s18598_s7, %s18599_s12  }
  0xf7   :  { %s18614_s5 = smov [#allocation12]   ;;  %s18615_s4 = smov [#allocation15]  }
  0xf8   :  { %s129_s21 = sshll.u32 %s18614_s5, 4  ;;  %s152_s24 = sshll.u32 %s18615_s4, 4  ;;  %s130_s21 = int_to_ptr.vmem [resolvable:$true] %s129_s21  ;;  %s153_s24 = int_to_ptr.vmem [resolvable:$true] %s152_s24 }
  0xf9   :  { %s20875_s16 = sld [smem:[#allocation51_spill]] }
  0xff   :  { %s18423_s25 = scalar_lea.hbm %s20875_s16, 16 }
 0x100   :  { %p18424_p4 = scmp.ne.s32.totalorder %s20875_s16, %s18423_s25  ;;  %p18427_p5 = scmp.lt.u32.totalorder %s18423_s25, %s20875_s16 }
 0x102   :  { %p18429_p6 = pnand %p18427_p5, %p18424_p4 }
 0x104   :  { %18432 = shalt.err (!%p18429_p6)
}
 0x105   :  { %s18433_s19 = scalar_lea.vmem %s130_s21, 16  ;;  %s18437_s2 = scalar_lea.vmem %s130_s21, 32 }
 0x106   :  { %p18434_p7 = scmp.ne.s32.totalorder %s130_s21, %s18433_s19  ;;  %p18438_p8 = scmp.lt.s32.totalorder %s130_s21, %s130_s21 }
 0x107   :  { %p18439_p9 = scmp.lt.s32.totalorder %s18437_s2, %s18433_s19 }
 0x109   :  { %p18440_p10 = por %p18439_p9, %p18438_p8 }
 0x10b   :  { %p18441_p11 = pnand %p18440_p10, %p18434_p7 }
 0x10d   :  { %18444 = shalt.err (!%p18441_p11)
}
 0x10e   :  { %132 = dma.hbm_to_vmem [thread:$0]  %s20875_s16, 16, %s130_s21, [#allocation11]  }
 0x10f   :  { %s18445_s5 = scalar_lea.hbm %s20822_s14, 768 }
 0x110   :  { %p18446_p12 = scmp.ne.s32.totalorder %s20822_s14, %s18445_s5  ;;  %p18449_p13 = scmp.lt.u32.totalorder %s18445_s5, %s20822_s14 }
 0x112   :  { %p18451_p0 = pnand %p18449_p13, %p18446_p12 }
 0x114   :  { %18454 = shalt.err (!%p18451_p0)
}
 0x115   :  { %s18455_s30 = scalar_lea.vmem %s153_s24, 768  ;;  %p18460_p2 = scmp.lt.s32.totalorder %s153_s24, %s153_s24 }
 0x116   :  { %p18456_p1 = scmp.ne.s32.totalorder %s153_s24, %s18455_s30  ;;  %p18461_p3 = scmp.lt.s32.totalorder %s18455_s30, %s18455_s30 }
 0x118   :  { %p18462_p4 = por %p18461_p3, %p18460_p2 }
 0x11a   :  { %p18463_p5 = pnand %p18462_p4, %p18456_p1 }
 0x11c   :  { %18466 = shalt.err (!%p18463_p5)
}
 0x11d   :  { %158 = dma.hbm_to_vmem [thread:$0]  %s20822_s14, 768, %s153_s24, [#allocation14], %s18598_s7, %s18598_s7, %s18599_s12  }
 0x11e   :  { %s18616_s0 = smov [#allocation18]   ;;  %s18617_s29 = smov [#allocation21]  }
 0x11f   :  { %s181_s11 = sshll.u32 %s18616_s0, 4  ;;  %s200_s19 = sshll.u32 %s18617_s29, 4  ;;  %s182_s11 = int_to_ptr.vmem [resolvable:$true] %s181_s11  ;;  %s201_s19 = int_to_ptr.vmem [resolvable:$true] %s200_s19 }
 0x120   :  { %s18467_s6 = scalar_lea.hbm %s20826_s18, 32 }
 0x121   :  { %p18468_p6 = scmp.ne.s32.totalorder %s20826_s18, %s18467_s6  ;;  %p18471_p7 = scmp.lt.u32.totalorder %s18467_s6, %s20826_s18 }
 0x123   :  { %p18473_p8 = pnand %p18471_p7, %p18468_p6 }
 0x125   :  { %18476 = shalt.err (!%p18473_p8)
}
 0x126   :  { %s18477_s14 = scalar_lea.vmem %s182_s11, 32  ;;  %p18482_p10 = scmp.lt.s32.totalorder %s182_s11, %s182_s11 }
 0x127   :  { %p18478_p9 = scmp.ne.s32.totalorder %s182_s11, %s18477_s14  ;;  %p18483_p11 = scmp.lt.s32.totalorder %s18477_s14, %s18477_s14 }
 0x129   :  { %p18484_p12 = por %p18483_p11, %p18482_p10 }
 0x12b   :  { %p18485_p13 = pnand %p18484_p12, %p18478_p9 }
 0x12d   :  { %18488 = shalt.err (!%p18485_p13)
}
 0x12e   :  { %184 = dma.hbm_to_vmem [thread:$0]  %s20826_s18, 32, %s182_s11, [#allocation17]  }
 0x12f   :  { %s18489_s28 = scalar_lea.hbm %s20828_s20, 8192 }
 0x130   :  { %p18490_p0 = scmp.ne.s32.totalorder %s20828_s20, %s18489_s28  ;;  %p18493_p1 = scmp.lt.u32.totalorder %s18489_s28, %s20828_s20 }
 0x132   :  { %p18495_p2 = pnand %p18493_p1, %p18490_p0 }
 0x134   :  { %18498 = shalt.err (!%p18495_p2)
}
 0x135   :  { %s18499_s0 = scalar_lea.vmem %s201_s19, 8192  ;;  %p18504_p4 = scmp.lt.s32.totalorder %s201_s19, %s201_s19 }
 0x136   :  { %p18500_p3 = scmp.ne.s32.totalorder %s201_s19, %s18499_s0  ;;  %p18505_p5 = scmp.lt.s32.totalorder %s18499_s0, %s18499_s0 }
 0x138   :  { %p18506_p6 = por %p18505_p5, %p18504_p4 }
 0x13a   :  { %p18507_p7 = pnand %p18506_p6, %p18500_p3 }
 0x13c   :  { %18510 = shalt.err (!%p18507_p7)
}
 0x13d   :  { %206 = dma.hbm_to_vmem [thread:$0]  %s20828_s20, 8192, %s201_s19, [#allocation20], %s18610_s1, %s18610_s1, %s18611_s10  }
 0x13e   :  { %s18618_s29 = smov [#allocation24]   ;;  %s18619_s8 = smov [#allocation27]  }
 0x13f   :  { %s226_s2 = sshll.u32 %s18618_s29, 4  ;;  %s253_s6 = sshll.u32 %s18619_s8, 4  ;;  %s227_s2 = int_to_ptr.vmem [resolvable:$true] %s226_s2  ;;  %s254_s6 = int_to_ptr.vmem [resolvable:$true] %s253_s6 }
 0x140   :  { %s18511_s5 = scalar_lea.hbm %s20831_s23, 49152 }
 0x141   :  { %p18512_p8 = scmp.ne.s32.totalorder %s20831_s23, %s18511_s5  ;;  %p18515_p9 = scmp.lt.u32.totalorder %s18511_s5, %s20831_s23 }
 0x143   :  { %p18517_p10 = pnand %p18515_p9, %p18512_p8 }
 0x145   :  { %18520 = shalt.err (!%p18517_p10)
}
 0x146   :  { %s18521_s20 = scalar_lea.vmem %s227_s2, 49152  ;;  %p18526_p12 = scmp.lt.s32.totalorder %s227_s2, %s227_s2 }
 0x147   :  { %p18522_p11 = scmp.ne.s32.totalorder %s227_s2, %s18521_s20  ;;  %p18527_p13 = scmp.lt.s32.totalorder %s18521_s20, %s18521_s20 }
 0x149   :  { %p18528_p0 = por %p18527_p13, %p18526_p12 }
 0x14b   :  { %p18529_p1 = pnand %p18528_p0, %p18522_p11 }
 0x14d   :  { %18532 = shalt.err (!%p18529_p1)
}
 0x14e   :  { %232 = dma.hbm_to_vmem [thread:$0]  %s20831_s23, 49152, %s227_s2, [#allocation23], %s18610_s1, %s18610_s1, %s18611_s10  }
 0x14f   :  { %s18533_s25 = scalar_lea.hbm %s20834_s26, 64 }
 0x150   :  { %p18534_p2 = scmp.ne.s32.totalorder %s20834_s26, %s18533_s25  ;;  %p18537_p3 = scmp.lt.u32.totalorder %s18533_s25, %s20834_s26 }
 0x152   :  { %p18539_p4 = pnand %p18537_p3, %p18534_p2 }
 0x154   :  { %18542 = shalt.err (!%p18539_p4)
}
 0x155   :  { %s18543_s18 = scalar_lea.vmem %s254_s6, 64  ;;  %p18548_p6 = scmp.lt.s32.totalorder %s254_s6, %s254_s6 }
 0x156   :  { %p18544_p5 = scmp.ne.s32.totalorder %s254_s6, %s18543_s18  ;;  %p18549_p7 = scmp.lt.s32.totalorder %s18543_s18, %s18543_s18 }
 0x158   :  { %p18550_p8 = por %p18549_p7, %p18548_p6 }
 0x15a   :  { %p18551_p9 = pnand %p18550_p8, %p18544_p5 }
 0x15c   :  { %18554 = shalt.err (!%p18551_p9)
}
 0x15d   :  { %256 = dma.hbm_to_vmem [thread:$0]  %s20834_s26, 64, %s254_s6, [#allocation26]  }
 0x15e   :  { %s18620_s10 = smov [#allocation28]   ;;  %s18555_s8 = scalar_lea.hbm %s20835_s27, 64 }
 0x15f   :  { %s263_s11 = sshll.u32 %s18620_s10, 4  ;;  %p18556_p10 = scmp.ne.s32.totalorder %s20835_s27, %s18555_s8  ;;  %s264_s11 = int_to_ptr.vmem [resolvable:$true] %s263_s11 }
 0x160   :  { %p18559_p11 = scmp.lt.u32.totalorder %s18555_s8, %s20835_s27 }
 0x162   :  { %p18561_p12 = pnand %p18559_p11, %p18556_p10 }
 0x164   :  { %18564 = shalt.err (!%p18561_p12)
}
 0x165   :  { %s18565_s14 = scalar_lea.vmem %s264_s11, 64  ;;  %p18570_p0 = scmp.lt.s32.totalorder %s264_s11, %s264_s11 }
 0x166   :  { %p18566_p13 = scmp.ne.s32.totalorder %s264_s11, %s18565_s14  ;;  %p18571_p1 = scmp.lt.s32.totalorder %s18565_s14, %s18565_s14 }
 0x168   :  { %p18572_p2 = por %p18571_p1, %p18570_p0 }
 0x16a   :  { %p18573_p3 = pnand %p18572_p2, %p18566_p13 }
 0x16c   :  { %18576 = shalt.err (!%p18573_p3)
}
 0x16d   :  { %266 = dma.hbm_to_vmem [thread:$0]  %s20835_s27, 64, %s264_s11, [#allocation29]  }
 0x16e   :  { %18577 = dma.done.wait [#allocation3], 2048  }
 0x16f   :  { %18578 = vsyncadd [#allocation3], 4294965248 }
 0x170   :  { %18579 = dma.done.wait [#allocation5], 6528  }
 0x171   :  { %18580 = vsyncadd [#allocation5], 4294960768 }
 0x172   :  { %18581 = dma.done.wait [#allocation8], 6144  }
 0x173   :  { %18582 = vsyncadd [#allocation8], 4294961152 }
 0x174   :  { %18583 = dma.done.wait [#allocation11], 32  }
 0x175   :  { %18584 = vsyncadd [#allocation11], 4294967264 }
 0x176   :  { %18585 = dma.done.wait [#allocation14], 2816  }
 0x177   :  { %18586 = vsyncadd [#allocation14], 4294964480 }
 0x178   :  { %18587 = dma.done.wait [#allocation17], 6176  }
 0x179   :  { %18588 = vsyncadd [#allocation17], 4294961120 }
 0x17a   :  { %18589 = dma.done.wait [#allocation20], 8224  }
 0x17b   :  { %18590 = vsyncadd [#allocation20], 4294959072 }
 0x17c   :  { %18591 = dma.done.wait [#allocation23], 50688  }
 0x17d   :  { %18592 = vsyncadd [#allocation23], 4294916608 }
 0x17e   :  { %18593 = dma.done.wait [#allocation26], 49216  }
 0x17f   :  { %18594 = vsyncadd [#allocation26], 4294918080 }
 0x180   :  { %18595 = dma.done.wait [#allocation29], 64  }
 0x181   :  { %18596 = vsyncadd [#allocation29], 4294967232  ;;  %v18621_v0 = vmov 0   ;;  %v16241_v1 = vld [vmem:[#allocation2 + $0x4] ss:$8 sps:$4 sm:$0xff]   ;;  %v16265_v10 = vld [vmem:[#allocation6 + $0x40] sm:$0xff]  }
 0x182   :  { %454 = vmatprep.mubr.bf16.mxu0 %v18621_v0  ;;  %v16243_v2 = vld [vmem:[#allocation2] ss:$8 sps:$4 sm:$0xff]   ;;  %422 = vmatprep.subr.bf16.mxu0 %v16241_v1  ;;  %v16244_v3 = vld [vmem:[#allocation2 + $0x14] ss:$8 sps:$4 sm:$0xff]   ;;  %v16246_v4 = vld [vmem:[#allocation2 + $0x10] ss:$8 sps:$4 sm:$0xff]  }
 0x183   :  { %423 = vmatpush1.bf16.msra.mxu0 %v16243_v2  ;;  %v16247_v5 = vld [vmem:[#allocation2 + $0x24] ss:$8 sps:$4 sm:$0xff]   ;;  %v16249_v6 = vld [vmem:[#allocation2 + $0x20] ss:$8 sps:$4 sm:$0xff]   ;;  %v16250_v7 = vld [vmem:[#allocation2 + $0x34] ss:$8 sps:$4 sm:$0xff]   ;;  %15422 = vmatprep.subr.bf16.mxu1 %v16265_v10 }
 0x184   :  { %424 = vmatprep.subr.bf16.mxu0 %v16244_v3  ;;  %v16252_v8 = vld [vmem:[#allocation2 + $0x30] ss:$8 sps:$4 sm:$0xff]   ;;  %v16253_v9 = vld [vmem:[#allocation2 + $0x44] ss:$8 sps:$4 sm:$0xff]   ;;  %v16255_v12 = vld [vmem:[#allocation2 + $0x40] ss:$8 sps:$4 sm:$0xff]  }
 0x185   :  { %v16266_v11 = vld [vmem:[#allocation6] sm:$0xff]   ;;  %v16267_v13 = vld [vmem:[#allocation6 + $0x48] sm:$0xff]   ;;  %v16269_v15 = vld [vmem:[#allocation6 + $0x50] sm:$0xff]   ;;  %s20876_s12 = sld [smem:[#allocation40_spill]]  ;;  %v18622_v35 = vmov 0.0   ;;  %vm18623_vm0 = vmmov 0  }
 0x186   :  { %15423 = vmatpush3.bf16.msra.mxu1 %v16266_v11  ;;  %v16268_v14 = vld [vmem:[#allocation6 + $0x8] sm:$0xff]   ;;  %v16256_v16 = vld [vmem:[#allocation2 + $0x54] ss:$8 sps:$4 sm:$0xff]   ;;  %v16258_v17 = vld [vmem:[#allocation2 + $0x50] ss:$8 sps:$4 sm:$0xff]   ;;  %s20877_s24 = sld [smem:[#allocation41_spill]] }
 0x187   :  { %425 = vmatpush1.bf16.msra.mxu0 %v16246_v4  ;;  %15424 = vmatprep.subr.bf16.mxu1 %v16267_v13  ;;  %v16270_v18 = vld [vmem:[#allocation6 + $0x10] sm:$0xff]   ;;  %v16271_v19 = vld [vmem:[#allocation6 + $0x58] sm:$0xff]   ;;  %v16273_v24 = vld [vmem:[#allocation6 + $0x60] sm:$0xff]   ;;  %vm644_vm1 = vcmask 130048   ;;  %vm804_vm2 = vcmask 1043456   ;;  %s20878_s21 = sld [smem:[#allocation45_spill]] }
 0x188   :  { %426 = vmatprep.subr.bf16.mxu0 %v16247_v5  ;;  %v16259_v20 = vld [vmem:[#allocation2 + $0x64] ss:$8 sps:$4 sm:$0xff]   ;;  %v16261_v21 = vld [vmem:[#allocation2 + $0x60] ss:$8 sps:$4 sm:$0xff]   ;;  %v16262_v22 = vld [vmem:[#allocation2 + $0x74] ss:$8 sps:$4 sm:$0xff]  }
 0x189   :  { %v16272_v23 = vld [vmem:[#allocation6 + $0x18] sm:$0xff]   ;;  %v16274_v25 = vld [vmem:[#allocation6 + $0x20] sm:$0xff]   ;;  %v16275_v28 = vld [vmem:[#allocation6 + $0x68] sm:$0xff]   ;;  %vm800_vm3 = vcmask 64512   ;;  %s20879_s22 = sld [smem:[#allocation42_spill]]  ;;  %vm2401_vm4 = vcmask 261120  }
 0x18a   :  { %15425 = vmatpush3.bf16.msra.mxu1 %v16268_v14  ;;  %v16264_v26 = vld [vmem:[#allocation2 + $0x70] ss:$8 sps:$4 sm:$0xff]   ;;  %v16276_v29 = vld [vmem:[#allocation6 + $0x28] sm:$0xff]   ;;  %v16277_v30 = vld [vmem:[#allocation6 + $0x70] sm:$0xff]   ;;  %s20880_s1 = sld [smem:[#allocation43_spill]]  ;;  %s20881_s8 = sld [smem:[#allocation54_spill]] }
 0x18b   :  { %427 = vmatpush1.bf16.msra.mxu0 %v16249_v6  ;;  %15426 = vmatprep.subr.bf16.mxu1 %v16269_v15  ;;  %v322_v27 = vld [vmem:[%s20876_s12] sm:$0xff]  ;;  %v16278_v32 = vld [vmem:[#allocation6 + $0x30] sm:$0xff]   ;;  %v16279_v33 = vld [vmem:[#allocation6 + $0x78] sm:$0xff]   ;;  %vm6162_vm5 = vcmask 523264   ;;  %s20882_s28 = sld [smem:[#allocation53_spill]]  ;;  %s20883_s0 = sld [smem:[#allocation55_spill]] }
 0x18c   :  { %428 = vmatprep.subr.bf16.mxu0 %v16250_v7  ;;  %v325_v31 = vpack.c.bf16 %v322_v27, %v322_v27  ;;  %v16280_v34 = vld [vmem:[#allocation6 + $0x38] sm:$0xff]   ;;  %v323_v36 = vld [vmem:[%s20877_s24] sm:$0xff]  ;;  %v324_v37 = vld [vmem:[%s20877_s24 + $0x8] sm:$0xff] }
 0x18d   :  { %v19037_v42 = vpack.c.bf16 %v324_v37, %v323_v36  ;;  %v16281_v45 = vld [vmem:[#allocation4] sm:$0xff]   ;;  %v16282_v46 = vld [vmem:[#allocation7] sm:$0xff]   ;;  %v16284_v48 = vld [vmem:[#allocation7 + $0x10] sm:$0xff]  }
 0x18e   :  { %15427 = vmatpush3.bf16.msra.mxu1 %v16270_v18  ;;  %v16283_v47 = vld [vmem:[#allocation7 + $0x8] sm:$0xff]   ;;  %v16285_v49 = vld [vmem:[#allocation7 + $0x18] sm:$0xff]   ;;  %v16286_v50 = vld [vmem:[#allocation7 + $0x20] sm:$0xff]  }
 0x18f   :  { %429 = vmatpush1.bf16.msra.mxu0 %v16252_v8  ;;  %15428 = vmatprep.subr.bf16.mxu1 %v16271_v19  ;;  %v16287_v51 = vld [vmem:[#allocation7 + $0x28] sm:$0xff]   ;;  %v16288_v52 = vld [vmem:[#allocation7 + $0x30] sm:$0xff]   ;;  %v16289_v53 = vld [vmem:[#allocation7 + $0x38] sm:$0xff]  }
 0x190   :  { %430 = vmatprep.subr.bf16.mxu0 %v16253_v9  ;;  %v16291_v58 = vld [vmem:[#allocation6 + $0xc0] sm:$0xff]   ;;  %v16290_v61 = vld [vmem:[%s20878_s21] sm:$0xff]   ;;  %v16295_v6 = vld [vmem:[#allocation6 + $0xd0] sm:$0xff]  }
 0x191   :  { %v16292_v62 = vld [vmem:[#allocation6 + $0x80] sm:$0xff]   ;;  %v16293_v1 = vld [vmem:[#allocation6 + $0xc8] sm:$0xff]   ;;  %v16296_v9 = vld [vmem:[#allocation6 + $0x90] sm:$0xff]  }
 0x192   :  { %15429 = vmatpush3.bf16.msra.mxu1 %v16272_v23  ;;  %v16294_v4 = vld [vmem:[#allocation6 + $0x88] sm:$0xff]   ;;  %v16297_v10 = vld [vmem:[#allocation6 + $0xd8] sm:$0xff]   ;;  %v16300_v13 = vld [vmem:[#allocation6 + $0xa0] sm:$0xff]  }
 0x193   :  { %431 = vmatpush1.bf16.msra.mxu0 %v16255_v12  ;;  %15430 = vmatprep.subr.bf16.mxu1 %v16273_v24  ;;  %v16298_v11 = vld [vmem:[#allocation6 + $0x98] sm:$0xff]   ;;  %v16299_v12 = vld [vmem:[#allocation6 + $0xe0] sm:$0xff]   ;;  %v16301_v14 = vld [vmem:[#allocation6 + $0xe8] sm:$0xff]  }
 0x194   :  { %432 = vmatprep.subr.bf16.mxu0 %v16256_v16  ;;  %v16302_v15 = vld [vmem:[#allocation6 + $0xa8] sm:$0xff]   ;;  %v16303_v16 = vld [vmem:[#allocation6 + $0xf0] sm:$0xff]   ;;  %v16305_v18 = vld [vmem:[#allocation6 + $0xf8] sm:$0xff]  }
 0x195   :  { %v16306_v19 = vld [vmem:[#allocation6 + $0xb8] sm:$0xff]   ;;  %v16310_v23 = vld [vmem:[#allocation6 + $0x108] sm:$0xff]   ;;  %v16311_v24 = vld [vmem:[#allocation6 + $0x150] sm:$0xff]  }
 0x196   :  { %15431 = vmatpush3.bf16.msra.mxu1 %v16274_v25  ;;  %v16312_v25 = vld [vmem:[#allocation6 + $0x110] sm:$0xff]   ;;  %v16314_v27 = vld [vmem:[#allocation6 + $0x118] sm:$0xff]  }
 0x197   :  { %433 = vmatpush1.bf16.msra.mxu0 %v16258_v17  ;;  %15432 = vmatprep.subr.bf16.mxu1 %v16275_v28  ;;  %v16304_v17 = vld [vmem:[#allocation6 + $0xb0] sm:$0xff]   ;;  %v16315_v28 = vld [vmem:[#allocation6 + $0x160] sm:$0xff]   ;;  %v16322_v36 = vld [vmem:[#allocation6 + $0x138] sm:$0xff]  }
 0x198   :  { %434 = vmatprep.subr.bf16.mxu0 %v16259_v20  ;;  %v16307_v20 = vld [vmem:[#allocation6 + $0x140] sm:$0xff]   ;;  %v19074_v37 = vld [vmem:[#allocation4 + $0x10] sm:$0xff]  }
 0x19a   :  { %15433 = vmatpush3.bf16.msra.mxu1 %v16276_v29  ;;  %v16316_v29 = vld [vmem:[#allocation6 + $0x120] sm:$0xff]  }
 0x19b   :  { %435 = vmatpush1.bf16.msra.mxu0 %v16261_v21  ;;  %15434 = vmatprep.subr.bf16.mxu1 %v16277_v30  ;;  %v16308_v21 = vld [vmem:[#allocation6 + $0x100] sm:$0xff]   ;;  %v16317_v30 = vld [vmem:[#allocation6 + $0x168] sm:$0xff]  }
 0x19c   :  { %436 = vmatprep.subr.bf16.mxu0 %v16262_v22  ;;  %v16309_v22 = vld [vmem:[#allocation6 + $0x148] sm:$0xff]  }
 0x19e   :  { %15435 = vmatpush3.bf16.msra.mxu1 %v16278_v32  ;;  %v16319_v32 = vld [vmem:[#allocation6 + $0x170] sm:$0xff]  }
 0x19f   :  { %437 = vmatpush1.bf16.msra.mxu0 %v16264_v26  ;;  %15436 = vmatprep.subr.bf16.mxu1 %v16279_v33  ;;  %v16313_v26 = vld [vmem:[#allocation6 + $0x158] sm:$0xff]   ;;  %v16320_v33 = vld [vmem:[#allocation6 + $0x130] sm:$0xff]  }
 0x1a0   :  { %15606 = vmatprep.subr.bf16.mxu0 %v18622_v35 }
 0x1a2   :  { %455 = vmatmul.mubr.bf16.vlgmr.msra.gmra.mrb[0].mxu0 %v325_v31  ;;  %15437 = vmatpush3.bf16.msra.mxu1 %v16280_v34  ;;  %v16318_v31 = vld [vmem:[#allocation6 + $0x128] sm:$0xff]   ;;  %v16321_v34 = vld [vmem:[#allocation6 + $0x178] sm:$0xff]  }
 0x1a3   :  { %15580 = vmatprep.subr.bf16.mxu1 %v18622_v35  ;;  %15608 = vmatprep.mubr.msk.bf16.mxu0 %vm18623_vm0, %v18622_v35 }
 0x275   :  { %v456_v38 = vpop.f32.mrb[0].mxu0 }
 0x276   :  { %v458_v39 = vpop.f32.mrb[1].mxu0  ;;  %v19039_v43 = vpack.c.bf16 %v456_v38, %v456_v38 }
 0x277   :  { %v19035_v40 = vpack.c.bf16 %v458_v39, %v458_v39  ;;  %v460_v41 = vpop.f32.mrb[2].mxu0 }
 0x278   :  { %v461_v44 = vpop.f32.mrb[3].mxu0 }
 0x279   :  { %626 = vmatprep.mubr.bf16.mxu1 %v19035_v40 }
 0x27a   :  { %627 = vmatmul.mubr.bf16.vlgmr.msra.gmra.mrb[0].mxu1 %v19039_v43 }
 0x27b   :  { %15581 = vmatpush3.bf16.msra.mxu1 %v19037_v42  ;;  %15582 = vmatprep.mubr.msk.bf16.mxu1 %vm18623_vm0, %v18622_v35 }
 0x27c   :  { %15586 = vmatprep.subr.bf16.mxu1 %v18622_v35 }
 0x282   :  { %15583 = vmatmul.mubr.msk.bf16.vlgmr.msra.gmra.mrb[4].mxu1 %vm644_vm1, %v16281_v45 }
 0x283   :  { %15587 = vmatpush3.bf16.msra.mxu1 %v16282_v46  ;;  %15602 = vmatprep.mubr.msk.bf16.mxu1 %vm18623_vm0, %v18622_v35 }
 0x284   :  { %15588 = vmatprep.subr.bf16.mxu1 %v18622_v35 }
 0x287   :  { %15589 = vmatpush3.bf16.msra.mxu1 %v16283_v47 }
 0x288   :  { %15590 = vmatprep.subr.bf16.mxu1 %v18622_v35 }
 0x28b   :  { %15591 = vmatpush3.bf16.msra.mxu1 %v16284_v48 }
 0x28c   :  { %15592 = vmatprep.subr.bf16.mxu1 %v18622_v35 }
 0x28f   :  { %15593 = vmatpush3.bf16.msra.mxu1 %v16285_v49 }
 0x290   :  { %15594 = vmatprep.subr.bf16.mxu1 %v18622_v35 }
 0x293   :  { %15595 = vmatpush3.bf16.msra.mxu1 %v16286_v50 }
 0x294   :  { %15596 = vmatprep.subr.bf16.mxu1 %v18622_v35 }
 0x297   :  { %15597 = vmatpush3.bf16.msra.mxu1 %v16287_v51 }
 0x298   :  { %15598 = vmatprep.subr.bf16.mxu1 %v18622_v35 }
 0x29b   :  { %15599 = vmatpush3.bf16.msra.mxu1 %v16288_v52 }
 0x29c   :  { %15600 = vmatprep.subr.bf16.mxu1 %v18622_v35 }
 0x29f   :  { %15601 = vmatpush3.bf16.msra.mxu1 %v16289_v53 }
 0x2a0   :  { %15612 = vmatprep.subr.bf16.mxu1 %v18622_v35 }
 0x34d   :  { %v15438_v54 = vpop.f32.mrb[0].mxu1 }
 0x34e   :  { %v15439_v55 = vpop.f32.mrb[1].mxu1 }
 0x34f   :  { %v15440_v56 = vadd.f32 %v15439_v55, %v15438_v54  ;;  %v15441_v57 = vpop.f32.mrb[2].mxu1 }
 0x350   :  { %v15442_v59 = vpop.f32.mrb[3].mxu1  ;;  %v16325_v57 = vld [vmem:[#allocation7 + $0x40] sm:$0xff]  }
 0x351   :  { %v634_v60 = vpack.c.bf16 %v15440_v56, %v15440_v56  ;;  %v16324_v56 = vld [vmem:[%s20878_s21 + $0x8] sm:$0xff]  }
 0x352   :  { %v16327_v59 = vld [vmem:[#allocation7 + $0x50] sm:$0xff]  }
 0x353   :  { %v806_v63 = vsel %vm804_vm2, %v634_v60, 0  ;;  %v16328_v60 = vld [vmem:[#allocation7 + $0x58] sm:$0xff]  }
 0x354   :  { %15607 = vmatpush3.bf16.msra.mxu0 %v806_v63  ;;  %v16331_v63 = vld [vmem:[#allocation7 + $0x70] sm:$0xff]  }
 0x355   :  { %v682_v2 = vpop.f32.mrb[4].mxu1  ;;  %15457 = vmatprep.subr.bf16.mxu0 %v16291_v58  ;;  %v16326_v58 = vld [vmem:[#allocation7 + $0x48] sm:$0xff]  }
 0x356   :  { %v15584_v3 = vpop.f32.mrb[5].mxu1 }
 0x357   :  { %v685_v5 = vpop.f32.mrb[6].mxu1  ;;  %15609 = vmatmul.mubr.msk.bf16.vlgmr.msra.gmra.mrb[4].mxu0 %vm800_vm3, %v16290_v61  ;;  %v16329_v61 = vld [vmem:[#allocation7 + $0x60] sm:$0xff]  }
 0x358   :  { %v689_v7 = vpack.c.bf16 %v685_v5, %v682_v2  ;;  %15458 = vmatpush3.bf16.msra.mxu0 %v16292_v62  ;;  %1010 = vmatprep.mubr.bf16.mxu0 %v19035_v40  ;;  %v15585_v8 = vpop.f32.mrb[7].mxu1  ;;  %v16330_v62 = vld [vmem:[#allocation7 + $0x68] sm:$0xff]  }
 0x359   :  { %15459 = vmatprep.subr.bf16.mxu0 %v16293_v1 }
 0x35a   :  { %15603 = vmatmul.mubr.bf16.vlgmr.msra.gmra.mrb[8].mxu1 %v689_v7 }
 0x35b   :  { %15614 = vmatprep.mubr.msk.bf16.mxu1 %vm18623_vm0, %v18622_v35 }
 0x35c   :  { %15460 = vmatpush3.bf16.msra.mxu0 %v16294_v4 }
 0x35d   :  { %15461 = vmatprep.subr.bf16.mxu0 %v16295_v6  ;;  %v16332_v6 = vld [vmem:[#allocation7 + $0x78] sm:$0xff]  }
 0x360   :  { %15462 = vmatpush3.bf16.msra.mxu0 %v16296_v9 }
 0x361   :  { %15463 = vmatprep.subr.bf16.mxu0 %v16297_v10 }
 0x364   :  { %15464 = vmatpush3.bf16.msra.mxu0 %v16298_v11 }
 0x365   :  { %15465 = vmatprep.subr.bf16.mxu0 %v16299_v12 }
 0x368   :  { %15466 = vmatpush3.bf16.msra.mxu0 %v16300_v13 }
 0x369   :  { %15467 = vmatprep.subr.bf16.mxu0 %v16301_v14  ;;  %v16333_v14 = vld [vmem:[%s20878_s21 + $0x10] sm:$0xff]  }
 0x36c   :  { %15468 = vmatpush3.bf16.msra.mxu0 %v16302_v15  ;;  %v16334_v15 = vld [vmem:[#allocation7 + $0x80] sm:$0xff]  }
 0x36d   :  { %15469 = vmatprep.subr.bf16.mxu0 %v16303_v16  ;;  %v16335_v16 = vld [vmem:[#allocation7 + $0x88] sm:$0xff]  }
 0x370   :  { %15470 = vmatpush3.bf16.msra.mxu0 %v16304_v17  ;;  %v16337_v17 = vld [vmem:[#allocation7 + $0x98] sm:$0xff]  }
 0x371   :  { %15471 = vmatprep.subr.bf16.mxu0 %v16305_v18  ;;  %v16338_v18 = vld [vmem:[#allocation7 + $0xa0] sm:$0xff]  }
 0x374   :  { %15472 = vmatpush3.bf16.msra.mxu0 %v16306_v19  ;;  %v16339_v19 = vld [vmem:[#allocation7 + $0xa8] sm:$0xff]  }
 0x375   :  { %15490 = vmatprep.subr.bf16.mxu0 %v16307_v20  ;;  %v16340_v20 = vld [vmem:[#allocation7 + $0xb0] sm:$0xff]  }
 0x377   :  { %1011 = vmatmul.mubr.bf16.vlgmr.msra.gmra.mrb[8].mxu0 %v19039_v43 }
 0x378   :  { %15491 = vmatpush3.bf16.msra.mxu0 %v16308_v21  ;;  %1345 = vmatprep.mubr.bf16.mxu0 %v19035_v40  ;;  %v16341_v21 = vld [vmem:[#allocation7 + $0xb8] sm:$0xff]  }
 0x379   :  { %15492 = vmatprep.subr.bf16.mxu0 %v16309_v22  ;;  %v16350_v22 = vld [vmem:[#allocation9] sm:$0xff]  }
 0x37c   :  { %15493 = vmatpush3.bf16.msra.mxu0 %v16310_v23 }
 0x37d   :  { %15494 = vmatprep.subr.bf16.mxu0 %v16311_v24  ;;  %v16351_v24 = vld [vmem:[#allocation9 + $0x8] sm:$0xff]  }
 0x380   :  { %15495 = vmatpush3.bf16.msra.mxu0 %v16312_v25 }
 0x381   :  { %15496 = vmatprep.subr.bf16.mxu0 %v16313_v26 }
 0x384   :  { %15497 = vmatpush3.bf16.msra.mxu0 %v16314_v27 }
 0x385   :  { %15498 = vmatprep.subr.bf16.mxu0 %v16315_v28 }
 0x388   :  { %15499 = vmatpush3.bf16.msra.mxu0 %v16316_v29 }
 0x389   :  { %15500 = vmatprep.subr.bf16.mxu0 %v16317_v30  ;;  %v16352_v30 = vld [vmem:[#allocation9 + $0x10] sm:$0xff]  }
 0x38c   :  { %15501 = vmatpush3.bf16.msra.mxu0 %v16318_v31  ;;  %v16353_v31 = vld [vmem:[#allocation9 + $0x18] sm:$0xff]  }
 0x38d   :  { %15502 = vmatprep.subr.bf16.mxu0 %v16319_v32  ;;  %v16354_v32 = vld [vmem:[#allocation9 + $0x20] sm:$0xff]  }
 0x390   :  { %15503 = vmatpush3.bf16.msra.mxu0 %v16320_v33  ;;  %v16355_v33 = vld [vmem:[#allocation9 + $0x28] sm:$0xff]  }
 0x391   :  { %15504 = vmatprep.subr.bf16.mxu0 %v16321_v34  ;;  %v16356_v34 = vld [vmem:[#allocation9 + $0x30] sm:$0xff]  }
 0x394   :  { %15505 = vmatpush3.bf16.msra.mxu0 %v16322_v36 }
 0x395   :  { %15644 = vmatprep.subr.bf16.mxu0 %v18622_v35 }
 0x397   :  { %1346 = vmatmul.mubr.bf16.vlgmr.msra.gmra.mrb[12].mxu0 %v19039_v43 }
 0x398   :  { %15645 = vmatpush3.bf16.msra.mxu0 %v19037_v42  ;;  %15646 = vmatprep.mubr.msk.bf16.mxu0 %vm18623_vm0, %v18622_v35 }
 0x399   :  { %15670 = vmatprep.subr.bf16.mxu0 %v18622_v35 }
 0x39f   :  { %15647 = vmatmul.mubr.msk.bf16.vlgmr.msra.gmra.mrb[16].mxu0 %vm644_vm1, %v19074_v37 }
 0x3a0   :  { %15672 = vmatprep.mubr.msk.bf16.mxu0 %vm18623_vm0, %v18622_v35 }
 0x42a   :  { %v842_v38 = vpop.f32.mrb[4].mxu0 }
 0x42b   :  { %v15610_v39 = vpop.f32.mrb[5].mxu0 }
 0x42c   :  { %v845_v40 = vpop.f32.mrb[6].mxu0 }
 0x42d   :  { %v788_v41 = vpop.f32.mrb[8].mxu1  ;;  %v15611_v43 = vpop.f32.mrb[7].mxu0 }
 0x42e   :  { %v19080_v44 = vadd.f32 %v842_v38, %v788_v41  ;;  %v15604_v45 = vpop.f32.mrb[9].mxu1 }
 0x42f   :  { %v791_v46 = vpop.f32.mrb[10].mxu1 }
 0x430   :  { %v19082_v47 = vadd.f32 %v845_v40, %v791_v46  ;;  %v15605_v48 = vpop.f32.mrb[11].mxu1 }
 0x44a   :  { %v15473_v49 = vpop.f32.mrb[8].mxu0 }
 0x44b   :  { %v15474_v50 = vpop.f32.mrb[9].mxu0 }
 0x44c   :  { %v15475_v51 = vadd.f32 %v15474_v50, %v15473_v49  ;;  %v15476_v52 = vpop.f32.mrb[10].mxu0 }
 0x44d   :  { %v15477_v53 = vpop.f32.mrb[11].mxu0 }
 0x44e   :  { %v1018_v54 = vpack.c.bf16 %v15475_v51, %v15475_v51  ;;  %v13902_v51 = vld [vmem:[#allocation10] ss:$0 sm:$0xff] }
 0x450   :  { %v1031_v55 = vsel %vm804_vm2, %v1018_v54, 0 }
 0x451   :  { %15613 = vmatpush3.bf16.msra.mxu1 %v1031_v55 }
 0x452   :  { %15618 = vmatprep.subr.bf16.mxu1 %v18622_v35 }
 0x454   :  { %15615 = vmatmul.mubr.msk.bf16.vlgmr.msra.gmra.mrb[12].mxu1 %vm800_vm3, %v16324_v56 }
 0x455   :  { %15619 = vmatpush3.bf16.msra.mxu1 %v16325_v57  ;;  %15634 = vmatprep.mubr.msk.bf16.mxu1 %vm18623_vm0, %v18622_v35 }
 0x456   :  { %15620 = vmatprep.subr.bf16.mxu1 %v18622_v35 }
 0x459   :  { %15621 = vmatpush3.bf16.msra.mxu1 %v16326_v58 }
 0x45a   :  { %15622 = vmatprep.subr.bf16.mxu1 %v18622_v35 }
 0x45d   :  { %15623 = vmatpush3.bf16.msra.mxu1 %v16327_v59 }
 0x45e   :  { %15624 = vmatprep.subr.bf16.mxu1 %v18622_v35 }
 0x461   :  { %15625 = vmatpush3.bf16.msra.mxu1 %v16328_v60 }
 0x462   :  { %15626 = vmatprep.subr.bf16.mxu1 %v18622_v35 }
 0x465   :  { %15627 = vmatpush3.bf16.msra.mxu1 %v16329_v61 }
 0x466   :  { %15628 = vmatprep.subr.bf16.mxu1 %v18622_v35 }
 0x469   :  { %15629 = vmatpush3.bf16.msra.mxu1 %v16330_v62  ;;  %v16342_v62 = vld [vmem:[#allocation9 + $0x40] sm:$0xff]  }
 0x46a   :  { %v15506_v1 = vpop.f32.mrb[12].mxu0  ;;  %15630 = vmatprep.subr.bf16.mxu1 %v18622_v35 }
 0x46b   :  { %v15507_v2 = vpop.f32.mrb[13].mxu0 }
 0x46c   :  { %v15508_v3 = vadd.f32 %v15507_v2, %v15506_v1  ;;  %v15509_v4 = vpop.f32.mrb[14].mxu0  ;;  %v16343_v1 = vld [vmem:[#allocation9 + $0x48] sm:$0xff]   ;;  %v16344_v2 = vld [vmem:[#allocation9 + $0x50] sm:$0xff]  }
 0x46d   :  { %15631 = vmatpush3.bf16.msra.mxu1 %v16331_v63  ;;  %v15510_v5 = vpop.f32.mrb[15].mxu0  ;;  %v18172_v63 = vld [vmem:[#allocation4] sm:$0xff]   ;;  %v16346_v4 = vld [vmem:[#allocation9 + $0x60] sm:$0xff]  }
 0x46e   :  { %15632 = vmatprep.subr.bf16.mxu1 %v18622_v35  ;;  %v1353_v7 = vpack.c.bf16 %v15508_v3, %v15508_v3  ;;  %v16345_v3 = vld [vmem:[#allocation9 + $0x58] sm:$0xff]   ;;  %v16347_v5 = vld [vmem:[#allocation9 + $0x68] sm:$0xff]  }
 0x470   :  { %v1366_v10 = vsel %vm804_vm2, %v1353_v7, 0  ;;  %v16349_v7 = vld [vmem:[#allocation9 + $0x78] sm:$0xff]  }
 0x471   :  { %15633 = vmatpush3.bf16.msra.mxu1 %v16332_v6  ;;  %v16348_v6 = vld [vmem:[#allocation9 + $0x70] sm:$0xff]  }
 0x472   :  { %15638 = vmatprep.subr.bf16.mxu1 %v18622_v35  ;;  %v1456_v8 = vpop.f32.mrb[16].mxu0 }
 0x473   :  { %v15648_v9 = vpop.f32.mrb[17].mxu0 }
 0x474   :  { %15635 = vmatmul.mubr.bf16.vlgmr.msra.gmra.mrb[16].mxu1 %v19037_v42  ;;  %v1459_v11 = vpop.f32.mrb[18].mxu0  ;;  %v16336_v42 = vld [vmem:[#allocation7 + $0x90] sm:$0xff]   ;;  %v16358_v9 = vld [vmem:[#allocation9 + $0x80] sm:$0xff]  }
 0x475   :  { %15639 = vmatpush3.bf16.msra.mxu1 %v1366_v10  ;;  %15640 = vmatprep.mubr.msk.bf16.mxu1 %vm18623_vm0, %v18622_v35  ;;  %v1463_v12 = vpack.c.bf16 %v1459_v11, %v1456_v8  ;;  %v15649_v13 = vpop.f32.mrb[19].mxu0  ;;  %v16357_v8 = vld [vmem:[#allocation9 + $0x38] sm:$0xff]   ;;  %v16359_v10 = vld [vmem:[#allocation9 + $0x88] sm:$0xff]   ;;  %v16360_v11 = vld [vmem:[#allocation9 + $0x90] sm:$0xff]  }
 0x476   :  { %15650 = vmatprep.subr.bf16.mxu1 %v18622_v35  ;;  %v16363_v13 = vld [vmem:[#allocation9 + $0xa8] sm:$0xff]  }
 0x47c   :  { %15641 = vmatmul.mubr.msk.bf16.vlgmr.msra.gmra.mrb[20].mxu1 %vm800_vm3, %v16333_v14  ;;  %v16364_v14 = vld [vmem:[#allocation9 + $0xb0] sm:$0xff]  }
 0x47d   :  { %15651 = vmatpush3.bf16.msra.mxu1 %v16334_v15  ;;  %15666 = vmatprep.mubr.msk.bf16.mxu1 %vm18623_vm0, %v18622_v35  ;;  %v16365_v15 = vld [vmem:[#allocation9 + $0xb8] sm:$0xff]  }
 0x47e   :  { %15652 = vmatprep.subr.bf16.mxu1 %v18622_v35 }
 0x481   :  { %15653 = vmatpush3.bf16.msra.mxu1 %v16335_v16 }
 0x482   :  { %15654 = vmatprep.subr.bf16.mxu1 %v18622_v35 }
 0x485   :  { %15655 = vmatpush3.bf16.msra.mxu1 %v16336_v42 }
 0x486   :  { %15656 = vmatprep.subr.bf16.mxu1 %v18622_v35 }
 0x489   :  { %15657 = vmatpush3.bf16.msra.mxu1 %v16337_v17 }
 0x48a   :  { %15658 = vmatprep.subr.bf16.mxu1 %v18622_v35 }
 0x48d   :  { %15659 = vmatpush3.bf16.msra.mxu1 %v16338_v18 }
 0x48e   :  { %15660 = vmatprep.subr.bf16.mxu1 %v18622_v35 }
 0x491   :  { %15661 = vmatpush3.bf16.msra.mxu1 %v16339_v19 }
 0x492   :  { %15662 = vmatprep.subr.bf16.mxu1 %v18622_v35 }
 0x495   :  { %15663 = vmatpush3.bf16.msra.mxu1 %v16340_v20 }
 0x496   :  { %15664 = vmatprep.subr.bf16.mxu1 %v18622_v35 }
 0x499   :  { %15665 = vmatpush3.bf16.msra.mxu1 %v16341_v21 }
 0x49a   :  { %15696 = vmatprep.subr.bf16.mxu1 %v18622_v35 }
 0x49c   :  { %15667 = vmatmul.mubr.bf16.vlgmr.msra.gmra.mrb[24].mxu1 %v1463_v12  ;;  %v16361_v12 = vld [vmem:[#allocation9 + $0x98] sm:$0xff]  }
 0x49d   :  { %15712 = vmatprep.mubr.msk.bf16.mxu1 %vm18623_vm0, %v18622_v35  ;;  %15697 = vmatpush3.bf16.msra.mxu1 %v16350_v22 }
 0x49e   :  { %15698 = vmatprep.subr.bf16.mxu1 %v18622_v35 }
 0x4a1   :  { %15699 = vmatpush3.bf16.msra.mxu1 %v16351_v24 }
 0x4a2   :  { %15700 = vmatprep.subr.bf16.mxu1 %v18622_v35 }
 0x4a5   :  { %15701 = vmatpush3.bf16.msra.mxu1 %v16352_v30  ;;  %v16371_v30 = vld [vmem:[#allocation13 + $0x14] ss:$8 sps:$4 sm:$0xff]  }
 0x4a6   :  { %15702 = vmatprep.subr.bf16.mxu1 %v18622_v35 }
 0x4a9   :  { %15703 = vmatpush3.bf16.msra.mxu1 %v16353_v31  ;;  %v16369_v31 = vld [vmem:[#allocation13 + $0x10] ss:$8 sps:$4 sm:$0xff]  }
 0x4aa   :  { %15704 = vmatprep.subr.bf16.mxu1 %v18622_v35 }
 0x4ad   :  { %15705 = vmatpush3.bf16.msra.mxu1 %v16354_v32  ;;  %v16374_v32 = vld [vmem:[#allocation13 + $0x24] ss:$8 sps:$4 sm:$0xff]  }
 0x4ae   :  { %15706 = vmatprep.subr.bf16.mxu1 %v18622_v35 }
 0x4b1   :  { %15707 = vmatpush3.bf16.msra.mxu1 %v16355_v33  ;;  %v16372_v33 = vld [vmem:[#allocation13 + $0x20] ss:$8 sps:$4 sm:$0xff]  }
 0x4b2   :  { %15708 = vmatprep.subr.bf16.mxu1 %v18622_v35 }
 0x4b5   :  { %15709 = vmatpush3.bf16.msra.mxu1 %v16356_v34  ;;  %v16377_v34 = vld [vmem:[#allocation13 + $0x34] ss:$8 sps:$4 sm:$0xff]  }
 0x4b6   :  { %15710 = vmatprep.subr.bf16.mxu1 %v18622_v35 }
 0x4b9   :  { %15711 = vmatpush3.bf16.msra.mxu1 %v16357_v8  ;;  %v16428_v8 = vld [vmem:[%s20823_s15 + $0xc4] ss:$8 sps:$4 sm:$0xff]  }
 0x527   :  { %v1067_v23 = vpop.f32.mrb[12].mxu1 }
 0x528   :  { %v1074_v25 = vadd.f32 %v1067_v23, %v19080_v44  ;;  %v15616_v26 = vpop.f32.mrb[13].mxu1 }
 0x529   :  { %v1070_v27 = vpop.f32.mrb[14].mxu1 }
 0x52a   :  { %v1075_v28 = vadd.f32 %v1070_v27, %v19082_v47  ;;  %v15617_v29 = vpop.f32.mrb[15].mxu1 }
 0x52b   :  { %v16368_v29 = vld [vmem:[#allocation13 + $0x4] ss:$8 sps:$4 sm:$0xff]  }
 0x52c   :  { %2099 = vmatprep.subr.bf16.mxu1 %v16368_v29 }
 0x547   :  { %v1175_v36 = vpop.f32.mrb[16].mxu1 }
 0x548   :  { %v1182_v38 = vadd.f32 %v1175_v36, %v1074_v25  ;;  %v15636_v39 = vpop.f32.mrb[17].mxu1  ;;  %v16375_v36 = vld [vmem:[#allocation13 + $0x30] ss:$8 sps:$4 sm:$0xff]  }
 0x549   :  { %v1178_v40 = vpop.f32.mrb[18].mxu1  ;;  %v16378_v39 = vld [vmem:[#allocation13 + $0x40] ss:$8 sps:$4 sm:$0xff]  }
 0x54a   :  { %v1183_v41 = vadd.f32 %v1178_v40, %v1075_v28  ;;  %v15637_v43 = vpop.f32.mrb[19].mxu1  ;;  %v16366_v28 = vld [vmem:[#allocation13] ss:$8 sps:$4 sm:$0xff]   ;;  %v16383_v40 = vld [vmem:[#allocation13 + $0x54] ss:$8 sps:$4 sm:$0xff]  }
 0x54b   :  { %v16386_v43 = vld [vmem:[#allocation13 + $0x64] ss:$8 sps:$4 sm:$0xff]  }
 0x54f   :  { %v1402_v44 = vpop.f32.mrb[20].mxu1 }
 0x550   :  { %v1409_v45 = vadd.f32 %v1402_v44, %v1182_v38  ;;  %v15642_v46 = vpop.f32.mrb[21].mxu1  ;;  %v16380_v38 = vld [vmem:[#allocation13 + $0x44] ss:$8 sps:$4 sm:$0xff]   ;;  %v16384_v44 = vld [vmem:[#allocation13 + $0x60] ss:$8 sps:$4 sm:$0xff]  }
 0x551   :  { %v1405_v47 = vpop.f32.mrb[22].mxu1  ;;  %v16387_v46 = vld [vmem:[#allocation13 + $0x70] ss:$8 sps:$4 sm:$0xff]  }
 0x552   :  { %v1410_v48 = vadd.f32 %v1405_v47, %v1183_v41  ;;  %v15643_v49 = vpop.f32.mrb[23].mxu1  ;;  %v16381_v41 = vld [vmem:[#allocation13 + $0x50] ss:$8 sps:$4 sm:$0xff]   ;;  %v16390_v47 = vld [vmem:[%s20823_s15] ss:$8 sps:$4 sm:$0xff]  }
 0x553   :  { %v16395_v49 = vld [vmem:[%s20823_s15 + $0x14] ss:$8 sps:$4 sm:$0xff]  }
 0x56f   :  { %v1563_v50 = vpop.f32.mrb[24].mxu1 }
 0x570   :  { %v1570_v52 = vadd.f32 %v1563_v50, %v1409_v45  ;;  %v15668_v53 = vpop.f32.mrb[25].mxu1  ;;  %v16389_v45 = vld [vmem:[#allocation13 + $0x74] ss:$8 sps:$4 sm:$0xff]  }
 0x571   :  { %v1566_v54 = vpop.f32.mrb[26].mxu1  ;;  %v16393_v50 = vld [vmem:[%s20823_s15 + $0x10] ss:$8 sps:$4 sm:$0xff]   ;;  %v16401_v53 = vld [vmem:[%s20823_s15 + $0x34] ss:$8 sps:$4 sm:$0xff]  }
 0x572   :  { %v1579_v55 = vadd.f32 %v13902_v51, %v1570_v52  ;;  %v1571_v56 = vadd.f32 %v1566_v54, %v1410_v48  ;;  %v15669_v57 = vpop.f32.mrb[27].mxu1  ;;  %v16392_v48 = vld [vmem:[%s20823_s15 + $0x4] ss:$8 sps:$4 sm:$0xff]   ;;  %v16396_v52 = vld [vmem:[%s20823_s15 + $0x20] ss:$8 sps:$4 sm:$0xff]  }
 0x573   :  { %v16399_v54 = vld [vmem:[%s20823_s15 + $0x30] ss:$8 sps:$4 sm:$0xff]   ;;  %v16407_v57 = vld [vmem:[%s20823_s15 + $0x54] ss:$8 sps:$4 sm:$0xff]  }
 0x574   :  { %v1580_v58 = vadd.f32 %v13902_v51, %v1571_v56  ;;  %v1581_v59 = vmax.f32 %v1579_v55, 0.0  ;;  %v16398_v51 = vld [vmem:[%s20823_s15 + $0x24] ss:$8 sps:$4 sm:$0xff]   ;;  %v16402_v56 = vld [vmem:[%s20823_s15 + $0x40] ss:$8 sps:$4 sm:$0xff]  }
 0x575   :  { %v16404_v55 = vld [vmem:[%s20823_s15 + $0x44] ss:$8 sps:$4 sm:$0xff]  }
 0x576   :  { %v1582_v60 = vmax.f32 %v1580_v58, 0.0  ;;  %v16405_v58 = vld [vmem:[%s20823_s15 + $0x50] ss:$8 sps:$4 sm:$0xff]  }
 0x578   :  { %v1583_v61 = vpack.c.bf16 %v1582_v60, %v1581_v59  ;;  %v16410_v59 = vld [vmem:[%s20823_s15 + $0x64] ss:$8 sps:$4 sm:$0xff]   ;;  %v16408_v60 = vld [vmem:[%s20823_s15 + $0x60] ss:$8 sps:$4 sm:$0xff]  }
 0x57a   :  { %15671 = vmatpush3.bf16.msra.mxu0 %v1583_v61 }
 0x57b   :  { %15676 = vmatprep.subr.bf16.mxu0 %v18622_v35 }
 0x57d   :  { %15673 = vmatmul.mubr.msk.bf16.vlgmr.msra.gmra.mrb[20].mxu0 %vm644_vm1, %v18172_v63  ;;  %v16416_v63 = vld [vmem:[%s20823_s15 + $0x84] ss:$8 sps:$4 sm:$0xff]  }
 0x57e   :  { %15677 = vmatpush3.bf16.msra.mxu0 %v16342_v62  ;;  %15692 = vmatprep.mubr.msk.bf16.mxu0 %vm18623_vm0, %v18622_v35  ;;  %v16411_v62 = vld [vmem:[%s20823_s15 + $0x70] ss:$8 sps:$4 sm:$0xff]  }
 0x57f   :  { %15678 = vmatprep.subr.bf16.mxu0 %v18622_v35 }
 0x582   :  { %15679 = vmatpush3.bf16.msra.mxu0 %v16343_v1  ;;  %v16414_v1 = vld [vmem:[%s20823_s15 + $0x80] ss:$8 sps:$4 sm:$0xff]  }
 0x583   :  { %15680 = vmatprep.subr.bf16.mxu0 %v18622_v35 }
 0x586   :  { %15681 = vmatpush3.bf16.msra.mxu0 %v16344_v2  ;;  %v16419_v2 = vld [vmem:[%s20823_s15 + $0x94] ss:$8 sps:$4 sm:$0xff]  }
 0x587   :  { %15682 = vmatprep.subr.bf16.mxu0 %v18622_v35 }
 0x58a   :  { %15683 = vmatpush3.bf16.msra.mxu0 %v16345_v3  ;;  %v16417_v3 = vld [vmem:[%s20823_s15 + $0x90] ss:$8 sps:$4 sm:$0xff]  }
 0x58b   :  { %15684 = vmatprep.subr.bf16.mxu0 %v18622_v35 }
 0x58e   :  { %15685 = vmatpush3.bf16.msra.mxu0 %v16346_v4  ;;  %v16422_v4 = vld [vmem:[%s20823_s15 + $0xa4] ss:$8 sps:$4 sm:$0xff]  }
 0x58f   :  { %15686 = vmatprep.subr.bf16.mxu0 %v18622_v35 }
 0x592   :  { %15687 = vmatpush3.bf16.msra.mxu0 %v16347_v5  ;;  %v16420_v5 = vld [vmem:[%s20823_s15 + $0xa0] ss:$8 sps:$4 sm:$0xff]  }
 0x593   :  { %15688 = vmatprep.subr.bf16.mxu0 %v18622_v35 }
 0x596   :  { %15689 = vmatpush3.bf16.msra.mxu0 %v16348_v6  ;;  %v16425_v6 = vld [vmem:[%s20823_s15 + $0xb4] ss:$8 sps:$4 sm:$0xff]  }
 0x597   :  { %15690 = vmatprep.subr.bf16.mxu0 %v18622_v35 }
 0x59a   :  { %15691 = vmatpush3.bf16.msra.mxu0 %v16349_v7  ;;  %v16423_v7 = vld [vmem:[%s20823_s15 + $0xb0] ss:$8 sps:$4 sm:$0xff]  }
 0x59b   :  { %15716 = vmatprep.subr.bf16.mxu0 %v18622_v35 }
 0x59d   :  { %15693 = vmatmul.mubr.bf16.vlgmr.msra.gmra.mrb[24].mxu0 %v1583_v61 }
 0x59e   :  { %15717 = vmatpush3.bf16.msra.mxu0 %v1583_v61  ;;  %15718 = vmatprep.mubr.msk.bf16.mxu0 %vm18623_vm0, %v18622_v35  ;;  %v16413_v61 = vld [vmem:[%s20823_s15 + $0x74] ss:$8 sps:$4 sm:$0xff]  }
 0x59f   :  { %15722 = vmatprep.subr.bf16.mxu0 %v18622_v35 }
 0x5a5   :  { %15719 = vmatmul.mubr.msk.bf16.vlgmr.msra.gmra.mrb[28].mxu0 %vm644_vm1, %v19074_v37  ;;  %v16362_v37 = vld [vmem:[#allocation9 + $0xa0] sm:$0xff]  }
 0x5a6   :  { %15738 = vmatprep.mubr.msk.bf16.mxu0 %vm18623_vm0, %v18622_v35  ;;  %15723 = vmatpush3.bf16.msra.mxu0 %v16358_v9  ;;  %v16426_v9 = vld [vmem:[%s20823_s15 + $0xc0] ss:$8 sps:$4 sm:$0xff]  }
 0x5a7   :  { %15724 = vmatprep.subr.bf16.mxu0 %v18622_v35 }
 0x5aa   :  { %15725 = vmatpush3.bf16.msra.mxu0 %v16359_v10  ;;  %v16431_v10 = vld [vmem:[%s20823_s15 + $0xd4] ss:$8 sps:$4 sm:$0xff]  }
 0x5ab   :  { %15726 = vmatprep.subr.bf16.mxu0 %v18622_v35 }
 0x5ae   :  { %15727 = vmatpush3.bf16.msra.mxu0 %v16360_v11  ;;  %v16429_v11 = vld [vmem:[%s20823_s15 + $0xd0] ss:$8 sps:$4 sm:$0xff]  }
 0x5af   :  { %15728 = vmatprep.subr.bf16.mxu0 %v18622_v35 }
 0x5b2   :  { %15729 = vmatpush3.bf16.msra.mxu0 %v16361_v12  ;;  %v16434_v12 = vld [vmem:[%s20823_s15 + $0xe4] ss:$8 sps:$4 sm:$0xff]  }
 0x5b3   :  { %15730 = vmatprep.subr.bf16.mxu0 %v18622_v35 }
 0x5b6   :  { %15731 = vmatpush3.bf16.msra.mxu0 %v16362_v37  ;;  %v16432_v37 = vld [vmem:[%s20823_s15 + $0xe0] ss:$8 sps:$4 sm:$0xff]  }
 0x5b7   :  { %15732 = vmatprep.subr.bf16.mxu0 %v18622_v35 }
 0x5ba   :  { %15733 = vmatpush3.bf16.msra.mxu0 %v16363_v13 }
 0x5bb   :  { %15734 = vmatprep.subr.bf16.mxu0 %v18622_v35 }
 0x5be   :  { %15735 = vmatpush3.bf16.msra.mxu0 %v16364_v14 }
 0x5bf   :  { %15736 = vmatprep.subr.bf16.mxu0 %v18622_v35 }
 0x5c2   :  { %15737 = vmatpush3.bf16.msra.mxu0 %v16365_v15 }
 0x5c3   :  { %2338 = vmatprep.subr.bf16.mxu0 %v16392_v48  ;;  %v16494_v48 = vld [vmem:[#allocation16 + $0x20] ss:$8 sps:$4 sm:$0xff]  }
 0x650   :  { %v1618_v16 = vpop.f32.mrb[20].mxu0 }
 0x651   :  { %v15674_v42 = vpop.f32.mrb[21].mxu0 }
 0x652   :  { %v1621_v17 = vpop.f32.mrb[22].mxu0 }
 0x653   :  { %v1625_v18 = vpack.c.bf16 %v1621_v17, %v1618_v16  ;;  %v15675_v19 = vpop.f32.mrb[23].mxu0 }
 0x654   :  { %v13929_v19 = vld [vmem:[#allocation12] ss:$0 sm:$0xff] }
 0x655   :  { %15713 = vmatmul.mubr.bf16.vlgmr.msra.gmra.mrb[28].mxu1 %v1625_v18 }
 0x656   :  { %2131 = vmatprep.mubr.bf16.mxu1 %v18621_v0  ;;  %2100 = vmatpush1.bf16.msra.mxu1 %v16366_v28 }
 0x657   :  { %2101 = vmatprep.subr.bf16.mxu1 %v16371_v30 }
 0x65a   :  { %2102 = vmatpush1.bf16.msra.mxu1 %v16369_v31 }
 0x65b   :  { %2103 = vmatprep.subr.bf16.mxu1 %v16374_v32  ;;  %v16437_v32 = vld [vmem:[%s20823_s15 + $0xf4] ss:$8 sps:$4 sm:$0xff]  }
 0x65e   :  { %2104 = vmatpush1.bf16.msra.mxu1 %v16372_v33  ;;  %v16435_v33 = vld [vmem:[%s20823_s15 + $0xf0] ss:$8 sps:$4 sm:$0xff]  }
 0x65f   :  { %2105 = vmatprep.subr.bf16.mxu1 %v16377_v34  ;;  %v2000_v34 = vld [vmem:[%s20879_s22 + $0x10] sm:$0xff] }
 0x662   :  { %2106 = vmatpush1.bf16.msra.mxu1 %v16375_v36  ;;  %v2001_v36 = vld [vmem:[%s20879_s22 + $0x18] sm:$0xff] }
 0x663   :  { %2107 = vmatprep.subr.bf16.mxu1 %v16380_v38  ;;  %v19275_v38 = vpack.c.bf16 %v2001_v36, %v2000_v34 }
 0x666   :  { %2108 = vmatpush1.bf16.msra.mxu1 %v16378_v39  ;;  %v16440_v39 = vld [vmem:[%s20823_s15 + $0x104] ss:$8 sps:$4 sm:$0xff]  }
 0x667   :  { %2109 = vmatprep.subr.bf16.mxu1 %v16383_v40  ;;  %v19282_v40 = vld [vmem:[#allocation15] sm:$0xff]  }
 0x66a   :  { %2110 = vmatpush1.bf16.msra.mxu1 %v16381_v41  ;;  %v19286_v41 = vld [vmem:[#allocation15 + $0x8] sm:$0xff]  }
 0x66b   :  { %2111 = vmatprep.subr.bf16.mxu1 %v16386_v43  ;;  %v16488_v43 = vld [vmem:[#allocation16] ss:$8 sps:$4 sm:$0xff]  }
 0x66e   :  { %2112 = vmatpush1.bf16.msra.mxu1 %v16384_v44  ;;  %v16490_v44 = vld [vmem:[#allocation16 + $0x4] ss:$8 sps:$4 sm:$0xff]  }
 0x66f   :  { %2113 = vmatprep.subr.bf16.mxu1 %v16389_v45  ;;  %v16493_v45 = vld [vmem:[#allocation16 + $0x14] ss:$8 sps:$4 sm:$0xff]  }
 0x670   :  { %v19157_v20 = vpop.f32.mrb[24].mxu0 }
 0x671   :  { %v15694_v21 = vpop.f32.mrb[25].mxu0 }
 0x672   :  { %v19159_v22 = vpop.f32.mrb[26].mxu0  ;;  %2114 = vmatpush1.bf16.msra.mxu1 %v16387_v46  ;;  %v16491_v46 = vld [vmem:[#allocation16 + $0x10] ss:$8 sps:$4 sm:$0xff]  }
 0x673   :  { %v15695_v23 = vpop.f32.mrb[27].mxu0 }
 0x678   :  { %v1871_v24 = vpop.f32.mrb[28].mxu0 }
 0x679   :  { %v15720_v25 = vpop.f32.mrb[29].mxu0 }
 0x67a   :  { %v1874_v26 = vpop.f32.mrb[30].mxu0 }
 0x67b   :  { %v1878_v35 = vpack.c.bf16 %v1874_v26, %v1871_v24  ;;  %v15721_v27 = vpop.f32.mrb[31].mxu0 }
 0x67d   :  { %15739 = vmatmul.mubr.bf16.vlgmr.msra.gmra.mrb[32].mxu0 %v1878_v35 }
 0x67e   :  { %2339 = vmatpush1.bf16.msra.mxu0 %v16390_v47  ;;  %v16496_v47 = vld [vmem:[#allocation16 + $0x24] ss:$8 sps:$4 sm:$0xff]  }
 0x67f   :  { %2340 = vmatprep.subr.bf16.mxu0 %v16395_v49  ;;  %v16499_v49 = vld [vmem:[#allocation16 + $0x34] ss:$8 sps:$4 sm:$0xff]  }
 0x682   :  { %2341 = vmatpush1.bf16.msra.mxu0 %v16393_v50  ;;  %v16497_v50 = vld [vmem:[#allocation16 + $0x30] ss:$8 sps:$4 sm:$0xff]  }
 0x683   :  { %2342 = vmatprep.subr.bf16.mxu0 %v16398_v51  ;;  %v16502_v51 = vld [vmem:[#allocation16 + $0x44] ss:$8 sps:$4 sm:$0xff]  }
 0x686   :  { %2343 = vmatpush1.bf16.msra.mxu0 %v16396_v52  ;;  %v16500_v52 = vld [vmem:[#allocation16 + $0x40] ss:$8 sps:$4 sm:$0xff]  }
 0x687   :  { %2344 = vmatprep.subr.bf16.mxu0 %v16401_v53  ;;  %v16505_v53 = vld [vmem:[#allocation16 + $0x54] ss:$8 sps:$4 sm:$0xff]  }
 0x68a   :  { %2345 = vmatpush1.bf16.msra.mxu0 %v16399_v54  ;;  %v16503_v54 = vld [vmem:[#allocation16 + $0x50] ss:$8 sps:$4 sm:$0xff]  }
 0x68b   :  { %2346 = vmatprep.subr.bf16.mxu0 %v16404_v55  ;;  %v16508_v55 = vld [vmem:[#allocation16 + $0x64] ss:$8 sps:$4 sm:$0xff]  }
 0x68e   :  { %2347 = vmatpush1.bf16.msra.mxu0 %v16402_v56  ;;  %v16506_v56 = vld [vmem:[#allocation16 + $0x60] ss:$8 sps:$4 sm:$0xff]  }
 0x68f   :  { %2348 = vmatprep.subr.bf16.mxu0 %v16407_v57 }
 0x692   :  { %2349 = vmatpush1.bf16.msra.mxu0 %v16405_v58 }
 0x693   :  { %2350 = vmatprep.subr.bf16.mxu0 %v16410_v59 }
 0x696   :  { %2351 = vmatpush1.bf16.msra.mxu0 %v16408_v60 }
 0x697   :  { %2352 = vmatprep.subr.bf16.mxu0 %v16413_v61 }
 0x69a   :  { %2353 = vmatpush1.bf16.msra.mxu0 %v16411_v62 }
 0x69b   :  { %2354 = vmatprep.subr.bf16.mxu0 %v16416_v63  ;;  %v16438_v63 = vld [vmem:[%s20823_s15 + $0x100] ss:$8 sps:$4 sm:$0xff]  }
 0x69e   :  { %2355 = vmatpush1.bf16.msra.mxu0 %v16414_v1  ;;  %v16445_v1 = vld [vmem:[%s20823_s15 + $0x114] ss:$8 sps:$4 sm:$0xff]  }
 0x69f   :  { %2356 = vmatprep.subr.bf16.mxu0 %v16419_v2  ;;  %v16443_v2 = vld [vmem:[%s20823_s15 + $0x110] ss:$8 sps:$4 sm:$0xff]  }
 0x6a2   :  { %2357 = vmatpush1.bf16.msra.mxu0 %v16417_v3  ;;  %v16448_v3 = vld [vmem:[%s20823_s15 + $0x124] ss:$8 sps:$4 sm:$0xff]  }
 0x6a3   :  { %2358 = vmatprep.subr.bf16.mxu0 %v16422_v4  ;;  %v16446_v4 = vld [vmem:[%s20823_s15 + $0x120] ss:$8 sps:$4 sm:$0xff]  }
 0x6a6   :  { %2359 = vmatpush1.bf16.msra.mxu0 %v16420_v5  ;;  %v16451_v5 = vld [vmem:[%s20823_s15 + $0x134] ss:$8 sps:$4 sm:$0xff]  }
 0x6a7   :  { %2360 = vmatprep.subr.bf16.mxu0 %v16425_v6  ;;  %v16449_v6 = vld [vmem:[%s20823_s15 + $0x130] ss:$8 sps:$4 sm:$0xff]  }
 0x6aa   :  { %2361 = vmatpush1.bf16.msra.mxu0 %v16423_v7  ;;  %v16454_v7 = vld [vmem:[%s20823_s15 + $0x144] ss:$8 sps:$4 sm:$0xff]  }
 0x6ab   :  { %2362 = vmatprep.subr.bf16.mxu0 %v16428_v8  ;;  %v16452_v8 = vld [vmem:[%s20823_s15 + $0x140] ss:$8 sps:$4 sm:$0xff]  }
 0x6ae   :  { %2363 = vmatpush1.bf16.msra.mxu0 %v16426_v9  ;;  %v16457_v9 = vld [vmem:[%s20823_s15 + $0x154] ss:$8 sps:$4 sm:$0xff]  }
 0x6af   :  { %2364 = vmatprep.subr.bf16.mxu0 %v16431_v10  ;;  %v16455_v10 = vld [vmem:[%s20823_s15 + $0x150] ss:$8 sps:$4 sm:$0xff]  }
 0x6b2   :  { %2365 = vmatpush1.bf16.msra.mxu0 %v16429_v11  ;;  %v16460_v11 = vld [vmem:[%s20823_s15 + $0x164] ss:$8 sps:$4 sm:$0xff]  }
 0x6b3   :  { %2366 = vmatprep.subr.bf16.mxu0 %v16434_v12  ;;  %v16458_v12 = vld [vmem:[%s20823_s15 + $0x160] ss:$8 sps:$4 sm:$0xff]  }
 0x6b6   :  { %2367 = vmatpush1.bf16.msra.mxu0 %v16432_v37  ;;  %v16463_v37 = vld [vmem:[%s20823_s15 + $0x174] ss:$8 sps:$4 sm:$0xff]  }
 0x6b7   :  { %2368 = vmatprep.subr.bf16.mxu0 %v16437_v32 }
 0x6ba   :  { %2369 = vmatpush1.bf16.msra.mxu0 %v16435_v33 }
 0x6bb   :  { %2870 = vmatprep.subr.bf16.mxu0 %v16440_v39 }
 0x728   :  { %v1830_v13 = vpop.f32.mrb[28].mxu1 }
 0x729   :  { %v1831_v14 = vadd.f32 %v1830_v13, %v19157_v20  ;;  %v15714_v15 = vpop.f32.mrb[29].mxu1  ;;  %v1998_v20 = vld [vmem:[%s20879_s22] sm:$0xff]  ;;  %v16461_v13 = vld [vmem:[%s20823_s15 + $0x170] ss:$8 sps:$4 sm:$0xff]  }
 0x72a   :  { %v1833_v16 = vpop.f32.mrb[30].mxu1  ;;  %v16464_v15 = vld [vmem:[%s20823_s15 + $0x180] ss:$8 sps:$4 sm:$0xff]  }
 0x72b   :  { %v1834_v42 = vadd.f32 %v1833_v16, %v19159_v22  ;;  %v15715_v17 = vpop.f32.mrb[31].mxu1  ;;  %v1999_v22 = vld [vmem:[%s20879_s22 + $0x8] sm:$0xff]  ;;  %v16469_v16 = vld [vmem:[%s20823_s15 + $0x194] ss:$8 sps:$4 sm:$0xff]  }
 0x72c   :  { %v19259_v31 = vpack.c.bf16 %v1999_v22, %v1998_v20  ;;  %v16472_v17 = vld [vmem:[%s20823_s15 + $0x1a4] ss:$8 sps:$4 sm:$0xff]  }
 0x72d   :  { %v16509_v22 = vld [vmem:[#allocation16 + $0x70] ss:$8 sps:$4 sm:$0xff]  }
 0x72e   :  { %15742 = vmatprep.subr.bf16.mxu1 %v19259_v31 }
 0x750   :  { %v1978_v18 = vpop.f32.mrb[32].mxu0 }
 0x751   :  { %v1985_v21 = vadd.f32 %v1978_v18, %v1831_v14  ;;  %v15740_v23 = vpop.f32.mrb[33].mxu0  ;;  %v16466_v14 = vld [vmem:[%s20823_s15 + $0x184] ss:$8 sps:$4 sm:$0xff]   ;;  %v16470_v18 = vld [vmem:[%s20823_s15 + $0x1a0] ss:$8 sps:$4 sm:$0xff]  }
 0x752   :  { %v1981_v24 = vpop.f32.mrb[34].mxu0  ;;  %v16478_v23 = vld [vmem:[%s20823_s15 + $0x1c4] ss:$8 sps:$4 sm:$0xff]  }
 0x753   :  { %v1994_v25 = vadd.f32 %v13929_v19, %v1985_v21  ;;  %v1986_v26 = vadd.f32 %v1981_v24, %v1834_v42  ;;  %v15741_v35 = vpop.f32.mrb[35].mxu0  ;;  %v16467_v42 = vld [vmem:[%s20823_s15 + $0x190] ss:$8 sps:$4 sm:$0xff]   ;;  %v16476_v24 = vld [vmem:[%s20823_s15 + $0x1c0] ss:$8 sps:$4 sm:$0xff]  }
 0x754   :  { %v16473_v21 = vld [vmem:[%s20823_s15 + $0x1b0] ss:$8 sps:$4 sm:$0xff]   ;;  %v16484_v35 = vld [vmem:[%s20823_s15 + $0x1e4] ss:$8 sps:$4 sm:$0xff]  }
 0x755   :  { %v1995_v27 = vadd.f32 %v13929_v19, %v1986_v26  ;;  %v1996_v28 = vmax.f32 %v1994_v25, 0.0  ;;  %v16475_v19 = vld [vmem:[%s20823_s15 + $0x1b4] ss:$8 sps:$4 sm:$0xff]   ;;  %v16479_v26 = vld [vmem:[%s20823_s15 + $0x1d0] ss:$8 sps:$4 sm:$0xff]  }
 0x756   :  { %v16481_v25 = vld [vmem:[%s20823_s15 + $0x1d4] ss:$8 sps:$4 sm:$0xff]  }
 0x757   :  { %v1997_v29 = vmax.f32 %v1995_v27, 0.0  ;;  %v16482_v27 = vld [vmem:[%s20823_s15 + $0x1e0] ss:$8 sps:$4 sm:$0xff]  }
 0x759   :  { %v2002_v30 = vpack.c.bf16 %v1997_v29, %v1996_v28  ;;  %v16487_v28 = vld [vmem:[%s20823_s15 + $0x1f4] ss:$8 sps:$4 sm:$0xff]   ;;  %v16485_v29 = vld [vmem:[%s20823_s15 + $0x1f0] ss:$8 sps:$4 sm:$0xff]  }
 0x75b   :  { %2132 = vmatmul.mubr.bf16.vlgmr.msra.gmra.mrb[32].mxu1 %v2002_v30  ;;  %v16511_v30 = vld [vmem:[#allocation16 + $0x74] ss:$8 sps:$4 sm:$0xff]  }
 0x75c   :  { %15743 = vmatpush3.bf16.msra.mxu1 %v19259_v31  ;;  %15746 = vmatprep.mubr.msk.bf16.mxu1 %vm2401_vm4, %v19282_v40 }
 0x75d   :  { %15744 = vmatprep.subr.bf16.mxu1 %v19275_v38 }
 0x760   :  { %15745 = vmatpush3.bf16.msra.mxu1 %v19275_v38 }
 0x761   :  { %2555 = vmatprep.subr.bf16.mxu1 %v16490_v44 }
 0x763   :  { %15747 = vmatmul.mubr.msk.bf16.vlgmr.msra.gmra.mrb[36].mxu1 %vm2401_vm4, %v19286_v41 }
 0x764   :  { %2587 = vmatprep.mubr.bf16.mxu1 %v18621_v0  ;;  %2556 = vmatpush1.bf16.msra.mxu1 %v16488_v43 }
 0x765   :  { %2557 = vmatprep.subr.bf16.mxu1 %v16493_v45 }
 0x768   :  { %2558 = vmatpush1.bf16.msra.mxu1 %v16491_v46 }
 0x769   :  { %2559 = vmatprep.subr.bf16.mxu1 %v16496_v47 }
 0x76c   :  { %2560 = vmatpush1.bf16.msra.mxu1 %v16494_v48 }
 0x76d   :  { %2561 = vmatprep.subr.bf16.mxu1 %v16499_v49  ;;  %v16512_v49 = vld [vmem:[%s20821_s13] sm:$0xff]  }
 0x770   :  { %2562 = vmatpush1.bf16.msra.mxu1 %v16497_v50  ;;  %v16513_v50 = vld [vmem:[%s20821_s13 + $0x8] sm:$0xff]  }
 0x771   :  { %2563 = vmatprep.subr.bf16.mxu1 %v16502_v51  ;;  %v19408_v51 = vld [vmem:[#allocation15 + $0x20] sm:$0xff]  }
 0x774   :  { %2564 = vmatpush1.bf16.msra.mxu1 %v16500_v52  ;;  %v19410_v52 = vld [vmem:[#allocation15 + $0x28] sm:$0xff]  }
 0x775   :  { %2565 = vmatprep.subr.bf16.mxu1 %v16505_v53 }
 0x778   :  { %2566 = vmatpush1.bf16.msra.mxu1 %v16503_v54 }
 0x779   :  { %2567 = vmatprep.subr.bf16.mxu1 %v16508_v55 }
 0x77c   :  { %2568 = vmatpush1.bf16.msra.mxu1 %v16506_v56 }
 0x77d   :  { %2569 = vmatprep.subr.bf16.mxu1 %v16511_v30  ;;  %v16569_v30 = vld [vmem:[%s20823_s15 + $0x294] ss:$8 sps:$4 sm:$0xff]  }
 0x780   :  { %2570 = vmatpush1.bf16.msra.mxu1 %v16509_v22  ;;  %v16572_v22 = vld [vmem:[%s20823_s15 + $0x2a4] ss:$8 sps:$4 sm:$0xff]  }
 0x82e   :  { %v2133_v57 = vpop.f32.mrb[32].mxu1 }
 0x82f   :  { %v2135_v58 = vpop.f32.mrb[33].mxu1 }
 0x830   :  { %v2137_v59 = vpop.f32.mrb[34].mxu1 }
 0x831   :  { %v19291_v60 = vpack.c.bf16 %v2137_v59, %v2133_v57  ;;  %v2139_v61 = vpop.f32.mrb[35].mxu1  ;;  %v16516_v59 = vld [vmem:[#allocation16 + $0x84] ss:$8 sps:$4 sm:$0xff]  }
 0x832   :  { %v19293_v62 = vpack.c.bf16 %v2139_v61, %v2135_v58  ;;  %v16517_v61 = vld [vmem:[%s20821_s13 + $0x10] sm:$0xff]  }
 0x834   :  { %2370 = vmatprep.mubr.bf16.mxu0 %v19293_v62 }
 0x835   :  { %2371 = vmatmul.mubr.bf16.vlgmr.msra.gmra.mrb[36].mxu0 %v19291_v60 }
 0x836   :  { %2871 = vmatpush1.bf16.msra.mxu0 %v16438_v63  ;;  %2902 = vmatprep.mubr.bf16.mxu0 %v19293_v62  ;;  %v15748_v20 = vpop.f32.mrb[36].mxu1  ;;  %v16514_v63 = vld [vmem:[#allocation16 + $0x80] ss:$8 sps:$4 sm:$0xff]  }
 0x837   :  { %2872 = vmatprep.subr.bf16.mxu0 %v16445_v1  ;;  %v2442_v32 = vpop.f32.mrb[37].mxu1  ;;  %v16520_v1 = vld [vmem:[#allocation16 + $0x94] ss:$8 sps:$4 sm:$0xff]  }
 0x838   :  { %v15749_v33 = vpop.f32.mrb[38].mxu1 }
 0x839   :  { %v2458_v34 = vpack.c.bf16 %v15749_v33, %v15748_v20  ;;  %v2445_v36 = vpop.f32.mrb[39].mxu1  ;;  %v16567_v20 = vld [vmem:[%s20823_s15 + $0x290] ss:$8 sps:$4 sm:$0xff]   ;;  %v16575_v33 = vld [vmem:[%s20823_s15 + $0x2b4] ss:$8 sps:$4 sm:$0xff]  }
 0x83a   :  { %2873 = vmatpush1.bf16.msra.mxu0 %v16443_v2  ;;  %v2457_v39 = vpack.c.bf16 %v2445_v36, %v2442_v32  ;;  %v16518_v2 = vld [vmem:[#allocation16 + $0x90] ss:$8 sps:$4 sm:$0xff]   ;;  %v16570_v32 = vld [vmem:[%s20823_s15 + $0x2a0] ss:$8 sps:$4 sm:$0xff]  }
 0x83b   :  { %2874 = vmatprep.subr.bf16.mxu0 %v16448_v3  ;;  %v16523_v3 = vld [vmem:[#allocation16 + $0xa4] ss:$8 sps:$4 sm:$0xff]   ;;  %v16578_v36 = vld [vmem:[%s20823_s15 + $0x2c4] ss:$8 sps:$4 sm:$0xff]  }
 0x83c   :  { %2588 = vmatmul.mubr.bf16.vlgmr.msra.gmra.mrb[40].mxu1 %v2457_v39  ;;  %v16576_v39 = vld [vmem:[%s20823_s15 + $0x2c0] ss:$8 sps:$4 sm:$0xff]  }
 0x83d   :  { %2597 = vmatprep.mubr.bf16.mxu1 %v18621_v0 }
 0x83e   :  { %2875 = vmatpush1.bf16.msra.mxu0 %v16446_v4  ;;  %v16533_v4 = vld [vmem:[%s20821_s13 + $0x18] sm:$0xff]  }
 0x83f   :  { %2876 = vmatprep.subr.bf16.mxu0 %v16451_v5  ;;  %v16521_v5 = vld [vmem:[#allocation16 + $0xa0] ss:$8 sps:$4 sm:$0xff]  }
 0x842   :  { %2877 = vmatpush1.bf16.msra.mxu0 %v16449_v6  ;;  %v16526_v6 = vld [vmem:[#allocation16 + $0xb4] ss:$8 sps:$4 sm:$0xff]  }
 0x843   :  { %2878 = vmatprep.subr.bf16.mxu0 %v16454_v7  ;;  %v16524_v7 = vld [vmem:[#allocation16 + $0xb0] ss:$8 sps:$4 sm:$0xff]  }
 0x844   :  { %2598 = vmatmul.mubr.bf16.gmra.mrb[44].mxu1 %v2458_v34  ;;  %v16573_v34 = vld [vmem:[%s20823_s15 + $0x2b0] ss:$8 sps:$4 sm:$0xff]  }
 0x845   :  { %2656 = vmatprep.mubr.bf16.mxu1 %v18621_v0 }
 0x846   :  { %2879 = vmatpush1.bf16.msra.mxu0 %v16452_v8  ;;  %v16529_v8 = vld [vmem:[#allocation16 + $0xc4] ss:$8 sps:$4 sm:$0xff]  }
 0x847   :  { %2880 = vmatprep.subr.bf16.mxu0 %v16457_v9  ;;  %v16527_v9 = vld [vmem:[#allocation16 + $0xc0] ss:$8 sps:$4 sm:$0xff]  }
 0x84a   :  { %2881 = vmatpush1.bf16.msra.mxu0 %v16455_v10  ;;  %v16532_v10 = vld [vmem:[#allocation16 + $0xd4] ss:$8 sps:$4 sm:$0xff]  }
 0x84b   :  { %2882 = vmatprep.subr.bf16.mxu0 %v16460_v11  ;;  %v16530_v11 = vld [vmem:[#allocation16 + $0xd0] ss:$8 sps:$4 sm:$0xff]  }
 0x84e   :  { %2883 = vmatpush1.bf16.msra.mxu0 %v16458_v12  ;;  %v16536_v12 = vld [vmem:[#allocation16 + $0xe4] ss:$8 sps:$4 sm:$0xff]  }
 0x84f   :  { %2884 = vmatprep.subr.bf16.mxu0 %v16463_v37  ;;  %v16534_v37 = vld [vmem:[#allocation16 + $0xe0] ss:$8 sps:$4 sm:$0xff]  }
 0x852   :  { %2885 = vmatpush1.bf16.msra.mxu0 %v16461_v13  ;;  %v16539_v13 = vld [vmem:[#allocation16 + $0xf4] ss:$8 sps:$4 sm:$0xff]  }
 0x853   :  { %2886 = vmatprep.subr.bf16.mxu0 %v16466_v14  ;;  %v16537_v14 = vld [vmem:[#allocation16 + $0xf0] ss:$8 sps:$4 sm:$0xff]  }
 0x856   :  { %2887 = vmatpush1.bf16.msra.mxu0 %v16464_v15  ;;  %v16542_v15 = vld [vmem:[%s20823_s15 + $0x204] ss:$8 sps:$4 sm:$0xff]  }
 0x857   :  { %2888 = vmatprep.subr.bf16.mxu0 %v16469_v16  ;;  %v16540_v16 = vld [vmem:[%s20823_s15 + $0x200] ss:$8 sps:$4 sm:$0xff]  }
 0x85a   :  { %2889 = vmatpush1.bf16.msra.mxu0 %v16467_v42  ;;  %v16545_v42 = vld [vmem:[%s20823_s15 + $0x214] ss:$8 sps:$4 sm:$0xff]  }
 0x85b   :  { %2890 = vmatprep.subr.bf16.mxu0 %v16472_v17  ;;  %v16543_v17 = vld [vmem:[%s20823_s15 + $0x210] ss:$8 sps:$4 sm:$0xff]  }
 0x85e   :  { %2891 = vmatpush1.bf16.msra.mxu0 %v16470_v18  ;;  %v16548_v18 = vld [vmem:[%s20823_s15 + $0x224] ss:$8 sps:$4 sm:$0xff]  }
 0x85f   :  { %2892 = vmatprep.subr.bf16.mxu0 %v16475_v19  ;;  %v16546_v19 = vld [vmem:[%s20823_s15 + $0x220] ss:$8 sps:$4 sm:$0xff]  }
 0x862   :  { %2893 = vmatpush1.bf16.msra.mxu0 %v16473_v21  ;;  %v16549_v21 = vld [vmem:[%s20823_s15 + $0x230] ss:$8 sps:$4 sm:$0xff]  }
 0x863   :  { %2894 = vmatprep.subr.bf16.mxu0 %v16478_v23  ;;  %v16554_v23 = vld [vmem:[%s20823_s15 + $0x244] ss:$8 sps:$4 sm:$0xff]  }
 0x866   :  { %2895 = vmatpush1.bf16.msra.mxu0 %v16476_v24  ;;  %v16552_v24 = vld [vmem:[%s20823_s15 + $0x240] ss:$8 sps:$4 sm:$0xff]  }
 0x867   :  { %2896 = vmatprep.subr.bf16.mxu0 %v16481_v25  ;;  %v16560_v25 = vld [vmem:[%s20823_s15 + $0x264] ss:$8 sps:$4 sm:$0xff]  }
 0x86a   :  { %2897 = vmatpush1.bf16.msra.mxu0 %v16479_v26  ;;  %v16558_v26 = vld [vmem:[%s20823_s15 + $0x260] ss:$8 sps:$4 sm:$0xff]  }
 0x86b   :  { %2898 = vmatprep.subr.bf16.mxu0 %v16484_v35  ;;  %v16563_v35 = vld [vmem:[%s20823_s15 + $0x274] ss:$8 sps:$4 sm:$0xff]  }
 0x86e   :  { %2899 = vmatpush1.bf16.msra.mxu0 %v16482_v27  ;;  %v16561_v27 = vld [vmem:[%s20823_s15 + $0x270] ss:$8 sps:$4 sm:$0xff]  }
 0x86f   :  { %2900 = vmatprep.subr.bf16.mxu0 %v16487_v28  ;;  %v16566_v28 = vld [vmem:[%s20823_s15 + $0x284] ss:$8 sps:$4 sm:$0xff]  }
 0x872   :  { %2901 = vmatpush1.bf16.msra.mxu0 %v16485_v29  ;;  %v16564_v29 = vld [vmem:[%s20823_s15 + $0x280] ss:$8 sps:$4 sm:$0xff]  }
 0x873   :  { %15750 = vmatprep.subr.bf16.mxu0 %v19259_v31 }
 0x875   :  { %2903 = vmatmul.mubr.bf16.vlgmr.msra.gmra.mrb[40].mxu0 %v19291_v60 }
 0x876   :  { %15751 = vmatpush3.bf16.msra.mxu0 %v19259_v31  ;;  %15754 = vmatprep.mubr.msk.bf16.mxu0 %vm2401_vm4, %v19408_v51 }
 0x877   :  { %15752 = vmatprep.subr.bf16.mxu0 %v19275_v38 }
 0x87a   :  { %15753 = vmatpush3.bf16.msra.mxu0 %v19275_v38 }
 0x87d   :  { %15755 = vmatmul.mubr.msk.bf16.vlgmr.msra.gmra.mrb[44].mxu0 %vm2401_vm4, %v19410_v52 }
 0x87e   :  { %3769 = vmatprep.mubr.bf16.mxu0 %v18621_v0 }
 0x908   :  { %v2372_v43 = vpop.f32.mrb[36].mxu0 }
 0x909   :  { %v2374_v44 = vpop.f32.mrb[37].mxu0 }
 0x90a   :  { %v2376_v45 = vpop.f32.mrb[38].mxu0 }
 0x90b   :  { %v2381_v46 = vpack.c.bf16 %v2376_v45, %v2372_v43  ;;  %v2378_v47 = vpop.f32.mrb[39].mxu0  ;;  %v16581_v43 = vld [vmem:[%s20823_s15 + $0x2d4] ss:$8 sps:$4 sm:$0xff]   ;;  %v16584_v45 = vld [vmem:[%s20823_s15 + $0x2e4] ss:$8 sps:$4 sm:$0xff]  }
 0x90c   :  { %v2382_v48 = vpack.c.bf16 %v2378_v47, %v2374_v44  ;;  %v16579_v44 = vld [vmem:[%s20823_s15 + $0x2d0] ss:$8 sps:$4 sm:$0xff]   ;;  %v16587_v47 = vld [vmem:[%s20823_s15 + $0x2f4] ss:$8 sps:$4 sm:$0xff]  }
 0x90e   :  { %2624 = vmatprep.subr.bf16.mxu1 %v2382_v48  ;;  %v16585_v48 = vld [vmem:[%s20823_s15 + $0x2f0] ss:$8 sps:$4 sm:$0xff]  }
 0x90f   :  { %2625 = vmatpush1.bf16.msra.mxu1 %v2381_v46  ;;  %v16582_v46 = vld [vmem:[%s20823_s15 + $0x2e0] ss:$8 sps:$4 sm:$0xff]  }
 0x912   :  { %14000 = vmatmul.mubr.msk.bf16.vlgmr.msra.gmra.mrb[40].mxu1 %vm644_vm1, %v16512_v49 }
 0x913   :  { %2666 = vmatprep.mubr.bf16.mxu1 %v18621_v0 }
 0x91a   :  { %14001 = vmatmul.mubr.msk.bf16.gmra.mrb[44].mxu1 %vm644_vm1, %v16513_v50 }
 0x91b   :  { %2968 = vmatprep.mubr.bf16.mxu1 %v18621_v0 }
 0x948   :  { %v2904_v53 = vpop.f32.mrb[40].mxu0 }
 0x949   :  { %v2906_v54 = vpop.f32.mrb[41].mxu0 }
 0x94a   :  { %v2908_v55 = vpop.f32.mrb[42].mxu0 }
 0x94b   :  { %v2913_v56 = vpack.c.bf16 %v2908_v55, %v2904_v53  ;;  %v2910_v57 = vpop.f32.mrb[43].mxu0 }
 0x94c   :  { %v2914_v58 = vpack.c.bf16 %v2910_v57, %v2906_v54 }
 0x94e   :  { %2936 = vmatprep.subr.bf16.mxu1 %v2914_v58 }
 0x94f   :  { %2937 = vmatpush1.bf16.msra.mxu1 %v2913_v56 }
 0x950   :  { %3094 = vmatprep.subr.bf16.mxu1 %v16516_v59  ;;  %v15756_v49 = vpop.f32.mrb[44].mxu0 }
 0x951   :  { %v3530_v50 = vpop.f32.mrb[45].mxu0 }
 0x952   :  { %14072 = vmatmul.mubr.msk.bf16.vlgmr.msra.gmra.mrb[40].mxu1 %vm644_vm1, %v16517_v61  ;;  %v15757_v53 = vpop.f32.mrb[46].mxu0 }
 0x953   :  { %3095 = vmatpush1.bf16.msra.mxu1 %v16514_v63  ;;  %2978 = vmatprep.mubr.bf16.mxu1 %v18621_v0  ;;  %v3546_v54 = vpack.c.bf16 %v15757_v53, %v15756_v49  ;;  %v3533_v55 = vpop.f32.mrb[47].mxu0 }
 0x954   :  { %3096 = vmatprep.subr.bf16.mxu1 %v16520_v1  ;;  %v3545_v56 = vpack.c.bf16 %v3533_v55, %v3530_v50 }
 0x957   :  { %3097 = vmatpush1.bf16.msra.mxu1 %v16518_v2  ;;  %v16592_v2 = vld [vmem:[#allocation16 + $0x104] ss:$8 sps:$4 sm:$0xff]  }
 0x958   :  { %3098 = vmatprep.subr.bf16.mxu1 %v16523_v3  ;;  %v16590_v3 = vld [vmem:[#allocation16 + $0x100] ss:$8 sps:$4 sm:$0xff]  }
 0x95a   :  { %14073 = vmatmul.mubr.msk.bf16.gmra.mrb[44].mxu1 %vm644_vm1, %v16533_v4  ;;  %v16596_v4 = vld [vmem:[#allocation16 + $0x114] ss:$8 sps:$4 sm:$0xff]  }
 0x95b   :  { %3099 = vmatpush1.bf16.msra.mxu1 %v16521_v5  ;;  %3126 = vmatprep.mubr.bf16.mxu1 %v18621_v0  ;;  %v16594_v5 = vld [vmem:[#allocation16 + $0x110] ss:$8 sps:$4 sm:$0xff]  }
 0x95c   :  { %3100 = vmatprep.subr.bf16.mxu1 %v16526_v6  ;;  %v16599_v6 = vld [vmem:[#allocation16 + $0x124] ss:$8 sps:$4 sm:$0xff]  }
 0x95f   :  { %3101 = vmatpush1.bf16.msra.mxu1 %v16524_v7  ;;  %v16609_v7 = vld [vmem:[%s20821_s13 + $0x28] sm:$0xff]  }
 0x960   :  { %3102 = vmatprep.subr.bf16.mxu1 %v16529_v8  ;;  %v16597_v8 = vld [vmem:[#allocation16 + $0x120] ss:$8 sps:$4 sm:$0xff]  }
 0x963   :  { %3103 = vmatpush1.bf16.msra.mxu1 %v16527_v9  ;;  %v16602_v9 = vld [vmem:[#allocation16 + $0x134] ss:$8 sps:$4 sm:$0xff]  }
 0x964   :  { %3104 = vmatprep.subr.bf16.mxu1 %v16532_v10  ;;  %v16600_v10 = vld [vmem:[#allocation16 + $0x130] ss:$8 sps:$4 sm:$0xff]  }
 0x967   :  { %3105 = vmatpush1.bf16.msra.mxu1 %v16530_v11  ;;  %v16605_v11 = vld [vmem:[#allocation16 + $0x144] ss:$8 sps:$4 sm:$0xff]  }
 0x968   :  { %3106 = vmatprep.subr.bf16.mxu1 %v16536_v12  ;;  %v16603_v12 = vld [vmem:[#allocation16 + $0x140] ss:$8 sps:$4 sm:$0xff]  }
 0x96b   :  { %3107 = vmatpush1.bf16.msra.mxu1 %v16534_v37  ;;  %v16608_v37 = vld [vmem:[#allocation16 + $0x154] ss:$8 sps:$4 sm:$0xff]  }
 0x96c   :  { %3108 = vmatprep.subr.bf16.mxu1 %v16539_v13  ;;  %v16606_v13 = vld [vmem:[#allocation16 + $0x150] ss:$8 sps:$4 sm:$0xff]  }
 0x96f   :  { %3109 = vmatpush1.bf16.msra.mxu1 %v16537_v14  ;;  %v16612_v14 = vld [vmem:[#allocation16 + $0x164] ss:$8 sps:$4 sm:$0xff]  }
 0x970   :  { %3348 = vmatprep.subr.bf16.mxu1 %v16542_v15  ;;  %v16610_v15 = vld [vmem:[#allocation16 + $0x160] ss:$8 sps:$4 sm:$0xff]  }
 0x972   :  { %3127 = vmatmul.mubr.bf16.vlgmr.msra.gmra.mrb[40].mxu1 %v19259_v31  ;;  %v16551_v31 = vld [vmem:[%s20823_s15 + $0x234] ss:$8 sps:$4 sm:$0xff]  }
 0x973   :  { %3349 = vmatpush1.bf16.msra.mxu1 %v16540_v16  ;;  %3136 = vmatprep.mubr.bf16.mxu1 %v18621_v0  ;;  %v16615_v16 = vld [vmem:[#allocation16 + $0x174] ss:$8 sps:$4 sm:$0xff]  }
 0x974   :  { %3350 = vmatprep.subr.bf16.mxu1 %v16545_v42  ;;  %v16613_v42 = vld [vmem:[#allocation16 + $0x170] ss:$8 sps:$4 sm:$0xff]  }
 0x977   :  { %3351 = vmatpush1.bf16.msra.mxu1 %v16543_v17  ;;  %v3707_v17 = vlaneseq }
 0x978   :  { %3352 = vmatprep.subr.bf16.mxu1 %v16548_v18 }
 0x979   :  { %v19541_v18 = vshrl.u32 %v3707_v17, 7  ;;  %v16660_v17 = vld [vmem:[%s20825_s17 + $0x1e4] ss:$8 sps:$4 sm:$0xff]  }
 0x97a   :  { %3137 = vmatmul.mubr.bf16.gmra.mrb[44].mxu1 %v19275_v38  ;;  %v16557_v38 = vld [vmem:[%s20823_s15 + $0x254] ss:$8 sps:$4 sm:$0xff]  }
 0x97b   :  { %3353 = vmatpush1.bf16.msra.mxu1 %v16546_v19  ;;  %3380 = vmatprep.mubr.bf16.mxu1 %v19293_v62  ;;  %v16555_v62 = vld [vmem:[%s20823_s15 + $0x250] ss:$8 sps:$4 sm:$0xff]   ;;  %v19544_v19 = vsub.s32 0, %v19541_v18 }
 0x97c   :  { %3354 = vmatprep.subr.bf16.mxu1 %v16551_v31  ;;  %v3705_v31 = vld [vmem:[#allocation18] sm:$0x3] }
 0x97f   :  { %3355 = vmatpush1.bf16.msra.mxu1 %v16549_v21  ;;  %v19547_v21 = vsub.s32 1, %v19541_v18 }
 0x980   :  { %3356 = vmatprep.subr.bf16.mxu1 %v16554_v23  ;;  %v3710_v23 = vrot.slane %v3705_v31, %v19544_v19 }
 0x983   :  { %3357 = vmatpush1.bf16.msra.mxu1 %v16552_v24  ;;  %v3714_v24 = vrot.slane %v3705_v31, %v19547_v21  ;;  %v16658_v31 = vld [vmem:[%s20825_s17 + $0x1e0] ss:$8 sps:$4 sm:$0xff]  }
 0x984   :  { %3358 = vmatprep.subr.bf16.mxu1 %v16557_v38 }
 0x987   :  { %3359 = vmatpush1.bf16.msra.mxu1 %v16555_v62 }
 0x988   :  { %3360 = vmatprep.subr.bf16.mxu1 %v16560_v25 }
 0x98b   :  { %3361 = vmatpush1.bf16.msra.mxu1 %v16558_v26 }
 0x98c   :  { %3362 = vmatprep.subr.bf16.mxu1 %v16563_v35 }
 0x98f   :  { %3363 = vmatpush1.bf16.msra.mxu1 %v16561_v27 }
 0x990   :  { %3364 = vmatprep.subr.bf16.mxu1 %v16566_v28 }
 0x993   :  { %3365 = vmatpush1.bf16.msra.mxu1 %v16564_v29 }
 0x994   :  { %3366 = vmatprep.subr.bf16.mxu1 %v16569_v30 }
 0x997   :  { %3367 = vmatpush1.bf16.msra.mxu1 %v16567_v20 }
 0x998   :  { %3368 = vmatprep.subr.bf16.mxu1 %v16572_v22 }
 0x99b   :  { %3369 = vmatpush1.bf16.msra.mxu1 %v16570_v32 }
 0x99c   :  { %3370 = vmatprep.subr.bf16.mxu1 %v16575_v33 }
 0x99f   :  { %3371 = vmatpush1.bf16.msra.mxu1 %v16573_v34 }
 0x9a0   :  { %3372 = vmatprep.subr.bf16.mxu1 %v16578_v36 }
 0x9a3   :  { %3373 = vmatpush1.bf16.msra.mxu1 %v16576_v39 }
 0x9a4   :  { %3374 = vmatprep.subr.bf16.mxu1 %v16581_v43 }
 0x9a7   :  { %3375 = vmatpush1.bf16.msra.mxu1 %v16579_v44 }
 0x9a8   :  { %3376 = vmatprep.subr.bf16.mxu1 %v16584_v45 }
 0x9ab   :  { %3377 = vmatpush1.bf16.msra.mxu1 %v16582_v46 }
 0x9ac   :  { %3378 = vmatprep.subr.bf16.mxu1 %v16587_v47 }
 0x9af   :  { %3379 = vmatpush1.bf16.msra.mxu1 %v16585_v48 }
 0x9b2   :  { %3381 = vmatmul.mubr.bf16.vlgmr.msra.gmra.mrb[48].mxu1 %v19291_v60  ;;  %v16593_v60 = vld [vmem:[%s20821_s13 + $0x20] sm:$0xff]  }
 0x9b3   :  { %3446 = vmatprep.mubr.bf16.mxu1 %v18621_v0 }
 0xa85   :  { %v3382_v57 = vpop.f32.mrb[48].mxu1 }
 0xa86   :  { %v3384_v58 = vpop.f32.mrb[49].mxu1 }
 0xa87   :  { %v3386_v59 = vpop.f32.mrb[50].mxu1 }
 0xa88   :  { %v3391_v61 = vpack.c.bf16 %v3386_v59, %v3382_v57  ;;  %v3388_v63 = vpop.f32.mrb[51].mxu1  ;;  %v16618_v57 = vld [vmem:[%s20825_s17 + $0x104] ss:$8 sps:$4 sm:$0xff]   ;;  %v16621_v59 = vld [vmem:[%s20825_s17 + $0x114] ss:$8 sps:$4 sm:$0xff]  }
 0xa89   :  { %v3392_v1 = vpack.c.bf16 %v3388_v63, %v3384_v58  ;;  %v16616_v58 = vld [vmem:[%s20825_s17 + $0x100] ss:$8 sps:$4 sm:$0xff]   ;;  %v16624_v63 = vld [vmem:[%s20825_s17 + $0x124] ss:$8 sps:$4 sm:$0xff]  }
 0xa8b   :  { %3414 = vmatprep.subr.bf16.mxu1 %v3392_v1  ;;  %v16625_v1 = vld [vmem:[%s20825_s17 + $0x130] ss:$8 sps:$4 sm:$0xff]  }
 0xa8c   :  { %3415 = vmatpush1.bf16.msra.mxu1 %v3391_v61  ;;  %v16619_v61 = vld [vmem:[%s20825_s17 + $0x110] ss:$8 sps:$4 sm:$0xff]  }
 0xa8d   :  { %3644 = vmatprep.subr.bf16.mxu1 %v16592_v2  ;;  %v16630_v2 = vld [vmem:[%s20825_s17 + $0x144] ss:$8 sps:$4 sm:$0xff]  }
 0xa8f   :  { %14160 = vmatmul.mubr.msk.bf16.vlgmr.msra.gmra.mrb[40].mxu1 %vm644_vm1, %v16593_v60  ;;  %v16628_v60 = vld [vmem:[%s20825_s17 + $0x140] ss:$8 sps:$4 sm:$0xff]  }
 0xa90   :  { %3645 = vmatpush1.bf16.msra.mxu1 %v16590_v3  ;;  %3456 = vmatprep.mubr.bf16.mxu1 %v18621_v0  ;;  %v16636_v3 = vld [vmem:[%s20825_s17 + $0x164] ss:$8 sps:$4 sm:$0xff]  }
 0xa91   :  { %3646 = vmatprep.subr.bf16.mxu1 %v16596_v4  ;;  %v16634_v4 = vld [vmem:[%s20825_s17 + $0x160] ss:$8 sps:$4 sm:$0xff]  }
 0xa94   :  { %3647 = vmatpush1.bf16.msra.mxu1 %v16594_v5  ;;  %v16639_v5 = vld [vmem:[%s20825_s17 + $0x174] ss:$8 sps:$4 sm:$0xff]  }
 0xa95   :  { %3648 = vmatprep.subr.bf16.mxu1 %v16599_v6  ;;  %v16637_v6 = vld [vmem:[%s20825_s17 + $0x170] ss:$8 sps:$4 sm:$0xff]  }
 0xa97   :  { %14161 = vmatmul.mubr.msk.bf16.gmra.mrb[44].mxu1 %vm644_vm1, %v16609_v7  ;;  %v16642_v7 = vld [vmem:[%s20825_s17 + $0x184] ss:$8 sps:$4 sm:$0xff]  }
 0xa98   :  { %3649 = vmatpush1.bf16.msra.mxu1 %v16597_v8  ;;  %3676 = vmatprep.mubr.bf16.mxu1 %v18621_v0  ;;  %v16640_v8 = vld [vmem:[%s20825_s17 + $0x180] ss:$8 sps:$4 sm:$0xff]  }
 0xa99   :  { %3650 = vmatprep.subr.bf16.mxu1 %v16602_v9  ;;  %v16645_v9 = vld [vmem:[%s20825_s17 + $0x194] ss:$8 sps:$4 sm:$0xff]  }
 0xa9c   :  { %3651 = vmatpush1.bf16.msra.mxu1 %v16600_v10  ;;  %v16643_v10 = vld [vmem:[%s20825_s17 + $0x190] ss:$8 sps:$4 sm:$0xff]  }
 0xa9d   :  { %3652 = vmatprep.subr.bf16.mxu1 %v16605_v11  ;;  %v16648_v11 = vld [vmem:[%s20825_s17 + $0x1a4] ss:$8 sps:$4 sm:$0xff]  }
 0xaa0   :  { %3653 = vmatpush1.bf16.msra.mxu1 %v16603_v12  ;;  %v16646_v12 = vld [vmem:[%s20825_s17 + $0x1a0] ss:$8 sps:$4 sm:$0xff]  }
 0xaa1   :  { %3654 = vmatprep.subr.bf16.mxu1 %v16608_v37  ;;  %v16651_v37 = vld [vmem:[%s20825_s17 + $0x1b4] ss:$8 sps:$4 sm:$0xff]  }
 0xaa4   :  { %3655 = vmatpush1.bf16.msra.mxu1 %v16606_v13  ;;  %v16649_v13 = vld [vmem:[%s20825_s17 + $0x1b0] ss:$8 sps:$4 sm:$0xff]  }
 0xaa5   :  { %3656 = vmatprep.subr.bf16.mxu1 %v16612_v14  ;;  %v16654_v14 = vld [vmem:[%s20825_s17 + $0x1c4] ss:$8 sps:$4 sm:$0xff]  }
 0xaa8   :  { %3657 = vmatpush1.bf16.msra.mxu1 %v16610_v15  ;;  %v16652_v15 = vld [vmem:[%s20825_s17 + $0x1c0] ss:$8 sps:$4 sm:$0xff]  }
 0xaa9   :  { %3658 = vmatprep.subr.bf16.mxu1 %v16615_v16  ;;  %v16657_v16 = vld [vmem:[%s20825_s17 + $0x1d4] ss:$8 sps:$4 sm:$0xff]  }
 0xaac   :  { %3659 = vmatpush1.bf16.msra.mxu1 %v16613_v42  ;;  %v16655_v42 = vld [vmem:[%s20825_s17 + $0x1d0] ss:$8 sps:$4 sm:$0xff]  }
 0xaaf   :  { %3677 = vmatmul.mubr.bf16.vlgmr.msra.gmra.mrb[40].mxu1 %v3545_v56 }
 0xab0   :  { %3686 = vmatprep.mubr.bf16.mxu1 %v18621_v0 }
 0xab7   :  { %3687 = vmatmul.mubr.bf16.gmra.mrb[44].mxu1 %v3546_v54 }
 0xab8   :  { %4317 = vmatprep.mubr.bf16.mxu1 %v18621_v0 }
 0xb82   :  { %v3678_v38 = vpop.f32.mrb[40].mxu1 }
 0xb83   :  { %v3717_v62 = vadd.f32 %v3710_v23, %v3678_v38  ;;  %v3680_v25 = vpop.f32.mrb[41].mxu1  ;;  %v16666_v38 = vld [vmem:[%s20825_s17 + $0x4] ss:$8 sps:$4 sm:$0xff]  }
 0xb84   :  { %v3718_v26 = vadd.f32 %v3714_v24, %v3680_v25  ;;  %v3682_v35 = vpop.f32.mrb[42].mxu1  ;;  %v16669_v25 = vld [vmem:[%s20825_s17 + $0x14] ss:$8 sps:$4 sm:$0xff]  }
 0xb85   :  { %v3719_v27 = vadd.f32 %v3710_v23, %v3682_v35  ;;  %v3684_v28 = vpop.f32.mrb[43].mxu1  ;;  %v3725_v30 = vmax.f32 %v3717_v62, 0.0  ;;  %v16664_v62 = vld [vmem:[%s20825_s17] ss:$8 sps:$4 sm:$0xff]   ;;  %v16672_v35 = vld [vmem:[%s20825_s17 + $0x24] ss:$8 sps:$4 sm:$0xff]  }
 0xb86   :  { %v3720_v29 = vadd.f32 %v3714_v24, %v3684_v28  ;;  %v3726_v22 = vmax.f32 %v3718_v26, 0.0  ;;  %v16667_v26 = vld [vmem:[%s20825_s17 + $0x10] ss:$8 sps:$4 sm:$0xff]   ;;  %v16675_v28 = vld [vmem:[%s20825_s17 + $0x34] ss:$8 sps:$4 sm:$0xff]  }
 0xb87   :  { %v3727_v20 = vmax.f32 %v3719_v27, 0.0  ;;  %v16670_v27 = vld [vmem:[%s20825_s17 + $0x20] ss:$8 sps:$4 sm:$0xff]  }
 0xb88   :  { %v3728_v32 = vmax.f32 %v3720_v29, 0.0  ;;  %v16673_v29 = vld [vmem:[%s20825_s17 + $0x30] ss:$8 sps:$4 sm:$0xff]  }
 0xb89   :  { %v19551_v33 = vpack.c.bf16 %v3727_v20, %v3725_v30  ;;  %v16678_v30 = vld [vmem:[%s20825_s17 + $0x44] ss:$8 sps:$4 sm:$0xff]   ;;  %v16676_v20 = vld [vmem:[%s20825_s17 + $0x40] ss:$8 sps:$4 sm:$0xff]  }
 0xb8a   :  { %v3734_v34 = vpack.c.bf16 %v3728_v32, %v3726_v22  ;;  %v3688_v36 = vpop.f32.mrb[44].mxu1  ;;  %v16681_v22 = vld [vmem:[%s20825_s17 + $0x54] ss:$8 sps:$4 sm:$0xff]   ;;  %v16679_v32 = vld [vmem:[%s20825_s17 + $0x50] ss:$8 sps:$4 sm:$0xff]  }
 0xb8b   :  { %v3721_v39 = vadd.f32 %v3710_v23, %v3688_v36  ;;  %v3690_v43 = vpop.f32.mrb[45].mxu1  ;;  %v16687_v36 = vld [vmem:[%s20825_s17 + $0x74] ss:$8 sps:$4 sm:$0xff]  }
 0xb8c   :  { %v3722_v44 = vadd.f32 %v3714_v24, %v3690_v43  ;;  %v3692_v45 = vpop.f32.mrb[46].mxu1  ;;  %3737 = vmatprep.subr.bf16.mxu0 %v3734_v34  ;;  %4285 = vmatprep.subr.bf16.mxu1 %v3734_v34  ;;  %v16690_v43 = vld [vmem:[%s20825_s17 + $0x84] ss:$8 sps:$4 sm:$0xff]  }
 0xb8d   :  { %v3723_v46 = vadd.f32 %v3710_v23, %v3692_v45  ;;  %v3694_v47 = vpop.f32.mrb[47].mxu1  ;;  %3738 = vmatpush1.bf16.msra.mxu0 %v19551_v33  ;;  %4286 = vmatpush1.bf16.msra.mxu1 %v19551_v33  ;;  %v3729_v49 = vmax.f32 %v3721_v39, 0.0  ;;  %v16663_v23 = vld [vmem:[%s20825_s17 + $0x1f4] ss:$8 sps:$4 sm:$0xff]   ;;  %v16685_v39 = vld [vmem:[%s20825_s17 + $0x70] ss:$8 sps:$4 sm:$0xff]  }
 0xb8e   :  { %v3724_v48 = vadd.f32 %v3714_v24, %v3694_v47  ;;  %v3730_v53 = vmax.f32 %v3722_v44, 0.0  ;;  %v16661_v24 = vld [vmem:[%s20825_s17 + $0x1f0] ss:$8 sps:$4 sm:$0xff]   ;;  %v16688_v44 = vld [vmem:[%s20825_s17 + $0x80] ss:$8 sps:$4 sm:$0xff]  }
 0xb8f   :  { %v3731_v50 = vmax.f32 %v3723_v46, 0.0  ;;  %v16693_v45 = vld [vmem:[%s20825_s17 + $0x94] ss:$8 sps:$4 sm:$0xff]   ;;  %v16691_v46 = vld [vmem:[%s20825_s17 + $0x90] ss:$8 sps:$4 sm:$0xff]  }
 0xb90   :  { %v3732_v54 = vmax.f32 %v3724_v48, 0.0  ;;  %v16696_v47 = vld [vmem:[%s20825_s17 + $0xa4] ss:$8 sps:$4 sm:$0xff]   ;;  %v16694_v48 = vld [vmem:[%s20825_s17 + $0xa0] ss:$8 sps:$4 sm:$0xff]  }
 0xb91   :  { %v19555_v55 = vpack.c.bf16 %v3731_v50, %v3729_v49  ;;  %v16699_v49 = vld [vmem:[%s20825_s17 + $0xb4] ss:$8 sps:$4 sm:$0xff]   ;;  %v16697_v50 = vld [vmem:[%s20825_s17 + $0xb0] ss:$8 sps:$4 sm:$0xff]  }
 0xb92   :  { %v19557_v56 = vpack.c.bf16 %v3732_v54, %v3730_v53  ;;  %v16702_v53 = vld [vmem:[%s20825_s17 + $0xc4] ss:$8 sps:$4 sm:$0xff]   ;;  %v16700_v54 = vld [vmem:[%s20825_s17 + $0xc0] ss:$8 sps:$4 sm:$0xff]  }
 0xb94   :  { %3739 = vmatprep.subr.bf16.mxu0 %v19557_v56  ;;  %4287 = vmatprep.subr.bf16.mxu1 %v19557_v56 }
 0xb95   :  { %3740 = vmatpush1.bf16.msra.mxu0 %v19555_v55  ;;  %4288 = vmatpush1.bf16.msra.mxu1 %v19555_v55 }
 0xb96   :  { %4019 = vmatprep.subr.bf16.mxu0 %v16618_v57  ;;  %v16708_v57 = vld [vmem:[%s20825_s17 + $0xe4] ss:$8 sps:$4 sm:$0xff]  }
 0xb98   :  { %14182 = vmatmul.mubr.msk.bf16.vlgmr.msra.gmra.mrb[48].mxu0 %vm2401_vm4, %v19282_v40  ;;  %14280 = vmatmul.mubr.msk.bf16.vlgmr.msra.gmra.mrb[52].mxu1 %vm2401_vm4, %v19408_v51  ;;  %v16622_v40 = vld [vmem:[%s20825_s17 + $0x120] ss:$8 sps:$4 sm:$0xff]   ;;  %v16627_v51 = vld [vmem:[%s20825_s17 + $0x134] ss:$8 sps:$4 sm:$0xff]  }
 0xb99   :  { %4020 = vmatpush1.bf16.msra.mxu0 %v16616_v58  ;;  %3779 = vmatprep.mubr.bf16.mxu0 %v18621_v0  ;;  %v16706_v58 = vld [vmem:[%s20825_s17 + $0xe0] ss:$8 sps:$4 sm:$0xff]  }
 0xb9a   :  { %4021 = vmatprep.subr.bf16.mxu0 %v16621_v59  ;;  %4327 = vmatprep.mubr.bf16.mxu1 %v18621_v0  ;;  %v16711_v59 = vld [vmem:[%s20825_s17 + $0xf4] ss:$8 sps:$4 sm:$0xff]  }
 0xb9d   :  { %4022 = vmatpush1.bf16.msra.mxu0 %v16619_v61  ;;  %v16709_v61 = vld [vmem:[%s20825_s17 + $0xf0] ss:$8 sps:$4 sm:$0xff]  }
 0xb9e   :  { %4023 = vmatprep.subr.bf16.mxu0 %v16624_v63  ;;  %v16714_v63 = vld [vmem:[%s20825_s17 + $0x204] ss:$8 sps:$4 sm:$0xff]  }
 0xba0   :  { %14183 = vmatmul.mubr.msk.bf16.gmra.mrb[52].mxu0 %vm2401_vm4, %v19286_v41  ;;  %14281 = vmatmul.mubr.msk.bf16.gmra.mrb[56].mxu1 %vm2401_vm4, %v19410_v52  ;;  %v16633_v41 = vld [vmem:[%s20825_s17 + $0x154] ss:$8 sps:$4 sm:$0xff]   ;;  %v16631_v52 = vld [vmem:[%s20825_s17 + $0x150] ss:$8 sps:$4 sm:$0xff]  }
 0xba1   :  { %4024 = vmatpush1.bf16.msra.mxu0 %v16622_v40  ;;  %4051 = vmatprep.mubr.bf16.mxu0 %v3734_v34  ;;  %v16682_v34 = vld [vmem:[%s20825_s17 + $0x60] ss:$8 sps:$4 sm:$0xff]  }
 0xba2   :  { %4025 = vmatprep.subr.bf16.mxu0 %v16627_v51  ;;  %v16760_v40 = vld [vmem:[#allocation21] ss:$16 sps:$4 sm:$0xff]   ;;  %v16762_v51 = vld [vmem:[#allocation21 + $0x4] ss:$16 sps:$4 sm:$0xff]  }
 0xba3   :  { %5020 = vmatprep.subr.bf16.mxu1 %v16762_v51  ;;  %v16729_v51 = vld [vmem:[%s20825_s17 + $0x254] ss:$8 sps:$4 sm:$0xff]  }
 0xba4   :  { %5021 = vmatpush1.bf16.msra.mxu1 %v16760_v40  ;;  %v16724_v40 = vld [vmem:[%s20825_s17 + $0x240] ss:$8 sps:$4 sm:$0xff]  }
 0xba5   :  { %4026 = vmatpush1.bf16.msra.mxu0 %v16625_v1  ;;  %v16765_v1 = vld [vmem:[#allocation21 + $0x24] ss:$16 sps:$4 sm:$0xff]  }
 0xba6   :  { %4027 = vmatprep.subr.bf16.mxu0 %v16630_v2  ;;  %v16763_v2 = vld [vmem:[#allocation21 + $0x20] ss:$16 sps:$4 sm:$0xff]   ;;  %5022 = vmatprep.subr.bf16.mxu1 %v16765_v1 }
 0xba7   :  { %v16727_v1 = vld [vmem:[%s20825_s17 + $0x250] ss:$8 sps:$4 sm:$0xff]  }
 0xba8   :  { %5023 = vmatpush1.bf16.msra.mxu1 %v16763_v2  ;;  %v16732_v2 = vld [vmem:[%s20825_s17 + $0x264] ss:$8 sps:$4 sm:$0xff]  }
 0xba9   :  { %4028 = vmatpush1.bf16.msra.mxu0 %v16628_v60  ;;  %v16768_v60 = vld [vmem:[#allocation21 + $0x44] ss:$16 sps:$4 sm:$0xff]  }
 0xbaa   :  { %4029 = vmatprep.subr.bf16.mxu0 %v16633_v41  ;;  %v16766_v41 = vld [vmem:[#allocation21 + $0x40] ss:$16 sps:$4 sm:$0xff]   ;;  %5024 = vmatprep.subr.bf16.mxu1 %v16768_v60 }
 0xbab   :  { %v16730_v60 = vld [vmem:[%s20825_s17 + $0x260] ss:$8 sps:$4 sm:$0xff]  }
 0xbac   :  { %5025 = vmatpush1.bf16.msra.mxu1 %v16766_v41  ;;  %v16735_v41 = vld [vmem:[%s20825_s17 + $0x274] ss:$8 sps:$4 sm:$0xff]  }
 0xbad   :  { %4030 = vmatpush1.bf16.msra.mxu0 %v16631_v52  ;;  %v16771_v52 = vld [vmem:[#allocation21 + $0x64] ss:$16 sps:$4 sm:$0xff]  }
 0xbae   :  { %4031 = vmatprep.subr.bf16.mxu0 %v16636_v3  ;;  %v16769_v3 = vld [vmem:[#allocation21 + $0x60] ss:$16 sps:$4 sm:$0xff]   ;;  %5026 = vmatprep.subr.bf16.mxu1 %v16771_v52 }
 0xbaf   :  { %v16733_v52 = vld [vmem:[%s20825_s17 + $0x270] ss:$8 sps:$4 sm:$0xff]  }
 0xbb0   :  { %5027 = vmatpush1.bf16.msra.mxu1 %v16769_v3  ;;  %v16738_v3 = vld [vmem:[%s20825_s17 + $0x284] ss:$8 sps:$4 sm:$0xff]  }
 0xbb1   :  { %4032 = vmatpush1.bf16.msra.mxu0 %v16634_v4  ;;  %v16774_v4 = vld [vmem:[#allocation21 + $0x84] ss:$16 sps:$4 sm:$0xff]  }
 0xbb2   :  { %4033 = vmatprep.subr.bf16.mxu0 %v16639_v5  ;;  %v16772_v5 = vld [vmem:[#allocation21 + $0x80] ss:$16 sps:$4 sm:$0xff]   ;;  %5028 = vmatprep.subr.bf16.mxu1 %v16774_v4 }
 0xbb3   :  { %v16736_v4 = vld [vmem:[%s20825_s17 + $0x280] ss:$8 sps:$4 sm:$0xff]  }
 0xbb4   :  { %5029 = vmatpush1.bf16.msra.mxu1 %v16772_v5  ;;  %v16741_v5 = vld [vmem:[%s20825_s17 + $0x294] ss:$8 sps:$4 sm:$0xff]  }
 0xbb5   :  { %4034 = vmatpush1.bf16.msra.mxu0 %v16637_v6  ;;  %v16777_v6 = vld [vmem:[#allocation21 + $0xa4] ss:$16 sps:$4 sm:$0xff]  }
 0xbb6   :  { %4035 = vmatprep.subr.bf16.mxu0 %v16642_v7  ;;  %v16775_v7 = vld [vmem:[#allocation21 + $0xa0] ss:$16 sps:$4 sm:$0xff]   ;;  %5030 = vmatprep.subr.bf16.mxu1 %v16777_v6 }
 0xbb7   :  { %v16739_v6 = vld [vmem:[%s20825_s17 + $0x290] ss:$8 sps:$4 sm:$0xff]  }
 0xbb8   :  { %5031 = vmatpush1.bf16.msra.mxu1 %v16775_v7  ;;  %v16744_v7 = vld [vmem:[%s20825_s17 + $0x2a4] ss:$8 sps:$4 sm:$0xff]  }
 0xbb9   :  { %4036 = vmatpush1.bf16.msra.mxu0 %v16640_v8  ;;  %v16780_v8 = vld [vmem:[#allocation21 + $0xc4] ss:$16 sps:$4 sm:$0xff]  }
 0xbba   :  { %4037 = vmatprep.subr.bf16.mxu0 %v16645_v9  ;;  %v16778_v9 = vld [vmem:[#allocation21 + $0xc0] ss:$16 sps:$4 sm:$0xff]   ;;  %5032 = vmatprep.subr.bf16.mxu1 %v16780_v8 }
 0xbbb   :  { %v16742_v8 = vld [vmem:[%s20825_s17 + $0x2a0] ss:$8 sps:$4 sm:$0xff]  }
 0xbbc   :  { %5033 = vmatpush1.bf16.msra.mxu1 %v16778_v9  ;;  %v16747_v9 = vld [vmem:[%s20825_s17 + $0x2b4] ss:$8 sps:$4 sm:$0xff]  }
 0xbbd   :  { %4038 = vmatpush1.bf16.msra.mxu0 %v16643_v10  ;;  %v16783_v10 = vld [vmem:[#allocation21 + $0xe4] ss:$16 sps:$4 sm:$0xff]  }
 0xbbe   :  { %4039 = vmatprep.subr.bf16.mxu0 %v16648_v11  ;;  %v16781_v11 = vld [vmem:[#allocation21 + $0xe0] ss:$16 sps:$4 sm:$0xff]   ;;  %5034 = vmatprep.subr.bf16.mxu1 %v16783_v10 }
 0xbbf   :  { %v16745_v10 = vld [vmem:[%s20825_s17 + $0x2b0] ss:$8 sps:$4 sm:$0xff]  }
 0xbc0   :  { %5035 = vmatpush1.bf16.msra.mxu1 %v16781_v11  ;;  %v16750_v11 = vld [vmem:[%s20825_s17 + $0x2c4] ss:$8 sps:$4 sm:$0xff]  }
 0xbc1   :  { %4040 = vmatpush1.bf16.msra.mxu0 %v16646_v12  ;;  %v16786_v12 = vld [vmem:[#allocation21 + $0x104] ss:$16 sps:$4 sm:$0xff]  }
 0xbc2   :  { %4041 = vmatprep.subr.bf16.mxu0 %v16651_v37  ;;  %v16784_v37 = vld [vmem:[#allocation21 + $0x100] ss:$16 sps:$4 sm:$0xff]   ;;  %5036 = vmatprep.subr.bf16.mxu1 %v16786_v12 }
 0xbc3   :  { %v16748_v12 = vld [vmem:[%s20825_s17 + $0x2c0] ss:$8 sps:$4 sm:$0xff]  }
 0xbc4   :  { %5037 = vmatpush1.bf16.msra.mxu1 %v16784_v37  ;;  %v16753_v37 = vld [vmem:[%s20825_s17 + $0x2d4] ss:$8 sps:$4 sm:$0xff]  }
 0xbc5   :  { %4042 = vmatpush1.bf16.msra.mxu0 %v16649_v13  ;;  %v16789_v13 = vld [vmem:[#allocation21 + $0x124] ss:$16 sps:$4 sm:$0xff]  }
 0xbc6   :  { %4043 = vmatprep.subr.bf16.mxu0 %v16654_v14  ;;  %v16787_v14 = vld [vmem:[#allocation21 + $0x120] ss:$16 sps:$4 sm:$0xff]   ;;  %5038 = vmatprep.subr.bf16.mxu1 %v16789_v13 }
 0xbc7   :  { %v16751_v13 = vld [vmem:[%s20825_s17 + $0x2d0] ss:$8 sps:$4 sm:$0xff]  }
 0xbc8   :  { %5039 = vmatpush1.bf16.msra.mxu1 %v16787_v14  ;;  %v16756_v14 = vld [vmem:[%s20825_s17 + $0x2e4] ss:$8 sps:$4 sm:$0xff]  }
 0xbc9   :  { %4044 = vmatpush1.bf16.msra.mxu0 %v16652_v15  ;;  %v16792_v15 = vld [vmem:[#allocation21 + $0x144] ss:$16 sps:$4 sm:$0xff]  }
 0xbca   :  { %4045 = vmatprep.subr.bf16.mxu0 %v16657_v16  ;;  %v16790_v16 = vld [vmem:[#allocation21 + $0x140] ss:$16 sps:$4 sm:$0xff]   ;;  %5040 = vmatprep.subr.bf16.mxu1 %v16792_v15 }
 0xbcb   :  { %v16754_v15 = vld [vmem:[%s20825_s17 + $0x2e0] ss:$8 sps:$4 sm:$0xff]  }
 0xbcc   :  { %5041 = vmatpush1.bf16.msra.mxu1 %v16790_v16  ;;  %v16759_v16 = vld [vmem:[%s20825_s17 + $0x2f4] ss:$8 sps:$4 sm:$0xff]  }
 0xbcd   :  { %4046 = vmatpush1.bf16.msra.mxu0 %v16655_v42  ;;  %v16795_v42 = vld [vmem:[#allocation21 + $0x164] ss:$16 sps:$4 sm:$0xff]  }
 0xbce   :  { %4047 = vmatprep.subr.bf16.mxu0 %v16660_v17  ;;  %v16793_v17 = vld [vmem:[#allocation21 + $0x160] ss:$16 sps:$4 sm:$0xff]   ;;  %5042 = vmatprep.subr.bf16.mxu1 %v16795_v42 }
 0xbcf   :  { %v16757_v42 = vld [vmem:[%s20825_s17 + $0x2f0] ss:$8 sps:$4 sm:$0xff]  }
 0xbd0   :  { %5043 = vmatpush1.bf16.msra.mxu1 %v16793_v17  ;;  %v16804_v17 = vld [vmem:[#allocation21 + $0x1c4] ss:$16 sps:$4 sm:$0xff]  }
 0xbd1   :  { %4048 = vmatpush1.bf16.msra.mxu0 %v16658_v31  ;;  %v16798_v31 = vld [vmem:[#allocation21 + $0x184] ss:$16 sps:$4 sm:$0xff]  }
 0xbd2   :  { %4049 = vmatprep.subr.bf16.mxu0 %v16663_v23  ;;  %v16796_v23 = vld [vmem:[#allocation21 + $0x180] ss:$16 sps:$4 sm:$0xff]   ;;  %5044 = vmatprep.subr.bf16.mxu1 %v16798_v31 }
 0xbd3   :  { %v16802_v31 = vld [vmem:[#allocation21 + $0x1c0] ss:$16 sps:$4 sm:$0xff]  }
 0xbd4   :  { %5045 = vmatpush1.bf16.msra.mxu1 %v16796_v23  ;;  %v16807_v23 = vld [vmem:[#allocation21 + $0x1e4] ss:$16 sps:$4 sm:$0xff]  }
 0xbd5   :  { %4050 = vmatpush1.bf16.msra.mxu0 %v16661_v24  ;;  %v16801_v24 = vld [vmem:[#allocation21 + $0x1a4] ss:$16 sps:$4 sm:$0xff]  }
 0xbd6   :  { %4232 = vmatprep.subr.bf16.mxu0 %v16666_v38  ;;  %5046 = vmatprep.subr.bf16.mxu1 %v16801_v24  ;;  %v16805_v24 = vld [vmem:[#allocation21 + $0x1e0] ss:$16 sps:$4 sm:$0xff]  }
 0xbd8   :  { %4052 = vmatmul.mubr.bf16.vlgmr.msra.gmra.mrb[56].mxu0 %v19551_v33  ;;  %v16684_v33 = vld [vmem:[%s20825_s17 + $0x64] ss:$8 sps:$4 sm:$0xff]  }
 0xbd9   :  { %4061 = vmatprep.mubr.bf16.mxu0 %v19557_v56  ;;  %4233 = vmatpush1.bf16.msra.mxu0 %v16664_v62  ;;  %v16703_v56 = vld [vmem:[%s20825_s17 + $0xd0] ss:$8 sps:$4 sm:$0xff]  }
 0xbda   :  { %4234 = vmatprep.subr.bf16.mxu0 %v16669_v25 }
 0xbdd   :  { %4235 = vmatpush1.bf16.msra.mxu0 %v16667_v26 }
 0xbde   :  { %4236 = vmatprep.subr.bf16.mxu0 %v16672_v35 }
 0xbe0   :  { %4062 = vmatmul.mubr.bf16.gmra.mrb[60].mxu0 %v19555_v55  ;;  %v16705_v55 = vld [vmem:[%s20825_s17 + $0xd4] ss:$8 sps:$4 sm:$0xff]  }
 0xbe1   :  { %4237 = vmatpush1.bf16.msra.mxu0 %v16670_v27 }
 0xbe2   :  { %4238 = vmatprep.subr.bf16.mxu0 %v16675_v28  ;;  %v16799_v28 = vld [vmem:[#allocation21 + $0x1a0] ss:$16 sps:$4 sm:$0xff]  }
 0xbe3   :  { %5047 = vmatpush1.bf16.msra.mxu1 %v16799_v28  ;;  %v16868_v28 = vld [vmem:[#allocation24 + $0x40] ss:$16 sps:$4 sm:$0xff]  }
 0xbe4   :  { %5048 = vmatprep.subr.bf16.mxu1 %v16804_v17 }
 0xbe5   :  { %4239 = vmatpush1.bf16.msra.mxu0 %v16673_v29 }
 0xbe6   :  { %4240 = vmatprep.subr.bf16.mxu0 %v16678_v30 }
 0xbe7   :  { %5049 = vmatpush1.bf16.msra.mxu1 %v16802_v31 }
 0xbe8   :  { %5050 = vmatprep.subr.bf16.mxu1 %v16807_v23  ;;  %v16811_v23 = vld [vmem:[#allocation21 + $0x28] ss:$16 sps:$4 sm:$0xff]  }
 0xbe9   :  { %4241 = vmatpush1.bf16.msra.mxu0 %v16676_v20 }
 0xbea   :  { %4242 = vmatprep.subr.bf16.mxu0 %v16681_v22 }
 0xbeb   :  { %5051 = vmatpush1.bf16.msra.mxu1 %v16805_v24 }
 0xbed   :  { %4243 = vmatpush1.bf16.msra.mxu0 %v16679_v32 }
 0xbee   :  { %4244 = vmatprep.subr.bf16.mxu0 %v16684_v33  ;;  %v16712_v33 = vld [vmem:[%s20825_s17 + $0x200] ss:$8 sps:$4 sm:$0xff]  }
 0xbf1   :  { %4245 = vmatpush1.bf16.msra.mxu0 %v16682_v34 }
 0xbf2   :  { %4246 = vmatprep.subr.bf16.mxu0 %v16687_v36  ;;  %v16717_v36 = vld [vmem:[%s20825_s17 + $0x214] ss:$8 sps:$4 sm:$0xff]  }
 0xbf5   :  { %4247 = vmatpush1.bf16.msra.mxu0 %v16685_v39  ;;  %v16715_v39 = vld [vmem:[%s20825_s17 + $0x210] ss:$8 sps:$4 sm:$0xff]  }
 0xbf6   :  { %4248 = vmatprep.subr.bf16.mxu0 %v16690_v43 }
 0xbf9   :  { %4249 = vmatpush1.bf16.msra.mxu0 %v16688_v44 }
 0xbfa   :  { %4250 = vmatprep.subr.bf16.mxu0 %v16693_v45  ;;  %v16720_v45 = vld [vmem:[%s20825_s17 + $0x224] ss:$8 sps:$4 sm:$0xff]  }
 0xbfd   :  { %4251 = vmatpush1.bf16.msra.mxu0 %v16691_v46 }
 0xbfe   :  { %4252 = vmatprep.subr.bf16.mxu0 %v16696_v47 }
 0xc01   :  { %4253 = vmatpush1.bf16.msra.mxu0 %v16694_v48 }
 0xc02   :  { %4254 = vmatprep.subr.bf16.mxu0 %v16699_v49 }
 0xc05   :  { %4255 = vmatpush1.bf16.msra.mxu0 %v16697_v50 }
 0xc06   :  { %4256 = vmatprep.subr.bf16.mxu0 %v16702_v53 }
 0xc09   :  { %4257 = vmatpush1.bf16.msra.mxu0 %v16700_v54 }
 0xc0a   :  { %4258 = vmatprep.subr.bf16.mxu0 %v16705_v55 }
 0xc0d   :  { %4259 = vmatpush1.bf16.msra.mxu0 %v16703_v56  ;;  %v16718_v56 = vld [vmem:[%s20825_s17 + $0x220] ss:$8 sps:$4 sm:$0xff]  }
 0xc0e   :  { %4260 = vmatprep.subr.bf16.mxu0 %v16708_v57 }
 0xc11   :  { %4261 = vmatpush1.bf16.msra.mxu0 %v16706_v58 }
 0xc12   :  { %4262 = vmatprep.subr.bf16.mxu0 %v16711_v59  ;;  %v16723_v59 = vld [vmem:[%s20825_s17 + $0x234] ss:$8 sps:$4 sm:$0xff]  }
 0xc15   :  { %4263 = vmatpush1.bf16.msra.mxu0 %v16709_v61  ;;  %v16721_v61 = vld [vmem:[%s20825_s17 + $0x230] ss:$8 sps:$4 sm:$0xff]  }
 0xc16   :  { %4535 = vmatprep.subr.bf16.mxu0 %v16714_v63  ;;  %v16726_v63 = vld [vmem:[%s20825_s17 + $0x244] ss:$8 sps:$4 sm:$0xff]  }
 0xc6b   :  { %v3771_v38 = vpop.f32.mrb[48].mxu0  ;;  %v19771_v62 = vpop.f32.mrb[52].mxu1 }
 0xc6c   :  { %v3773_v25 = vpop.f32.mrb[49].mxu0  ;;  %v4321_v26 = vpop.f32.mrb[53].mxu1 }
 0xc6d   :  { %v3775_v35 = vpop.f32.mrb[50].mxu0  ;;  %v19773_v27 = vpop.f32.mrb[54].mxu1 }
 0xc6e   :  { %v3790_v29 = vpack.c.bf16 %v3775_v35, %v3771_v38  ;;  %v3777_v30 = vpop.f32.mrb[51].mxu0  ;;  %v4338_v20 = vpack.c.bf16 %v19773_v27, %v19771_v62  ;;  %v4325_v22 = vpop.f32.mrb[55].mxu1  ;;  %v16810_v38 = vld [vmem:[#allocation21 + $0xc] ss:$16 sps:$4 sm:$0xff]   ;;  %v16864_v35 = vld [vmem:[#allocation24 + $0x24] ss:$16 sps:$4 sm:$0xff]  }
 0xc6f   :  { %v3791_v32 = vpack.c.bf16 %v3777_v30, %v3773_v25  ;;  %v4339_v34 = vpack.c.bf16 %v4325_v22, %v4321_v26  ;;  %5073 = vmatprep.subr.bf16.mxu1 %v16810_v38  ;;  %v16856_v25 = vld [vmem:[#allocation24] ss:$16 sps:$4 sm:$0xff]   ;;  %v16858_v26 = vld [vmem:[#allocation24 + $0x4] ss:$16 sps:$4 sm:$0xff]  }
 0xc70   :  { %v16862_v62 = vld [vmem:[#allocation24 + $0x20] ss:$16 sps:$4 sm:$0xff]   ;;  %v16870_v27 = vld [vmem:[#allocation24 + $0x44] ss:$16 sps:$4 sm:$0xff]  }
 0xc71   :  { %4264 = vmatprep.mubr.bf16.mxu0 %v3791_v32  ;;  %v16874_v30 = vld [vmem:[#allocation24 + $0x60] ss:$16 sps:$4 sm:$0xff]   ;;  %v16888_v32 = vld [vmem:[#allocation24 + $0xa4] ss:$16 sps:$4 sm:$0xff]  }
 0xc72   :  { %4265 = vmatmul.mubr.bf16.vlgmr.msra.gmra.mrb[56].mxu0 %v3790_v29  ;;  %v16876_v29 = vld [vmem:[#allocation24 + $0x64] ss:$16 sps:$4 sm:$0xff]   ;;  %v16880_v22 = vld [vmem:[#allocation24 + $0x80] ss:$16 sps:$4 sm:$0xff]  }
 0xc73   :  { %4536 = vmatpush1.bf16.msra.mxu0 %v16712_v33  ;;  %v3781_v43 = vpop.f32.mrb[52].mxu0  ;;  %v19786_v44 = vpop.f32.mrb[56].mxu1  ;;  %v16886_v33 = vld [vmem:[#allocation24 + $0xa0] ss:$16 sps:$4 sm:$0xff]  }
 0xc74   :  { %4537 = vmatprep.subr.bf16.mxu0 %v16717_v36  ;;  %v3783_v46 = vpop.f32.mrb[53].mxu0  ;;  %v19791_v47 = vpop.f32.mrb[57].mxu1  ;;  %v16892_v36 = vld [vmem:[#allocation24 + $0xc0] ss:$16 sps:$4 sm:$0xff]  }
 0xc75   :  { %v3785_v48 = vpop.f32.mrb[54].mxu0  ;;  %v19793_v49 = vpop.f32.mrb[58].mxu1 }
 0xc76   :  { %v3792_v50 = vpack.c.bf16 %v3785_v48, %v3781_v43  ;;  %v3787_v53 = vpop.f32.mrb[55].mxu0  ;;  %v4340_v54 = vpack.c.bf16 %v19793_v49, %v19786_v44  ;;  %v19797_v55 = vpop.f32.mrb[59].mxu1  ;;  %v16898_v43 = vld [vmem:[#allocation24 + $0xe0] ss:$16 sps:$4 sm:$0xff]   ;;  %v16906_v44 = vld [vmem:[#allocation24 + $0x104] ss:$16 sps:$4 sm:$0xff]  }
 0xc77   :  { %4538 = vmatpush1.bf16.msra.mxu0 %v16715_v39  ;;  %v3793_v57 = vpack.c.bf16 %v3787_v53, %v3783_v46  ;;  %v4341_v58 = vpack.c.bf16 %v19797_v55, %v19791_v47  ;;  %v16900_v39 = vld [vmem:[#allocation24 + $0xe4] ss:$16 sps:$4 sm:$0xff]   ;;  %v16910_v47 = vld [vmem:[#allocation24 + $0x120] ss:$16 sps:$4 sm:$0xff]   ;;  %v4596_v49 = vld [vmem:[#allocation19] sm:$0x3] }
 0xc78   :  { %4539 = vmatprep.subr.bf16.mxu0 %v16720_v45  ;;  %v16904_v45 = vld [vmem:[#allocation24 + $0x100] ss:$16 sps:$4 sm:$0xff]   ;;  %v16912_v46 = vld [vmem:[#allocation24 + $0x124] ss:$16 sps:$4 sm:$0xff]   ;;  %v4605_v55 = vrot.slane %v4596_v49, %v19547_v21 }
 0xc79   :  { %4274 = vmatprep.mubr.bf16.mxu0 %v3793_v57  ;;  %v16918_v48 = vld [vmem:[#allocation24 + $0x144] ss:$16 sps:$4 sm:$0xff]  }
 0xc7a   :  { %4275 = vmatmul.mubr.bf16.gmra.mrb[60].mxu0 %v3792_v50  ;;  %v16916_v50 = vld [vmem:[#allocation24 + $0x140] ss:$16 sps:$4 sm:$0xff]   ;;  %v16924_v53 = vld [vmem:[#allocation24 + $0x164] ss:$16 sps:$4 sm:$0xff]  }
 0xc7b   :  { %4540 = vmatpush1.bf16.msra.mxu0 %v16718_v56  ;;  %4567 = vmatprep.mubr.bf16.mxu0 %v4339_v34  ;;  %v16894_v34 = vld [vmem:[#allocation24 + $0xc4] ss:$16 sps:$4 sm:$0xff]   ;;  %v16922_v56 = vld [vmem:[#allocation24 + $0x160] ss:$16 sps:$4 sm:$0xff]  }
 0xc7c   :  { %4541 = vmatprep.subr.bf16.mxu0 %v16723_v59  ;;  %v16930_v57 = vld [vmem:[#allocation24 + $0x184] ss:$16 sps:$4 sm:$0xff]  }
 0xc7f   :  { %4542 = vmatpush1.bf16.msra.mxu0 %v16721_v61 }
 0xc80   :  { %4543 = vmatprep.subr.bf16.mxu0 %v16726_v63 }
 0xc83   :  { %4544 = vmatpush1.bf16.msra.mxu0 %v16724_v40 }
 0xc84   :  { %4545 = vmatprep.subr.bf16.mxu0 %v16729_v51  ;;  %v16928_v51 = vld [vmem:[#allocation24 + $0x180] ss:$16 sps:$4 sm:$0xff]  }
 0xc87   :  { %4546 = vmatpush1.bf16.msra.mxu0 %v16727_v1 }
 0xc88   :  { %4547 = vmatprep.subr.bf16.mxu0 %v16732_v2 }
 0xc8b   :  { %4548 = vmatpush1.bf16.msra.mxu0 %v16730_v60  ;;  %v16936_v60 = vld [vmem:[#allocation24 + $0x1a4] ss:$16 sps:$4 sm:$0xff]  }
 0xc8c   :  { %4549 = vmatprep.subr.bf16.mxu0 %v16735_v41 }
 0xc8f   :  { %4550 = vmatpush1.bf16.msra.mxu0 %v16733_v52 }
 0xc90   :  { %4551 = vmatprep.subr.bf16.mxu0 %v16738_v3 }
 0xc93   :  { %4552 = vmatpush1.bf16.msra.mxu0 %v16736_v4 }
 0xc94   :  { %4553 = vmatprep.subr.bf16.mxu0 %v16741_v5 }
 0xc97   :  { %4554 = vmatpush1.bf16.msra.mxu0 %v16739_v6  ;;  %v16934_v6 = vld [vmem:[#allocation24 + $0x1a0] ss:$16 sps:$4 sm:$0xff]  }
 0xc98   :  { %4555 = vmatprep.subr.bf16.mxu0 %v16744_v7 }
 0xc9b   :  { %4556 = vmatpush1.bf16.msra.mxu0 %v16742_v8  ;;  %v16942_v8 = vld [vmem:[#allocation24 + $0x1c4] ss:$16 sps:$4 sm:$0xff]  }
 0xc9c   :  { %4557 = vmatprep.subr.bf16.mxu0 %v16747_v9 }
 0xc9f   :  { %4558 = vmatpush1.bf16.msra.mxu0 %v16745_v10 }
 0xca0   :  { %4559 = vmatprep.subr.bf16.mxu0 %v16750_v11  ;;  %v16808_v11 = vld [vmem:[#allocation21 + $0x8] ss:$16 sps:$4 sm:$0xff]  }
 0xca3   :  { %4560 = vmatpush1.bf16.msra.mxu0 %v16748_v12 }
 0xca4   :  { %4561 = vmatprep.subr.bf16.mxu0 %v16753_v37 }
 0xca7   :  { %4562 = vmatpush1.bf16.msra.mxu0 %v16751_v13  ;;  %v16813_v13 = vld [vmem:[#allocation21 + $0x2c] ss:$16 sps:$4 sm:$0xff]  }
 0xca8   :  { %4563 = vmatprep.subr.bf16.mxu0 %v16756_v14 }
 0xcab   :  { %4564 = vmatpush1.bf16.msra.mxu0 %v16754_v15 }
 0xcac   :  { %4565 = vmatprep.subr.bf16.mxu0 %v16759_v16  ;;  %v16940_v16 = vld [vmem:[#allocation24 + $0x1c0] ss:$16 sps:$4 sm:$0xff]  }
 0xcaf   :  { %4566 = vmatpush1.bf16.msra.mxu0 %v16757_v42 }
 0xcb0   :  { %5906 = vmatprep.subr.bf16.mxu0 %v16858_v26 }
 0xcb2   :  { %4568 = vmatmul.mubr.bf16.vlgmr.msra.gmra.mrb[56].mxu0 %v4338_v20  ;;  %v16882_v20 = vld [vmem:[#allocation24 + $0x84] ss:$16 sps:$4 sm:$0xff]  }
 0xcb3   :  { %4577 = vmatprep.mubr.bf16.mxu0 %v4341_v58  ;;  %5907 = vmatpush1.bf16.msra.mxu0 %v16856_v25  ;;  %v16816_v25 = vld [vmem:[#allocation21 + $0x4c] ss:$16 sps:$4 sm:$0xff]  }
 0xcb4   :  { %5908 = vmatprep.subr.bf16.mxu0 %v16864_v35 }
 0xcb7   :  { %5909 = vmatpush1.bf16.msra.mxu0 %v16862_v62 }
 0xcb8   :  { %5910 = vmatprep.subr.bf16.mxu0 %v16870_v27 }
 0xcba   :  { %4578 = vmatmul.mubr.bf16.gmra.mrb[60].mxu0 %v4340_v54  ;;  %v4601_v54 = vrot.slane %v4596_v49, %v19544_v19  ;;  %v16838_v49 = vld [vmem:[#allocation21 + $0x148] ss:$16 sps:$4 sm:$0xff]  }
 0xcbb   :  { %5911 = vmatpush1.bf16.msra.mxu0 %v16868_v28  ;;  %v16814_v28 = vld [vmem:[#allocation21 + $0x48] ss:$16 sps:$4 sm:$0xff]  }
 0xcbc   :  { %5912 = vmatprep.subr.bf16.mxu0 %v16876_v29  ;;  %v16819_v29 = vld [vmem:[#allocation21 + $0x6c] ss:$16 sps:$4 sm:$0xff]  }
 0xcbf   :  { %5913 = vmatpush1.bf16.msra.mxu0 %v16874_v30  ;;  %v16817_v30 = vld [vmem:[#allocation21 + $0x68] ss:$16 sps:$4 sm:$0xff]  }
 0xcc0   :  { %5914 = vmatprep.subr.bf16.mxu0 %v16882_v20  ;;  %v16822_v20 = vld [vmem:[#allocation21 + $0x8c] ss:$16 sps:$4 sm:$0xff]  }
 0xcc3   :  { %5915 = vmatpush1.bf16.msra.mxu0 %v16880_v22  ;;  %v16820_v22 = vld [vmem:[#allocation21 + $0x88] ss:$16 sps:$4 sm:$0xff]  }
 0xcc4   :  { %5916 = vmatprep.subr.bf16.mxu0 %v16888_v32  ;;  %v16825_v32 = vld [vmem:[#allocation21 + $0xac] ss:$16 sps:$4 sm:$0xff]  }
 0xcc7   :  { %5917 = vmatpush1.bf16.msra.mxu0 %v16886_v33  ;;  %v16823_v33 = vld [vmem:[#allocation21 + $0xa8] ss:$16 sps:$4 sm:$0xff]  }
 0xcc8   :  { %5918 = vmatprep.subr.bf16.mxu0 %v16894_v34  ;;  %v16828_v34 = vld [vmem:[#allocation21 + $0xcc] ss:$16 sps:$4 sm:$0xff]  }
 0xccb   :  { %5919 = vmatpush1.bf16.msra.mxu0 %v16892_v36  ;;  %v16826_v36 = vld [vmem:[#allocation21 + $0xc8] ss:$16 sps:$4 sm:$0xff]  }
 0xccc   :  { %5920 = vmatprep.subr.bf16.mxu0 %v16900_v39  ;;  %v16831_v39 = vld [vmem:[#allocation21 + $0xec] ss:$16 sps:$4 sm:$0xff]  }
 0xccf   :  { %5921 = vmatpush1.bf16.msra.mxu0 %v16898_v43  ;;  %v16829_v43 = vld [vmem:[#allocation21 + $0xe8] ss:$16 sps:$4 sm:$0xff]  }
 0xcd0   :  { %5922 = vmatprep.subr.bf16.mxu0 %v16906_v44  ;;  %v16834_v44 = vld [vmem:[#allocation21 + $0x10c] ss:$16 sps:$4 sm:$0xff]  }
 0xcd3   :  { %5923 = vmatpush1.bf16.msra.mxu0 %v16904_v45  ;;  %v16832_v45 = vld [vmem:[#allocation21 + $0x108] ss:$16 sps:$4 sm:$0xff]  }
 0xcd4   :  { %5924 = vmatprep.subr.bf16.mxu0 %v16912_v46  ;;  %v16837_v46 = vld [vmem:[#allocation21 + $0x12c] ss:$16 sps:$4 sm:$0xff]  }
 0xcd7   :  { %5925 = vmatpush1.bf16.msra.mxu0 %v16910_v47  ;;  %v16835_v47 = vld [vmem:[#allocation21 + $0x128] ss:$16 sps:$4 sm:$0xff]  }
 0xcd8   :  { %5926 = vmatprep.subr.bf16.mxu0 %v16918_v48  ;;  %v16840_v48 = vld [vmem:[#allocation21 + $0x14c] ss:$16 sps:$4 sm:$0xff]  }
 0xcdb   :  { %5927 = vmatpush1.bf16.msra.mxu0 %v16916_v50  ;;  %v16843_v50 = vld [vmem:[#allocation21 + $0x16c] ss:$16 sps:$4 sm:$0xff]  }
 0xcdc   :  { %5928 = vmatprep.subr.bf16.mxu0 %v16924_v53  ;;  %v16841_v53 = vld [vmem:[#allocation21 + $0x168] ss:$16 sps:$4 sm:$0xff]  }
 0xcdf   :  { %5929 = vmatpush1.bf16.msra.mxu0 %v16922_v56  ;;  %v16849_v56 = vld [vmem:[#allocation21 + $0x1ac] ss:$16 sps:$4 sm:$0xff]  }
 0xce0   :  { %5930 = vmatprep.subr.bf16.mxu0 %v16930_v57  ;;  %v16847_v57 = vld [vmem:[#allocation21 + $0x1a8] ss:$16 sps:$4 sm:$0xff]  }
 0xce3   :  { %5931 = vmatpush1.bf16.msra.mxu0 %v16928_v51  ;;  %v16859_v51 = vld [vmem:[#allocation24 + $0x8] ss:$16 sps:$4 sm:$0xff]  }
 0xce4   :  { %5932 = vmatprep.subr.bf16.mxu0 %v16936_v60  ;;  %v16873_v60 = vld [vmem:[#allocation24 + $0x4c] ss:$16 sps:$4 sm:$0xff]  }
 0xce7   :  { %5933 = vmatpush1.bf16.msra.mxu0 %v16934_v6  ;;  %v16891_v6 = vld [vmem:[#allocation24 + $0xac] ss:$16 sps:$4 sm:$0xff]  }
 0xce8   :  { %5934 = vmatprep.subr.bf16.mxu0 %v16942_v8  ;;  %v16897_v8 = vld [vmem:[#allocation24 + $0xcc] ss:$16 sps:$4 sm:$0xff]  }
 0xceb   :  { %5935 = vmatpush1.bf16.msra.mxu0 %v16940_v16  ;;  %v16915_v16 = vld [vmem:[#allocation24 + $0x12c] ss:$16 sps:$4 sm:$0xff]  }
 0xd85   :  { %v4569_v58 = vpop.f32.mrb[56].mxu0 }
 0xd86   :  { %v4608_v59 = vadd.f32 %v4601_v54, %v4569_v58  ;;  %v4571_v61 = vpop.f32.mrb[57].mxu0  ;;  %v16852_v58 = vld [vmem:[#allocation21 + $0x1cc] ss:$16 sps:$4 sm:$0xff]  }
 0xd87   :  { %v4609_v63 = vadd.f32 %v4605_v55, %v4571_v61  ;;  %v4573_v40 = vpop.f32.mrb[58].mxu0  ;;  %v16855_v61 = vld [vmem:[#allocation21 + $0x1ec] ss:$16 sps:$4 sm:$0xff]  }
 0xd88   :  { %v4610_v1 = vadd.f32 %v4601_v54, %v4573_v40  ;;  %v4575_v2 = vpop.f32.mrb[59].mxu0  ;;  %v4616_v52 = vmax.f32 %v4608_v59, 0.0  ;;  %v16850_v59 = vld [vmem:[#allocation21 + $0x1c8] ss:$16 sps:$4 sm:$0xff]   ;;  %v16861_v40 = vld [vmem:[#allocation24 + $0xc] ss:$16 sps:$4 sm:$0xff]  }
 0xd89   :  { %v4611_v41 = vadd.f32 %v4605_v55, %v4575_v2  ;;  %v4617_v4 = vmax.f32 %v4609_v63, 0.0  ;;  %v16853_v63 = vld [vmem:[#allocation21 + $0x1e8] ss:$16 sps:$4 sm:$0xff]  }
 0xd8a   :  { %v4618_v3 = vmax.f32 %v4610_v1, 0.0  ;;  %v16867_v1 = vld [vmem:[#allocation24 + $0x2c] ss:$16 sps:$4 sm:$0xff]   ;;  %v16865_v2 = vld [vmem:[#allocation24 + $0x28] ss:$16 sps:$4 sm:$0xff]  }
 0xd8b   :  { %v4619_v5 = vmax.f32 %v4611_v41, 0.0  ;;  %v16871_v41 = vld [vmem:[#allocation24 + $0x48] ss:$16 sps:$4 sm:$0xff]  }
 0xd8c   :  { %v19890_v7 = vpack.c.bf16 %v4618_v3, %v4616_v52  ;;  %v16879_v52 = vld [vmem:[#allocation24 + $0x6c] ss:$16 sps:$4 sm:$0xff]   ;;  %v16877_v3 = vld [vmem:[#allocation24 + $0x68] ss:$16 sps:$4 sm:$0xff]  }
 0xd8d   :  { %v4633_v9 = vpack.c.bf16 %v4619_v5, %v4617_v4  ;;  %v4579_v10 = vpop.f32.mrb[60].mxu0  ;;  %v16885_v4 = vld [vmem:[#allocation24 + $0x8c] ss:$16 sps:$4 sm:$0xff]   ;;  %v16883_v5 = vld [vmem:[#allocation24 + $0x88] ss:$16 sps:$4 sm:$0xff]  }
 0xd8e   :  { %v4612_v12 = vadd.f32 %v4601_v54, %v4579_v10  ;;  %v4581_v37 = vpop.f32.mrb[61].mxu0  ;;  %v16895_v10 = vld [vmem:[#allocation24 + $0xc8] ss:$16 sps:$4 sm:$0xff]  }
 0xd8f   :  { %v4613_v14 = vadd.f32 %v4605_v55, %v4581_v37  ;;  %v4583_v15 = vpop.f32.mrb[62].mxu0  ;;  %5052 = vmatprep.mubr.bf16.mxu1 %v4633_v9  ;;  %v16954_v37 = vld [vmem:[#allocation24 + $0x204] ss:$16 sps:$4 sm:$0xff]  }
 0xd90   :  { %v4614_v42 = vadd.f32 %v4601_v54, %v4583_v15  ;;  %v4585_v17 = vpop.f32.mrb[63].mxu0  ;;  %5053 = vmatmul.mubr.bf16.vlgmr.msra.gmra.mrb[60].mxu1 %v19890_v7  ;;  %v4620_v24 = vmax.f32 %v4612_v12, 0.0  ;;  %v16846_v54 = vld [vmem:[#allocation21 + $0x18c] ss:$16 sps:$4 sm:$0xff]   ;;  %v16907_v15 = vld [vmem:[#allocation24 + $0x108] ss:$16 sps:$4 sm:$0xff]  }
 0xd91   :  { %v4615_v31 = vadd.f32 %v4605_v55, %v4585_v17  ;;  %5074 = vmatpush1.bf16.msra.mxu1 %v16808_v11  ;;  %v4621_v26 = vmax.f32 %v4613_v14, 0.0  ;;  %v16844_v55 = vld [vmem:[#allocation21 + $0x188] ss:$16 sps:$4 sm:$0xff]   ;;  %v16946_v11 = vld [vmem:[#allocation24 + $0x1e0] ss:$16 sps:$4 sm:$0xff]  }
 0xd92   :  { %v4622_v38 = vmax.f32 %v4614_v42, 0.0  ;;  %5075 = vmatprep.subr.bf16.mxu1 %v16813_v13  ;;  %v16903_v12 = vld [vmem:[#allocation24 + $0xec] ss:$16 sps:$4 sm:$0xff]   ;;  %v16901_v13 = vld [vmem:[#allocation24 + $0xe8] ss:$16 sps:$4 sm:$0xff]  }
 0xd93   :  { %v4623_v35 = vmax.f32 %v4615_v31, 0.0  ;;  %v16909_v14 = vld [vmem:[#allocation24 + $0x10c] ss:$16 sps:$4 sm:$0xff]   ;;  %v16913_v42 = vld [vmem:[#allocation24 + $0x128] ss:$16 sps:$4 sm:$0xff]  }
 0xd94   :  { %v19893_v62 = vpack.c.bf16 %v4622_v38, %v4620_v24  ;;  %v16921_v17 = vld [vmem:[#allocation24 + $0x14c] ss:$16 sps:$4 sm:$0xff]   ;;  %v16919_v31 = vld [vmem:[#allocation24 + $0x148] ss:$16 sps:$4 sm:$0xff]  }
 0xd95   :  { %v19895_v27 = vpack.c.bf16 %v4623_v35, %v4621_v26  ;;  %5076 = vmatpush1.bf16.msra.mxu1 %v16811_v23  ;;  %v16927_v23 = vld [vmem:[#allocation24 + $0x16c] ss:$16 sps:$4 sm:$0xff]   ;;  %v16925_v24 = vld [vmem:[#allocation24 + $0x168] ss:$16 sps:$4 sm:$0xff]  }
 0xd96   :  { %5077 = vmatprep.subr.bf16.mxu1 %v16816_v25  ;;  %v16933_v38 = vld [vmem:[#allocation24 + $0x18c] ss:$16 sps:$4 sm:$0xff]   ;;  %v16931_v25 = vld [vmem:[#allocation24 + $0x188] ss:$16 sps:$4 sm:$0xff]  }
 0xd97   :  { %5062 = vmatprep.mubr.bf16.mxu1 %v19895_v27  ;;  %v16939_v26 = vld [vmem:[#allocation24 + $0x1ac] ss:$16 sps:$4 sm:$0xff]   ;;  %v16937_v35 = vld [vmem:[#allocation24 + $0x1a8] ss:$16 sps:$4 sm:$0xff]  }
 0xd98   :  { %5063 = vmatmul.mubr.bf16.gmra.mrb[64].mxu1 %v19893_v62 }
 0xd99   :  { %5078 = vmatpush1.bf16.msra.mxu1 %v16814_v28  ;;  %5105 = vmatprep.mubr.bf16.mxu1 %v4633_v9  ;;  %v16948_v9 = vld [vmem:[#allocation24 + $0x1e4] ss:$16 sps:$4 sm:$0xff]   ;;  %v16951_v28 = vld [vmem:[#allocation24 + $0x1ec] ss:$16 sps:$4 sm:$0xff]  }
 0xd9a   :  { %5079 = vmatprep.subr.bf16.mxu1 %v16819_v29  ;;  %5936 = vmatprep.subr.bf16.mxu0 %v16948_v9  ;;  %v16949_v29 = vld [vmem:[#allocation24 + $0x1e8] ss:$16 sps:$4 sm:$0xff]  }
 0xd9b   :  { %5937 = vmatpush1.bf16.msra.mxu0 %v16946_v11  ;;  %v16991_v9 = vld [vmem:[#allocation24 + $0x2c8] ss:$16 sps:$4 sm:$0xff]   ;;  %v16999_v11 = vld [vmem:[#allocation24 + $0x2ec] ss:$16 sps:$4 sm:$0xff]  }
 0xd9c   :  { %5959 = vmatprep.subr.bf16.mxu0 %v16954_v37  ;;  %v16997_v37 = vld [vmem:[#allocation24 + $0x2e8] ss:$16 sps:$4 sm:$0xff]  }
 0xd9d   :  { %5080 = vmatpush1.bf16.msra.mxu1 %v16817_v30  ;;  %v16957_v30 = vld [vmem:[#allocation24 + $0x20c] ss:$16 sps:$4 sm:$0xff]  }
 0xd9e   :  { %5081 = vmatprep.subr.bf16.mxu1 %v16822_v20 }
 0xda1   :  { %5082 = vmatpush1.bf16.msra.mxu1 %v16820_v22 }
 0xda2   :  { %5083 = vmatprep.subr.bf16.mxu1 %v16825_v32 }
 0xda5   :  { %5084 = vmatpush1.bf16.msra.mxu1 %v16823_v33 }
 0xda6   :  { %5085 = vmatprep.subr.bf16.mxu1 %v16828_v34 }
 0xda9   :  { %5086 = vmatpush1.bf16.msra.mxu1 %v16826_v36 }
 0xdaa   :  { %5087 = vmatprep.subr.bf16.mxu1 %v16831_v39  ;;  %v16952_v39 = vld [vmem:[#allocation24 + $0x200] ss:$16 sps:$4 sm:$0xff]  }
 0xdad   :  { %5088 = vmatpush1.bf16.msra.mxu1 %v16829_v43  ;;  %v16955_v43 = vld [vmem:[#allocation24 + $0x208] ss:$16 sps:$4 sm:$0xff]  }
 0xdae   :  { %5089 = vmatprep.subr.bf16.mxu1 %v16834_v44  ;;  %v16960_v44 = vld [vmem:[#allocation24 + $0x224] ss:$16 sps:$4 sm:$0xff]  }
 0xdb1   :  { %5090 = vmatpush1.bf16.msra.mxu1 %v16832_v45  ;;  %v16963_v45 = vld [vmem:[#allocation24 + $0x22c] ss:$16 sps:$4 sm:$0xff]  }
 0xdb2   :  { %5091 = vmatprep.subr.bf16.mxu1 %v16837_v46 }
 0xdb5   :  { %5092 = vmatpush1.bf16.msra.mxu1 %v16835_v47  ;;  %v16958_v47 = vld [vmem:[#allocation24 + $0x220] ss:$16 sps:$4 sm:$0xff]  }
 0xdb6   :  { %5093 = vmatprep.subr.bf16.mxu1 %v16840_v48  ;;  %v16961_v48 = vld [vmem:[#allocation24 + $0x228] ss:$16 sps:$4 sm:$0xff]  }
 0xdb9   :  { %5094 = vmatpush1.bf16.msra.mxu1 %v16838_v49 }
 0xdba   :  { %5095 = vmatprep.subr.bf16.mxu1 %v16843_v50  ;;  %v16966_v50 = vld [vmem:[#allocation24 + $0x244] ss:$16 sps:$4 sm:$0xff]  }
 0xdbd   :  { %5096 = vmatpush1.bf16.msra.mxu1 %v16841_v53  ;;  %v16969_v53 = vld [vmem:[#allocation24 + $0x24c] ss:$16 sps:$4 sm:$0xff]  }
 0xdbe   :  { %5097 = vmatprep.subr.bf16.mxu1 %v16846_v54 }
 0xdc1   :  { %5098 = vmatpush1.bf16.msra.mxu1 %v16844_v55 }
 0xdc2   :  { %5099 = vmatprep.subr.bf16.mxu1 %v16849_v56 }
 0xdc5   :  { %5100 = vmatpush1.bf16.msra.mxu1 %v16847_v57 }
 0xdc6   :  { %5101 = vmatprep.subr.bf16.mxu1 %v16852_v58  ;;  %v16964_v58 = vld [vmem:[#allocation24 + $0x240] ss:$16 sps:$4 sm:$0xff]  }
 0xdc9   :  { %5102 = vmatpush1.bf16.msra.mxu1 %v16850_v59  ;;  %v16967_v59 = vld [vmem:[#allocation24 + $0x248] ss:$16 sps:$4 sm:$0xff]  }
 0xdca   :  { %5103 = vmatprep.subr.bf16.mxu1 %v16855_v61  ;;  %v16972_v61 = vld [vmem:[#allocation24 + $0x264] ss:$16 sps:$4 sm:$0xff]  }
 0xdcd   :  { %5104 = vmatpush1.bf16.msra.mxu1 %v16853_v63  ;;  %v16975_v63 = vld [vmem:[#allocation24 + $0x26c] ss:$16 sps:$4 sm:$0xff]  }
 0xdce   :  { %6012 = vmatprep.subr.bf16.mxu1 %v16861_v40  ;;  %v16970_v40 = vld [vmem:[#allocation24 + $0x260] ss:$16 sps:$4 sm:$0xff]  }
 0xdd0   :  { %5106 = vmatmul.mubr.bf16.vlgmr.msra.gmra.mrb[68].mxu1 %v19890_v7  ;;  %v16889_v7 = vld [vmem:[#allocation24 + $0xa8] ss:$16 sps:$4 sm:$0xff]  }
 0xdd1   :  { %5115 = vmatprep.mubr.bf16.mxu1 %v19895_v27  ;;  %6013 = vmatpush1.bf16.msra.mxu1 %v16859_v51  ;;  %v16943_v27 = vld [vmem:[#allocation24 + $0x1c8] ss:$16 sps:$4 sm:$0xff]  }
 0xdd2   :  { %6014 = vmatprep.subr.bf16.mxu1 %v16867_v1  ;;  %v16973_v51 = vld [vmem:[#allocation24 + $0x268] ss:$16 sps:$4 sm:$0xff]   ;;  %v16978_v1 = vld [vmem:[#allocation24 + $0x284] ss:$16 sps:$4 sm:$0xff]  }
 0xdd5   :  { %6015 = vmatpush1.bf16.msra.mxu1 %v16865_v2  ;;  %v16981_v2 = vld [vmem:[#allocation24 + $0x28c] ss:$16 sps:$4 sm:$0xff]  }
 0xdd6   :  { %6016 = vmatprep.subr.bf16.mxu1 %v16873_v60  ;;  %v16976_v60 = vld [vmem:[#allocation24 + $0x280] ss:$16 sps:$4 sm:$0xff]  }
 0xdd8   :  { %5116 = vmatmul.mubr.bf16.gmra.mrb[72].mxu1 %v19893_v62  ;;  %v16945_v62 = vld [vmem:[#allocation24 + $0x1cc] ss:$16 sps:$4 sm:$0xff]  }
 0xdd9   :  { %6017 = vmatpush1.bf16.msra.mxu1 %v16871_v41  ;;  %v16979_v41 = vld [vmem:[#allocation24 + $0x288] ss:$16 sps:$4 sm:$0xff]  }
 0xdda   :  { %6018 = vmatprep.subr.bf16.mxu1 %v16879_v52  ;;  %v16984_v52 = vld [vmem:[#allocation24 + $0x2a4] ss:$16 sps:$4 sm:$0xff]  }
 0xddd   :  { %6019 = vmatpush1.bf16.msra.mxu1 %v16877_v3  ;;  %v16987_v3 = vld [vmem:[#allocation24 + $0x2ac] ss:$16 sps:$4 sm:$0xff]  }
 0xdde   :  { %6020 = vmatprep.subr.bf16.mxu1 %v16885_v4  ;;  %v16982_v4 = vld [vmem:[#allocation24 + $0x2a0] ss:$16 sps:$4 sm:$0xff]  }
 0xde1   :  { %6021 = vmatpush1.bf16.msra.mxu1 %v16883_v5  ;;  %v16985_v5 = vld [vmem:[#allocation24 + $0x2a8] ss:$16 sps:$4 sm:$0xff]  }
 0xde2   :  { %6022 = vmatprep.subr.bf16.mxu1 %v16891_v6  ;;  %v16990_v6 = vld [vmem:[#allocation24 + $0x2c4] ss:$16 sps:$4 sm:$0xff]  }
 0xde5   :  { %6023 = vmatpush1.bf16.msra.mxu1 %v16889_v7  ;;  %v16993_v7 = vld [vmem:[#allocation24 + $0x2cc] ss:$16 sps:$4 sm:$0xff]  }
 0xde6   :  { %6024 = vmatprep.subr.bf16.mxu1 %v16897_v8  ;;  %v16988_v8 = vld [vmem:[#allocation24 + $0x2c0] ss:$16 sps:$4 sm:$0xff]  }
 0xde9   :  { %6025 = vmatpush1.bf16.msra.mxu1 %v16895_v10  ;;  %v16996_v10 = vld [vmem:[#allocation24 + $0x2e4] ss:$16 sps:$4 sm:$0xff]  }
 0xdea   :  { %6026 = vmatprep.subr.bf16.mxu1 %v16903_v12  ;;  %v16994_v12 = vld [vmem:[#allocation24 + $0x2e0] ss:$16 sps:$4 sm:$0xff]  }
 0xded   :  { %6027 = vmatpush1.bf16.msra.mxu1 %v16901_v13  ;;  %v17002_v13 = vld [vmem:[#allocation24 + $0x304] ss:$16 sps:$4 sm:$0xff]  }
 0xdee   :  { %6028 = vmatprep.subr.bf16.mxu1 %v16909_v14  ;;  %v17005_v14 = vld [vmem:[#allocation24 + $0x30c] ss:$16 sps:$4 sm:$0xff]  }
 0xdf1   :  { %6029 = vmatpush1.bf16.msra.mxu1 %v16907_v15  ;;  %v17000_v15 = vld [vmem:[#allocation24 + $0x300] ss:$16 sps:$4 sm:$0xff]  }
 0xdf2   :  { %6030 = vmatprep.subr.bf16.mxu1 %v16915_v16  ;;  %v17003_v16 = vld [vmem:[#allocation24 + $0x308] ss:$16 sps:$4 sm:$0xff]  }
 0xdf5   :  { %6031 = vmatpush1.bf16.msra.mxu1 %v16913_v42  ;;  %v17008_v42 = vld [vmem:[#allocation24 + $0x324] ss:$16 sps:$4 sm:$0xff]  }
 0xdf6   :  { %6032 = vmatprep.subr.bf16.mxu1 %v16921_v17  ;;  %v17011_v17 = vld [vmem:[#allocation24 + $0x32c] ss:$16 sps:$4 sm:$0xff]  }
 0xdf9   :  { %6033 = vmatpush1.bf16.msra.mxu1 %v16919_v31  ;;  %v17006_v31 = vld [vmem:[#allocation24 + $0x320] ss:$16 sps:$4 sm:$0xff]  }
 0xdfa   :  { %6034 = vmatprep.subr.bf16.mxu1 %v16927_v23  ;;  %v17009_v23 = vld [vmem:[#allocation24 + $0x328] ss:$16 sps:$4 sm:$0xff]  }
 0xdfd   :  { %6035 = vmatpush1.bf16.msra.mxu1 %v16925_v24  ;;  %v17014_v24 = vld [vmem:[#allocation24 + $0x344] ss:$16 sps:$4 sm:$0xff]  }
 0xdfe   :  { %6036 = vmatprep.subr.bf16.mxu1 %v16933_v38  ;;  %v17017_v38 = vld [vmem:[#allocation24 + $0x34c] ss:$16 sps:$4 sm:$0xff]  }
 0xe01   :  { %6037 = vmatpush1.bf16.msra.mxu1 %v16931_v25  ;;  %v17012_v25 = vld [vmem:[#allocation24 + $0x340] ss:$16 sps:$4 sm:$0xff]  }
 0xe02   :  { %6038 = vmatprep.subr.bf16.mxu1 %v16939_v26  ;;  %v17015_v26 = vld [vmem:[#allocation24 + $0x348] ss:$16 sps:$4 sm:$0xff]  }
 0xe05   :  { %6039 = vmatpush1.bf16.msra.mxu1 %v16937_v35  ;;  %v17020_v35 = vld [vmem:[#allocation24 + $0x364] ss:$16 sps:$4 sm:$0xff]  }
 0xe06   :  { %6040 = vmatprep.subr.bf16.mxu1 %v16945_v62  ;;  %v17023_v62 = vld [vmem:[#allocation24 + $0x36c] ss:$16 sps:$4 sm:$0xff]  }
 0xe09   :  { %6041 = vmatpush1.bf16.msra.mxu1 %v16943_v27  ;;  %v17018_v27 = vld [vmem:[#allocation24 + $0x360] ss:$16 sps:$4 sm:$0xff]  }
 0xe0a   :  { %6042 = vmatprep.subr.bf16.mxu1 %v16951_v28  ;;  %v17021_v28 = vld [vmem:[#allocation24 + $0x368] ss:$16 sps:$4 sm:$0xff]  }
 0xe0d   :  { %6043 = vmatpush1.bf16.msra.mxu1 %v16949_v29  ;;  %v17026_v29 = vld [vmem:[#allocation24 + $0x384] ss:$16 sps:$4 sm:$0xff]  }
 0xe0e   :  { %6065 = vmatprep.subr.bf16.mxu1 %v16957_v30  ;;  %v17029_v30 = vld [vmem:[#allocation24 + $0x38c] ss:$16 sps:$4 sm:$0xff]  }
 0xe63   :  { %v5054_v20 = vpop.f32.mrb[60].mxu1 }
 0xe64   :  { %v5056_v22 = vpop.f32.mrb[61].mxu1 }
 0xe65   :  { %v5058_v32 = vpop.f32.mrb[62].mxu1 }
 0xe66   :  { %v19902_v33 = vpack.c.bf16 %v5058_v32, %v5054_v20  ;;  %v5060_v34 = vpop.f32.mrb[63].mxu1  ;;  %v17024_v20 = vld [vmem:[#allocation24 + $0x380] ss:$16 sps:$4 sm:$0xff]   ;;  %v17032_v32 = vld [vmem:[#allocation24 + $0x3a4] ss:$16 sps:$4 sm:$0xff]  }
 0xe67   :  { %v19904_v36 = vpack.c.bf16 %v5060_v34, %v5056_v22  ;;  %v17027_v22 = vld [vmem:[#allocation24 + $0x388] ss:$16 sps:$4 sm:$0xff]   ;;  %v17035_v34 = vld [vmem:[#allocation24 + $0x3ac] ss:$16 sps:$4 sm:$0xff]  }
 0xe69   :  { %5938 = vmatprep.mubr.bf16.mxu0 %v19904_v36  ;;  %6044 = vmatprep.mubr.bf16.mxu1 %v19904_v36 }
 0xe6a   :  { %5939 = vmatmul.mubr.bf16.vlgmr.msra.gmra.mrb[64].mxu0 %v19902_v33  ;;  %6045 = vmatmul.mubr.bf16.vlgmr.msra.gmra.mrb[76].mxu1 %v19902_v33 }
 0xe6b   :  { %5960 = vmatpush1.bf16.msra.mxu0 %v16952_v39  ;;  %6066 = vmatpush1.bf16.msra.mxu1 %v16955_v43  ;;  %v5064_v46 = vpop.f32.mrb[64].mxu1  ;;  %v17030_v39 = vld [vmem:[#allocation24 + $0x3a0] ss:$16 sps:$4 sm:$0xff]   ;;  %v17033_v43 = vld [vmem:[#allocation24 + $0x3a8] ss:$16 sps:$4 sm:$0xff]  }
 0xe6c   :  { %v5066_v49 = vpop.f32.mrb[65].mxu1  ;;  %5961 = vmatprep.subr.bf16.mxu0 %v16960_v44  ;;  %6067 = vmatprep.subr.bf16.mxu1 %v16963_v45  ;;  %v17038_v44 = vld [vmem:[#allocation24 + $0x3c4] ss:$16 sps:$4 sm:$0xff]   ;;  %v17041_v45 = vld [vmem:[#allocation24 + $0x3cc] ss:$16 sps:$4 sm:$0xff]  }
 0xe6d   :  { %v5068_v54 = vpop.f32.mrb[66].mxu1 }
 0xe6e   :  { %v19910_v55 = vpack.c.bf16 %v5068_v54, %v5064_v46  ;;  %v5070_v56 = vpop.f32.mrb[67].mxu1  ;;  %v17036_v46 = vld [vmem:[#allocation24 + $0x3c0] ss:$16 sps:$4 sm:$0xff]  }
 0xe6f   :  { %v19912_v57 = vpack.c.bf16 %v5070_v56, %v5066_v49  ;;  %5962 = vmatpush1.bf16.msra.mxu0 %v16958_v47  ;;  %6068 = vmatpush1.bf16.msra.mxu1 %v16961_v48  ;;  %v17039_v47 = vld [vmem:[#allocation24 + $0x3c8] ss:$16 sps:$4 sm:$0xff]   ;;  %v17044_v48 = vld [vmem:[#allocation24 + $0x3e4] ss:$16 sps:$4 sm:$0xff]   ;;  %v17047_v49 = vld [vmem:[#allocation24 + $0x3ec] ss:$16 sps:$4 sm:$0xff]  }
 0xe70   :  { %5963 = vmatprep.subr.bf16.mxu0 %v16966_v50  ;;  %6069 = vmatprep.subr.bf16.mxu1 %v16969_v53  ;;  %v4624_v50 = vld [vmem:[%s20880_s1] sm:$0xff]  ;;  %v4625_v53 = vld [vmem:[%s20880_s1 + $0x8] sm:$0xff] }
 0xe71   :  { %5948 = vmatprep.mubr.bf16.mxu0 %v19912_v57  ;;  %6054 = vmatprep.mubr.bf16.mxu1 %v19912_v57  ;;  %v17042_v56 = vld [vmem:[#allocation24 + $0x3e0] ss:$16 sps:$4 sm:$0xff]  }
 0xe72   :  { %5949 = vmatmul.mubr.bf16.gmra.mrb[68].mxu0 %v19910_v55  ;;  %6055 = vmatmul.mubr.bf16.gmra.mrb[80].mxu1 %v19910_v55 }
 0xe73   :  { %5964 = vmatpush1.bf16.msra.mxu0 %v16964_v58  ;;  %6070 = vmatpush1.bf16.msra.mxu1 %v16967_v59  ;;  %v17045_v58 = vld [vmem:[#allocation24 + $0x3e8] ss:$16 sps:$4 sm:$0xff]  }
 0xe74   :  { %5965 = vmatprep.subr.bf16.mxu0 %v16972_v61  ;;  %6071 = vmatprep.subr.bf16.mxu1 %v16975_v63  ;;  %v19924_v61 = vpack.c.bf16 %v4625_v53, %v4624_v50  ;;  %v17057_v63 = vld [vmem:[%s20881_s8 + $0xc] ss:$16 sps:$4 sm:$0xff]   ;;  %v17088_v50 = vld [vmem:[%s20881_s8 + $0xc0] ss:$16 sps:$4 sm:$0xff]   ;;  %v17091_v53 = vld [vmem:[%s20881_s8 + $0xc8] ss:$16 sps:$4 sm:$0xff]  }
 0xe77   :  { %5966 = vmatpush1.bf16.msra.mxu0 %v16970_v40  ;;  %6072 = vmatpush1.bf16.msra.mxu1 %v16973_v51  ;;  %v4626_v51 = vld [vmem:[%s20880_s1 + $0x10] sm:$0xff] }
 0xe78   :  { %5967 = vmatprep.subr.bf16.mxu0 %v16978_v1  ;;  %6073 = vmatprep.subr.bf16.mxu1 %v16981_v2  ;;  %v4627_v1 = vld [vmem:[%s20880_s1 + $0x18] sm:$0xff] }
 0xe7b   :  { %5968 = vmatpush1.bf16.msra.mxu0 %v16976_v60  ;;  %6074 = vmatpush1.bf16.msra.mxu1 %v16979_v41 }
 0xe7c   :  { %5969 = vmatprep.subr.bf16.mxu0 %v16984_v52  ;;  %6075 = vmatprep.subr.bf16.mxu1 %v16987_v3  ;;  %v17055_v52 = vld [vmem:[%s20881_s8 + $0x8] ss:$16 sps:$4 sm:$0xff]   ;;  %v19943_v3 = vpack.c.bf16 %v4627_v1, %v4626_v51 }
 0xe7f   :  { %5970 = vmatpush1.bf16.msra.mxu0 %v16982_v4  ;;  %6076 = vmatpush1.bf16.msra.mxu1 %v16985_v5  ;;  %v17063_v4 = vld [vmem:[%s20881_s8 + $0x2c] ss:$16 sps:$4 sm:$0xff]   ;;  %v4628_v5 = vld [vmem:[%s20880_s1 + $0x20] sm:$0xff] }
 0xe80   :  { %5971 = vmatprep.subr.bf16.mxu0 %v16990_v6  ;;  %6077 = vmatprep.subr.bf16.mxu1 %v16993_v7  ;;  %v4629_v6 = vld [vmem:[%s20880_s1 + $0x28] sm:$0xff] }
 0xe83   :  { %5972 = vmatpush1.bf16.msra.mxu0 %v16988_v8  ;;  %6078 = vmatpush1.bf16.msra.mxu1 %v16991_v9  ;;  %v17061_v8 = vld [vmem:[%s20881_s8 + $0x28] ss:$16 sps:$4 sm:$0xff]  }
 0xe84   :  { %5973 = vmatprep.subr.bf16.mxu0 %v16996_v10  ;;  %6079 = vmatprep.subr.bf16.mxu1 %v16999_v11  ;;  %v19963_v10 = vpack.c.bf16 %v4629_v6, %v4628_v5  ;;  %v17069_v11 = vld [vmem:[%s20881_s8 + $0x4c] ss:$16 sps:$4 sm:$0xff]  }
 0xe87   :  { %5974 = vmatpush1.bf16.msra.mxu0 %v16994_v12  ;;  %6080 = vmatpush1.bf16.msra.mxu1 %v16997_v37  ;;  %v4630_v37 = vld [vmem:[%s20880_s1 + $0x30] sm:$0xff] }
 0xe88   :  { %5975 = vmatprep.subr.bf16.mxu0 %v17002_v13  ;;  %6081 = vmatprep.subr.bf16.mxu1 %v17005_v14  ;;  %v4631_v13 = vld [vmem:[%s20880_s1 + $0x38] sm:$0xff] }
 0xe8b   :  { %5976 = vmatpush1.bf16.msra.mxu0 %v17000_v15  ;;  %6082 = vmatpush1.bf16.msra.mxu1 %v17003_v16 }
 0xe8c   :  { %5977 = vmatprep.subr.bf16.mxu0 %v17008_v42  ;;  %6083 = vmatprep.subr.bf16.mxu1 %v17011_v17  ;;  %v17048_v42 = vld [vmem:[#allocation22] sm:$0xff]   ;;  %v19980_v17 = vpack.c.bf16 %v4631_v13, %v4630_v37 }
 0xe8f   :  { %5978 = vmatpush1.bf16.msra.mxu0 %v17006_v31  ;;  %6084 = vmatpush1.bf16.msra.mxu1 %v17009_v23  ;;  %v17067_v31 = vld [vmem:[%s20881_s8 + $0x48] ss:$16 sps:$4 sm:$0xff]   ;;  %v17075_v23 = vld [vmem:[%s20881_s8 + $0x6c] ss:$16 sps:$4 sm:$0xff]  }
 0xe90   :  { %5979 = vmatprep.subr.bf16.mxu0 %v17014_v24  ;;  %6085 = vmatprep.subr.bf16.mxu1 %v17017_v38  ;;  %v17054_v24 = vld [vmem:[%s20881_s8 + $0x4] ss:$16 sps:$4 sm:$0xff]   ;;  %v17073_v38 = vld [vmem:[%s20881_s8 + $0x68] ss:$16 sps:$4 sm:$0xff]  }
 0xe93   :  { %5980 = vmatpush1.bf16.msra.mxu0 %v17012_v25  ;;  %6086 = vmatpush1.bf16.msra.mxu1 %v17015_v26  ;;  %v17081_v25 = vld [vmem:[%s20881_s8 + $0x8c] ss:$16 sps:$4 sm:$0xff]  }
 0xe94   :  { %5981 = vmatprep.subr.bf16.mxu0 %v17020_v35  ;;  %6087 = vmatprep.subr.bf16.mxu1 %v17023_v62  ;;  %v17049_v26 = vld [vmem:[#allocation22 + $0x8] sm:$0xff]   ;;  %v17050_v35 = vld [vmem:[#allocation22 + $0x10] sm:$0xff]  }
 0xe95   :  { %v17052_v62 = vld [vmem:[%s20881_s8] ss:$16 sps:$4 sm:$0xff]  }
 0xe97   :  { %5982 = vmatpush1.bf16.msra.mxu0 %v17018_v27  ;;  %6088 = vmatpush1.bf16.msra.mxu1 %v17021_v28  ;;  %v17060_v27 = vld [vmem:[%s20881_s8 + $0x24] ss:$16 sps:$4 sm:$0xff]   ;;  %v17079_v28 = vld [vmem:[%s20881_s8 + $0x88] ss:$16 sps:$4 sm:$0xff]  }
 0xe98   :  { %5983 = vmatprep.subr.bf16.mxu0 %v17026_v29  ;;  %6089 = vmatprep.subr.bf16.mxu1 %v17029_v30  ;;  %v17087_v29 = vld [vmem:[%s20881_s8 + $0xac] ss:$16 sps:$4 sm:$0xff]   ;;  %v17058_v30 = vld [vmem:[%s20881_s8 + $0x20] ss:$16 sps:$4 sm:$0xff]  }
 0xe9b   :  { %5984 = vmatpush1.bf16.msra.mxu0 %v17024_v20  ;;  %6090 = vmatpush1.bf16.msra.mxu1 %v17027_v22  ;;  %v17066_v20 = vld [vmem:[%s20881_s8 + $0x44] ss:$16 sps:$4 sm:$0xff]   ;;  %v17085_v22 = vld [vmem:[%s20881_s8 + $0xa8] ss:$16 sps:$4 sm:$0xff]  }
 0xe9c   :  { %5985 = vmatprep.subr.bf16.mxu0 %v17032_v32  ;;  %6091 = vmatprep.subr.bf16.mxu1 %v17035_v34  ;;  %v17051_v32 = vld [vmem:[#allocation22 + $0x18] sm:$0xff]   ;;  %v17064_v34 = vld [vmem:[%s20881_s8 + $0x40] ss:$16 sps:$4 sm:$0xff]  }
 0xe9f   :  { %5986 = vmatpush1.bf16.msra.mxu0 %v17030_v39  ;;  %6092 = vmatpush1.bf16.msra.mxu1 %v17033_v43  ;;  %v17072_v39 = vld [vmem:[%s20881_s8 + $0x64] ss:$16 sps:$4 sm:$0xff]   ;;  %v17070_v43 = vld [vmem:[%s20881_s8 + $0x60] ss:$16 sps:$4 sm:$0xff]  }
 0xea0   :  { %5987 = vmatprep.subr.bf16.mxu0 %v17038_v44  ;;  %6093 = vmatprep.subr.bf16.mxu1 %v17041_v45  ;;  %v17078_v44 = vld [vmem:[%s20881_s8 + $0x84] ss:$16 sps:$4 sm:$0xff]   ;;  %v17076_v45 = vld [vmem:[%s20881_s8 + $0x80] ss:$16 sps:$4 sm:$0xff]  }
 0xea3   :  { %v5107_v54 = vpop.f32.mrb[68].mxu1  ;;  %5988 = vmatpush1.bf16.msra.mxu0 %v17036_v46  ;;  %6094 = vmatpush1.bf16.msra.mxu1 %v17039_v47  ;;  %v17084_v46 = vld [vmem:[%s20881_s8 + $0xa4] ss:$16 sps:$4 sm:$0xff]   ;;  %v17082_v47 = vld [vmem:[%s20881_s8 + $0xa0] ss:$16 sps:$4 sm:$0xff]  }
 0xea4   :  { %v5109_v59 = vpop.f32.mrb[69].mxu1  ;;  %5989 = vmatprep.subr.bf16.mxu0 %v17044_v48  ;;  %6095 = vmatprep.subr.bf16.mxu1 %v17047_v49  ;;  %v17090_v48 = vld [vmem:[%s20881_s8 + $0xc4] ss:$16 sps:$4 sm:$0xff]   ;;  %v17093_v49 = vld [vmem:[%s20881_s8 + $0xcc] ss:$16 sps:$4 sm:$0xff]  }
 0xea5   :  { %v5111_v40 = vpop.f32.mrb[70].mxu1 }
 0xea6   :  { %v19935_v2 = vpack.c.bf16 %v5111_v40, %v5107_v54  ;;  %v5113_v60 = vpop.f32.mrb[71].mxu1  ;;  %v17096_v54 = vld [vmem:[%s20881_s8 + $0xe4] ss:$16 sps:$4 sm:$0xff]  }
 0xea7   :  { %v19937_v41 = vpack.c.bf16 %v5113_v60, %v5109_v59  ;;  %5990 = vmatpush1.bf16.msra.mxu0 %v17042_v56  ;;  %6096 = vmatpush1.bf16.msra.mxu1 %v17045_v58  ;;  %v17099_v56 = vld [vmem:[%s20881_s8 + $0xec] ss:$16 sps:$4 sm:$0xff]   ;;  %v17094_v58 = vld [vmem:[%s20881_s8 + $0xe0] ss:$16 sps:$4 sm:$0xff]   ;;  %v17097_v59 = vld [vmem:[%s20881_s8 + $0xe8] ss:$16 sps:$4 sm:$0xff]  }
 0xea8   :  { %15758 = vmatprep.subr.bf16.mxu0 %v19924_v61  ;;  %6509 = vmatprep.subr.bf16.mxu1 %v17057_v63 }
 0xea9   :  { %5991 = vmatprep.mubr.bf16.mxu0 %v19937_v41  ;;  %6097 = vmatprep.mubr.bf16.mxu1 %v19937_v41 }
 0xeaa   :  { %5992 = vmatmul.mubr.bf16.vlgmr.msra.gmra.mrb[64].mxu0 %v19935_v2  ;;  %6098 = vmatmul.mubr.bf16.vlgmr.msra.gmra.mrb[76].mxu1 %v19935_v2 }
 0xeab   :  { %v5117_v7 = vpop.f32.mrb[72].mxu1  ;;  %15759 = vmatpush3.bf16.msra.mxu0 %v19924_v61  ;;  %6510 = vmatpush1.bf16.msra.mxu1 %v17055_v52 }
 0xeac   :  { %v5119_v9 = vpop.f32.mrb[73].mxu1  ;;  %15760 = vmatprep.subr.bf16.mxu0 %v19943_v3  ;;  %6511 = vmatprep.subr.bf16.mxu1 %v17063_v4 }
 0xead   :  { %v5121_v12 = vpop.f32.mrb[74].mxu1 }
 0xeae   :  { %v19974_v14 = vpack.c.bf16 %v5121_v12, %v5117_v7  ;;  %v5123_v15 = vpop.f32.mrb[75].mxu1 }
 0xeaf   :  { %v19976_v16 = vpack.c.bf16 %v5123_v15, %v5119_v9  ;;  %15761 = vmatpush3.bf16.msra.mxu0 %v19943_v3  ;;  %6512 = vmatpush1.bf16.msra.mxu1 %v17061_v8 }
 0xeb0   :  { %15762 = vmatprep.subr.bf16.mxu0 %v19963_v10  ;;  %6513 = vmatprep.subr.bf16.mxu1 %v17069_v11 }
 0xeb1   :  { %6001 = vmatprep.mubr.bf16.mxu0 %v19976_v16  ;;  %6107 = vmatprep.mubr.bf16.mxu1 %v19976_v16 }
 0xeb2   :  { %6002 = vmatmul.mubr.bf16.gmra.mrb[68].mxu0 %v19974_v14  ;;  %6108 = vmatmul.mubr.bf16.gmra.mrb[80].mxu1 %v19974_v14 }
 0xeb3   :  { %15763 = vmatpush3.bf16.msra.mxu0 %v19963_v10  ;;  %15766 = vmatprep.mubr.msk.bf16.mxu0 %vm6162_vm5, %v17048_v42 }
 0xeb4   :  { %15764 = vmatprep.subr.bf16.mxu0 %v19980_v17  ;;  %6514 = vmatpush1.bf16.msra.mxu1 %v17067_v31 }
 0xeb5   :  { %6515 = vmatprep.subr.bf16.mxu1 %v17075_v23  ;;  %6541 = vmatprep.mubr.bf16.mxu1 %v18621_v0 }
 0xeb7   :  { %15765 = vmatpush3.bf16.msra.mxu0 %v19980_v17 }
 0xeb8   :  { %6436 = vmatprep.subr.bf16.mxu0 %v17054_v24  ;;  %6516 = vmatpush1.bf16.msra.mxu1 %v17073_v38 }
 0xeb9   :  { %6517 = vmatprep.subr.bf16.mxu1 %v17081_v25 }
 0xeba   :  { %15767 = vmatmul.mubr.msk.bf16.vlgmr.msra.gmra.mrb[72].mxu0 %vm6162_vm5, %v17049_v26 }
 0xebb   :  { %15770 = vmatprep.mubr.msk.bf16.mxu0 %vm6162_vm5, %v17050_v35  ;;  %6437 = vmatpush1.bf16.msra.mxu0 %v17052_v62 }
 0xebc   :  { %6438 = vmatprep.subr.bf16.mxu0 %v17060_v27  ;;  %6518 = vmatpush1.bf16.msra.mxu1 %v17079_v28 }
 0xebd   :  { %6519 = vmatprep.subr.bf16.mxu1 %v17087_v29 }
 0xebf   :  { %6439 = vmatpush1.bf16.msra.mxu0 %v17058_v30 }
 0xec0   :  { %6440 = vmatprep.subr.bf16.mxu0 %v17066_v20  ;;  %6520 = vmatpush1.bf16.msra.mxu1 %v17085_v22  ;;  %v17102_v22 = vld [vmem:[#allocation24 + $0x404] ss:$16 sps:$4 sm:$0xff]  }
 0xec1   :  { %6521 = vmatprep.subr.bf16.mxu1 %v17093_v49  ;;  %v17109_v49 = vld [vmem:[#allocation24 + $0x424] ss:$16 sps:$4 sm:$0xff]  }
 0xec2   :  { %15771 = vmatmul.mubr.msk.bf16.gmra.mrb[76].mxu0 %vm6162_vm5, %v17051_v32  ;;  %v17105_v32 = vld [vmem:[#allocation24 + $0x40c] ss:$16 sps:$4 sm:$0xff]  }
 0xec3   :  { %6441 = vmatpush1.bf16.msra.mxu0 %v17064_v34  ;;  %6468 = vmatprep.mubr.bf16.mxu0 %v18621_v0 }
 0xec4   :  { %6442 = vmatprep.subr.bf16.mxu0 %v17072_v39  ;;  %6522 = vmatpush1.bf16.msra.mxu1 %v17091_v53  ;;  %v17107_v53 = vld [vmem:[#allocation24 + $0x420] ss:$16 sps:$4 sm:$0xff]  }
 0xec5   :  { %6523 = vmatprep.subr.bf16.mxu1 %v17099_v56  ;;  %v17115_v56 = vld [vmem:[#allocation24 + $0x444] ss:$16 sps:$4 sm:$0xff]  }
 0xec7   :  { %6443 = vmatpush1.bf16.msra.mxu0 %v17070_v43 }
 0xec8   :  { %6444 = vmatprep.subr.bf16.mxu0 %v17078_v44  ;;  %6524 = vmatpush1.bf16.msra.mxu1 %v17097_v59  ;;  %v17119_v59 = vld [vmem:[%s20882_s28 + $0x8] sm:$0xff]  }
 0xecb   :  { %6445 = vmatpush1.bf16.msra.mxu0 %v17076_v45 }
 0xecc   :  { %6446 = vmatprep.subr.bf16.mxu0 %v17084_v46  ;;  %v17106_v46 = vld [vmem:[%s20882_s28] sm:$0xff]  }
 0xecf   :  { %6447 = vmatpush1.bf16.msra.mxu0 %v17082_v47  ;;  %v17100_v47 = vld [vmem:[#allocation24 + $0x400] ss:$16 sps:$4 sm:$0xff]  }
 0xed0   :  { %6448 = vmatprep.subr.bf16.mxu0 %v17090_v48  ;;  %v17103_v48 = vld [vmem:[#allocation24 + $0x408] ss:$16 sps:$4 sm:$0xff]  }
 0xed3   :  { %6449 = vmatpush1.bf16.msra.mxu0 %v17088_v50  ;;  %v17112_v50 = vld [vmem:[#allocation24 + $0x42c] ss:$16 sps:$4 sm:$0xff]  }
 0xed4   :  { %6450 = vmatprep.subr.bf16.mxu0 %v17096_v54  ;;  %v17110_v54 = vld [vmem:[#allocation24 + $0x428] ss:$16 sps:$4 sm:$0xff]  }
 0xed7   :  { %6451 = vmatpush1.bf16.msra.mxu0 %v17094_v58  ;;  %v17118_v58 = vld [vmem:[#allocation24 + $0x44c] ss:$16 sps:$4 sm:$0xff]  }
 0xf7d   :  { %v5993_v63 = vpop.f32.mrb[64].mxu0  ;;  %v6099_v40 = vpop.f32.mrb[76].mxu1 }
 0xf7e   :  { %v5995_v51 = vpop.f32.mrb[65].mxu0  ;;  %v6101_v1 = vpop.f32.mrb[77].mxu1 }
 0xf7f   :  { %v5997_v60 = vpop.f32.mrb[66].mxu0  ;;  %v6103_v52 = vpop.f32.mrb[78].mxu1 }
 0xf80   :  { %v6118_v4 = vpack.c.bf16 %v5997_v60, %v5993_v63  ;;  %v6120_v5 = vpack.c.bf16 %v6103_v52, %v6099_v40  ;;  %v5999_v6 = vpop.f32.mrb[67].mxu0  ;;  %v6105_v7 = vpop.f32.mrb[79].mxu1  ;;  %v17113_v63 = vld [vmem:[#allocation24 + $0x440] ss:$16 sps:$4 sm:$0xff]   ;;  %v17116_v40 = vld [vmem:[#allocation24 + $0x448] ss:$16 sps:$4 sm:$0xff]  }
 0xf81   :  { %v6119_v8 = vpack.c.bf16 %v5999_v6, %v5995_v51  ;;  %v6121_v9 = vpack.c.bf16 %v6105_v7, %v6101_v1  ;;  %v17122_v51 = vld [vmem:[#allocation24 + $0x464] ss:$16 sps:$4 sm:$0xff]   ;;  %v17125_v1 = vld [vmem:[#allocation24 + $0x46c] ss:$16 sps:$4 sm:$0xff]   ;;  %v17120_v60 = vld [vmem:[#allocation24 + $0x460] ss:$16 sps:$4 sm:$0xff]  }
 0xf82   :  { %v17123_v52 = vld [vmem:[#allocation24 + $0x468] ss:$16 sps:$4 sm:$0xff]   ;;  %v17132_v6 = vld [vmem:[%s20882_s28 + $0x10] sm:$0xff]  }
 0xf83   :  { %6614 = vmatprep.subr.bf16.mxu0 %v6119_v8  ;;  %6687 = vmatprep.subr.bf16.mxu1 %v6121_v9  ;;  %v17126_v7 = vld [vmem:[#allocation24 + $0x480] ss:$16 sps:$4 sm:$0xff]   ;;  %v17129_v8 = vld [vmem:[#allocation24 + $0x488] ss:$16 sps:$4 sm:$0xff]   ;;  %v17135_v9 = vld [vmem:[#allocation24 + $0x4a4] ss:$16 sps:$4 sm:$0xff]  }
 0xf85   :  { %v6003_v11 = vpop.f32.mrb[68].mxu0  ;;  %v6109_v12 = vpop.f32.mrb[80].mxu1 }
 0xf86   :  { %v6005_v37 = vpop.f32.mrb[69].mxu0  ;;  %v6111_v13 = vpop.f32.mrb[81].mxu1 }
 0xf87   :  { %v6007_v15 = vpop.f32.mrb[70].mxu0  ;;  %v6113_v42 = vpop.f32.mrb[82].mxu1 }
 0xf88   :  { %v6122_v31 = vpack.c.bf16 %v6007_v15, %v6003_v11  ;;  %v6124_v23 = vpack.c.bf16 %v6113_v42, %v6109_v12  ;;  %v6009_v24 = vpop.f32.mrb[71].mxu0  ;;  %v6115_v38 = vpop.f32.mrb[83].mxu1  ;;  %v17138_v11 = vld [vmem:[#allocation24 + $0x4ac] ss:$16 sps:$4 sm:$0xff]   ;;  %v17133_v12 = vld [vmem:[#allocation24 + $0x4a0] ss:$16 sps:$4 sm:$0xff]  }
 0xf89   :  { %v6123_v25 = vpack.c.bf16 %v6009_v24, %v6005_v37  ;;  %v6125_v26 = vpack.c.bf16 %v6115_v38, %v6111_v13  ;;  %v17136_v37 = vld [vmem:[#allocation24 + $0x4a8] ss:$16 sps:$4 sm:$0xff]   ;;  %v17141_v13 = vld [vmem:[#allocation24 + $0x4c4] ss:$16 sps:$4 sm:$0xff]   ;;  %v17144_v15 = vld [vmem:[#allocation24 + $0x4cc] ss:$16 sps:$4 sm:$0xff]  }
 0xf8a   :  { %v17145_v42 = vld [vmem:[%s20882_s28 + $0x18] sm:$0xff]   ;;  %v17148_v24 = vld [vmem:[#allocation24 + $0x4e4] ss:$16 sps:$4 sm:$0xff]  }
 0xf8b   :  { %v17151_v38 = vld [vmem:[#allocation24 + $0x4ec] ss:$16 sps:$4 sm:$0xff]  }
 0xf8d   :  { %v15768_v35 = vpop.f32.mrb[72].mxu0 }
 0xf8e   :  { %v6209_v62 = vpop.f32.mrb[73].mxu0 }
 0xf8f   :  { %v15769_v27 = vpop.f32.mrb[74].mxu0 }
 0xf90   :  { %v6241_v28 = vpack.c.bf16 %v15769_v27, %v15768_v35  ;;  %v6212_v29 = vpop.f32.mrb[75].mxu0  ;;  %v17154_v35 = vld [vmem:[#allocation24 + $0x504] ss:$16 sps:$4 sm:$0xff]   ;;  %v17152_v27 = vld [vmem:[#allocation24 + $0x500] ss:$16 sps:$4 sm:$0xff]  }
 0xf91   :  { %v6240_v30 = vpack.c.bf16 %v6212_v29, %v6209_v62  ;;  %v17157_v62 = vld [vmem:[#allocation24 + $0x50c] ss:$16 sps:$4 sm:$0xff]   ;;  %v17160_v29 = vld [vmem:[#allocation24 + $0x524] ss:$16 sps:$4 sm:$0xff]  }
 0xf93   :  { %6469 = vmatmul.mubr.bf16.vlgmr.msra.gmra.mrb[80].mxu0 %v6240_v30  ;;  %6542 = vmatmul.mubr.bf16.vlgmr.msra.gmra.mrb[84].mxu1 %v6240_v30  ;;  %v17163_v30 = vld [vmem:[#allocation24 + $0x52c] ss:$16 sps:$4 sm:$0xff]  }
 0xf94   :  { %6615 = vmatpush1.bf16.msra.mxu0 %v6118_v4  ;;  %6688 = vmatpush1.bf16.msra.mxu1 %v6120_v5  ;;  %v17128_v4 = vld [vmem:[#allocation24 + $0x484] ss:$16 sps:$4 sm:$0xff]   ;;  %v17131_v5 = vld [vmem:[#allocation24 + $0x48c] ss:$16 sps:$4 sm:$0xff]  }
 0xf95   :  { %6616 = vmatprep.subr.bf16.mxu0 %v6123_v25  ;;  %6689 = vmatprep.subr.bf16.mxu1 %v6125_v26  ;;  %v15772_v20 = vpop.f32.mrb[76].mxu0  ;;  %v17146_v25 = vld [vmem:[#allocation24 + $0x4e0] ss:$16 sps:$4 sm:$0xff]   ;;  %v17149_v26 = vld [vmem:[#allocation24 + $0x4e8] ss:$16 sps:$4 sm:$0xff]  }
 0xf96   :  { %6478 = vmatprep.mubr.bf16.mxu0 %v18621_v0  ;;  %6551 = vmatprep.mubr.bf16.mxu1 %v18621_v0  ;;  %v6225_v34 = vpop.f32.mrb[77].mxu0 }
 0xf97   :  { %v15773_v39 = vpop.f32.mrb[78].mxu0 }
 0xf98   :  { %6617 = vmatpush1.bf16.msra.mxu0 %v6122_v31  ;;  %6690 = vmatpush1.bf16.msra.mxu1 %v6124_v23  ;;  %v6243_v43 = vpack.c.bf16 %v15773_v39, %v15772_v20  ;;  %v6228_v44 = vpop.f32.mrb[79].mxu0  ;;  %v17139_v31 = vld [vmem:[#allocation24 + $0x4c0] ss:$16 sps:$4 sm:$0xff]   ;;  %v17142_v23 = vld [vmem:[#allocation24 + $0x4c8] ss:$16 sps:$4 sm:$0xff]  }
 0xf99   :  { %v6242_v45 = vpack.c.bf16 %v6228_v44, %v6225_v34  ;;  %7529 = vmatprep.subr.bf16.mxu0 %v17102_v22  ;;  %7635 = vmatprep.subr.bf16.mxu1 %v17105_v32  ;;  %v17158_v20 = vld [vmem:[#allocation24 + $0x520] ss:$16 sps:$4 sm:$0xff]   ;;  %v17161_v22 = vld [vmem:[#allocation24 + $0x528] ss:$16 sps:$4 sm:$0xff]   ;;  %v17166_v32 = vld [vmem:[#allocation24 + $0x544] ss:$16 sps:$4 sm:$0xff]  }
 0xf9a   :  { %v17169_v34 = vld [vmem:[#allocation24 + $0x54c] ss:$16 sps:$4 sm:$0xff]   ;;  %v17164_v39 = vld [vmem:[#allocation24 + $0x540] ss:$16 sps:$4 sm:$0xff]   ;;  %v17172_v44 = vld [vmem:[#allocation24 + $0x564] ss:$16 sps:$4 sm:$0xff]  }
 0xf9b   :  { %6479 = vmatmul.mubr.bf16.gmra.mrb[84].mxu0 %v6241_v28  ;;  %6552 = vmatmul.mubr.bf16.gmra.mrb[88].mxu1 %v6241_v28  ;;  %v17155_v28 = vld [vmem:[#allocation24 + $0x508] ss:$16 sps:$4 sm:$0xff]  }
 0xf9c   :  { %6488 = vmatprep.mubr.bf16.mxu0 %v18621_v0  ;;  %6561 = vmatprep.mubr.bf16.mxu1 %v18621_v0 }
 0xfa3   :  { %6489 = vmatmul.mubr.bf16.gmra.mrb[88].mxu0 %v6242_v45  ;;  %6562 = vmatmul.mubr.bf16.gmra.mrb[92].mxu1 %v6242_v45  ;;  %v17175_v45 = vld [vmem:[#allocation24 + $0x56c] ss:$16 sps:$4 sm:$0xff]  }
 0xfa4   :  { %6498 = vmatprep.mubr.bf16.mxu0 %v18621_v0  ;;  %6571 = vmatprep.mubr.bf16.mxu1 %v18621_v0 }
 0xfab   :  { %6499 = vmatmul.mubr.bf16.gmra.mrb[92].mxu0 %v6243_v43  ;;  %6572 = vmatmul.mubr.bf16.gmra.mrb[96].mxu1 %v6243_v43  ;;  %v17167_v43 = vld [vmem:[#allocation24 + $0x548] ss:$16 sps:$4 sm:$0xff]  }
 0xfac   :  { %6646 = vmatprep.mubr.bf16.mxu0 %v18621_v0  ;;  %6719 = vmatprep.mubr.bf16.mxu1 %v18621_v0 }
 0xfb3   :  { %14582 = vmatmul.mubr.msk.bf16.vlgmr.msra.gmra.mrb[80].mxu0 %vm2401_vm4, %v17106_v46  ;;  %14586 = vmatmul.mubr.msk.bf16.vlgmr.msra.gmra.mrb[84].mxu1 %vm2401_vm4, %v17106_v46  ;;  %v17170_v46 = vld [vmem:[#allocation24 + $0x560] ss:$16 sps:$4 sm:$0xff]  }
 0xfb4   :  { %7530 = vmatpush1.bf16.msra.mxu0 %v17100_v47  ;;  %7636 = vmatpush1.bf16.msra.mxu1 %v17103_v48  ;;  %v17173_v47 = vld [vmem:[#allocation24 + $0x568] ss:$16 sps:$4 sm:$0xff]   ;;  %v17178_v48 = vld [vmem:[#allocation24 + $0x584] ss:$16 sps:$4 sm:$0xff]  }
 0xfb5   :  { %7531 = vmatprep.subr.bf16.mxu0 %v17109_v49  ;;  %7637 = vmatprep.subr.bf16.mxu1 %v17112_v50  ;;  %v17181_v49 = vld [vmem:[#allocation24 + $0x58c] ss:$16 sps:$4 sm:$0xff]   ;;  %v17176_v50 = vld [vmem:[#allocation24 + $0x580] ss:$16 sps:$4 sm:$0xff]  }
 0xfb6   :  { %6656 = vmatprep.mubr.bf16.mxu0 %v18621_v0  ;;  %6729 = vmatprep.mubr.bf16.mxu1 %v18621_v0 }
 0xfb8   :  { %7532 = vmatpush1.bf16.msra.mxu0 %v17107_v53  ;;  %7638 = vmatpush1.bf16.msra.mxu1 %v17110_v54  ;;  %v17179_v53 = vld [vmem:[#allocation24 + $0x588] ss:$16 sps:$4 sm:$0xff]   ;;  %v17184_v54 = vld [vmem:[#allocation24 + $0x5a4] ss:$16 sps:$4 sm:$0xff]  }
 0xfb9   :  { %7533 = vmatprep.subr.bf16.mxu0 %v17115_v56  ;;  %7639 = vmatprep.subr.bf16.mxu1 %v17118_v58  ;;  %v17187_v56 = vld [vmem:[#allocation24 + $0x5ac] ss:$16 sps:$4 sm:$0xff]   ;;  %v17182_v58 = vld [vmem:[#allocation24 + $0x5a0] ss:$16 sps:$4 sm:$0xff]  }
 0xfbb   :  { %14583 = vmatmul.mubr.msk.bf16.gmra.mrb[84].mxu0 %vm2401_vm4, %v17119_v59  ;;  %14587 = vmatmul.mubr.msk.bf16.gmra.mrb[88].mxu1 %vm2401_vm4, %v17119_v59  ;;  %v17185_v59 = vld [vmem:[#allocation24 + $0x5a8] ss:$16 sps:$4 sm:$0xff]  }
 0xfbc   :  { %7534 = vmatpush1.bf16.msra.mxu0 %v17113_v63  ;;  %7640 = vmatpush1.bf16.msra.mxu1 %v17116_v40  ;;  %v17190_v63 = vld [vmem:[#allocation24 + $0x5c4] ss:$16 sps:$4 sm:$0xff]   ;;  %v17193_v40 = vld [vmem:[#allocation24 + $0x5cc] ss:$16 sps:$4 sm:$0xff]  }
 0xfbd   :  { %7535 = vmatprep.subr.bf16.mxu0 %v17122_v51  ;;  %7641 = vmatprep.subr.bf16.mxu1 %v17125_v1  ;;  %v17188_v51 = vld [vmem:[#allocation24 + $0x5c0] ss:$16 sps:$4 sm:$0xff]   ;;  %v17191_v1 = vld [vmem:[#allocation24 + $0x5c8] ss:$16 sps:$4 sm:$0xff]  }
 0xfbe   :  { %6666 = vmatprep.mubr.bf16.mxu0 %v18621_v0  ;;  %6739 = vmatprep.mubr.bf16.mxu1 %v18621_v0 }
 0xfc0   :  { %7536 = vmatpush1.bf16.msra.mxu0 %v17120_v60  ;;  %7642 = vmatpush1.bf16.msra.mxu1 %v17123_v52  ;;  %v17196_v60 = vld [vmem:[#allocation24 + $0x5e4] ss:$16 sps:$4 sm:$0xff]   ;;  %v17199_v52 = vld [vmem:[#allocation24 + $0x5ec] ss:$16 sps:$4 sm:$0xff]  }
 0xfc1   :  { %7537 = vmatprep.subr.bf16.mxu0 %v17128_v4  ;;  %7643 = vmatprep.subr.bf16.mxu1 %v17131_v5  ;;  %v17194_v4 = vld [vmem:[#allocation24 + $0x5e0] ss:$16 sps:$4 sm:$0xff]   ;;  %v17197_v5 = vld [vmem:[#allocation24 + $0x5e8] ss:$16 sps:$4 sm:$0xff]  }
 0xfc3   :  { %14584 = vmatmul.mubr.msk.bf16.gmra.mrb[88].mxu0 %vm2401_vm4, %v17132_v6  ;;  %14588 = vmatmul.mubr.msk.bf16.gmra.mrb[92].mxu1 %vm2401_vm4, %v17132_v6  ;;  %v17202_v6 = vld [vmem:[#allocation24 + $0x604] ss:$16 sps:$4 sm:$0xff]  }
 0xfc4   :  { %7538 = vmatpush1.bf16.msra.mxu0 %v17126_v7  ;;  %7644 = vmatpush1.bf16.msra.mxu1 %v17129_v8  ;;  %v17205_v7 = vld [vmem:[#allocation24 + $0x60c] ss:$16 sps:$4 sm:$0xff]   ;;  %v17200_v8 = vld [vmem:[#allocation24 + $0x600] ss:$16 sps:$4 sm:$0xff]  }
 0xfc5   :  { %7539 = vmatprep.subr.bf16.mxu0 %v17135_v9  ;;  %7645 = vmatprep.subr.bf16.mxu1 %v17138_v11  ;;  %v17203_v9 = vld [vmem:[#allocation24 + $0x608] ss:$16 sps:$4 sm:$0xff]   ;;  %v17208_v11 = vld [vmem:[#allocation24 + $0x624] ss:$16 sps:$4 sm:$0xff]  }
 0xfc6   :  { %6676 = vmatprep.mubr.bf16.mxu0 %v18621_v0  ;;  %6749 = vmatprep.mubr.bf16.mxu1 %v18621_v0 }
 0xfc8   :  { %7540 = vmatpush1.bf16.msra.mxu0 %v17133_v12  ;;  %7646 = vmatpush1.bf16.msra.mxu1 %v17136_v37  ;;  %v17211_v12 = vld [vmem:[#allocation24 + $0x62c] ss:$16 sps:$4 sm:$0xff]   ;;  %v17206_v37 = vld [vmem:[#allocation24 + $0x620] ss:$16 sps:$4 sm:$0xff]  }
 0xfc9   :  { %7541 = vmatprep.subr.bf16.mxu0 %v17141_v13  ;;  %7647 = vmatprep.subr.bf16.mxu1 %v17144_v15  ;;  %v17209_v13 = vld [vmem:[#allocation24 + $0x628] ss:$16 sps:$4 sm:$0xff]   ;;  %v17214_v15 = vld [vmem:[#allocation24 + $0x644] ss:$16 sps:$4 sm:$0xff]  }
 0xfcb   :  { %14585 = vmatmul.mubr.msk.bf16.gmra.mrb[92].mxu0 %vm2401_vm4, %v17145_v42  ;;  %14589 = vmatmul.mubr.msk.bf16.gmra.mrb[96].mxu1 %vm2401_vm4, %v17145_v42  ;;  %v17217_v42 = vld [vmem:[#allocation24 + $0x64c] ss:$16 sps:$4 sm:$0xff]  }
 0xfcc   :  { %7542 = vmatpush1.bf16.msra.mxu0 %v17139_v31  ;;  %7648 = vmatpush1.bf16.msra.mxu1 %v17142_v23  ;;  %v17212_v31 = vld [vmem:[#allocation24 + $0x640] ss:$16 sps:$4 sm:$0xff]   ;;  %v17215_v23 = vld [vmem:[#allocation24 + $0x648] ss:$16 sps:$4 sm:$0xff]  }
 0xfcd   :  { %7561 = vmatprep.mubr.bf16.mxu0 %v19904_v36  ;;  %7667 = vmatprep.mubr.bf16.mxu1 %v19904_v36 }
 0xfce   :  { %7543 = vmatprep.subr.bf16.mxu0 %v17148_v24  ;;  %7649 = vmatprep.subr.bf16.mxu1 %v17151_v38  ;;  %v17220_v24 = vld [vmem:[#allocation24 + $0x664] ss:$16 sps:$4 sm:$0xff]   ;;  %v17223_v38 = vld [vmem:[#allocation24 + $0x66c] ss:$16 sps:$4 sm:$0xff]  }
 0xfd0   :  { %7544 = vmatpush1.bf16.msra.mxu0 %v17146_v25  ;;  %7650 = vmatpush1.bf16.msra.mxu1 %v17149_v26  ;;  %v17218_v25 = vld [vmem:[#allocation24 + $0x660] ss:$16 sps:$4 sm:$0xff]   ;;  %v17221_v26 = vld [vmem:[#allocation24 + $0x668] ss:$16 sps:$4 sm:$0xff]  }
 0xfd1   :  { %7545 = vmatprep.subr.bf16.mxu0 %v17154_v35  ;;  %7651 = vmatprep.subr.bf16.mxu1 %v17157_v62  ;;  %v17226_v35 = vld [vmem:[#allocation24 + $0x684] ss:$16 sps:$4 sm:$0xff]   ;;  %v17229_v62 = vld [vmem:[#allocation24 + $0x68c] ss:$16 sps:$4 sm:$0xff]  }
 0xfd4   :  { %7546 = vmatpush1.bf16.msra.mxu0 %v17152_v27  ;;  %7652 = vmatpush1.bf16.msra.mxu1 %v17155_v28  ;;  %v17224_v27 = vld [vmem:[#allocation24 + $0x680] ss:$16 sps:$4 sm:$0xff]   ;;  %v17227_v28 = vld [vmem:[#allocation24 + $0x688] ss:$16 sps:$4 sm:$0xff]  }
 0xfd5   :  { %7547 = vmatprep.subr.bf16.mxu0 %v17160_v29  ;;  %7653 = vmatprep.subr.bf16.mxu1 %v17163_v30  ;;  %v17232_v29 = vld [vmem:[#allocation24 + $0x6a4] ss:$16 sps:$4 sm:$0xff]   ;;  %v17235_v30 = vld [vmem:[#allocation24 + $0x6ac] ss:$16 sps:$4 sm:$0xff]  }
 0xfd8   :  { %7548 = vmatpush1.bf16.msra.mxu0 %v17158_v20  ;;  %7654 = vmatpush1.bf16.msra.mxu1 %v17161_v22  ;;  %v17230_v20 = vld [vmem:[#allocation24 + $0x6a0] ss:$16 sps:$4 sm:$0xff]   ;;  %v17233_v22 = vld [vmem:[#allocation24 + $0x6a8] ss:$16 sps:$4 sm:$0xff]  }
 0xfd9   :  { %7549 = vmatprep.subr.bf16.mxu0 %v17166_v32  ;;  %7655 = vmatprep.subr.bf16.mxu1 %v17169_v34  ;;  %v17238_v32 = vld [vmem:[#allocation24 + $0x6c4] ss:$16 sps:$4 sm:$0xff]   ;;  %v17241_v34 = vld [vmem:[#allocation24 + $0x6cc] ss:$16 sps:$4 sm:$0xff]  }
 0xfdc   :  { %7550 = vmatpush1.bf16.msra.mxu0 %v17164_v39  ;;  %7656 = vmatpush1.bf16.msra.mxu1 %v17167_v43  ;;  %v17236_v39 = vld [vmem:[#allocation24 + $0x6c0] ss:$16 sps:$4 sm:$0xff]   ;;  %v17239_v43 = vld [vmem:[#allocation24 + $0x6c8] ss:$16 sps:$4 sm:$0xff]  }
 0xfdd   :  { %7551 = vmatprep.subr.bf16.mxu0 %v17172_v44  ;;  %7657 = vmatprep.subr.bf16.mxu1 %v17175_v45  ;;  %v17244_v44 = vld [vmem:[#allocation24 + $0x6e4] ss:$16 sps:$4 sm:$0xff]   ;;  %v17247_v45 = vld [vmem:[#allocation24 + $0x6ec] ss:$16 sps:$4 sm:$0xff]  }
 0xfe0   :  { %7552 = vmatpush1.bf16.msra.mxu0 %v17170_v46  ;;  %7658 = vmatpush1.bf16.msra.mxu1 %v17173_v47  ;;  %v17242_v46 = vld [vmem:[#allocation24 + $0x6e0] ss:$16 sps:$4 sm:$0xff]   ;;  %v17245_v47 = vld [vmem:[#allocation24 + $0x6e8] ss:$16 sps:$4 sm:$0xff]  }
 0xfe1   :  { %7553 = vmatprep.subr.bf16.mxu0 %v17178_v48  ;;  %7659 = vmatprep.subr.bf16.mxu1 %v17181_v49  ;;  %v17250_v48 = vld [vmem:[#allocation24 + $0x704] ss:$16 sps:$4 sm:$0xff]   ;;  %v17253_v49 = vld [vmem:[#allocation24 + $0x70c] ss:$16 sps:$4 sm:$0xff]  }
 0xfe4   :  { %7554 = vmatpush1.bf16.msra.mxu0 %v17176_v50  ;;  %7660 = vmatpush1.bf16.msra.mxu1 %v17179_v53  ;;  %v17248_v50 = vld [vmem:[#allocation24 + $0x700] ss:$16 sps:$4 sm:$0xff]   ;;  %v17251_v53 = vld [vmem:[#allocation24 + $0x708] ss:$16 sps:$4 sm:$0xff]  }
 0xfe5   :  { %7555 = vmatprep.subr.bf16.mxu0 %v17184_v54  ;;  %7661 = vmatprep.subr.bf16.mxu1 %v17187_v56  ;;  %v17256_v54 = vld [vmem:[#allocation24 + $0x724] ss:$16 sps:$4 sm:$0xff]   ;;  %v17259_v56 = vld [vmem:[#allocation24 + $0x72c] ss:$16 sps:$4 sm:$0xff]  }
 0xfe8   :  { %7556 = vmatpush1.bf16.msra.mxu0 %v17182_v58  ;;  %7662 = vmatpush1.bf16.msra.mxu1 %v17185_v59  ;;  %v17254_v58 = vld [vmem:[#allocation24 + $0x720] ss:$16 sps:$4 sm:$0xff]   ;;  %v17257_v59 = vld [vmem:[#allocation24 + $0x728] ss:$16 sps:$4 sm:$0xff]  }
 0xfe9   :  { %7557 = vmatprep.subr.bf16.mxu0 %v17190_v63  ;;  %7663 = vmatprep.subr.bf16.mxu1 %v17193_v40  ;;  %v17262_v63 = vld [vmem:[#allocation24 + $0x744] ss:$16 sps:$4 sm:$0xff]   ;;  %v17265_v40 = vld [vmem:[#allocation24 + $0x74c] ss:$16 sps:$4 sm:$0xff]  }
 0xfec   :  { %7558 = vmatpush1.bf16.msra.mxu0 %v17188_v51  ;;  %7664 = vmatpush1.bf16.msra.mxu1 %v17191_v1  ;;  %v17260_v51 = vld [vmem:[#allocation24 + $0x740] ss:$16 sps:$4 sm:$0xff]   ;;  %v17263_v1 = vld [vmem:[#allocation24 + $0x748] ss:$16 sps:$4 sm:$0xff]  }
 0xfed   :  { %7559 = vmatprep.subr.bf16.mxu0 %v17196_v60  ;;  %7665 = vmatprep.subr.bf16.mxu1 %v17199_v52  ;;  %v17268_v60 = vld [vmem:[#allocation24 + $0x764] ss:$16 sps:$4 sm:$0xff]   ;;  %v17271_v52 = vld [vmem:[#allocation24 + $0x76c] ss:$16 sps:$4 sm:$0xff]  }
 0xff0   :  { %7560 = vmatpush1.bf16.msra.mxu0 %v17194_v4  ;;  %7666 = vmatpush1.bf16.msra.mxu1 %v17197_v5  ;;  %v17266_v4 = vld [vmem:[#allocation24 + $0x760] ss:$16 sps:$4 sm:$0xff]   ;;  %v17269_v5 = vld [vmem:[#allocation24 + $0x768] ss:$16 sps:$4 sm:$0xff]  }
 0xff1   :  { %7582 = vmatprep.subr.bf16.mxu0 %v17202_v6  ;;  %7688 = vmatprep.subr.bf16.mxu1 %v17205_v7  ;;  %v17274_v6 = vld [vmem:[#allocation24 + $0x784] ss:$16 sps:$4 sm:$0xff]   ;;  %v17277_v7 = vld [vmem:[#allocation24 + $0x78c] ss:$16 sps:$4 sm:$0xff]  }
 0xff3   :  { %7562 = vmatmul.mubr.bf16.vlgmr.msra.gmra.mrb[96].mxu0 %v19902_v33  ;;  %7668 = vmatmul.mubr.bf16.vlgmr.msra.gmra.mrb[100].mxu1 %v19902_v33 }
 0xff4   :  { %7571 = vmatprep.mubr.bf16.mxu0 %v19912_v57  ;;  %7583 = vmatpush1.bf16.msra.mxu0 %v17200_v8  ;;  %v17272_v8 = vld [vmem:[#allocation24 + $0x780] ss:$16 sps:$4 sm:$0xff]  }
 0xff5   :  { %7677 = vmatprep.mubr.bf16.mxu1 %v19912_v57  ;;  %7689 = vmatpush1.bf16.msra.mxu1 %v17203_v9  ;;  %v17275_v9 = vld [vmem:[#allocation24 + $0x788] ss:$16 sps:$4 sm:$0xff]  }
 0xff6   :  { %7584 = vmatprep.subr.bf16.mxu0 %v17208_v11  ;;  %7690 = vmatprep.subr.bf16.mxu1 %v17211_v12  ;;  %v17280_v11 = vld [vmem:[#allocation24 + $0x7a4] ss:$16 sps:$4 sm:$0xff]   ;;  %v17283_v12 = vld [vmem:[#allocation24 + $0x7ac] ss:$16 sps:$4 sm:$0xff]  }
 0xff8   :  { %7585 = vmatpush1.bf16.msra.mxu0 %v17206_v37  ;;  %v17278_v37 = vld [vmem:[#allocation24 + $0x7a0] ss:$16 sps:$4 sm:$0xff]  }
 0xff9   :  { %7691 = vmatpush1.bf16.msra.mxu1 %v17209_v13  ;;  %7586 = vmatprep.subr.bf16.mxu0 %v17214_v15  ;;  %v17281_v13 = vld [vmem:[#allocation24 + $0x7a8] ss:$16 sps:$4 sm:$0xff]   ;;  %v17286_v15 = vld [vmem:[#allocation24 + $0x7c4] ss:$16 sps:$4 sm:$0xff]  }
 0xffa   :  { %7692 = vmatprep.subr.bf16.mxu1 %v17217_v42  ;;  %v17289_v42 = vld [vmem:[#allocation24 + $0x7cc] ss:$16 sps:$4 sm:$0xff]  }
 0xffb   :  { %7572 = vmatmul.mubr.bf16.gmra.mrb[100].mxu0 %v19910_v55  ;;  %7678 = vmatmul.mubr.bf16.gmra.mrb[104].mxu1 %v19910_v55 }
 0xffc   :  { %7587 = vmatpush1.bf16.msra.mxu0 %v17212_v31  ;;  %7614 = vmatprep.mubr.bf16.mxu0 %v19937_v41  ;;  %v17284_v31 = vld [vmem:[#allocation24 + $0x7c0] ss:$16 sps:$4 sm:$0xff]  }
 0xffd   :  { %7693 = vmatpush1.bf16.msra.mxu1 %v17215_v23  ;;  %7720 = vmatprep.mubr.bf16.mxu1 %v19937_v41  ;;  %v17287_v23 = vld [vmem:[#allocation24 + $0x7c8] ss:$16 sps:$4 sm:$0xff]  }
 0xffe   :  { %7588 = vmatprep.subr.bf16.mxu0 %v17220_v24  ;;  %7694 = vmatprep.subr.bf16.mxu1 %v17223_v38  ;;  %v17292_v24 = vld [vmem:[#allocation24 + $0x7e4] ss:$16 sps:$4 sm:$0xff]   ;;  %v17295_v38 = vld [vmem:[#allocation24 + $0x7ec] ss:$16 sps:$4 sm:$0xff]  }
0x1000   :  { %7589 = vmatpush1.bf16.msra.mxu0 %v17218_v25  ;;  %v17290_v25 = vld [vmem:[#allocation24 + $0x7e0] ss:$16 sps:$4 sm:$0xff]  }
0x1001   :  { %7695 = vmatpush1.bf16.msra.mxu1 %v17221_v26  ;;  %7590 = vmatprep.subr.bf16.mxu0 %v17226_v35  ;;  %v17293_v26 = vld [vmem:[#allocation24 + $0x7e8] ss:$16 sps:$4 sm:$0xff]  }
0x1002   :  { %7696 = vmatprep.subr.bf16.mxu1 %v17229_v62 }
0x1004   :  { %7591 = vmatpush1.bf16.msra.mxu0 %v17224_v27 }
0x1005   :  { %7697 = vmatpush1.bf16.msra.mxu1 %v17227_v28  ;;  %7592 = vmatprep.subr.bf16.mxu0 %v17232_v29 }
0x1006   :  { %7698 = vmatprep.subr.bf16.mxu1 %v17235_v30 }
0x1008   :  { %7593 = vmatpush1.bf16.msra.mxu0 %v17230_v20 }
0x1009   :  { %7699 = vmatpush1.bf16.msra.mxu1 %v17233_v22  ;;  %7594 = vmatprep.subr.bf16.mxu0 %v17238_v32 }
0x100a   :  { %7700 = vmatprep.subr.bf16.mxu1 %v17241_v34 }
0x100c   :  { %7595 = vmatpush1.bf16.msra.mxu0 %v17236_v39 }
0x100d   :  { %7701 = vmatpush1.bf16.msra.mxu1 %v17239_v43  ;;  %7596 = vmatprep.subr.bf16.mxu0 %v17244_v44 }
0x100e   :  { %7702 = vmatprep.subr.bf16.mxu1 %v17247_v45 }
0x1010   :  { %7597 = vmatpush1.bf16.msra.mxu0 %v17242_v46 }
0x1011   :  { %7703 = vmatpush1.bf16.msra.mxu1 %v17245_v47  ;;  %7598 = vmatprep.subr.bf16.mxu0 %v17250_v48 }
0x1012   :  { %7704 = vmatprep.subr.bf16.mxu1 %v17253_v49 }
0x1014   :  { %7599 = vmatpush1.bf16.msra.mxu0 %v17248_v50 }
0x1015   :  { %7705 = vmatpush1.bf16.msra.mxu1 %v17251_v53  ;;  %7600 = vmatprep.subr.bf16.mxu0 %v17256_v54 }
0x1016   :  { %7706 = vmatprep.subr.bf16.mxu1 %v17259_v56 }
0x1018   :  { %7601 = vmatpush1.bf16.msra.mxu0 %v17254_v58 }
0x1019   :  { %7707 = vmatpush1.bf16.msra.mxu1 %v17257_v59  ;;  %7602 = vmatprep.subr.bf16.mxu0 %v17262_v63  ;;  %v17299_v59 = vld [vmem:[%s20881_s8 + $0x104] ss:$16 sps:$4 sm:$0xff]  }
0x101a   :  { %7708 = vmatprep.subr.bf16.mxu1 %v17265_v40  ;;  %v17302_v40 = vld [vmem:[%s20881_s8 + $0x10c] ss:$16 sps:$4 sm:$0xff]  }
0x101c   :  { %7603 = vmatpush1.bf16.msra.mxu0 %v17260_v51  ;;  %v17296_v51 = vld [vmem:[%s20882_s28 + $0x20] sm:$0xff]  }
0x101d   :  { %7709 = vmatpush1.bf16.msra.mxu1 %v17263_v1  ;;  %7604 = vmatprep.subr.bf16.mxu0 %v17268_v60  ;;  %v17297_v1 = vld [vmem:[%s20881_s8 + $0x100] ss:$16 sps:$4 sm:$0xff]   ;;  %v17300_v60 = vld [vmem:[%s20881_s8 + $0x108] ss:$16 sps:$4 sm:$0xff]  }
0x101e   :  { %7710 = vmatprep.subr.bf16.mxu1 %v17271_v52  ;;  %v17305_v52 = vld [vmem:[%s20881_s8 + $0x124] ss:$16 sps:$4 sm:$0xff]  }
0x1020   :  { %7605 = vmatpush1.bf16.msra.mxu0 %v17266_v4  ;;  %v17308_v4 = vld [vmem:[%s20881_s8 + $0x12c] ss:$16 sps:$4 sm:$0xff]  }
0x1021   :  { %7711 = vmatpush1.bf16.msra.mxu1 %v17269_v5  ;;  %7606 = vmatprep.subr.bf16.mxu0 %v17274_v6  ;;  %v17303_v5 = vld [vmem:[%s20881_s8 + $0x120] ss:$16 sps:$4 sm:$0xff]   ;;  %v17306_v6 = vld [vmem:[%s20881_s8 + $0x128] ss:$16 sps:$4 sm:$0xff]  }
0x1022   :  { %7712 = vmatprep.subr.bf16.mxu1 %v17277_v7  ;;  %v17312_v7 = vld [vmem:[%s20881_s8 + $0x144] ss:$16 sps:$4 sm:$0xff]  }
0x1024   :  { %7607 = vmatpush1.bf16.msra.mxu0 %v17272_v8  ;;  %v17315_v8 = vld [vmem:[%s20881_s8 + $0x14c] ss:$16 sps:$4 sm:$0xff]  }
0x1025   :  { %7713 = vmatpush1.bf16.msra.mxu1 %v17275_v9  ;;  %7608 = vmatprep.subr.bf16.mxu0 %v17280_v11  ;;  %v17309_v9 = vld [vmem:[%s20882_s28 + $0x28] sm:$0xff]   ;;  %v17310_v11 = vld [vmem:[%s20881_s8 + $0x140] ss:$16 sps:$4 sm:$0xff]  }
0x1026   :  { %7714 = vmatprep.subr.bf16.mxu1 %v17283_v12  ;;  %v17313_v12 = vld [vmem:[%s20881_s8 + $0x148] ss:$16 sps:$4 sm:$0xff]  }
0x1028   :  { %7609 = vmatpush1.bf16.msra.mxu0 %v17278_v37  ;;  %v17318_v37 = vld [vmem:[%s20881_s8 + $0x164] ss:$16 sps:$4 sm:$0xff]  }
0x1029   :  { %7715 = vmatpush1.bf16.msra.mxu1 %v17281_v13  ;;  %7610 = vmatprep.subr.bf16.mxu0 %v17286_v15  ;;  %v17321_v13 = vld [vmem:[%s20881_s8 + $0x16c] ss:$16 sps:$4 sm:$0xff]   ;;  %v17316_v15 = vld [vmem:[%s20881_s8 + $0x160] ss:$16 sps:$4 sm:$0xff]  }
0x102a   :  { %7716 = vmatprep.subr.bf16.mxu1 %v17289_v42  ;;  %v17319_v42 = vld [vmem:[%s20881_s8 + $0x168] ss:$16 sps:$4 sm:$0xff]  }
0x102c   :  { %7611 = vmatpush1.bf16.msra.mxu0 %v17284_v31  ;;  %v17325_v31 = vld [vmem:[%s20881_s8 + $0x184] ss:$16 sps:$4 sm:$0xff]  }
0x102d   :  { %7717 = vmatpush1.bf16.msra.mxu1 %v17287_v23  ;;  %7612 = vmatprep.subr.bf16.mxu0 %v17292_v24  ;;  %v17328_v23 = vld [vmem:[%s20881_s8 + $0x18c] ss:$16 sps:$4 sm:$0xff]   ;;  %v17322_v24 = vld [vmem:[%s20882_s28 + $0x30] sm:$0xff]  }
0x102e   :  { %7718 = vmatprep.subr.bf16.mxu1 %v17295_v38  ;;  %v17323_v38 = vld [vmem:[%s20881_s8 + $0x180] ss:$16 sps:$4 sm:$0xff]  }
0x1030   :  { %7613 = vmatpush1.bf16.msra.mxu0 %v17290_v25  ;;  %v17326_v25 = vld [vmem:[%s20881_s8 + $0x188] ss:$16 sps:$4 sm:$0xff]  }
0x1031   :  { %7719 = vmatpush1.bf16.msra.mxu1 %v17293_v26  ;;  %v17331_v26 = vld [vmem:[%s20881_s8 + $0x1a4] ss:$16 sps:$4 sm:$0xff]  }
0x1033   :  { %7615 = vmatmul.mubr.bf16.vlgmr.msra.gmra.mrb[96].mxu0 %v19935_v2 }
0x1034   :  { %7721 = vmatmul.mubr.bf16.vlgmr.msra.gmra.mrb[100].mxu1 %v19935_v2  ;;  %7624 = vmatprep.mubr.bf16.mxu0 %v19976_v16 }
0x1035   :  { %7730 = vmatprep.mubr.bf16.mxu1 %v19976_v16 }
0x103b   :  { %7625 = vmatmul.mubr.bf16.gmra.mrb[100].mxu0 %v19974_v14 }
0x103c   :  { %7731 = vmatmul.mubr.bf16.gmra.mrb[104].mxu1 %v19974_v14  ;;  %7822 = vmatprep.mubr.bf16.mxu0 %v18621_v0 }
0x103d   :  { %7895 = vmatprep.mubr.bf16.mxu1 %v18621_v0 }
0x1106   :  { %v7616_v35 = vpop.f32.mrb[96].mxu0 }
0x1107   :  { %v7722_v62 = vpop.f32.mrb[100].mxu1  ;;  %v7618_v27 = vpop.f32.mrb[97].mxu0 }
0x1108   :  { %v7724_v28 = vpop.f32.mrb[101].mxu1  ;;  %v7620_v29 = vpop.f32.mrb[98].mxu0 }
0x1109   :  { %v7741_v30 = vpack.c.bf16 %v7620_v29, %v7616_v35  ;;  %v7726_v20 = vpop.f32.mrb[102].mxu1  ;;  %v7622_v22 = vpop.f32.mrb[99].mxu0  ;;  %v17334_v35 = vld [vmem:[%s20881_s8 + $0x1ac] ss:$16 sps:$4 sm:$0xff]  }
0x110a   :  { %v7743_v32 = vpack.c.bf16 %v7726_v20, %v7722_v62  ;;  %v7742_v34 = vpack.c.bf16 %v7622_v22, %v7618_v27  ;;  %v7728_v39 = vpop.f32.mrb[103].mxu1  ;;  %v17329_v62 = vld [vmem:[%s20881_s8 + $0x1a0] ss:$16 sps:$4 sm:$0xff]   ;;  %v17332_v27 = vld [vmem:[%s20881_s8 + $0x1a8] ss:$16 sps:$4 sm:$0xff]  }
0x110b   :  { %v7744_v43 = vpack.c.bf16 %v7728_v39, %v7724_v28  ;;  %v17338_v28 = vld [vmem:[%s20881_s8 + $0x1c4] ss:$16 sps:$4 sm:$0xff]   ;;  %v17341_v29 = vld [vmem:[%s20881_s8 + $0x1cc] ss:$16 sps:$4 sm:$0xff]   ;;  %v17336_v20 = vld [vmem:[%s20881_s8 + $0x1c0] ss:$16 sps:$4 sm:$0xff]  }
0x110c   :  { %7790 = vmatprep.subr.bf16.mxu0 %v7742_v34  ;;  %v17339_v22 = vld [vmem:[%s20881_s8 + $0x1c8] ss:$16 sps:$4 sm:$0xff]   ;;  %v17347_v34 = vld [vmem:[%s20881_s8 + $0x1ec] ss:$16 sps:$4 sm:$0xff]   ;;  %v17342_v39 = vld [vmem:[%s20881_s8 + $0x1e0] ss:$16 sps:$4 sm:$0xff]  }
0x110d   :  { %7863 = vmatprep.subr.bf16.mxu1 %v7744_v43  ;;  %7791 = vmatpush1.bf16.msra.mxu0 %v7741_v30  ;;  %v17335_v30 = vld [vmem:[%s20882_s28 + $0x38] sm:$0xff]  }
0x110e   :  { %7864 = vmatpush1.bf16.msra.mxu1 %v7743_v32  ;;  %v7626_v44 = vpop.f32.mrb[100].mxu0  ;;  %v17344_v32 = vld [vmem:[%s20881_s8 + $0x1e4] ss:$16 sps:$4 sm:$0xff]   ;;  %v17345_v43 = vld [vmem:[%s20881_s8 + $0x1e8] ss:$16 sps:$4 sm:$0xff]  }
0x110f   :  { %v7732_v45 = vpop.f32.mrb[104].mxu1  ;;  %v7628_v46 = vpop.f32.mrb[101].mxu0 }
0x1110   :  { %v7734_v47 = vpop.f32.mrb[105].mxu1  ;;  %v7630_v48 = vpop.f32.mrb[102].mxu0 }
0x1111   :  { %v7745_v49 = vpack.c.bf16 %v7630_v48, %v7626_v44  ;;  %v7736_v50 = vpop.f32.mrb[106].mxu1  ;;  %v7632_v53 = vpop.f32.mrb[103].mxu0  ;;  %v17350_v44 = vld [vmem:[#allocation24 + $0x804] ss:$16 sps:$4 sm:$0xff]  }
0x1112   :  { %v7747_v54 = vpack.c.bf16 %v7736_v50, %v7732_v45  ;;  %v7746_v56 = vpack.c.bf16 %v7632_v53, %v7628_v46  ;;  %v7738_v58 = vpop.f32.mrb[107].mxu1  ;;  %v17353_v45 = vld [vmem:[#allocation24 + $0x80c] ss:$16 sps:$4 sm:$0xff]   ;;  %v17348_v46 = vld [vmem:[#allocation24 + $0x800] ss:$16 sps:$4 sm:$0xff]  }
0x1113   :  { %v7748_v63 = vpack.c.bf16 %v7738_v58, %v7734_v47  ;;  %v17351_v47 = vld [vmem:[#allocation24 + $0x808] ss:$16 sps:$4 sm:$0xff]   ;;  %v17356_v48 = vld [vmem:[#allocation24 + $0x824] ss:$16 sps:$4 sm:$0xff]   ;;  %v17354_v50 = vld [vmem:[#allocation24 + $0x820] ss:$16 sps:$4 sm:$0xff]  }
0x1114   :  { %7792 = vmatprep.subr.bf16.mxu0 %v7746_v56  ;;  %v17357_v53 = vld [vmem:[#allocation24 + $0x828] ss:$16 sps:$4 sm:$0xff]   ;;  %v17365_v56 = vld [vmem:[#allocation24 + $0x84c] ss:$16 sps:$4 sm:$0xff]   ;;  %v17360_v58 = vld [vmem:[#allocation24 + $0x840] ss:$16 sps:$4 sm:$0xff]  }
0x1115   :  { %7865 = vmatprep.subr.bf16.mxu1 %v7748_v63  ;;  %7793 = vmatpush1.bf16.msra.mxu0 %v7745_v49  ;;  %v17359_v49 = vld [vmem:[#allocation24 + $0x82c] ss:$16 sps:$4 sm:$0xff]   ;;  %v17368_v63 = vld [vmem:[#allocation24 + $0x864] ss:$16 sps:$4 sm:$0xff]  }
0x1116   :  { %7866 = vmatpush1.bf16.msra.mxu1 %v7747_v54  ;;  %8161 = vmatprep.subr.bf16.mxu0 %v17299_v59  ;;  %v17362_v54 = vld [vmem:[#allocation24 + $0x844] ss:$16 sps:$4 sm:$0xff]   ;;  %v17363_v59 = vld [vmem:[#allocation24 + $0x848] ss:$16 sps:$4 sm:$0xff]  }
0x1117   :  { %8234 = vmatprep.subr.bf16.mxu1 %v17302_v40  ;;  %v17371_v40 = vld [vmem:[#allocation24 + $0x86c] ss:$16 sps:$4 sm:$0xff]  }
0x1118   :  { %14730 = vmatmul.mubr.msk.bf16.vlgmr.msra.gmra.mrb[80].mxu0 %vm2401_vm4, %v17296_v51 }
0x1119   :  { %14734 = vmatmul.mubr.msk.bf16.vlgmr.msra.gmra.mrb[84].mxu1 %vm2401_vm4, %v17296_v51  ;;  %8162 = vmatpush1.bf16.msra.mxu0 %v17297_v1  ;;  %v17366_v51 = vld [vmem:[#allocation24 + $0x860] ss:$16 sps:$4 sm:$0xff]   ;;  %v17369_v1 = vld [vmem:[#allocation24 + $0x868] ss:$16 sps:$4 sm:$0xff]  }
0x111a   :  { %8235 = vmatpush1.bf16.msra.mxu1 %v17300_v60  ;;  %8163 = vmatprep.subr.bf16.mxu0 %v17305_v52  ;;  %v17374_v60 = vld [vmem:[#allocation24 + $0x884] ss:$16 sps:$4 sm:$0xff]   ;;  %v17377_v52 = vld [vmem:[#allocation24 + $0x88c] ss:$16 sps:$4 sm:$0xff]  }
0x111b   :  { %8236 = vmatprep.subr.bf16.mxu1 %v17308_v4  ;;  %7832 = vmatprep.mubr.bf16.mxu0 %v18621_v0  ;;  %v17372_v4 = vld [vmem:[#allocation24 + $0x880] ss:$16 sps:$4 sm:$0xff]  }
0x111c   :  { %7905 = vmatprep.mubr.bf16.mxu1 %v18621_v0 }
0x111d   :  { %8164 = vmatpush1.bf16.msra.mxu0 %v17303_v5  ;;  %v17375_v5 = vld [vmem:[#allocation24 + $0x888] ss:$16 sps:$4 sm:$0xff]  }
0x111e   :  { %8237 = vmatpush1.bf16.msra.mxu1 %v17306_v6  ;;  %8165 = vmatprep.subr.bf16.mxu0 %v17312_v7  ;;  %v17380_v6 = vld [vmem:[#allocation24 + $0x8a4] ss:$16 sps:$4 sm:$0xff]   ;;  %v17383_v7 = vld [vmem:[#allocation24 + $0x8ac] ss:$16 sps:$4 sm:$0xff]  }
0x111f   :  { %8238 = vmatprep.subr.bf16.mxu1 %v17315_v8  ;;  %v17378_v8 = vld [vmem:[#allocation24 + $0x8a0] ss:$16 sps:$4 sm:$0xff]  }
0x1120   :  { %14731 = vmatmul.mubr.msk.bf16.gmra.mrb[84].mxu0 %vm2401_vm4, %v17309_v9 }
0x1121   :  { %14735 = vmatmul.mubr.msk.bf16.gmra.mrb[88].mxu1 %vm2401_vm4, %v17309_v9  ;;  %8166 = vmatpush1.bf16.msra.mxu0 %v17310_v11  ;;  %v17381_v9 = vld [vmem:[#allocation24 + $0x8a8] ss:$16 sps:$4 sm:$0xff]   ;;  %v17386_v11 = vld [vmem:[#allocation24 + $0x8c4] ss:$16 sps:$4 sm:$0xff]  }
0x1122   :  { %8239 = vmatpush1.bf16.msra.mxu1 %v17313_v12  ;;  %8167 = vmatprep.subr.bf16.mxu0 %v17318_v37  ;;  %v17389_v12 = vld [vmem:[#allocation24 + $0x8cc] ss:$16 sps:$4 sm:$0xff]   ;;  %v17384_v37 = vld [vmem:[#allocation24 + $0x8c0] ss:$16 sps:$4 sm:$0xff]  }
0x1123   :  { %8240 = vmatprep.subr.bf16.mxu1 %v17321_v13  ;;  %7842 = vmatprep.mubr.bf16.mxu0 %v18621_v0  ;;  %v17387_v13 = vld [vmem:[#allocation24 + $0x8c8] ss:$16 sps:$4 sm:$0xff]  }
0x1124   :  { %7915 = vmatprep.mubr.bf16.mxu1 %v18621_v0 }
0x1125   :  { %8168 = vmatpush1.bf16.msra.mxu0 %v17316_v15  ;;  %v17392_v15 = vld [vmem:[#allocation24 + $0x8e4] ss:$16 sps:$4 sm:$0xff]  }
0x1126   :  { %8241 = vmatpush1.bf16.msra.mxu1 %v17319_v42  ;;  %8169 = vmatprep.subr.bf16.mxu0 %v17325_v31  ;;  %v17395_v42 = vld [vmem:[#allocation24 + $0x8ec] ss:$16 sps:$4 sm:$0xff]   ;;  %v17390_v31 = vld [vmem:[#allocation24 + $0x8e0] ss:$16 sps:$4 sm:$0xff]  }
0x1127   :  { %8242 = vmatprep.subr.bf16.mxu1 %v17328_v23  ;;  %v17393_v23 = vld [vmem:[#allocation24 + $0x8e8] ss:$16 sps:$4 sm:$0xff]  }
0x1128   :  { %14732 = vmatmul.mubr.msk.bf16.gmra.mrb[88].mxu0 %vm2401_vm4, %v17322_v24 }
0x1129   :  { %14736 = vmatmul.mubr.msk.bf16.gmra.mrb[92].mxu1 %vm2401_vm4, %v17322_v24  ;;  %8170 = vmatpush1.bf16.msra.mxu0 %v17323_v38  ;;  %v17398_v24 = vld [vmem:[#allocation24 + $0x904] ss:$16 sps:$4 sm:$0xff]   ;;  %v17401_v38 = vld [vmem:[#allocation24 + $0x90c] ss:$16 sps:$4 sm:$0xff]  }
0x112a   :  { %8243 = vmatpush1.bf16.msra.mxu1 %v17326_v25  ;;  %8171 = vmatprep.subr.bf16.mxu0 %v17331_v26  ;;  %v17396_v25 = vld [vmem:[#allocation24 + $0x900] ss:$16 sps:$4 sm:$0xff]   ;;  %v17399_v26 = vld [vmem:[#allocation24 + $0x908] ss:$16 sps:$4 sm:$0xff]  }
0x112b   :  { %8244 = vmatprep.subr.bf16.mxu1 %v17334_v35  ;;  %7852 = vmatprep.mubr.bf16.mxu0 %v18621_v0  ;;  %v17404_v35 = vld [vmem:[#allocation24 + $0x924] ss:$16 sps:$4 sm:$0xff]  }
0x112c   :  { %7925 = vmatprep.mubr.bf16.mxu1 %v18621_v0 }
0x112d   :  { %8172 = vmatpush1.bf16.msra.mxu0 %v17329_v62  ;;  %v17407_v62 = vld [vmem:[#allocation24 + $0x92c] ss:$16 sps:$4 sm:$0xff]  }
0x112e   :  { %8245 = vmatpush1.bf16.msra.mxu1 %v17332_v27  ;;  %8173 = vmatprep.subr.bf16.mxu0 %v17338_v28  ;;  %v17402_v27 = vld [vmem:[#allocation24 + $0x920] ss:$16 sps:$4 sm:$0xff]   ;;  %v17405_v28 = vld [vmem:[#allocation24 + $0x928] ss:$16 sps:$4 sm:$0xff]  }
0x112f   :  { %8246 = vmatprep.subr.bf16.mxu1 %v17341_v29  ;;  %v17410_v29 = vld [vmem:[#allocation24 + $0x944] ss:$16 sps:$4 sm:$0xff]  }
0x1130   :  { %14733 = vmatmul.mubr.msk.bf16.gmra.mrb[92].mxu0 %vm2401_vm4, %v17335_v30 }
0x1131   :  { %14737 = vmatmul.mubr.msk.bf16.gmra.mrb[96].mxu1 %vm2401_vm4, %v17335_v30  ;;  %8174 = vmatpush1.bf16.msra.mxu0 %v17336_v20  ;;  %v17413_v30 = vld [vmem:[#allocation24 + $0x94c] ss:$16 sps:$4 sm:$0xff]   ;;  %v17411_v20 = vld [vmem:[#allocation24 + $0x948] ss:$16 sps:$4 sm:$0xff]  }
0x1132   :  { %8247 = vmatpush1.bf16.msra.mxu1 %v17339_v22  ;;  %8175 = vmatprep.subr.bf16.mxu0 %v17344_v32  ;;  %v17416_v22 = vld [vmem:[#allocation24 + $0x964] ss:$16 sps:$4 sm:$0xff]   ;;  %v17419_v32 = vld [vmem:[#allocation24 + $0x96c] ss:$16 sps:$4 sm:$0xff]  }
0x1133   :  { %8248 = vmatprep.subr.bf16.mxu1 %v17347_v34  ;;  %8193 = vmatprep.mubr.bf16.mxu0 %v18621_v0  ;;  %v17414_v34 = vld [vmem:[#allocation24 + $0x960] ss:$16 sps:$4 sm:$0xff]  }
0x1134   :  { %8266 = vmatprep.mubr.bf16.mxu1 %v18621_v0 }
0x1135   :  { %8176 = vmatpush1.bf16.msra.mxu0 %v17342_v39  ;;  %v17417_v39 = vld [vmem:[#allocation24 + $0x968] ss:$16 sps:$4 sm:$0xff]  }
0x1136   :  { %8249 = vmatpush1.bf16.msra.mxu1 %v17345_v43  ;;  %9108 = vmatprep.subr.bf16.mxu0 %v17350_v44  ;;  %v17422_v43 = vld [vmem:[#allocation24 + $0x984] ss:$16 sps:$4 sm:$0xff]   ;;  %v17425_v44 = vld [vmem:[#allocation24 + $0x98c] ss:$16 sps:$4 sm:$0xff]  }
0x1137   :  { %9214 = vmatprep.subr.bf16.mxu1 %v17353_v45  ;;  %v17420_v45 = vld [vmem:[#allocation24 + $0x980] ss:$16 sps:$4 sm:$0xff]  }
0x1138   :  { %8194 = vmatmul.mubr.bf16.vlgmr.msra.gmra.mrb[80].mxu0 %v19924_v61 }
0x1139   :  { %8267 = vmatmul.mubr.bf16.vlgmr.msra.gmra.mrb[84].mxu1 %v19924_v61  ;;  %9109 = vmatpush1.bf16.msra.mxu0 %v17348_v46  ;;  %v17423_v46 = vld [vmem:[#allocation24 + $0x988] ss:$16 sps:$4 sm:$0xff]  }
0x113a   :  { %9215 = vmatpush1.bf16.msra.mxu1 %v17351_v47  ;;  %9110 = vmatprep.subr.bf16.mxu0 %v17356_v48  ;;  %v17428_v47 = vld [vmem:[#allocation24 + $0x9a4] ss:$16 sps:$4 sm:$0xff]   ;;  %v17431_v48 = vld [vmem:[#allocation24 + $0x9ac] ss:$16 sps:$4 sm:$0xff]  }
0x113b   :  { %9216 = vmatprep.subr.bf16.mxu1 %v17359_v49  ;;  %8203 = vmatprep.mubr.bf16.mxu0 %v18621_v0  ;;  %v17426_v49 = vld [vmem:[#allocation24 + $0x9a0] ss:$16 sps:$4 sm:$0xff]  }
0x113c   :  { %8276 = vmatprep.mubr.bf16.mxu1 %v18621_v0 }
0x113d   :  { %9111 = vmatpush1.bf16.msra.mxu0 %v17354_v50  ;;  %v17429_v50 = vld [vmem:[#allocation24 + $0x9a8] ss:$16 sps:$4 sm:$0xff]  }
0x113e   :  { %9217 = vmatpush1.bf16.msra.mxu1 %v17357_v53  ;;  %9112 = vmatprep.subr.bf16.mxu0 %v17362_v54  ;;  %v17434_v53 = vld [vmem:[#allocation24 + $0x9c4] ss:$16 sps:$4 sm:$0xff]   ;;  %v17437_v54 = vld [vmem:[#allocation24 + $0x9cc] ss:$16 sps:$4 sm:$0xff]  }
0x113f   :  { %9218 = vmatprep.subr.bf16.mxu1 %v17365_v56  ;;  %v17432_v56 = vld [vmem:[#allocation24 + $0x9c0] ss:$16 sps:$4 sm:$0xff]  }
0x1140   :  { %8204 = vmatmul.mubr.bf16.gmra.mrb[84].mxu0 %v19943_v3 }
0x1141   :  { %8277 = vmatmul.mubr.bf16.gmra.mrb[88].mxu1 %v19943_v3  ;;  %9113 = vmatpush1.bf16.msra.mxu0 %v17360_v58  ;;  %v17435_v58 = vld [vmem:[#allocation24 + $0x9c8] ss:$16 sps:$4 sm:$0xff]  }
0x1142   :  { %9219 = vmatpush1.bf16.msra.mxu1 %v17363_v59  ;;  %9114 = vmatprep.subr.bf16.mxu0 %v17368_v63  ;;  %v17440_v59 = vld [vmem:[#allocation24 + $0x9e4] ss:$16 sps:$4 sm:$0xff]   ;;  %v17443_v63 = vld [vmem:[#allocation24 + $0x9ec] ss:$16 sps:$4 sm:$0xff]  }
0x1143   :  { %9220 = vmatprep.subr.bf16.mxu1 %v17371_v40  ;;  %8213 = vmatprep.mubr.bf16.mxu0 %v18621_v0  ;;  %v17438_v40 = vld [vmem:[#allocation24 + $0x9e0] ss:$16 sps:$4 sm:$0xff]  }
0x1144   :  { %8286 = vmatprep.mubr.bf16.mxu1 %v18621_v0 }
0x1145   :  { %9115 = vmatpush1.bf16.msra.mxu0 %v17366_v51  ;;  %v17441_v51 = vld [vmem:[#allocation24 + $0x9e8] ss:$16 sps:$4 sm:$0xff]  }
0x1146   :  { %9221 = vmatpush1.bf16.msra.mxu1 %v17369_v1  ;;  %9116 = vmatprep.subr.bf16.mxu0 %v17374_v60  ;;  %v17446_v1 = vld [vmem:[#allocation24 + $0xa04] ss:$16 sps:$4 sm:$0xff]   ;;  %v17449_v60 = vld [vmem:[#allocation24 + $0xa0c] ss:$16 sps:$4 sm:$0xff]  }
0x1147   :  { %9222 = vmatprep.subr.bf16.mxu1 %v17377_v52  ;;  %v17444_v52 = vld [vmem:[#allocation24 + $0xa00] ss:$16 sps:$4 sm:$0xff]  }
0x1148   :  { %8214 = vmatmul.mubr.bf16.gmra.mrb[88].mxu0 %v19963_v10 }
0x1149   :  { %8287 = vmatmul.mubr.bf16.gmra.mrb[92].mxu1 %v19963_v10  ;;  %9117 = vmatpush1.bf16.msra.mxu0 %v17372_v4  ;;  %v17447_v4 = vld [vmem:[#allocation24 + $0xa08] ss:$16 sps:$4 sm:$0xff]  }
0x114a   :  { %9223 = vmatpush1.bf16.msra.mxu1 %v17375_v5  ;;  %9118 = vmatprep.subr.bf16.mxu0 %v17380_v6  ;;  %v17452_v5 = vld [vmem:[#allocation24 + $0xa24] ss:$16 sps:$4 sm:$0xff]   ;;  %v17455_v6 = vld [vmem:[#allocation24 + $0xa2c] ss:$16 sps:$4 sm:$0xff]  }
0x114b   :  { %9224 = vmatprep.subr.bf16.mxu1 %v17383_v7  ;;  %8223 = vmatprep.mubr.bf16.mxu0 %v18621_v0  ;;  %v17450_v7 = vld [vmem:[#allocation24 + $0xa20] ss:$16 sps:$4 sm:$0xff]  }
0x114c   :  { %8296 = vmatprep.mubr.bf16.mxu1 %v18621_v0 }
0x114d   :  { %9119 = vmatpush1.bf16.msra.mxu0 %v17378_v8  ;;  %v17453_v8 = vld [vmem:[#allocation24 + $0xa28] ss:$16 sps:$4 sm:$0xff]  }
0x114e   :  { %9225 = vmatpush1.bf16.msra.mxu1 %v17381_v9  ;;  %9120 = vmatprep.subr.bf16.mxu0 %v17386_v11  ;;  %v17458_v9 = vld [vmem:[#allocation24 + $0xa44] ss:$16 sps:$4 sm:$0xff]   ;;  %v17461_v11 = vld [vmem:[#allocation24 + $0xa4c] ss:$16 sps:$4 sm:$0xff]  }
0x114f   :  { %9226 = vmatprep.subr.bf16.mxu1 %v17389_v12  ;;  %v17456_v12 = vld [vmem:[#allocation24 + $0xa40] ss:$16 sps:$4 sm:$0xff]  }
0x1150   :  { %8224 = vmatmul.mubr.bf16.gmra.mrb[92].mxu0 %v19980_v17 }
0x1151   :  { %8297 = vmatmul.mubr.bf16.gmra.mrb[96].mxu1 %v19980_v17  ;;  %9121 = vmatpush1.bf16.msra.mxu0 %v17384_v37  ;;  %v17459_v37 = vld [vmem:[#allocation24 + $0xa48] ss:$16 sps:$4 sm:$0xff]  }
0x1152   :  { %9140 = vmatprep.mubr.bf16.mxu0 %v19904_v36  ;;  %9227 = vmatpush1.bf16.msra.mxu1 %v17387_v13  ;;  %v17464_v13 = vld [vmem:[#allocation24 + $0xa64] ss:$16 sps:$4 sm:$0xff]  }
0x1153   :  { %9246 = vmatprep.mubr.bf16.mxu1 %v19904_v36  ;;  %9122 = vmatprep.subr.bf16.mxu0 %v17392_v15  ;;  %v17408_v36 = vld [vmem:[#allocation24 + $0x940] ss:$16 sps:$4 sm:$0xff]   ;;  %v17465_v15 = vld [vmem:[#allocation24 + $0xa68] ss:$16 sps:$4 sm:$0xff]  }
0x1154   :  { %9228 = vmatprep.subr.bf16.mxu1 %v17395_v42  ;;  %v17470_v42 = vld [vmem:[#allocation24 + $0xa84] ss:$16 sps:$4 sm:$0xff]  }
0x1155   :  { %9123 = vmatpush1.bf16.msra.mxu0 %v17390_v31  ;;  %v17473_v31 = vld [vmem:[#allocation24 + $0xa8c] ss:$16 sps:$4 sm:$0xff]  }
0x1156   :  { %9229 = vmatpush1.bf16.msra.mxu1 %v17393_v23  ;;  %9124 = vmatprep.subr.bf16.mxu0 %v17398_v24  ;;  %v17468_v23 = vld [vmem:[#allocation24 + $0xa80] ss:$16 sps:$4 sm:$0xff]   ;;  %v17471_v24 = vld [vmem:[#allocation24 + $0xa88] ss:$16 sps:$4 sm:$0xff]  }
0x1157   :  { %9230 = vmatprep.subr.bf16.mxu1 %v17401_v38  ;;  %v17476_v38 = vld [vmem:[#allocation24 + $0xaa4] ss:$16 sps:$4 sm:$0xff]  }
0x1159   :  { %9125 = vmatpush1.bf16.msra.mxu0 %v17396_v25  ;;  %v17474_v25 = vld [vmem:[#allocation24 + $0xaa0] ss:$16 sps:$4 sm:$0xff]  }
0x115a   :  { %9231 = vmatpush1.bf16.msra.mxu1 %v17399_v26  ;;  %9126 = vmatprep.subr.bf16.mxu0 %v17404_v35  ;;  %v17482_v26 = vld [vmem:[#allocation24 + $0xac4] ss:$16 sps:$4 sm:$0xff]   ;;  %v17485_v35 = vld [vmem:[#allocation24 + $0xacc] ss:$16 sps:$4 sm:$0xff]  }
0x115b   :  { %9232 = vmatprep.subr.bf16.mxu1 %v17407_v62  ;;  %v17480_v62 = vld [vmem:[#allocation24 + $0xac0] ss:$16 sps:$4 sm:$0xff]  }
0x115d   :  { %9127 = vmatpush1.bf16.msra.mxu0 %v17402_v27  ;;  %v17483_v27 = vld [vmem:[#allocation24 + $0xac8] ss:$16 sps:$4 sm:$0xff]  }
0x115e   :  { %9233 = vmatpush1.bf16.msra.mxu1 %v17405_v28  ;;  %9128 = vmatprep.subr.bf16.mxu0 %v17410_v29  ;;  %v17488_v28 = vld [vmem:[#allocation24 + $0xae4] ss:$16 sps:$4 sm:$0xff]   ;;  %v17491_v29 = vld [vmem:[#allocation24 + $0xaec] ss:$16 sps:$4 sm:$0xff]  }
0x115f   :  { %9234 = vmatprep.subr.bf16.mxu1 %v17413_v30  ;;  %v17486_v30 = vld [vmem:[#allocation24 + $0xae0] ss:$16 sps:$4 sm:$0xff]  }
0x1161   :  { %9129 = vmatpush1.bf16.msra.mxu0 %v17408_v36  ;;  %v17489_v36 = vld [vmem:[#allocation24 + $0xae8] ss:$16 sps:$4 sm:$0xff]  }
0x1162   :  { %9235 = vmatpush1.bf16.msra.mxu1 %v17411_v20  ;;  %9130 = vmatprep.subr.bf16.mxu0 %v17416_v22  ;;  %v17494_v20 = vld [vmem:[#allocation24 + $0xb04] ss:$16 sps:$4 sm:$0xff]   ;;  %v17497_v22 = vld [vmem:[#allocation24 + $0xb0c] ss:$16 sps:$4 sm:$0xff]  }
0x1163   :  { %9236 = vmatprep.subr.bf16.mxu1 %v17419_v32  ;;  %v17492_v32 = vld [vmem:[#allocation24 + $0xb00] ss:$16 sps:$4 sm:$0xff]  }
0x1165   :  { %9131 = vmatpush1.bf16.msra.mxu0 %v17414_v34  ;;  %v17495_v34 = vld [vmem:[#allocation24 + $0xb08] ss:$16 sps:$4 sm:$0xff]  }
0x1166   :  { %9237 = vmatpush1.bf16.msra.mxu1 %v17417_v39  ;;  %9132 = vmatprep.subr.bf16.mxu0 %v17422_v43  ;;  %v17500_v39 = vld [vmem:[#allocation24 + $0xb24] ss:$16 sps:$4 sm:$0xff]   ;;  %v17503_v43 = vld [vmem:[#allocation24 + $0xb2c] ss:$16 sps:$4 sm:$0xff]  }
0x1167   :  { %9238 = vmatprep.subr.bf16.mxu1 %v17425_v44  ;;  %v17498_v44 = vld [vmem:[#allocation24 + $0xb20] ss:$16 sps:$4 sm:$0xff]  }
0x1169   :  { %9133 = vmatpush1.bf16.msra.mxu0 %v17420_v45  ;;  %v17501_v45 = vld [vmem:[#allocation24 + $0xb28] ss:$16 sps:$4 sm:$0xff]  }
0x116a   :  { %9239 = vmatpush1.bf16.msra.mxu1 %v17423_v46  ;;  %9134 = vmatprep.subr.bf16.mxu0 %v17428_v47  ;;  %v17506_v46 = vld [vmem:[#allocation24 + $0xb44] ss:$16 sps:$4 sm:$0xff]   ;;  %v17509_v47 = vld [vmem:[#allocation24 + $0xb4c] ss:$16 sps:$4 sm:$0xff]  }
0x116b   :  { %9240 = vmatprep.subr.bf16.mxu1 %v17431_v48  ;;  %v17504_v48 = vld [vmem:[#allocation24 + $0xb40] ss:$16 sps:$4 sm:$0xff]  }
0x116d   :  { %9135 = vmatpush1.bf16.msra.mxu0 %v17426_v49  ;;  %v17507_v49 = vld [vmem:[#allocation24 + $0xb48] ss:$16 sps:$4 sm:$0xff]  }
0x116e   :  { %9241 = vmatpush1.bf16.msra.mxu1 %v17429_v50  ;;  %9136 = vmatprep.subr.bf16.mxu0 %v17434_v53  ;;  %v17512_v50 = vld [vmem:[#allocation24 + $0xb64] ss:$16 sps:$4 sm:$0xff]   ;;  %v17515_v53 = vld [vmem:[#allocation24 + $0xb6c] ss:$16 sps:$4 sm:$0xff]  }
0x116f   :  { %9242 = vmatprep.subr.bf16.mxu1 %v17437_v54  ;;  %v17510_v54 = vld [vmem:[#allocation24 + $0xb60] ss:$16 sps:$4 sm:$0xff]  }
0x1171   :  { %9137 = vmatpush1.bf16.msra.mxu0 %v17432_v56  ;;  %v17513_v56 = vld [vmem:[#allocation24 + $0xb68] ss:$16 sps:$4 sm:$0xff]  }
0x1172   :  { %9243 = vmatpush1.bf16.msra.mxu1 %v17435_v58  ;;  %9138 = vmatprep.subr.bf16.mxu0 %v17440_v59  ;;  %v17518_v58 = vld [vmem:[#allocation24 + $0xb84] ss:$16 sps:$4 sm:$0xff]   ;;  %v17521_v59 = vld [vmem:[#allocation24 + $0xb8c] ss:$16 sps:$4 sm:$0xff]  }
0x1173   :  { %9244 = vmatprep.subr.bf16.mxu1 %v17443_v63  ;;  %v17516_v63 = vld [vmem:[#allocation24 + $0xb80] ss:$16 sps:$4 sm:$0xff]  }
0x1175   :  { %9139 = vmatpush1.bf16.msra.mxu0 %v17438_v40  ;;  %v17519_v40 = vld [vmem:[#allocation24 + $0xb88] ss:$16 sps:$4 sm:$0xff]  }
0x1176   :  { %9245 = vmatpush1.bf16.msra.mxu1 %v17441_v51  ;;  %9161 = vmatprep.subr.bf16.mxu0 %v17446_v1  ;;  %v17524_v51 = vld [vmem:[#allocation24 + $0xba4] ss:$16 sps:$4 sm:$0xff]   ;;  %v17527_v1 = vld [vmem:[#allocation24 + $0xbac] ss:$16 sps:$4 sm:$0xff]  }
0x1177   :  { %9267 = vmatprep.subr.bf16.mxu1 %v17449_v60  ;;  %v17522_v60 = vld [vmem:[#allocation24 + $0xba0] ss:$16 sps:$4 sm:$0xff]  }
0x1178   :  { %9141 = vmatmul.mubr.bf16.vlgmr.msra.gmra.mrb[104].mxu0 %v19902_v33 }
0x1179   :  { %9247 = vmatmul.mubr.bf16.vlgmr.msra.gmra.mrb[108].mxu1 %v19902_v33  ;;  %9150 = vmatprep.mubr.bf16.mxu0 %v19912_v57  ;;  %v17467_v33 = vld [vmem:[#allocation24 + $0xa6c] ss:$16 sps:$4 sm:$0xff]  }
0x117a   :  { %9162 = vmatpush1.bf16.msra.mxu0 %v17444_v52  ;;  %9256 = vmatprep.mubr.bf16.mxu1 %v19912_v57  ;;  %v17462_v57 = vld [vmem:[#allocation24 + $0xa60] ss:$16 sps:$4 sm:$0xff]   ;;  %v17525_v52 = vld [vmem:[#allocation24 + $0xba8] ss:$16 sps:$4 sm:$0xff]  }
0x117b   :  { %9268 = vmatpush1.bf16.msra.mxu1 %v17447_v4  ;;  %9163 = vmatprep.subr.bf16.mxu0 %v17452_v5  ;;  %v17530_v4 = vld [vmem:[#allocation24 + $0xbc4] ss:$16 sps:$4 sm:$0xff]   ;;  %v17533_v5 = vld [vmem:[#allocation24 + $0xbcc] ss:$16 sps:$4 sm:$0xff]  }
0x117c   :  { %9269 = vmatprep.subr.bf16.mxu1 %v17455_v6  ;;  %v17528_v6 = vld [vmem:[#allocation24 + $0xbc0] ss:$16 sps:$4 sm:$0xff]  }
0x117e   :  { %9164 = vmatpush1.bf16.msra.mxu0 %v17450_v7  ;;  %v17531_v7 = vld [vmem:[#allocation24 + $0xbc8] ss:$16 sps:$4 sm:$0xff]  }
0x117f   :  { %9270 = vmatpush1.bf16.msra.mxu1 %v17453_v8  ;;  %9165 = vmatprep.subr.bf16.mxu0 %v17458_v9  ;;  %v17536_v8 = vld [vmem:[#allocation24 + $0xbe4] ss:$16 sps:$4 sm:$0xff]   ;;  %v17539_v9 = vld [vmem:[#allocation24 + $0xbec] ss:$16 sps:$4 sm:$0xff]  }
0x1180   :  { %9151 = vmatmul.mubr.bf16.gmra.mrb[108].mxu0 %v19910_v55  ;;  %9271 = vmatprep.subr.bf16.mxu1 %v17461_v11  ;;  %v17534_v11 = vld [vmem:[#allocation24 + $0xbe0] ss:$16 sps:$4 sm:$0xff]  }
0x1181   :  { %9257 = vmatmul.mubr.bf16.gmra.mrb[112].mxu1 %v19910_v55  ;;  %9193 = vmatprep.mubr.bf16.mxu0 %v19937_v41  ;;  %v17479_v55 = vld [vmem:[#allocation24 + $0xaac] ss:$16 sps:$4 sm:$0xff]  }
0x1182   :  { %9166 = vmatpush1.bf16.msra.mxu0 %v17456_v12  ;;  %9299 = vmatprep.mubr.bf16.mxu1 %v19937_v41  ;;  %v17477_v41 = vld [vmem:[#allocation24 + $0xaa8] ss:$16 sps:$4 sm:$0xff]  }
0x1183   :  { %9272 = vmatpush1.bf16.msra.mxu1 %v17459_v37  ;;  %9167 = vmatprep.subr.bf16.mxu0 %v17464_v13  ;;  %v17537_v12 = vld [vmem:[#allocation24 + $0xbe8] ss:$16 sps:$4 sm:$0xff]  }
0x1184   :  { %9273 = vmatprep.subr.bf16.mxu1 %v17467_v33 }
0x1186   :  { %9168 = vmatpush1.bf16.msra.mxu0 %v17462_v57 }
0x1187   :  { %9274 = vmatpush1.bf16.msra.mxu1 %v17465_v15  ;;  %9169 = vmatprep.subr.bf16.mxu0 %v17470_v42 }
0x1188   :  { %9275 = vmatprep.subr.bf16.mxu1 %v17473_v31 }
0x118a   :  { %9170 = vmatpush1.bf16.msra.mxu0 %v17468_v23 }
0x118b   :  { %9276 = vmatpush1.bf16.msra.mxu1 %v17471_v24  ;;  %9171 = vmatprep.subr.bf16.mxu0 %v17476_v38 }
0x118c   :  { %9277 = vmatprep.subr.bf16.mxu1 %v17479_v55 }
0x118e   :  { %9172 = vmatpush1.bf16.msra.mxu0 %v17474_v25 }
0x118f   :  { %9278 = vmatpush1.bf16.msra.mxu1 %v17477_v41  ;;  %9173 = vmatprep.subr.bf16.mxu0 %v17482_v26 }
0x1190   :  { %9279 = vmatprep.subr.bf16.mxu1 %v17485_v35 }
0x1192   :  { %9174 = vmatpush1.bf16.msra.mxu0 %v17480_v62 }
0x1193   :  { %9280 = vmatpush1.bf16.msra.mxu1 %v17483_v27  ;;  %9175 = vmatprep.subr.bf16.mxu0 %v17488_v28 }
0x1194   :  { %9281 = vmatprep.subr.bf16.mxu1 %v17491_v29 }
0x1196   :  { %9176 = vmatpush1.bf16.msra.mxu0 %v17486_v30 }
0x1197   :  { %9282 = vmatpush1.bf16.msra.mxu1 %v17489_v36  ;;  %9177 = vmatprep.subr.bf16.mxu0 %v17494_v20  ;;  %v17553_v20 = vld [vmem:[%s20881_s8 + $0x20c] ss:$16 sps:$4 sm:$0xff]  }
0x1198   :  { %9283 = vmatprep.subr.bf16.mxu1 %v17497_v22  ;;  %v17540_v22 = vld [vmem:[%s20882_s28 + $0x40] sm:$0xff]  }
0x119a   :  { %9178 = vmatpush1.bf16.msra.mxu0 %v17492_v32  ;;  %v17551_v32 = vld [vmem:[%s20881_s8 + $0x208] ss:$16 sps:$4 sm:$0xff]  }
0x119b   :  { %9284 = vmatpush1.bf16.msra.mxu1 %v17495_v34  ;;  %9179 = vmatprep.subr.bf16.mxu0 %v17500_v39  ;;  %v17559_v34 = vld [vmem:[%s20881_s8 + $0x22c] ss:$16 sps:$4 sm:$0xff]   ;;  %v17557_v39 = vld [vmem:[%s20881_s8 + $0x228] ss:$16 sps:$4 sm:$0xff]  }
0x119c   :  { %9285 = vmatprep.subr.bf16.mxu1 %v17503_v43  ;;  %v17541_v43 = vld [vmem:[%s20882_s28 + $0x48] sm:$0xff]  }
0x119e   :  { %9180 = vmatpush1.bf16.msra.mxu0 %v17498_v44  ;;  %v17563_v44 = vld [vmem:[%s20881_s8 + $0x248] ss:$16 sps:$4 sm:$0xff]  }
0x119f   :  { %9286 = vmatpush1.bf16.msra.mxu1 %v17501_v45  ;;  %9181 = vmatprep.subr.bf16.mxu0 %v17506_v46  ;;  %v17571_v45 = vld [vmem:[%s20881_s8 + $0x26c] ss:$16 sps:$4 sm:$0xff]   ;;  %v17569_v46 = vld [vmem:[%s20881_s8 + $0x268] ss:$16 sps:$4 sm:$0xff]  }
0x11a0   :  { %9287 = vmatprep.subr.bf16.mxu1 %v17509_v47  ;;  %v17542_v47 = vld [vmem:[%s20882_s28 + $0x50] sm:$0xff]  }
0x11a2   :  { %9182 = vmatpush1.bf16.msra.mxu0 %v17504_v48  ;;  %v17575_v48 = vld [vmem:[%s20881_s8 + $0x288] ss:$16 sps:$4 sm:$0xff]  }
0x11a3   :  { %9288 = vmatpush1.bf16.msra.mxu1 %v17507_v49  ;;  %9183 = vmatprep.subr.bf16.mxu0 %v17512_v50  ;;  %v17583_v49 = vld [vmem:[%s20881_s8 + $0x2ac] ss:$16 sps:$4 sm:$0xff]  }
0x11a4   :  { %9289 = vmatprep.subr.bf16.mxu1 %v17515_v53  ;;  %v17543_v50 = vld [vmem:[%s20882_s28 + $0x58] sm:$0xff]  }
0x11a5   :  { %v17589_v53 = vld [vmem:[%s20881_s8 + $0x2cc] ss:$16 sps:$4 sm:$0xff]  }
0x11a6   :  { %9184 = vmatpush1.bf16.msra.mxu0 %v17510_v54  ;;  %v17544_v54 = vld [vmem:[#allocation22 + $0x40] sm:$0xff]  }
0x11a7   :  { %9290 = vmatpush1.bf16.msra.mxu1 %v17513_v56  ;;  %9185 = vmatprep.subr.bf16.mxu0 %v17518_v58  ;;  %v17587_v56 = vld [vmem:[%s20881_s8 + $0x2c8] ss:$16 sps:$4 sm:$0xff]  }
0x11a8   :  { %9291 = vmatprep.subr.bf16.mxu1 %v17521_v59  ;;  %v17545_v58 = vld [vmem:[#allocation22 + $0x48] sm:$0xff]   ;;  %v17546_v59 = vld [vmem:[#allocation22 + $0x50] sm:$0xff]  }
0x11aa   :  { %9186 = vmatpush1.bf16.msra.mxu0 %v17516_v63  ;;  %v17548_v63 = vld [vmem:[%s20881_s8 + $0x200] ss:$16 sps:$4 sm:$0xff]  }
0x11ab   :  { %9292 = vmatpush1.bf16.msra.mxu1 %v17519_v40  ;;  %9187 = vmatprep.subr.bf16.mxu0 %v17524_v51  ;;  %v17556_v40 = vld [vmem:[%s20881_s8 + $0x224] ss:$16 sps:$4 sm:$0xff]   ;;  %v17554_v51 = vld [vmem:[%s20881_s8 + $0x220] ss:$16 sps:$4 sm:$0xff]  }
0x11ac   :  { %9293 = vmatprep.subr.bf16.mxu1 %v17527_v1  ;;  %v17562_v1 = vld [vmem:[%s20881_s8 + $0x244] ss:$16 sps:$4 sm:$0xff]  }
0x11ae   :  { %9188 = vmatpush1.bf16.msra.mxu0 %v17522_v60  ;;  %v17547_v60 = vld [vmem:[#allocation22 + $0x58] sm:$0xff]  }
0x11af   :  { %9294 = vmatpush1.bf16.msra.mxu1 %v17525_v52  ;;  %9189 = vmatprep.subr.bf16.mxu0 %v17530_v4  ;;  %v17560_v52 = vld [vmem:[%s20881_s8 + $0x240] ss:$16 sps:$4 sm:$0xff]   ;;  %v17568_v4 = vld [vmem:[%s20881_s8 + $0x264] ss:$16 sps:$4 sm:$0xff]  }
0x11b0   :  { %9295 = vmatprep.subr.bf16.mxu1 %v17533_v5  ;;  %v17566_v5 = vld [vmem:[%s20881_s8 + $0x260] ss:$16 sps:$4 sm:$0xff]  }
0x11b2   :  { %9190 = vmatpush1.bf16.msra.mxu0 %v17528_v6  ;;  %v17574_v6 = vld [vmem:[%s20881_s8 + $0x284] ss:$16 sps:$4 sm:$0xff]  }
0x11b3   :  { %9296 = vmatpush1.bf16.msra.mxu1 %v17531_v7  ;;  %9191 = vmatprep.subr.bf16.mxu0 %v17536_v8  ;;  %v17572_v7 = vld [vmem:[%s20881_s8 + $0x280] ss:$16 sps:$4 sm:$0xff]   ;;  %v17580_v8 = vld [vmem:[%s20881_s8 + $0x2a4] ss:$16 sps:$4 sm:$0xff]  }
0x11b4   :  { %9297 = vmatprep.subr.bf16.mxu1 %v17539_v9  ;;  %v17578_v9 = vld [vmem:[%s20881_s8 + $0x2a0] ss:$16 sps:$4 sm:$0xff]  }
0x11b6   :  { %9192 = vmatpush1.bf16.msra.mxu0 %v17534_v11  ;;  %v17586_v11 = vld [vmem:[%s20881_s8 + $0x2c4] ss:$16 sps:$4 sm:$0xff]  }
0x11b7   :  { %9298 = vmatpush1.bf16.msra.mxu1 %v17537_v12  ;;  %v17584_v12 = vld [vmem:[%s20881_s8 + $0x2c0] ss:$16 sps:$4 sm:$0xff]  }
0x11b9   :  { %9194 = vmatmul.mubr.bf16.vlgmr.msra.gmra.mrb[104].mxu0 %v19935_v2 }
0x11ba   :  { %9300 = vmatmul.mubr.bf16.vlgmr.msra.gmra.mrb[108].mxu1 %v19935_v2  ;;  %9203 = vmatprep.mubr.bf16.mxu0 %v19976_v16 }
0x11bb   :  { %9309 = vmatprep.mubr.bf16.mxu1 %v19976_v16 }
0x11c1   :  { %9204 = vmatmul.mubr.bf16.gmra.mrb[108].mxu0 %v19974_v14 }
0x11c2   :  { %9310 = vmatmul.mubr.bf16.gmra.mrb[112].mxu1 %v19974_v14  ;;  %9401 = vmatprep.mubr.bf16.mxu0 %v18621_v0 }
0x11c3   :  { %9474 = vmatprep.mubr.bf16.mxu1 %v18621_v0 }
0x128c   :  { %v9195_v37 = vpop.f32.mrb[104].mxu0 }
0x128d   :  { %v9301_v13 = vpop.f32.mrb[108].mxu1  ;;  %v9197_v33 = vpop.f32.mrb[105].mxu0 }
0x128e   :  { %v9303_v57 = vpop.f32.mrb[109].mxu1  ;;  %v9199_v15 = vpop.f32.mrb[106].mxu0 }
0x128f   :  { %v9320_v42 = vpack.c.bf16 %v9199_v15, %v9195_v37  ;;  %v9305_v31 = vpop.f32.mrb[110].mxu1  ;;  %v9201_v2 = vpop.f32.mrb[107].mxu0  ;;  %v17592_v37 = vld [vmem:[%s20881_s8 + $0x2e4] ss:$16 sps:$4 sm:$0xff]  }
0x1290   :  { %v9322_v23 = vpack.c.bf16 %v9305_v31, %v9301_v13  ;;  %v9321_v24 = vpack.c.bf16 %v9201_v2, %v9197_v33  ;;  %v9307_v38 = vpop.f32.mrb[111].mxu1  ;;  %v17595_v13 = vld [vmem:[%s20881_s8 + $0x2ec] ss:$16 sps:$4 sm:$0xff]   ;;  %v17590_v33 = vld [vmem:[%s20881_s8 + $0x2e0] ss:$16 sps:$4 sm:$0xff]  }
0x1291   :  { %v9323_v16 = vpack.c.bf16 %v9307_v38, %v9303_v57  ;;  %v17593_v57 = vld [vmem:[%s20881_s8 + $0x2e8] ss:$16 sps:$4 sm:$0xff]  }
0x1292   :  { %9369 = vmatprep.subr.bf16.mxu0 %v9321_v24 }
0x1293   :  { %9442 = vmatprep.subr.bf16.mxu1 %v9323_v16  ;;  %9370 = vmatpush1.bf16.msra.mxu0 %v9320_v42 }
0x1294   :  { %9443 = vmatpush1.bf16.msra.mxu1 %v9322_v23  ;;  %v9205_v14 = vpop.f32.mrb[108].mxu0 }
0x1295   :  { %v9311_v55 = vpop.f32.mrb[112].mxu1  ;;  %v9207_v25 = vpop.f32.mrb[109].mxu0 }
0x1296   :  { %v9313_v41 = vpop.f32.mrb[113].mxu1  ;;  %v9209_v26 = vpop.f32.mrb[110].mxu0 }
0x1297   :  { %v9324_v35 = vpack.c.bf16 %v9209_v26, %v9205_v14  ;;  %v9315_v62 = vpop.f32.mrb[114].mxu1  ;;  %v9211_v27 = vpop.f32.mrb[111].mxu0  ;;  %v10040_v26 = vsub.s32 2, %v19541_v18 }
0x1298   :  { %v9326_v28 = vpack.c.bf16 %v9315_v62, %v9311_v55  ;;  %v9325_v29 = vpack.c.bf16 %v9211_v27, %v9207_v25  ;;  %v9317_v30 = vpop.f32.mrb[115].mxu1  ;;  %v10044_v62 = vsub.s32 3, %v19541_v18 }
0x1299   :  { %v9327_v36 = vpack.c.bf16 %v9317_v30, %v9313_v41 }
0x129a   :  { %9371 = vmatprep.subr.bf16.mxu0 %v9325_v29 }
0x129b   :  { %9444 = vmatprep.subr.bf16.mxu1 %v9327_v36  ;;  %9372 = vmatpush1.bf16.msra.mxu0 %v9324_v35  ;;  %v10028_v35 = vld [vmem:[#allocation27] sm:$0xf] }
0x129c   :  { %9445 = vmatpush1.bf16.msra.mxu1 %v9326_v28  ;;  %15774 = vmatprep.subr.bf16.mxu0 %v19924_v61  ;;  %v20431_v27 = vrot.slane %v10028_v35, %v19544_v19  ;;  %v20435_v28 = vrot.slane %v10028_v35, %v10040_v26  ;;  %v20438_v29 = vrot.slane %v10028_v35, %v19547_v21 }
0x129d   :  { %9923 = vmatprep.subr.bf16.mxu1 %v17553_v20  ;;  %v20442_v30 = vrot.slane %v10028_v35, %v10044_v62 }
0x129e   :  { %14942 = vmatmul.mubr.msk.bf16.vlgmr.msra.gmra.mrb[80].mxu0 %vm2401_vm4, %v17540_v22 }
0x129f   :  { %9411 = vmatprep.mubr.bf16.mxu0 %v18621_v0  ;;  %15775 = vmatpush3.bf16.msra.mxu0 %v19924_v61  ;;  %v17565_v61 = vld [vmem:[%s20881_s8 + $0x24c] ss:$16 sps:$4 sm:$0xff]  }
0x12a0   :  { %15776 = vmatprep.subr.bf16.mxu0 %v19943_v3  ;;  %14946 = vmatmul.mubr.msk.bf16.vlgmr.msra.gmra.mrb[84].mxu1 %vm2401_vm4, %v17540_v22 }
0x12a1   :  { %9924 = vmatpush1.bf16.msra.mxu1 %v17551_v32  ;;  %9484 = vmatprep.mubr.bf16.mxu1 %v18621_v0 }
0x12a2   :  { %9925 = vmatprep.subr.bf16.mxu1 %v17559_v34 }
0x12a3   :  { %15777 = vmatpush3.bf16.msra.mxu0 %v19943_v3  ;;  %v17550_v3 = vld [vmem:[%s20881_s8 + $0x204] ss:$16 sps:$4 sm:$0xff]  }
0x12a4   :  { %15778 = vmatprep.subr.bf16.mxu0 %v19963_v10 }
0x12a5   :  { %9926 = vmatpush1.bf16.msra.mxu1 %v17557_v39 }
0x12a6   :  { %14943 = vmatmul.mubr.msk.bf16.gmra.mrb[84].mxu0 %vm2401_vm4, %v17541_v43  ;;  %9927 = vmatprep.subr.bf16.mxu1 %v17565_v61 }
0x12a7   :  { %9421 = vmatprep.mubr.bf16.mxu0 %v18621_v0  ;;  %15779 = vmatpush3.bf16.msra.mxu0 %v19963_v10  ;;  %v17577_v10 = vld [vmem:[%s20881_s8 + $0x28c] ss:$16 sps:$4 sm:$0xff]  }
0x12a8   :  { %15780 = vmatprep.subr.bf16.mxu0 %v19980_v17  ;;  %14947 = vmatmul.mubr.msk.bf16.gmra.mrb[88].mxu1 %vm2401_vm4, %v17541_v43 }
0x12a9   :  { %9928 = vmatpush1.bf16.msra.mxu1 %v17563_v44  ;;  %9494 = vmatprep.mubr.bf16.mxu1 %v18621_v0 }
0x12aa   :  { %9929 = vmatprep.subr.bf16.mxu1 %v17571_v45 }
0x12ab   :  { %15781 = vmatpush3.bf16.msra.mxu0 %v19980_v17  ;;  %v17581_v17 = vld [vmem:[%s20881_s8 + $0x2a8] ss:$16 sps:$4 sm:$0xff]  }
0x12ac   :  { %9850 = vmatprep.subr.bf16.mxu0 %v17550_v3 }
0x12ad   :  { %9930 = vmatpush1.bf16.msra.mxu1 %v17569_v46 }
0x12ae   :  { %14944 = vmatmul.mubr.msk.bf16.gmra.mrb[88].mxu0 %vm2401_vm4, %v17542_v47  ;;  %9931 = vmatprep.subr.bf16.mxu1 %v17577_v10 }
0x12af   :  { %9431 = vmatprep.mubr.bf16.mxu0 %v18621_v0 }
0x12b0   :  { %14948 = vmatmul.mubr.msk.bf16.gmra.mrb[92].mxu1 %vm2401_vm4, %v17542_v47 }
0x12b1   :  { %9932 = vmatpush1.bf16.msra.mxu1 %v17575_v48  ;;  %9504 = vmatprep.mubr.bf16.mxu1 %v18621_v0 }
0x12b2   :  { %9933 = vmatprep.subr.bf16.mxu1 %v17583_v49 }
0x12b5   :  { %9934 = vmatpush1.bf16.msra.mxu1 %v17581_v17 }
0x12b6   :  { %14945 = vmatmul.mubr.msk.bf16.gmra.mrb[92].mxu0 %vm2401_vm4, %v17543_v50  ;;  %9935 = vmatprep.subr.bf16.mxu1 %v17589_v53 }
0x12b7   :  { %15782 = vmatprep.mubr.msk.bf16.mxu0 %vm6162_vm5, %v17544_v54 }
0x12b8   :  { %14949 = vmatmul.mubr.msk.bf16.gmra.mrb[96].mxu1 %vm2401_vm4, %v17543_v50 }
0x12b9   :  { %9936 = vmatpush1.bf16.msra.mxu1 %v17587_v56  ;;  %9955 = vmatprep.mubr.bf16.mxu1 %v18621_v0 }
0x12ba   :  { %9937 = vmatprep.subr.bf16.mxu1 %v17595_v13 }
0x12bd   :  { %9938 = vmatpush1.bf16.msra.mxu1 %v17593_v57 }
0x12be   :  { %15783 = vmatmul.mubr.msk.bf16.vlgmr.msra.gmra.mrb[112].mxu0 %vm6162_vm5, %v17545_v58 }
0x12bf   :  { %15786 = vmatprep.mubr.msk.bf16.mxu0 %vm6162_vm5, %v17546_v59  ;;  %9851 = vmatpush1.bf16.msra.mxu0 %v17548_v63 }
0x12c0   :  { %9852 = vmatprep.subr.bf16.mxu0 %v17556_v40 }
0x12c3   :  { %9853 = vmatpush1.bf16.msra.mxu0 %v17554_v51 }
0x12c4   :  { %9854 = vmatprep.subr.bf16.mxu0 %v17562_v1 }
0x12c6   :  { %15787 = vmatmul.mubr.msk.bf16.gmra.mrb[116].mxu0 %vm6162_vm5, %v17547_v60 }
0x12c7   :  { %9855 = vmatpush1.bf16.msra.mxu0 %v17560_v52  ;;  %9882 = vmatprep.mubr.bf16.mxu0 %v18621_v0 }
0x12c8   :  { %9856 = vmatprep.subr.bf16.mxu0 %v17568_v4 }
0x12cb   :  { %9857 = vmatpush1.bf16.msra.mxu0 %v17566_v5 }
0x12cc   :  { %9858 = vmatprep.subr.bf16.mxu0 %v17574_v6 }
0x12cf   :  { %9859 = vmatpush1.bf16.msra.mxu0 %v17572_v7 }
0x12d0   :  { %9860 = vmatprep.subr.bf16.mxu0 %v17580_v8 }
0x12d3   :  { %9861 = vmatpush1.bf16.msra.mxu0 %v17578_v9 }
0x12d4   :  { %9862 = vmatprep.subr.bf16.mxu0 %v17586_v11 }
0x12d7   :  { %9863 = vmatpush1.bf16.msra.mxu0 %v17584_v12 }
0x12d8   :  { %9864 = vmatprep.subr.bf16.mxu0 %v17592_v37 }
0x12db   :  { %9865 = vmatpush1.bf16.msra.mxu0 %v17590_v33 }
0x1391   :  { %v15784_v15 = vpop.f32.mrb[112].mxu0 }
0x1392   :  { %v9622_v42 = vpop.f32.mrb[113].mxu0 }
0x1393   :  { %v15785_v31 = vpop.f32.mrb[114].mxu0 }
0x1394   :  { %v9654_v2 = vpack.c.bf16 %v15785_v31, %v15784_v15  ;;  %v9625_v23 = vpop.f32.mrb[115].mxu0 }
0x1395   :  { %v9653_v24 = vpack.c.bf16 %v9625_v23, %v9622_v42 }
0x1397   :  { %9883 = vmatmul.mubr.bf16.vlgmr.msra.gmra.mrb[80].mxu0 %v9653_v24  ;;  %9956 = vmatmul.mubr.bf16.vlgmr.msra.gmra.mrb[84].mxu1 %v9653_v24 }
0x1398   :  { %9892 = vmatprep.mubr.bf16.mxu0 %v18621_v0  ;;  %9965 = vmatprep.mubr.bf16.mxu1 %v18621_v0 }
0x1399   :  { %v15788_v38 = vpop.f32.mrb[116].mxu0 }
0x139a   :  { %v9638_v16 = vpop.f32.mrb[117].mxu0 }
0x139b   :  { %v15789_v14 = vpop.f32.mrb[118].mxu0 }
0x139c   :  { %v9656_v55 = vpack.c.bf16 %v15789_v14, %v15788_v38  ;;  %v9641_v25 = vpop.f32.mrb[119].mxu0 }
0x139d   :  { %v9655_v41 = vpack.c.bf16 %v9641_v25, %v9638_v16 }
0x139f   :  { %9893 = vmatmul.mubr.bf16.gmra.mrb[84].mxu0 %v9654_v2  ;;  %9966 = vmatmul.mubr.bf16.gmra.mrb[88].mxu1 %v9654_v2 }
0x13a0   :  { %9902 = vmatprep.mubr.bf16.mxu0 %v18621_v0  ;;  %9975 = vmatprep.mubr.bf16.mxu1 %v18621_v0 }
0x13a7   :  { %9903 = vmatmul.mubr.bf16.gmra.mrb[88].mxu0 %v9655_v41  ;;  %9976 = vmatmul.mubr.bf16.gmra.mrb[92].mxu1 %v9655_v41 }
0x13a8   :  { %9912 = vmatprep.mubr.bf16.mxu0 %v18621_v0  ;;  %9985 = vmatprep.mubr.bf16.mxu1 %v18621_v0 }
0x13af   :  { %9913 = vmatmul.mubr.bf16.gmra.mrb[92].mxu0 %v9656_v55  ;;  %9986 = vmatmul.mubr.bf16.gmra.mrb[96].mxu1 %v9656_v55 }
0x13b0   :  { %10162 = vmatprep.mubr.bf16.mxu1 %v18621_v0  ;;  %10235 = vmatprep.mubr.bf16.mxu0 %v18621_v0 }
0x146a   :  { %v9884_v36 = vpop.f32.mrb[80].mxu0  ;;  %v9957_v20 = vpop.f32.mrb[84].mxu1 }
0x146b   :  { %v10050_v22 = vadd.f32 %v20431_v27, %v9884_v36  ;;  %v10052_v32 = vadd.f32 %v20435_v28, %v9957_v20  ;;  %v9886_v34 = vpop.f32.mrb[81].mxu0  ;;  %v9959_v39 = vpop.f32.mrb[85].mxu1 }
0x146c   :  { %v10051_v43 = vadd.f32 %v20438_v29, %v9886_v34  ;;  %v10053_v61 = vadd.f32 %v20442_v30, %v9959_v39  ;;  %v9888_v44 = vpop.f32.mrb[82].mxu0  ;;  %v9961_v45 = vpop.f32.mrb[86].mxu1 }
0x146d   :  { %v10054_v3 = vadd.f32 %v20431_v27, %v9888_v44  ;;  %v10056_v46 = vadd.f32 %v20435_v28, %v9961_v45  ;;  %v9890_v47 = vpop.f32.mrb[83].mxu0  ;;  %v9963_v10 = vpop.f32.mrb[87].mxu1  ;;  %v10082_v17 = vmax.f32 %v10050_v22, 0.0  ;;  %v10084_v50 = vmax.f32 %v10052_v32, 0.0 }
0x146e   :  { %v10055_v48 = vadd.f32 %v20438_v29, %v9890_v47  ;;  %v10057_v49 = vadd.f32 %v20442_v30, %v9963_v10  ;;  %v10083_v56 = vmax.f32 %v10051_v43, 0.0  ;;  %v10085_v58 = vmax.f32 %v10053_v61, 0.0 }
0x146f   :  { %v10086_v53 = vmax.f32 %v10054_v3, 0.0  ;;  %v10088_v54 = vmax.f32 %v10056_v46, 0.0 }
0x1470   :  { %v10087_v59 = vmax.f32 %v10055_v48, 0.0  ;;  %v10089_v63 = vmax.f32 %v10057_v49, 0.0 }
0x1471   :  { %v20452_v40 = vpack.c.bf16 %v10086_v53, %v10082_v17  ;;  %v20454_v51 = vpack.c.bf16 %v10088_v54, %v10084_v50 }
0x1472   :  { %v20456_v1 = vpack.c.bf16 %v10087_v59, %v10083_v56  ;;  %v20458_v60 = vpack.c.bf16 %v10089_v63, %v10085_v58  ;;  %v9894_v52 = vpop.f32.mrb[84].mxu0  ;;  %v9967_v4 = vpop.f32.mrb[88].mxu1 }
0x1473   :  { %v10058_v5 = vadd.f32 %v20431_v27, %v9894_v52  ;;  %v10060_v6 = vadd.f32 %v20435_v28, %v9967_v4  ;;  %v9896_v7 = vpop.f32.mrb[85].mxu0  ;;  %v9969_v8 = vpop.f32.mrb[89].mxu1 }
0x1474   :  { %v10059_v9 = vadd.f32 %v20438_v29, %v9896_v7  ;;  %v10061_v11 = vadd.f32 %v20442_v30, %v9969_v8  ;;  %v9898_v12 = vpop.f32.mrb[86].mxu0  ;;  %v9971_v37 = vpop.f32.mrb[90].mxu1  ;;  %10130 = vmatprep.subr.bf16.mxu1 %v20456_v1  ;;  %10203 = vmatprep.subr.bf16.mxu0 %v20458_v60 }
0x1475   :  { %v10062_v13 = vadd.f32 %v20431_v27, %v9898_v12  ;;  %v10064_v33 = vadd.f32 %v20435_v28, %v9971_v37  ;;  %v9900_v57 = vpop.f32.mrb[87].mxu0  ;;  %v9973_v15 = vpop.f32.mrb[91].mxu1  ;;  %10131 = vmatpush1.bf16.msra.mxu1 %v20452_v40  ;;  %10204 = vmatpush1.bf16.msra.mxu0 %v20454_v51  ;;  %v10090_v2 = vmax.f32 %v10058_v5, 0.0  ;;  %v10092_v23 = vmax.f32 %v10060_v6, 0.0 }
0x1476   :  { %v10063_v42 = vadd.f32 %v20438_v29, %v9900_v57  ;;  %v10065_v31 = vadd.f32 %v20442_v30, %v9973_v15  ;;  %v10091_v16 = vmax.f32 %v10059_v9, 0.0  ;;  %v10093_v14 = vmax.f32 %v10061_v11, 0.0 }
0x1477   :  { %v10094_v24 = vmax.f32 %v10062_v13, 0.0  ;;  %v10096_v38 = vmax.f32 %v10064_v33, 0.0 }
0x1478   :  { %v10095_v55 = vmax.f32 %v10063_v42, 0.0  ;;  %v10097_v25 = vmax.f32 %v10065_v31, 0.0 }
0x1479   :  { %v20472_v41 = vpack.c.bf16 %v10094_v24, %v10090_v2  ;;  %v20474_v35 = vpack.c.bf16 %v10096_v38, %v10092_v23 }
0x147a   :  { %v20476_v36 = vpack.c.bf16 %v10095_v55, %v10091_v16  ;;  %v20478_v20 = vpack.c.bf16 %v10097_v25, %v10093_v14  ;;  %v9904_v22 = vpop.f32.mrb[88].mxu0  ;;  %v9977_v32 = vpop.f32.mrb[92].mxu1 }
0x147b   :  { %v10066_v34 = vadd.f32 %v20431_v27, %v9904_v22  ;;  %v10068_v39 = vadd.f32 %v20435_v28, %v9977_v32  ;;  %v9906_v43 = vpop.f32.mrb[89].mxu0  ;;  %v9979_v61 = vpop.f32.mrb[93].mxu1 }
0x147c   :  { %v10067_v44 = vadd.f32 %v20438_v29, %v9906_v43  ;;  %v10069_v45 = vadd.f32 %v20442_v30, %v9979_v61  ;;  %v9908_v3 = vpop.f32.mrb[90].mxu0  ;;  %v9981_v46 = vpop.f32.mrb[94].mxu1  ;;  %10132 = vmatprep.subr.bf16.mxu1 %v20476_v36  ;;  %10205 = vmatprep.subr.bf16.mxu0 %v20478_v20 }
0x147d   :  { %v10070_v47 = vadd.f32 %v20431_v27, %v9908_v3  ;;  %v10072_v10 = vadd.f32 %v20435_v28, %v9981_v46  ;;  %v9910_v48 = vpop.f32.mrb[91].mxu0  ;;  %v9983_v49 = vpop.f32.mrb[95].mxu1  ;;  %10133 = vmatpush1.bf16.msra.mxu1 %v20472_v41  ;;  %10206 = vmatpush1.bf16.msra.mxu0 %v20474_v35  ;;  %v10098_v53 = vmax.f32 %v10066_v34, 0.0  ;;  %v10100_v54 = vmax.f32 %v10068_v39, 0.0  ;;  %v17598_v3 = vld [vmem:[#allocation25 + $0x404] ss:$16 sps:$4 sm:$0xff]  }
0x147e   :  { %v10071_v17 = vadd.f32 %v20438_v29, %v9910_v48  ;;  %v10073_v50 = vadd.f32 %v20442_v30, %v9983_v49  ;;  %v10099_v59 = vmax.f32 %v10067_v44, 0.0  ;;  %v10101_v63 = vmax.f32 %v10069_v45, 0.0  ;;  %v17599_v46 = vld [vmem:[#allocation25 + $0x408] ss:$16 sps:$4 sm:$0xff]   ;;  %v18173_v48 = vld [vmem:[#allocation22] sm:$0xff]  }
0x147f   :  { %v10102_v56 = vmax.f32 %v10070_v47, 0.0  ;;  %v10104_v58 = vmax.f32 %v10072_v10, 0.0  ;;  %v17604_v47 = vld [vmem:[#allocation25 + $0x424] ss:$16 sps:$4 sm:$0xff]   ;;  %v17607_v10 = vld [vmem:[#allocation25 + $0x42c] ss:$16 sps:$4 sm:$0xff]  }
0x1480   :  { %v10103_v52 = vmax.f32 %v10071_v17, 0.0  ;;  %v10105_v4 = vmax.f32 %v10073_v50, 0.0  ;;  %v17602_v49 = vld [vmem:[#allocation25 + $0x420] ss:$16 sps:$4 sm:$0xff]   ;;  %v17605_v17 = vld [vmem:[#allocation25 + $0x428] ss:$16 sps:$4 sm:$0xff]  }
0x1481   :  { %v20492_v5 = vpack.c.bf16 %v10102_v56, %v10098_v53  ;;  %v20494_v6 = vpack.c.bf16 %v10104_v58, %v10100_v54  ;;  %v17610_v50 = vld [vmem:[#allocation25 + $0x444] ss:$16 sps:$4 sm:$0xff]   ;;  %v17613_v53 = vld [vmem:[#allocation25 + $0x44c] ss:$16 sps:$4 sm:$0xff]   ;;  %v17608_v54 = vld [vmem:[#allocation25 + $0x440] ss:$16 sps:$4 sm:$0xff]  }
0x1482   :  { %v20496_v7 = vpack.c.bf16 %v10103_v52, %v10099_v59  ;;  %v20498_v8 = vpack.c.bf16 %v10105_v4, %v10101_v63  ;;  %v9914_v9 = vpop.f32.mrb[92].mxu0  ;;  %v9987_v11 = vpop.f32.mrb[96].mxu1  ;;  %v17611_v56 = vld [vmem:[#allocation25 + $0x448] ss:$16 sps:$4 sm:$0xff]   ;;  %v17616_v58 = vld [vmem:[#allocation25 + $0x464] ss:$16 sps:$4 sm:$0xff]  }
0x1483   :  { %v10074_v12 = vadd.f32 %v20431_v27, %v9914_v9  ;;  %v10076_v37 = vadd.f32 %v20435_v28, %v9987_v11  ;;  %v9916_v13 = vpop.f32.mrb[93].mxu0  ;;  %v9989_v33 = vpop.f32.mrb[97].mxu1  ;;  %v17619_v59 = vld [vmem:[#allocation25 + $0x46c] ss:$16 sps:$4 sm:$0xff]   ;;  %v17614_v52 = vld [vmem:[#allocation25 + $0x460] ss:$16 sps:$4 sm:$0xff]  }
0x1484   :  { %v10075_v57 = vadd.f32 %v20438_v29, %v9916_v13  ;;  %v10077_v15 = vadd.f32 %v20442_v30, %v9989_v33  ;;  %v9918_v42 = vpop.f32.mrb[94].mxu0  ;;  %v9991_v31 = vpop.f32.mrb[98].mxu1  ;;  %10134 = vmatprep.subr.bf16.mxu1 %v20496_v7  ;;  %10207 = vmatprep.subr.bf16.mxu0 %v20498_v8  ;;  %v18174_v63 = vld [vmem:[#allocation22 + $0x8] sm:$0xff]   ;;  %v17622_v9 = vld [vmem:[#allocation25 + $0x484] ss:$16 sps:$4 sm:$0xff]  }
0x1485   :  { %v10078_v2 = vadd.f32 %v20431_v27, %v9918_v42  ;;  %v10080_v23 = vadd.f32 %v20435_v28, %v9991_v31  ;;  %v9920_v24 = vpop.f32.mrb[95].mxu0  ;;  %v9993_v38 = vpop.f32.mrb[99].mxu1  ;;  %10135 = vmatpush1.bf16.msra.mxu1 %v20492_v5  ;;  %10208 = vmatpush1.bf16.msra.mxu0 %v20494_v6  ;;  %v10106_v55 = vmax.f32 %v10074_v12, 0.0  ;;  %v10108_v25 = vmax.f32 %v10076_v37, 0.0  ;;  %v17617_v4 = vld [vmem:[#allocation25 + $0x468] ss:$16 sps:$4 sm:$0xff]  }
0x1486   :  { %v10079_v16 = vadd.f32 %v20438_v29, %v9920_v24  ;;  %v10081_v14 = vadd.f32 %v20442_v30, %v9993_v38  ;;  %v10107_v34 = vmax.f32 %v10075_v57, 0.0  ;;  %v10109_v39 = vmax.f32 %v10077_v15, 0.0  ;;  %v17601_v29 = vld [vmem:[#allocation25 + $0x40c] ss:$16 sps:$4 sm:$0xff]   ;;  %v17596_v30 = vld [vmem:[#allocation25 + $0x400] ss:$16 sps:$4 sm:$0xff]  }
0x1487   :  { %v10110_v22 = vmax.f32 %v10078_v2, 0.0  ;;  %v10112_v32 = vmax.f32 %v10080_v23, 0.0  ;;  %v17625_v11 = vld [vmem:[#allocation25 + $0x48c] ss:$16 sps:$4 sm:$0xff]   ;;  %v17620_v12 = vld [vmem:[#allocation25 + $0x480] ss:$16 sps:$4 sm:$0xff]  }
0x1488   :  { %v10111_v43 = vmax.f32 %v10079_v16, 0.0  ;;  %v10113_v27 = vmax.f32 %v10081_v14, 0.0  ;;  %v17623_v37 = vld [vmem:[#allocation25 + $0x488] ss:$16 sps:$4 sm:$0xff]   ;;  %v17628_v13 = vld [vmem:[#allocation25 + $0x4a4] ss:$16 sps:$4 sm:$0xff]  }
0x1489   :  { %v20512_v61 = vpack.c.bf16 %v10110_v22, %v10106_v55  ;;  %v20514_v28 = vpack.c.bf16 %v10112_v32, %v10108_v25  ;;  %v17631_v33 = vld [vmem:[#allocation25 + $0x4ac] ss:$16 sps:$4 sm:$0xff]   ;;  %v18175_v57 = vld [vmem:[#allocation22 + $0x10] sm:$0xff]   ;;  %v17629_v42 = vld [vmem:[#allocation25 + $0x4a8] ss:$16 sps:$4 sm:$0xff]  }
0x148a   :  { %v20516_v44 = vpack.c.bf16 %v10111_v43, %v10107_v34  ;;  %v20518_v45 = vpack.c.bf16 %v10113_v27, %v10109_v39  ;;  %v17626_v15 = vld [vmem:[#allocation25 + $0x4a0] ss:$16 sps:$4 sm:$0xff]   ;;  %v17634_v31 = vld [vmem:[#allocation25 + $0x4c4] ss:$16 sps:$4 sm:$0xff]   ;;  %v17637_v2 = vld [vmem:[#allocation25 + $0x4cc] ss:$16 sps:$4 sm:$0xff]  }
0x148b   :  { %v17632_v23 = vld [vmem:[#allocation25 + $0x4c0] ss:$16 sps:$4 sm:$0xff]   ;;  %v17635_v24 = vld [vmem:[#allocation25 + $0x4c8] ss:$16 sps:$4 sm:$0xff]   ;;  %v17640_v38 = vld [vmem:[#allocation25 + $0x4e4] ss:$16 sps:$4 sm:$0xff]  }
0x148c   :  { %10136 = vmatprep.subr.bf16.mxu1 %v20516_v44  ;;  %10209 = vmatprep.subr.bf16.mxu0 %v20518_v45  ;;  %v17643_v16 = vld [vmem:[#allocation25 + $0x4ec] ss:$16 sps:$4 sm:$0xff]   ;;  %v17638_v55 = vld [vmem:[#allocation25 + $0x4e0] ss:$16 sps:$4 sm:$0xff]   ;;  %v17641_v25 = vld [vmem:[#allocation25 + $0x4e8] ss:$16 sps:$4 sm:$0xff]  }
0x148d   :  { %10137 = vmatpush1.bf16.msra.mxu1 %v20512_v61  ;;  %10210 = vmatpush1.bf16.msra.mxu0 %v20514_v28  ;;  %v18176_v14 = vld [vmem:[#allocation22 + $0x18] sm:$0xff]   ;;  %v17646_v22 = vld [vmem:[#allocation25 + $0x504] ss:$16 sps:$4 sm:$0xff]   ;;  %v17644_v34 = vld [vmem:[#allocation25 + $0x500] ss:$16 sps:$4 sm:$0xff]  }
0x148e   :  { %11189 = vmatprep.subr.bf16.mxu1 %v17598_v3  ;;  %11335 = vmatprep.subr.bf16.mxu0 %v17601_v29  ;;  %v17649_v32 = vld [vmem:[#allocation25 + $0x50c] ss:$16 sps:$4 sm:$0xff]   ;;  %v17647_v39 = vld [vmem:[#allocation25 + $0x508] ss:$16 sps:$4 sm:$0xff]   ;;  %v17652_v43 = vld [vmem:[#allocation25 + $0x524] ss:$16 sps:$4 sm:$0xff]  }
0x148f   :  { %v17655_v27 = vld [vmem:[#allocation25 + $0x52c] ss:$16 sps:$4 sm:$0xff]   ;;  %v17650_v3 = vld [vmem:[#allocation25 + $0x520] ss:$16 sps:$4 sm:$0xff]   ;;  %v17653_v29 = vld [vmem:[#allocation25 + $0x528] ss:$16 sps:$4 sm:$0xff]  }
0x1490   :  { %15022 = vmatmul.mubr.msk.bf16.vlgmr.msra.gmra.mrb[116].mxu1 %vm6162_vm5, %v18173_v48  ;;  %15026 = vmatmul.mubr.msk.bf16.vlgmr.msra.gmra.mrb[120].mxu0 %vm6162_vm5, %v18173_v48  ;;  %v17664_v48 = vld [vmem:[#allocation25 + $0x564] ss:$16 sps:$4 sm:$0xff]  }
0x1491   :  { %11190 = vmatpush1.bf16.msra.mxu1 %v17596_v30  ;;  %11336 = vmatpush1.bf16.msra.mxu0 %v17599_v46  ;;  %v17658_v30 = vld [vmem:[#allocation25 + $0x544] ss:$16 sps:$4 sm:$0xff]   ;;  %v17661_v46 = vld [vmem:[#allocation25 + $0x54c] ss:$16 sps:$4 sm:$0xff]  }
0x1492   :  { %11191 = vmatprep.subr.bf16.mxu1 %v17604_v47  ;;  %11337 = vmatprep.subr.bf16.mxu0 %v17607_v10  ;;  %v17656_v47 = vld [vmem:[#allocation25 + $0x540] ss:$16 sps:$4 sm:$0xff]   ;;  %v17659_v10 = vld [vmem:[#allocation25 + $0x548] ss:$16 sps:$4 sm:$0xff]  }
0x1493   :  { %10172 = vmatprep.mubr.bf16.mxu1 %v18621_v0  ;;  %10245 = vmatprep.mubr.bf16.mxu0 %v18621_v0 }
0x1495   :  { %11192 = vmatpush1.bf16.msra.mxu1 %v17602_v49  ;;  %11338 = vmatpush1.bf16.msra.mxu0 %v17605_v17  ;;  %v17667_v49 = vld [vmem:[#allocation25 + $0x56c] ss:$16 sps:$4 sm:$0xff]   ;;  %v17662_v17 = vld [vmem:[#allocation25 + $0x560] ss:$16 sps:$4 sm:$0xff]  }
0x1496   :  { %11193 = vmatprep.subr.bf16.mxu1 %v17610_v50  ;;  %11339 = vmatprep.subr.bf16.mxu0 %v17613_v53  ;;  %v17665_v50 = vld [vmem:[#allocation25 + $0x568] ss:$16 sps:$4 sm:$0xff]   ;;  %v17670_v53 = vld [vmem:[#allocation25 + $0x584] ss:$16 sps:$4 sm:$0xff]  }
0x1498   :  { %15023 = vmatmul.mubr.msk.bf16.gmra.mrb[120].mxu1 %vm6162_vm5, %v18174_v63  ;;  %15027 = vmatmul.mubr.msk.bf16.gmra.mrb[124].mxu0 %vm6162_vm5, %v18174_v63  ;;  %v17679_v63 = vld [vmem:[#allocation25 + $0x5ac] ss:$16 sps:$4 sm:$0xff]  }
0x1499   :  { %11194 = vmatpush1.bf16.msra.mxu1 %v17608_v54  ;;  %11340 = vmatpush1.bf16.msra.mxu0 %v17611_v56  ;;  %v17673_v54 = vld [vmem:[#allocation25 + $0x58c] ss:$16 sps:$4 sm:$0xff]   ;;  %v17668_v56 = vld [vmem:[#allocation25 + $0x580] ss:$16 sps:$4 sm:$0xff]  }
0x149a   :  { %11195 = vmatprep.subr.bf16.mxu1 %v17616_v58  ;;  %11341 = vmatprep.subr.bf16.mxu0 %v17619_v59  ;;  %v17671_v58 = vld [vmem:[#allocation25 + $0x588] ss:$16 sps:$4 sm:$0xff]   ;;  %v17676_v59 = vld [vmem:[#allocation25 + $0x5a4] ss:$16 sps:$4 sm:$0xff]  }
0x149b   :  { %10182 = vmatprep.mubr.bf16.mxu1 %v18621_v0  ;;  %10255 = vmatprep.mubr.bf16.mxu0 %v18621_v0 }
0x149d   :  { %11196 = vmatpush1.bf16.msra.mxu1 %v17614_v52  ;;  %11342 = vmatpush1.bf16.msra.mxu0 %v17617_v4  ;;  %v17674_v52 = vld [vmem:[#allocation25 + $0x5a0] ss:$16 sps:$4 sm:$0xff]   ;;  %v17677_v4 = vld [vmem:[#allocation25 + $0x5a8] ss:$16 sps:$4 sm:$0xff]  }
0x149e   :  { %11197 = vmatprep.subr.bf16.mxu1 %v17622_v9  ;;  %11343 = vmatprep.subr.bf16.mxu0 %v17625_v11  ;;  %v17682_v9 = vld [vmem:[#allocation25 + $0x5c4] ss:$16 sps:$4 sm:$0xff]   ;;  %v17685_v11 = vld [vmem:[#allocation25 + $0x5cc] ss:$16 sps:$4 sm:$0xff]  }
0x14a0   :  { %15024 = vmatmul.mubr.msk.bf16.gmra.mrb[124].mxu1 %vm6162_vm5, %v18175_v57  ;;  %15028 = vmatmul.mubr.msk.bf16.gmra.mrb[128].mxu0 %vm6162_vm5, %v18175_v57  ;;  %v17686_v57 = vld [vmem:[#allocation25 + $0x5e0] ss:$16 sps:$4 sm:$0xff]  }
0x14a1   :  { %11198 = vmatpush1.bf16.msra.mxu1 %v17620_v12  ;;  %11344 = vmatpush1.bf16.msra.mxu0 %v17623_v37  ;;  %v17680_v12 = vld [vmem:[#allocation25 + $0x5c0] ss:$16 sps:$4 sm:$0xff]   ;;  %v17683_v37 = vld [vmem:[#allocation25 + $0x5c8] ss:$16 sps:$4 sm:$0xff]  }
0x14a2   :  { %11199 = vmatprep.subr.bf16.mxu1 %v17628_v13  ;;  %11345 = vmatprep.subr.bf16.mxu0 %v17631_v33  ;;  %v17688_v13 = vld [vmem:[#allocation25 + $0x5e4] ss:$16 sps:$4 sm:$0xff]   ;;  %v17691_v33 = vld [vmem:[#allocation25 + $0x5ec] ss:$16 sps:$4 sm:$0xff]  }
0x14a3   :  { %10192 = vmatprep.mubr.bf16.mxu1 %v18621_v0  ;;  %10265 = vmatprep.mubr.bf16.mxu0 %v18621_v0 }
0x14a5   :  { %11200 = vmatpush1.bf16.msra.mxu1 %v17626_v15  ;;  %11346 = vmatpush1.bf16.msra.mxu0 %v17629_v42  ;;  %v17689_v15 = vld [vmem:[#allocation25 + $0x5e8] ss:$16 sps:$4 sm:$0xff]   ;;  %v17694_v42 = vld [vmem:[#allocation25 + $0x604] ss:$16 sps:$4 sm:$0xff]  }
0x14a6   :  { %11201 = vmatprep.subr.bf16.mxu1 %v17634_v31  ;;  %11347 = vmatprep.subr.bf16.mxu0 %v17637_v2  ;;  %v17697_v31 = vld [vmem:[#allocation25 + $0x60c] ss:$16 sps:$4 sm:$0xff]   ;;  %v17692_v2 = vld [vmem:[#allocation25 + $0x600] ss:$16 sps:$4 sm:$0xff]  }
0x14a8   :  { %15025 = vmatmul.mubr.msk.bf16.gmra.mrb[128].mxu1 %vm6162_vm5, %v18176_v14  ;;  %15029 = vmatmul.mubr.msk.bf16.gmra.mrb[132].mxu0 %vm6162_vm5, %v18176_v14  ;;  %v17701_v14 = vld [vmem:[#allocation25 + $0x628] ss:$16 sps:$4 sm:$0xff]  }
0x14a9   :  { %11202 = vmatpush1.bf16.msra.mxu1 %v17632_v23  ;;  %11221 = vmatprep.mubr.bf16.mxu1 %v20456_v1  ;;  %v17695_v23 = vld [vmem:[#allocation25 + $0x608] ss:$16 sps:$4 sm:$0xff]  }
0x14aa   :  { %11348 = vmatpush1.bf16.msra.mxu0 %v17635_v24  ;;  %11367 = vmatprep.mubr.bf16.mxu0 %v20456_v1  ;;  %v17700_v24 = vld [vmem:[#allocation25 + $0x624] ss:$16 sps:$4 sm:$0xff]  }
0x14ab   :  { %11203 = vmatprep.subr.bf16.mxu1 %v17640_v38  ;;  %11349 = vmatprep.subr.bf16.mxu0 %v17643_v16  ;;  %v17703_v38 = vld [vmem:[#allocation25 + $0x62c] ss:$16 sps:$4 sm:$0xff]   ;;  %v17698_v16 = vld [vmem:[#allocation25 + $0x620] ss:$16 sps:$4 sm:$0xff]  }
0x14ad   :  { %11204 = vmatpush1.bf16.msra.mxu1 %v17638_v55  ;;  %v17706_v55 = vld [vmem:[#allocation25 + $0x644] ss:$16 sps:$4 sm:$0xff]  }
0x14ae   :  { %11350 = vmatpush1.bf16.msra.mxu0 %v17641_v25  ;;  %11205 = vmatprep.subr.bf16.mxu1 %v17646_v22  ;;  %v17709_v25 = vld [vmem:[#allocation25 + $0x64c] ss:$16 sps:$4 sm:$0xff]   ;;  %v17704_v22 = vld [vmem:[#allocation25 + $0x640] ss:$16 sps:$4 sm:$0xff]  }
0x14af   :  { %11351 = vmatprep.subr.bf16.mxu0 %v17649_v32  ;;  %v17707_v32 = vld [vmem:[#allocation25 + $0x648] ss:$16 sps:$4 sm:$0xff]  }
0x14b1   :  { %11206 = vmatpush1.bf16.msra.mxu1 %v17644_v34  ;;  %v17712_v34 = vld [vmem:[#allocation25 + $0x664] ss:$16 sps:$4 sm:$0xff]  }
0x14b2   :  { %11352 = vmatpush1.bf16.msra.mxu0 %v17647_v39  ;;  %11207 = vmatprep.subr.bf16.mxu1 %v17652_v43  ;;  %v17715_v39 = vld [vmem:[#allocation25 + $0x66c] ss:$16 sps:$4 sm:$0xff]   ;;  %v17710_v43 = vld [vmem:[#allocation25 + $0x660] ss:$16 sps:$4 sm:$0xff]  }
0x14b3   :  { %11353 = vmatprep.subr.bf16.mxu0 %v17655_v27  ;;  %v17713_v27 = vld [vmem:[#allocation25 + $0x668] ss:$16 sps:$4 sm:$0xff]  }
0x14b5   :  { %11208 = vmatpush1.bf16.msra.mxu1 %v17650_v3  ;;  %v17718_v3 = vld [vmem:[#allocation25 + $0x684] ss:$16 sps:$4 sm:$0xff]  }
0x14b6   :  { %11354 = vmatpush1.bf16.msra.mxu0 %v17653_v29  ;;  %11209 = vmatprep.subr.bf16.mxu1 %v17658_v30  ;;  %v17721_v29 = vld [vmem:[#allocation25 + $0x68c] ss:$16 sps:$4 sm:$0xff]   ;;  %v17716_v30 = vld [vmem:[#allocation25 + $0x680] ss:$16 sps:$4 sm:$0xff]  }
0x14b7   :  { %11355 = vmatprep.subr.bf16.mxu0 %v17661_v46  ;;  %v17719_v46 = vld [vmem:[#allocation25 + $0x688] ss:$16 sps:$4 sm:$0xff]  }
0x14b9   :  { %11210 = vmatpush1.bf16.msra.mxu1 %v17656_v47  ;;  %v17724_v47 = vld [vmem:[#allocation25 + $0x6a4] ss:$16 sps:$4 sm:$0xff]  }
0x14ba   :  { %11356 = vmatpush1.bf16.msra.mxu0 %v17659_v10  ;;  %11211 = vmatprep.subr.bf16.mxu1 %v17664_v48  ;;  %v17727_v10 = vld [vmem:[#allocation25 + $0x6ac] ss:$16 sps:$4 sm:$0xff]   ;;  %v17722_v48 = vld [vmem:[#allocation25 + $0x6a0] ss:$16 sps:$4 sm:$0xff]  }
0x14bb   :  { %11357 = vmatprep.subr.bf16.mxu0 %v17667_v49  ;;  %v17725_v49 = vld [vmem:[#allocation25 + $0x6a8] ss:$16 sps:$4 sm:$0xff]  }
0x14bd   :  { %11212 = vmatpush1.bf16.msra.mxu1 %v17662_v17  ;;  %v17730_v17 = vld [vmem:[#allocation25 + $0x6c4] ss:$16 sps:$4 sm:$0xff]  }
0x14be   :  { %11358 = vmatpush1.bf16.msra.mxu0 %v17665_v50  ;;  %11213 = vmatprep.subr.bf16.mxu1 %v17670_v53  ;;  %v17733_v50 = vld [vmem:[#allocation25 + $0x6cc] ss:$16 sps:$4 sm:$0xff]   ;;  %v17728_v53 = vld [vmem:[#allocation25 + $0x6c0] ss:$16 sps:$4 sm:$0xff]  }
0x14bf   :  { %11359 = vmatprep.subr.bf16.mxu0 %v17673_v54  ;;  %v17731_v54 = vld [vmem:[#allocation25 + $0x6c8] ss:$16 sps:$4 sm:$0xff]  }
0x14c1   :  { %11214 = vmatpush1.bf16.msra.mxu1 %v17668_v56  ;;  %v17736_v56 = vld [vmem:[#allocation25 + $0x6e4] ss:$16 sps:$4 sm:$0xff]  }
0x14c2   :  { %11360 = vmatpush1.bf16.msra.mxu0 %v17671_v58  ;;  %11215 = vmatprep.subr.bf16.mxu1 %v17676_v59  ;;  %v17739_v58 = vld [vmem:[#allocation25 + $0x6ec] ss:$16 sps:$4 sm:$0xff]   ;;  %v17734_v59 = vld [vmem:[#allocation25 + $0x6e0] ss:$16 sps:$4 sm:$0xff]  }
0x14c3   :  { %11361 = vmatprep.subr.bf16.mxu0 %v17679_v63  ;;  %v17737_v63 = vld [vmem:[#allocation25 + $0x6e8] ss:$16 sps:$4 sm:$0xff]  }
0x14c5   :  { %11216 = vmatpush1.bf16.msra.mxu1 %v17674_v52  ;;  %v17742_v52 = vld [vmem:[#allocation25 + $0x704] ss:$16 sps:$4 sm:$0xff]  }
0x14c6   :  { %11362 = vmatpush1.bf16.msra.mxu0 %v17677_v4  ;;  %11217 = vmatprep.subr.bf16.mxu1 %v17682_v9  ;;  %v17745_v4 = vld [vmem:[#allocation25 + $0x70c] ss:$16 sps:$4 sm:$0xff]   ;;  %v17740_v9 = vld [vmem:[#allocation25 + $0x700] ss:$16 sps:$4 sm:$0xff]  }
0x14c7   :  { %11363 = vmatprep.subr.bf16.mxu0 %v17685_v11  ;;  %v17743_v11 = vld [vmem:[#allocation25 + $0x708] ss:$16 sps:$4 sm:$0xff]  }
0x14c9   :  { %11218 = vmatpush1.bf16.msra.mxu1 %v17680_v12  ;;  %v17748_v12 = vld [vmem:[#allocation25 + $0x724] ss:$16 sps:$4 sm:$0xff]  }
0x14ca   :  { %11364 = vmatpush1.bf16.msra.mxu0 %v17683_v37  ;;  %11219 = vmatprep.subr.bf16.mxu1 %v17688_v13  ;;  %v17751_v37 = vld [vmem:[#allocation25 + $0x72c] ss:$16 sps:$4 sm:$0xff]   ;;  %v17746_v13 = vld [vmem:[#allocation25 + $0x720] ss:$16 sps:$4 sm:$0xff]  }
0x14cb   :  { %11365 = vmatprep.subr.bf16.mxu0 %v17691_v33  ;;  %v17749_v33 = vld [vmem:[#allocation25 + $0x728] ss:$16 sps:$4 sm:$0xff]  }
0x14cd   :  { %11220 = vmatpush1.bf16.msra.mxu1 %v17686_v57  ;;  %v17754_v57 = vld [vmem:[#allocation25 + $0x744] ss:$16 sps:$4 sm:$0xff]  }
0x14ce   :  { %11366 = vmatpush1.bf16.msra.mxu0 %v17689_v15  ;;  %11262 = vmatprep.subr.bf16.mxu1 %v17694_v42  ;;  %v17757_v15 = vld [vmem:[#allocation25 + $0x74c] ss:$16 sps:$4 sm:$0xff]   ;;  %v17752_v42 = vld [vmem:[#allocation25 + $0x740] ss:$16 sps:$4 sm:$0xff]  }
0x14cf   :  { %11408 = vmatprep.subr.bf16.mxu0 %v17697_v31  ;;  %v17755_v31 = vld [vmem:[#allocation25 + $0x748] ss:$16 sps:$4 sm:$0xff]  }
0x14d0   :  { %11222 = vmatmul.mubr.bf16.vlgmr.msra.gmra.mrb[132].mxu1 %v20452_v40 }
0x14d1   :  { %11368 = vmatmul.mubr.bf16.vlgmr.msra.gmra.mrb[136].mxu0 %v20452_v40  ;;  %11231 = vmatprep.mubr.bf16.mxu1 %v20476_v36 }
0x14d2   :  { %11263 = vmatpush1.bf16.msra.mxu1 %v17692_v2  ;;  %11377 = vmatprep.mubr.bf16.mxu0 %v20476_v36  ;;  %v17760_v2 = vld [vmem:[#allocation25 + $0x764] ss:$16 sps:$4 sm:$0xff]  }
0x14d3   :  { %11409 = vmatpush1.bf16.msra.mxu0 %v17695_v23  ;;  %11264 = vmatprep.subr.bf16.mxu1 %v17700_v24  ;;  %v17763_v23 = vld [vmem:[#allocation25 + $0x76c] ss:$16 sps:$4 sm:$0xff]   ;;  %v17758_v24 = vld [vmem:[#allocation25 + $0x760] ss:$16 sps:$4 sm:$0xff]  }
0x14d4   :  { %11410 = vmatprep.subr.bf16.mxu0 %v17703_v38  ;;  %v17761_v38 = vld [vmem:[#allocation25 + $0x768] ss:$16 sps:$4 sm:$0xff]  }
0x14d6   :  { %11265 = vmatpush1.bf16.msra.mxu1 %v17698_v16  ;;  %v17766_v16 = vld [vmem:[#allocation25 + $0x784] ss:$16 sps:$4 sm:$0xff]  }
0x14d7   :  { %11411 = vmatpush1.bf16.msra.mxu0 %v17701_v14  ;;  %11266 = vmatprep.subr.bf16.mxu1 %v17706_v55  ;;  %v17769_v14 = vld [vmem:[#allocation25 + $0x78c] ss:$16 sps:$4 sm:$0xff]   ;;  %v17764_v55 = vld [vmem:[#allocation25 + $0x780] ss:$16 sps:$4 sm:$0xff]  }
0x14d8   :  { %11232 = vmatmul.mubr.bf16.gmra.mrb[136].mxu1 %v20472_v41  ;;  %11412 = vmatprep.subr.bf16.mxu0 %v17709_v25  ;;  %v17767_v25 = vld [vmem:[#allocation25 + $0x788] ss:$16 sps:$4 sm:$0xff]  }
0x14d9   :  { %11378 = vmatmul.mubr.bf16.gmra.mrb[140].mxu0 %v20472_v41  ;;  %11241 = vmatprep.mubr.bf16.mxu1 %v20496_v7 }
0x14da   :  { %11267 = vmatpush1.bf16.msra.mxu1 %v17704_v22  ;;  %11387 = vmatprep.mubr.bf16.mxu0 %v20496_v7  ;;  %v17772_v22 = vld [vmem:[#allocation25 + $0x7a4] ss:$16 sps:$4 sm:$0xff]  }
0x14db   :  { %11413 = vmatpush1.bf16.msra.mxu0 %v17707_v32  ;;  %11268 = vmatprep.subr.bf16.mxu1 %v17712_v34  ;;  %v17775_v32 = vld [vmem:[#allocation25 + $0x7ac] ss:$16 sps:$4 sm:$0xff]   ;;  %v17770_v34 = vld [vmem:[#allocation25 + $0x7a0] ss:$16 sps:$4 sm:$0xff]  }
0x14dc   :  { %11414 = vmatprep.subr.bf16.mxu0 %v17715_v39  ;;  %v17773_v39 = vld [vmem:[#allocation25 + $0x7a8] ss:$16 sps:$4 sm:$0xff]  }
0x14de   :  { %11269 = vmatpush1.bf16.msra.mxu1 %v17710_v43  ;;  %v17778_v43 = vld [vmem:[#allocation25 + $0x7c4] ss:$16 sps:$4 sm:$0xff]  }
0x14df   :  { %11415 = vmatpush1.bf16.msra.mxu0 %v17713_v27  ;;  %11270 = vmatprep.subr.bf16.mxu1 %v17718_v3  ;;  %v17781_v27 = vld [vmem:[#allocation25 + $0x7cc] ss:$16 sps:$4 sm:$0xff]   ;;  %v17776_v3 = vld [vmem:[#allocation25 + $0x7c0] ss:$16 sps:$4 sm:$0xff]  }
0x14e0   :  { %11242 = vmatmul.mubr.bf16.gmra.mrb[140].mxu1 %v20492_v5  ;;  %11416 = vmatprep.subr.bf16.mxu0 %v17721_v29  ;;  %v17779_v29 = vld [vmem:[#allocation25 + $0x7c8] ss:$16 sps:$4 sm:$0xff]  }
0x14e1   :  { %11388 = vmatmul.mubr.bf16.gmra.mrb[144].mxu0 %v20492_v5  ;;  %11251 = vmatprep.mubr.bf16.mxu1 %v20516_v44 }
0x14e2   :  { %11271 = vmatpush1.bf16.msra.mxu1 %v17716_v30  ;;  %11397 = vmatprep.mubr.bf16.mxu0 %v20516_v44  ;;  %v17784_v30 = vld [vmem:[#allocation25 + $0x7e4] ss:$16 sps:$4 sm:$0xff]  }
0x14e3   :  { %11417 = vmatpush1.bf16.msra.mxu0 %v17719_v46  ;;  %11272 = vmatprep.subr.bf16.mxu1 %v17724_v47  ;;  %v17787_v46 = vld [vmem:[#allocation25 + $0x7ec] ss:$16 sps:$4 sm:$0xff]   ;;  %v17782_v47 = vld [vmem:[#allocation25 + $0x7e0] ss:$16 sps:$4 sm:$0xff]  }
0x14e4   :  { %11418 = vmatprep.subr.bf16.mxu0 %v17727_v10  ;;  %v17785_v10 = vld [vmem:[#allocation25 + $0x7e8] ss:$16 sps:$4 sm:$0xff]  }
0x14e6   :  { %11273 = vmatpush1.bf16.msra.mxu1 %v17722_v48  ;;  %v17790_v48 = vld [vmem:[#allocation25 + $0x4] ss:$16 sps:$4 sm:$0xff]  }
0x14e7   :  { %11419 = vmatpush1.bf16.msra.mxu0 %v17725_v49  ;;  %11274 = vmatprep.subr.bf16.mxu1 %v17730_v17  ;;  %v17793_v49 = vld [vmem:[#allocation25 + $0xc] ss:$16 sps:$4 sm:$0xff]   ;;  %v17788_v17 = vld [vmem:[#allocation25] ss:$16 sps:$4 sm:$0xff]  }
0x14e8   :  { %11252 = vmatmul.mubr.bf16.gmra.mrb[144].mxu1 %v20512_v61  ;;  %11420 = vmatprep.subr.bf16.mxu0 %v17733_v50  ;;  %v17791_v50 = vld [vmem:[#allocation25 + $0x8] ss:$16 sps:$4 sm:$0xff]  }
0x14e9   :  { %11398 = vmatmul.mubr.bf16.gmra.mrb[148].mxu0 %v20512_v61  ;;  %11294 = vmatprep.mubr.bf16.mxu1 %v20458_v60 }
0x14ea   :  { %11275 = vmatpush1.bf16.msra.mxu1 %v17728_v53  ;;  %11440 = vmatprep.mubr.bf16.mxu0 %v20458_v60  ;;  %v17796_v53 = vld [vmem:[#allocation25 + $0x24] ss:$16 sps:$4 sm:$0xff]  }
0x14eb   :  { %11421 = vmatpush1.bf16.msra.mxu0 %v17731_v54  ;;  %11276 = vmatprep.subr.bf16.mxu1 %v17736_v56  ;;  %v17799_v54 = vld [vmem:[#allocation25 + $0x2c] ss:$16 sps:$4 sm:$0xff]   ;;  %v17794_v56 = vld [vmem:[#allocation25 + $0x20] ss:$16 sps:$4 sm:$0xff]  }
0x14ec   :  { %11422 = vmatprep.subr.bf16.mxu0 %v17739_v58  ;;  %v17797_v58 = vld [vmem:[#allocation25 + $0x28] ss:$16 sps:$4 sm:$0xff]  }
0x14ee   :  { %11277 = vmatpush1.bf16.msra.mxu1 %v17734_v59  ;;  %v17802_v59 = vld [vmem:[#allocation25 + $0x44] ss:$16 sps:$4 sm:$0xff]  }
0x14ef   :  { %11423 = vmatpush1.bf16.msra.mxu0 %v17737_v63  ;;  %11278 = vmatprep.subr.bf16.mxu1 %v17742_v52  ;;  %v17805_v63 = vld [vmem:[#allocation25 + $0x4c] ss:$16 sps:$4 sm:$0xff]   ;;  %v17800_v52 = vld [vmem:[#allocation25 + $0x40] ss:$16 sps:$4 sm:$0xff]  }
0x14f0   :  { %11424 = vmatprep.subr.bf16.mxu0 %v17745_v4  ;;  %v17803_v4 = vld [vmem:[#allocation25 + $0x48] ss:$16 sps:$4 sm:$0xff]  }
0x14f2   :  { %11279 = vmatpush1.bf16.msra.mxu1 %v17740_v9  ;;  %v17808_v9 = vld [vmem:[#allocation25 + $0x64] ss:$16 sps:$4 sm:$0xff]  }
0x14f3   :  { %11425 = vmatpush1.bf16.msra.mxu0 %v17743_v11  ;;  %11280 = vmatprep.subr.bf16.mxu1 %v17748_v12  ;;  %v17811_v11 = vld [vmem:[#allocation25 + $0x6c] ss:$16 sps:$4 sm:$0xff]   ;;  %v17806_v12 = vld [vmem:[#allocation25 + $0x60] ss:$16 sps:$4 sm:$0xff]  }
0x14f4   :  { %11426 = vmatprep.subr.bf16.mxu0 %v17751_v37  ;;  %v17809_v37 = vld [vmem:[#allocation25 + $0x68] ss:$16 sps:$4 sm:$0xff]  }
0x14f6   :  { %11281 = vmatpush1.bf16.msra.mxu1 %v17746_v13  ;;  %v17814_v13 = vld [vmem:[#allocation25 + $0x84] ss:$16 sps:$4 sm:$0xff]  }
0x14f7   :  { %11427 = vmatpush1.bf16.msra.mxu0 %v17749_v33  ;;  %11282 = vmatprep.subr.bf16.mxu1 %v17754_v57  ;;  %v17817_v33 = vld [vmem:[#allocation25 + $0x8c] ss:$16 sps:$4 sm:$0xff]   ;;  %v17812_v57 = vld [vmem:[#allocation25 + $0x80] ss:$16 sps:$4 sm:$0xff]  }
0x14f8   :  { %11428 = vmatprep.subr.bf16.mxu0 %v17757_v15  ;;  %v17815_v15 = vld [vmem:[#allocation25 + $0x88] ss:$16 sps:$4 sm:$0xff]  }
0x14fa   :  { %11283 = vmatpush1.bf16.msra.mxu1 %v17752_v42  ;;  %v17820_v42 = vld [vmem:[#allocation25 + $0xa4] ss:$16 sps:$4 sm:$0xff]  }
0x14fb   :  { %11429 = vmatpush1.bf16.msra.mxu0 %v17755_v31  ;;  %11284 = vmatprep.subr.bf16.mxu1 %v17760_v2  ;;  %v17823_v31 = vld [vmem:[#allocation25 + $0xac] ss:$16 sps:$4 sm:$0xff]   ;;  %v17818_v2 = vld [vmem:[#allocation25 + $0xa0] ss:$16 sps:$4 sm:$0xff]  }
0x14fc   :  { %11430 = vmatprep.subr.bf16.mxu0 %v17763_v23  ;;  %v17821_v23 = vld [vmem:[#allocation25 + $0xa8] ss:$16 sps:$4 sm:$0xff]  }
0x14fe   :  { %11285 = vmatpush1.bf16.msra.mxu1 %v17758_v24  ;;  %v17826_v24 = vld [vmem:[#allocation25 + $0xc4] ss:$16 sps:$4 sm:$0xff]  }
0x14ff   :  { %11431 = vmatpush1.bf16.msra.mxu0 %v17761_v38  ;;  %11286 = vmatprep.subr.bf16.mxu1 %v17766_v16  ;;  %v17829_v38 = vld [vmem:[#allocation25 + $0xcc] ss:$16 sps:$4 sm:$0xff]   ;;  %v17824_v16 = vld [vmem:[#allocation25 + $0xc0] ss:$16 sps:$4 sm:$0xff]  }
0x1500   :  { %11432 = vmatprep.subr.bf16.mxu0 %v17769_v14  ;;  %v17827_v14 = vld [vmem:[#allocation25 + $0xc8] ss:$16 sps:$4 sm:$0xff]  }
0x1502   :  { %11287 = vmatpush1.bf16.msra.mxu1 %v17764_v55  ;;  %v17832_v55 = vld [vmem:[#allocation25 + $0xe4] ss:$16 sps:$4 sm:$0xff]  }
0x1503   :  { %11433 = vmatpush1.bf16.msra.mxu0 %v17767_v25  ;;  %11288 = vmatprep.subr.bf16.mxu1 %v17772_v22  ;;  %v17835_v25 = vld [vmem:[#allocation25 + $0xec] ss:$16 sps:$4 sm:$0xff]   ;;  %v17830_v22 = vld [vmem:[#allocation25 + $0xe0] ss:$16 sps:$4 sm:$0xff]  }
0x1504   :  { %11434 = vmatprep.subr.bf16.mxu0 %v17775_v32  ;;  %v17833_v32 = vld [vmem:[#allocation25 + $0xe8] ss:$16 sps:$4 sm:$0xff]  }
0x1506   :  { %11289 = vmatpush1.bf16.msra.mxu1 %v17770_v34  ;;  %v17838_v34 = vld [vmem:[#allocation25 + $0x104] ss:$16 sps:$4 sm:$0xff]  }
0x1507   :  { %11435 = vmatpush1.bf16.msra.mxu0 %v17773_v39  ;;  %11290 = vmatprep.subr.bf16.mxu1 %v17778_v43  ;;  %v17841_v39 = vld [vmem:[#allocation25 + $0x10c] ss:$16 sps:$4 sm:$0xff]   ;;  %v17836_v43 = vld [vmem:[#allocation25 + $0x100] ss:$16 sps:$4 sm:$0xff]  }
0x1508   :  { %11436 = vmatprep.subr.bf16.mxu0 %v17781_v27  ;;  %v17839_v27 = vld [vmem:[#allocation25 + $0x108] ss:$16 sps:$4 sm:$0xff]  }
0x150a   :  { %11291 = vmatpush1.bf16.msra.mxu1 %v17776_v3  ;;  %v17844_v3 = vld [vmem:[#allocation25 + $0x124] ss:$16 sps:$4 sm:$0xff]  }
0x150b   :  { %11437 = vmatpush1.bf16.msra.mxu0 %v17779_v29  ;;  %11292 = vmatprep.subr.bf16.mxu1 %v17784_v30  ;;  %v17847_v29 = vld [vmem:[#allocation25 + $0x12c] ss:$16 sps:$4 sm:$0xff]   ;;  %v17842_v30 = vld [vmem:[#allocation25 + $0x120] ss:$16 sps:$4 sm:$0xff]  }
0x150c   :  { %11438 = vmatprep.subr.bf16.mxu0 %v17787_v46  ;;  %v17845_v46 = vld [vmem:[#allocation25 + $0x128] ss:$16 sps:$4 sm:$0xff]  }
0x150e   :  { %11293 = vmatpush1.bf16.msra.mxu1 %v17782_v47  ;;  %v17850_v47 = vld [vmem:[#allocation25 + $0x144] ss:$16 sps:$4 sm:$0xff]  }
0x150f   :  { %11439 = vmatpush1.bf16.msra.mxu0 %v17785_v10  ;;  %12121 = vmatprep.subr.bf16.mxu1 %v17790_v48  ;;  %v17853_v10 = vld [vmem:[#allocation25 + $0x14c] ss:$16 sps:$4 sm:$0xff]   ;;  %v17848_v48 = vld [vmem:[#allocation25 + $0x140] ss:$16 sps:$4 sm:$0xff]  }
0x1510   :  { %12267 = vmatprep.subr.bf16.mxu0 %v17793_v49  ;;  %v17851_v49 = vld [vmem:[#allocation25 + $0x148] ss:$16 sps:$4 sm:$0xff]  }
0x1511   :  { %11295 = vmatmul.mubr.bf16.vlgmr.msra.gmra.mrb[132].mxu1 %v20454_v51 }
0x1512   :  { %11441 = vmatmul.mubr.bf16.vlgmr.msra.gmra.mrb[136].mxu0 %v20454_v51  ;;  %11304 = vmatprep.mubr.bf16.mxu1 %v20478_v20 }
0x1513   :  { %11450 = vmatprep.mubr.bf16.mxu0 %v20478_v20  ;;  %12122 = vmatpush1.bf16.msra.mxu1 %v17788_v17  ;;  %v17856_v17 = vld [vmem:[#allocation25 + $0x164] ss:$16 sps:$4 sm:$0xff]  }
0x1514   :  { %12268 = vmatpush1.bf16.msra.mxu0 %v17791_v50  ;;  %12123 = vmatprep.subr.bf16.mxu1 %v17796_v53  ;;  %v17859_v50 = vld [vmem:[#allocation25 + $0x16c] ss:$16 sps:$4 sm:$0xff]   ;;  %v17854_v53 = vld [vmem:[#allocation25 + $0x160] ss:$16 sps:$4 sm:$0xff]  }
0x1515   :  { %12269 = vmatprep.subr.bf16.mxu0 %v17799_v54  ;;  %v17857_v54 = vld [vmem:[#allocation25 + $0x168] ss:$16 sps:$4 sm:$0xff]  }
0x1517   :  { %12124 = vmatpush1.bf16.msra.mxu1 %v17794_v56  ;;  %v17862_v56 = vld [vmem:[#allocation25 + $0x184] ss:$16 sps:$4 sm:$0xff]  }
0x1518   :  { %12270 = vmatpush1.bf16.msra.mxu0 %v17797_v58  ;;  %12125 = vmatprep.subr.bf16.mxu1 %v17802_v59  ;;  %v17865_v58 = vld [vmem:[#allocation25 + $0x18c] ss:$16 sps:$4 sm:$0xff]   ;;  %v17860_v59 = vld [vmem:[#allocation25 + $0x180] ss:$16 sps:$4 sm:$0xff]  }
0x1519   :  { %11305 = vmatmul.mubr.bf16.gmra.mrb[136].mxu1 %v20474_v35  ;;  %12271 = vmatprep.subr.bf16.mxu0 %v17805_v63  ;;  %v17863_v63 = vld [vmem:[#allocation25 + $0x188] ss:$16 sps:$4 sm:$0xff]  }
0x151a   :  { %11451 = vmatmul.mubr.bf16.gmra.mrb[140].mxu0 %v20474_v35  ;;  %11314 = vmatprep.mubr.bf16.mxu1 %v20498_v8 }
0x151b   :  { %11460 = vmatprep.mubr.bf16.mxu0 %v20498_v8  ;;  %12126 = vmatpush1.bf16.msra.mxu1 %v17800_v52  ;;  %v17868_v52 = vld [vmem:[#allocation25 + $0x1a4] ss:$16 sps:$4 sm:$0xff]  }
0x151c   :  { %12272 = vmatpush1.bf16.msra.mxu0 %v17803_v4  ;;  %12127 = vmatprep.subr.bf16.mxu1 %v17808_v9  ;;  %v17871_v4 = vld [vmem:[#allocation25 + $0x1ac] ss:$16 sps:$4 sm:$0xff]   ;;  %v17866_v9 = vld [vmem:[#allocation25 + $0x1a0] ss:$16 sps:$4 sm:$0xff]  }
0x151d   :  { %12273 = vmatprep.subr.bf16.mxu0 %v17811_v11  ;;  %v17869_v11 = vld [vmem:[#allocation25 + $0x1a8] ss:$16 sps:$4 sm:$0xff]  }
0x151f   :  { %12128 = vmatpush1.bf16.msra.mxu1 %v17806_v12  ;;  %v17874_v12 = vld [vmem:[#allocation25 + $0x1c4] ss:$16 sps:$4 sm:$0xff]  }
0x1520   :  { %12274 = vmatpush1.bf16.msra.mxu0 %v17809_v37  ;;  %12129 = vmatprep.subr.bf16.mxu1 %v17814_v13  ;;  %v17877_v37 = vld [vmem:[#allocation25 + $0x1cc] ss:$16 sps:$4 sm:$0xff]   ;;  %v17872_v13 = vld [vmem:[#allocation25 + $0x1c0] ss:$16 sps:$4 sm:$0xff]  }
0x1521   :  { %11315 = vmatmul.mubr.bf16.gmra.mrb[140].mxu1 %v20494_v6  ;;  %12275 = vmatprep.subr.bf16.mxu0 %v17817_v33  ;;  %v17875_v33 = vld [vmem:[#allocation25 + $0x1c8] ss:$16 sps:$4 sm:$0xff]  }
0x1522   :  { %11461 = vmatmul.mubr.bf16.gmra.mrb[144].mxu0 %v20494_v6  ;;  %11324 = vmatprep.mubr.bf16.mxu1 %v20518_v45 }
0x1523   :  { %11470 = vmatprep.mubr.bf16.mxu0 %v20518_v45  ;;  %12130 = vmatpush1.bf16.msra.mxu1 %v17812_v57  ;;  %v17880_v57 = vld [vmem:[#allocation25 + $0x1e4] ss:$16 sps:$4 sm:$0xff]  }
0x1524   :  { %12276 = vmatpush1.bf16.msra.mxu0 %v17815_v15  ;;  %12131 = vmatprep.subr.bf16.mxu1 %v17820_v42  ;;  %v17883_v15 = vld [vmem:[#allocation25 + $0x1ec] ss:$16 sps:$4 sm:$0xff]   ;;  %v17878_v42 = vld [vmem:[#allocation25 + $0x1e0] ss:$16 sps:$4 sm:$0xff]  }
0x1525   :  { %12277 = vmatprep.subr.bf16.mxu0 %v17823_v31  ;;  %v17881_v31 = vld [vmem:[#allocation25 + $0x1e8] ss:$16 sps:$4 sm:$0xff]  }
0x1527   :  { %12132 = vmatpush1.bf16.msra.mxu1 %v17818_v2  ;;  %v17886_v2 = vld [vmem:[#allocation25 + $0x204] ss:$16 sps:$4 sm:$0xff]  }
0x1528   :  { %12278 = vmatpush1.bf16.msra.mxu0 %v17821_v23  ;;  %12133 = vmatprep.subr.bf16.mxu1 %v17826_v24  ;;  %v17889_v23 = vld [vmem:[#allocation25 + $0x20c] ss:$16 sps:$4 sm:$0xff]  }
0x1529   :  { %11325 = vmatmul.mubr.bf16.gmra.mrb[144].mxu1 %v20514_v28  ;;  %12279 = vmatprep.subr.bf16.mxu0 %v17829_v38 }
0x152a   :  { %11471 = vmatmul.mubr.bf16.gmra.mrb[148].mxu0 %v20514_v28 }
0x152b   :  { %12134 = vmatpush1.bf16.msra.mxu1 %v17824_v16 }
0x152c   :  { %12280 = vmatpush1.bf16.msra.mxu0 %v17827_v14  ;;  %12135 = vmatprep.subr.bf16.mxu1 %v17832_v55 }
0x152d   :  { %12281 = vmatprep.subr.bf16.mxu0 %v17835_v25 }
0x152f   :  { %12136 = vmatpush1.bf16.msra.mxu1 %v17830_v22 }
0x1530   :  { %12282 = vmatpush1.bf16.msra.mxu0 %v17833_v32  ;;  %12137 = vmatprep.subr.bf16.mxu1 %v17838_v34 }
0x1531   :  { %12283 = vmatprep.subr.bf16.mxu0 %v17841_v39 }
0x1533   :  { %12138 = vmatpush1.bf16.msra.mxu1 %v17836_v43 }
0x1534   :  { %12284 = vmatpush1.bf16.msra.mxu0 %v17839_v27  ;;  %12139 = vmatprep.subr.bf16.mxu1 %v17844_v3  ;;  %v17884_v27 = vld [vmem:[#allocation25 + $0x200] ss:$16 sps:$4 sm:$0xff]   ;;  %v17887_v3 = vld [vmem:[#allocation25 + $0x208] ss:$16 sps:$4 sm:$0xff]  }
0x1535   :  { %12285 = vmatprep.subr.bf16.mxu0 %v17847_v29 }
0x1537   :  { %12140 = vmatpush1.bf16.msra.mxu1 %v17842_v30  ;;  %v17892_v30 = vld [vmem:[#allocation25 + $0x224] ss:$16 sps:$4 sm:$0xff]  }
0x1538   :  { %12286 = vmatpush1.bf16.msra.mxu0 %v17845_v46  ;;  %12141 = vmatprep.subr.bf16.mxu1 %v17850_v47  ;;  %v17895_v46 = vld [vmem:[#allocation25 + $0x22c] ss:$16 sps:$4 sm:$0xff]   ;;  %v17890_v47 = vld [vmem:[#allocation25 + $0x220] ss:$16 sps:$4 sm:$0xff]  }
0x1539   :  { %12287 = vmatprep.subr.bf16.mxu0 %v17853_v10  ;;  %v17893_v10 = vld [vmem:[#allocation25 + $0x228] ss:$16 sps:$4 sm:$0xff]  }
0x153b   :  { %12142 = vmatpush1.bf16.msra.mxu1 %v17848_v48 }
0x153c   :  { %12288 = vmatpush1.bf16.msra.mxu0 %v17851_v49  ;;  %12143 = vmatprep.subr.bf16.mxu1 %v17856_v17  ;;  %v17898_v17 = vld [vmem:[#allocation25 + $0x244] ss:$16 sps:$4 sm:$0xff]  }
0x153d   :  { %12289 = vmatprep.subr.bf16.mxu0 %v17859_v50  ;;  %v17901_v50 = vld [vmem:[#allocation25 + $0x24c] ss:$16 sps:$4 sm:$0xff]  }
0x153f   :  { %12144 = vmatpush1.bf16.msra.mxu1 %v17854_v53 }
0x1540   :  { %12290 = vmatpush1.bf16.msra.mxu0 %v17857_v54  ;;  %12145 = vmatprep.subr.bf16.mxu1 %v17862_v56 }
0x1541   :  { %12291 = vmatprep.subr.bf16.mxu0 %v17865_v58 }
0x1543   :  { %12146 = vmatpush1.bf16.msra.mxu1 %v17860_v59 }
0x1544   :  { %12292 = vmatpush1.bf16.msra.mxu0 %v17863_v63  ;;  %12147 = vmatprep.subr.bf16.mxu1 %v17868_v52 }
0x1545   :  { %12293 = vmatprep.subr.bf16.mxu0 %v17871_v4 }
0x1547   :  { %12148 = vmatpush1.bf16.msra.mxu1 %v17866_v9  ;;  %v17896_v9 = vld [vmem:[#allocation25 + $0x240] ss:$16 sps:$4 sm:$0xff]  }
0x1548   :  { %12294 = vmatpush1.bf16.msra.mxu0 %v17869_v11  ;;  %12149 = vmatprep.subr.bf16.mxu1 %v17874_v12  ;;  %v17899_v11 = vld [vmem:[#allocation25 + $0x248] ss:$16 sps:$4 sm:$0xff]  }
0x1549   :  { %12295 = vmatprep.subr.bf16.mxu0 %v17877_v37 }
0x154b   :  { %12150 = vmatpush1.bf16.msra.mxu1 %v17872_v13  ;;  %v17904_v13 = vld [vmem:[#allocation25 + $0x264] ss:$16 sps:$4 sm:$0xff]  }
0x154c   :  { %12296 = vmatpush1.bf16.msra.mxu0 %v17875_v33  ;;  %12151 = vmatprep.subr.bf16.mxu1 %v17880_v57  ;;  %v17907_v33 = vld [vmem:[#allocation25 + $0x26c] ss:$16 sps:$4 sm:$0xff]   ;;  %v17902_v57 = vld [vmem:[#allocation25 + $0x260] ss:$16 sps:$4 sm:$0xff]  }
0x154d   :  { %12297 = vmatprep.subr.bf16.mxu0 %v17883_v15  ;;  %v17905_v15 = vld [vmem:[#allocation25 + $0x268] ss:$16 sps:$4 sm:$0xff]  }
0x154f   :  { %12152 = vmatpush1.bf16.msra.mxu1 %v17878_v42 }
0x1550   :  { %12298 = vmatpush1.bf16.msra.mxu0 %v17881_v31  ;;  %12194 = vmatprep.subr.bf16.mxu1 %v17886_v2  ;;  %v17910_v2 = vld [vmem:[#allocation25 + $0x284] ss:$16 sps:$4 sm:$0xff]  }
0x1551   :  { %12340 = vmatprep.subr.bf16.mxu0 %v17889_v23  ;;  %v17913_v23 = vld [vmem:[#allocation25 + $0x28c] ss:$16 sps:$4 sm:$0xff]  }
0x1563   :  { %v10164_v24 = vpop.f32.mrb[116].mxu1  ;;  %v10237_v38 = vpop.f32.mrb[120].mxu0 }
0x1564   :  { %v10166_v16 = vpop.f32.mrb[117].mxu1  ;;  %v10239_v14 = vpop.f32.mrb[121].mxu0 }
0x1565   :  { %v10168_v55 = vpop.f32.mrb[118].mxu1  ;;  %v10241_v25 = vpop.f32.mrb[122].mxu0 }
0x1566   :  { %v10276_v22 = vpack.c.bf16 %v10168_v55, %v10164_v24  ;;  %v10170_v32 = vpop.f32.mrb[119].mxu1  ;;  %v20570_v34 = vpack.c.bf16 %v10241_v25, %v10237_v38  ;;  %v10243_v39 = vpop.f32.mrb[123].mxu0 }
0x1567   :  { %v10277_v43 = vpack.c.bf16 %v10170_v32, %v10166_v16  ;;  %v20572_v29 = vpack.c.bf16 %v10243_v39, %v10239_v14  ;;  %v17908_v39 = vld [vmem:[#allocation25 + $0x280] ss:$16 sps:$4 sm:$0xff]  }
0x1569   :  { %12153 = vmatprep.mubr.bf16.mxu1 %v10277_v43  ;;  %12299 = vmatprep.mubr.bf16.mxu0 %v10277_v43  ;;  %v17911_v43 = vld [vmem:[#allocation25 + $0x288] ss:$16 sps:$4 sm:$0xff]  }
0x156a   :  { %12154 = vmatmul.mubr.bf16.vlgmr.msra.gmra.mrb[132].mxu1 %v10276_v22  ;;  %12300 = vmatmul.mubr.bf16.vlgmr.msra.gmra.mrb[136].mxu0 %v10276_v22 }
0x156b   :  { %12195 = vmatpush1.bf16.msra.mxu1 %v17884_v27  ;;  %12341 = vmatpush1.bf16.msra.mxu0 %v17887_v3  ;;  %v10174_v48 = vpop.f32.mrb[120].mxu1  ;;  %v10247_v49 = vpop.f32.mrb[124].mxu0 }
0x156c   :  { %12196 = vmatprep.subr.bf16.mxu1 %v17892_v30  ;;  %12342 = vmatprep.subr.bf16.mxu0 %v17895_v46  ;;  %v10176_v53 = vpop.f32.mrb[121].mxu1  ;;  %v10249_v54 = vpop.f32.mrb[125].mxu0  ;;  %v17916_v30 = vld [vmem:[#allocation25 + $0x2a4] ss:$16 sps:$4 sm:$0xff]   ;;  %v17919_v46 = vld [vmem:[#allocation25 + $0x2ac] ss:$16 sps:$4 sm:$0xff]  }
0x156d   :  { %v10178_v56 = vpop.f32.mrb[122].mxu1  ;;  %v10251_v58 = vpop.f32.mrb[126].mxu0 }
0x156e   :  { %v10280_v59 = vpack.c.bf16 %v10178_v56, %v10174_v48  ;;  %v10180_v63 = vpop.f32.mrb[123].mxu1  ;;  %v20574_v52 = vpack.c.bf16 %v10251_v58, %v10247_v49  ;;  %v10253_v4 = vpop.f32.mrb[127].mxu0 }
0x156f   :  { %12197 = vmatpush1.bf16.msra.mxu1 %v17890_v47  ;;  %12343 = vmatpush1.bf16.msra.mxu0 %v17893_v10  ;;  %v10281_v12 = vpack.c.bf16 %v10180_v63, %v10176_v53  ;;  %v20576_v37 = vpack.c.bf16 %v10253_v4, %v10249_v54  ;;  %v17914_v47 = vld [vmem:[#allocation25 + $0x2a0] ss:$16 sps:$4 sm:$0xff]   ;;  %v17917_v10 = vld [vmem:[#allocation25 + $0x2a8] ss:$16 sps:$4 sm:$0xff]  }
0x1570   :  { %12198 = vmatprep.subr.bf16.mxu1 %v17898_v17  ;;  %12344 = vmatprep.subr.bf16.mxu0 %v17901_v50  ;;  %v17922_v17 = vld [vmem:[#allocation25 + $0x2c4] ss:$16 sps:$4 sm:$0xff]   ;;  %v17925_v50 = vld [vmem:[#allocation25 + $0x2cc] ss:$16 sps:$4 sm:$0xff]  }
0x1571   :  { %12163 = vmatprep.mubr.bf16.mxu1 %v10281_v12  ;;  %12309 = vmatprep.mubr.bf16.mxu0 %v10281_v12  ;;  %v17923_v12 = vld [vmem:[#allocation25 + $0x2c8] ss:$16 sps:$4 sm:$0xff]  }
0x1572   :  { %12164 = vmatmul.mubr.bf16.gmra.mrb[136].mxu1 %v10280_v59  ;;  %12310 = vmatmul.mubr.bf16.gmra.mrb[140].mxu0 %v10280_v59 }
0x1573   :  { %12199 = vmatpush1.bf16.msra.mxu1 %v17896_v9  ;;  %12345 = vmatpush1.bf16.msra.mxu0 %v17899_v11  ;;  %v10184_v42 = vpop.f32.mrb[124].mxu1  ;;  %v10257_v31 = vpop.f32.mrb[128].mxu0  ;;  %v17920_v11 = vld [vmem:[#allocation25 + $0x2c0] ss:$16 sps:$4 sm:$0xff]  }
0x1574   :  { %12200 = vmatprep.subr.bf16.mxu1 %v17904_v13  ;;  %12346 = vmatprep.subr.bf16.mxu0 %v17907_v33  ;;  %v10186_v24 = vpop.f32.mrb[125].mxu1  ;;  %v10259_v38 = vpop.f32.mrb[129].mxu0 }
0x1575   :  { %v10188_v16 = vpop.f32.mrb[126].mxu1  ;;  %v10261_v14 = vpop.f32.mrb[130].mxu0 }
0x1576   :  { %v10284_v55 = vpack.c.bf16 %v10188_v16, %v10184_v42  ;;  %v10190_v25 = vpop.f32.mrb[127].mxu1  ;;  %v20578_v22 = vpack.c.bf16 %v10261_v14, %v10257_v31  ;;  %v10263_v32 = vpop.f32.mrb[131].mxu0  ;;  %v17926_v42 = vld [vmem:[#allocation25 + $0x2e0] ss:$16 sps:$4 sm:$0xff]   ;;  %v17929_v31 = vld [vmem:[#allocation25 + $0x2e8] ss:$16 sps:$4 sm:$0xff]  }
0x1577   :  { %12201 = vmatpush1.bf16.msra.mxu1 %v17902_v57  ;;  %12347 = vmatpush1.bf16.msra.mxu0 %v17905_v15  ;;  %v10285_v27 = vpack.c.bf16 %v10190_v25, %v10186_v24  ;;  %v20580_v3 = vpack.c.bf16 %v10263_v32, %v10259_v38  ;;  %v17928_v57 = vld [vmem:[#allocation25 + $0x2e4] ss:$16 sps:$4 sm:$0xff]   ;;  %v17931_v15 = vld [vmem:[#allocation25 + $0x2ec] ss:$16 sps:$4 sm:$0xff]   ;;  %v17932_v24 = vld [vmem:[#allocation25 + $0x300] ss:$16 sps:$4 sm:$0xff]  }
0x1578   :  { %12202 = vmatprep.subr.bf16.mxu1 %v17910_v2  ;;  %12348 = vmatprep.subr.bf16.mxu0 %v17913_v23  ;;  %v17934_v2 = vld [vmem:[#allocation25 + $0x304] ss:$16 sps:$4 sm:$0xff]   ;;  %v17937_v23 = vld [vmem:[#allocation25 + $0x30c] ss:$16 sps:$4 sm:$0xff]   ;;  %v17935_v38 = vld [vmem:[#allocation25 + $0x308] ss:$16 sps:$4 sm:$0xff]  }
0x1579   :  { %12173 = vmatprep.mubr.bf16.mxu1 %v10285_v27  ;;  %12319 = vmatprep.mubr.bf16.mxu0 %v10285_v27  ;;  %v17940_v16 = vld [vmem:[#allocation25 + $0x324] ss:$16 sps:$4 sm:$0xff]   ;;  %v17943_v14 = vld [vmem:[#allocation25 + $0x32c] ss:$16 sps:$4 sm:$0xff]   ;;  %v17941_v25 = vld [vmem:[#allocation25 + $0x328] ss:$16 sps:$4 sm:$0xff]  }
0x157a   :  { %12174 = vmatmul.mubr.bf16.gmra.mrb[140].mxu1 %v10284_v55  ;;  %12320 = vmatmul.mubr.bf16.gmra.mrb[144].mxu0 %v10284_v55  ;;  %v17938_v55 = vld [vmem:[#allocation25 + $0x320] ss:$16 sps:$4 sm:$0xff]   ;;  %v17946_v32 = vld [vmem:[#allocation25 + $0x344] ss:$16 sps:$4 sm:$0xff]  }
0x157b   :  { %12203 = vmatpush1.bf16.msra.mxu1 %v17908_v39  ;;  %12349 = vmatpush1.bf16.msra.mxu0 %v17911_v43  ;;  %v10194_v48 = vpop.f32.mrb[128].mxu1  ;;  %v10267_v49 = vpop.f32.mrb[132].mxu0  ;;  %v17949_v39 = vld [vmem:[#allocation25 + $0x34c] ss:$16 sps:$4 sm:$0xff]   ;;  %v17944_v43 = vld [vmem:[#allocation25 + $0x340] ss:$16 sps:$4 sm:$0xff]  }
0x157c   :  { %12204 = vmatprep.subr.bf16.mxu1 %v17916_v30  ;;  %12350 = vmatprep.subr.bf16.mxu0 %v17919_v46  ;;  %v10196_v53 = vpop.f32.mrb[129].mxu1  ;;  %v10269_v54 = vpop.f32.mrb[133].mxu0  ;;  %v17952_v27 = vld [vmem:[#allocation25 + $0x364] ss:$16 sps:$4 sm:$0xff]   ;;  %v17955_v30 = vld [vmem:[#allocation25 + $0x36c] ss:$16 sps:$4 sm:$0xff]  }
0x157d   :  { %v10198_v56 = vpop.f32.mrb[130].mxu1  ;;  %v10271_v58 = vpop.f32.mrb[134].mxu0  ;;  %v17950_v46 = vld [vmem:[#allocation25 + $0x360] ss:$16 sps:$4 sm:$0xff]  }
0x157e   :  { %v10288_v59 = vpack.c.bf16 %v10198_v56, %v10194_v48  ;;  %v10200_v63 = vpop.f32.mrb[131].mxu1  ;;  %v20582_v4 = vpack.c.bf16 %v10271_v58, %v10267_v49  ;;  %v10273_v9 = vpop.f32.mrb[135].mxu0  ;;  %v17961_v48 = vld [vmem:[#allocation25 + $0x38c] ss:$16 sps:$4 sm:$0xff]   ;;  %v17956_v49 = vld [vmem:[#allocation25 + $0x380] ss:$16 sps:$4 sm:$0xff]  }
0x157f   :  { %12205 = vmatpush1.bf16.msra.mxu1 %v17914_v47  ;;  %12351 = vmatpush1.bf16.msra.mxu0 %v17917_v10  ;;  %v10289_v13 = vpack.c.bf16 %v10200_v63, %v10196_v53  ;;  %v20584_v33 = vpack.c.bf16 %v10273_v9, %v10269_v54  ;;  %v17953_v47 = vld [vmem:[#allocation25 + $0x368] ss:$16 sps:$4 sm:$0xff]   ;;  %v17958_v10 = vld [vmem:[#allocation25 + $0x384] ss:$16 sps:$4 sm:$0xff]   ;;  %v17967_v53 = vld [vmem:[#allocation25 + $0x3ac] ss:$16 sps:$4 sm:$0xff]  }
0x1580   :  { %12206 = vmatprep.subr.bf16.mxu1 %v17922_v17  ;;  %12352 = vmatprep.subr.bf16.mxu0 %v17925_v50  ;;  %v17959_v17 = vld [vmem:[#allocation25 + $0x388] ss:$16 sps:$4 sm:$0xff]   ;;  %v17964_v50 = vld [vmem:[#allocation25 + $0x3a4] ss:$16 sps:$4 sm:$0xff]   ;;  %v17962_v54 = vld [vmem:[#allocation25 + $0x3a0] ss:$16 sps:$4 sm:$0xff]  }
0x1581   :  { %12183 = vmatprep.mubr.bf16.mxu1 %v10289_v13  ;;  %12329 = vmatprep.mubr.bf16.mxu0 %v10289_v13  ;;  %v17965_v56 = vld [vmem:[#allocation25 + $0x3a8] ss:$16 sps:$4 sm:$0xff]   ;;  %v17970_v58 = vld [vmem:[#allocation25 + $0x3c4] ss:$16 sps:$4 sm:$0xff]   ;;  %v17968_v63 = vld [vmem:[#allocation25 + $0x3c0] ss:$16 sps:$4 sm:$0xff]  }
0x1582   :  { %12184 = vmatmul.mubr.bf16.gmra.mrb[144].mxu1 %v10288_v59  ;;  %12330 = vmatmul.mubr.bf16.gmra.mrb[148].mxu0 %v10288_v59  ;;  %v17973_v59 = vld [vmem:[#allocation25 + $0x3cc] ss:$16 sps:$4 sm:$0xff]   ;;  %v17971_v9 = vld [vmem:[#allocation25 + $0x3c8] ss:$16 sps:$4 sm:$0xff]   ;;  %v17974_v13 = vld [vmem:[#allocation25 + $0x3e0] ss:$16 sps:$4 sm:$0xff]  }
0x1583   :  { %12207 = vmatpush1.bf16.msra.mxu1 %v17920_v11  ;;  %12353 = vmatpush1.bf16.msra.mxu0 %v17923_v12  ;;  %v17976_v11 = vld [vmem:[#allocation25 + $0x3e4] ss:$16 sps:$4 sm:$0xff]   ;;  %v17979_v12 = vld [vmem:[#allocation25 + $0x3ec] ss:$16 sps:$4 sm:$0xff]  }
0x1584   :  { %12208 = vmatprep.subr.bf16.mxu1 %v17928_v57  ;;  %12354 = vmatprep.subr.bf16.mxu0 %v17931_v15  ;;  %v17977_v57 = vld [vmem:[#allocation25 + $0x3e8] ss:$16 sps:$4 sm:$0xff]   ;;  %v18015_v15 = vld [vmem:[#allocation25 + $0x8ac] ss:$16 sps:$4 sm:$0xff]  }
0x1585   :  { %12226 = vmatprep.mubr.bf16.mxu1 %v20572_v29  ;;  %12372 = vmatprep.mubr.bf16.mxu0 %v20572_v29  ;;  %v17947_v29 = vld [vmem:[#allocation25 + $0x348] ss:$16 sps:$4 sm:$0xff]  }
0x1587   :  { %12209 = vmatpush1.bf16.msra.mxu1 %v17926_v42  ;;  %12355 = vmatpush1.bf16.msra.mxu0 %v17929_v31  ;;  %v18179_v42 = vld [vmem:[#allocation22 + $0x50] sm:$0xff]  }
0x1588   :  { %12210 = vmatprep.subr.bf16.mxu1 %v17934_v2  ;;  %12356 = vmatprep.subr.bf16.mxu0 %v17937_v23  ;;  %v18010_v31 = vld [vmem:[#allocation25 + $0x8a0] ss:$16 sps:$4 sm:$0xff]   ;;  %v18013_v2 = vld [vmem:[#allocation25 + $0x8a8] ss:$16 sps:$4 sm:$0xff]   ;;  %v18018_v23 = vld [vmem:[#allocation25 + $0x8c4] ss:$16 sps:$4 sm:$0xff]  }
0x158b   :  { %12211 = vmatpush1.bf16.msra.mxu1 %v17932_v24  ;;  %12357 = vmatpush1.bf16.msra.mxu0 %v17935_v38  ;;  %v18021_v24 = vld [vmem:[#allocation25 + $0x8cc] ss:$16 sps:$4 sm:$0xff]   ;;  %v18016_v38 = vld [vmem:[#allocation25 + $0x8c0] ss:$16 sps:$4 sm:$0xff]  }
0x158c   :  { %12212 = vmatprep.subr.bf16.mxu1 %v17940_v16  ;;  %12358 = vmatprep.subr.bf16.mxu0 %v17943_v14  ;;  %v18019_v16 = vld [vmem:[#allocation25 + $0x8c8] ss:$16 sps:$4 sm:$0xff]   ;;  %v18024_v14 = vld [vmem:[#allocation25 + $0x8e4] ss:$16 sps:$4 sm:$0xff]  }
0x158f   :  { %12213 = vmatpush1.bf16.msra.mxu1 %v17938_v55  ;;  %12359 = vmatpush1.bf16.msra.mxu0 %v17941_v25  ;;  %v18027_v55 = vld [vmem:[#allocation25 + $0x8ec] ss:$16 sps:$4 sm:$0xff]  }
0x1590   :  { %12214 = vmatprep.subr.bf16.mxu1 %v17946_v32  ;;  %12360 = vmatprep.subr.bf16.mxu0 %v17949_v39  ;;  %v18180_v25 = vld [vmem:[#allocation22 + $0x58] sm:$0xff]   ;;  %v18030_v39 = vld [vmem:[#allocation25 + $0x904] ss:$16 sps:$4 sm:$0xff]  }
0x1591   :  { %v18025_v32 = vld [vmem:[#allocation25 + $0x8e8] ss:$16 sps:$4 sm:$0xff]  }
0x1593   :  { %12215 = vmatpush1.bf16.msra.mxu1 %v17944_v43  ;;  %12361 = vmatpush1.bf16.msra.mxu0 %v17947_v29  ;;  %v18033_v43 = vld [vmem:[#allocation25 + $0x90c] ss:$16 sps:$4 sm:$0xff]   ;;  %v18028_v29 = vld [vmem:[#allocation25 + $0x900] ss:$16 sps:$4 sm:$0xff]  }
0x1594   :  { %12216 = vmatprep.subr.bf16.mxu1 %v17952_v27  ;;  %12362 = vmatprep.subr.bf16.mxu0 %v17955_v30  ;;  %v18031_v27 = vld [vmem:[#allocation25 + $0x908] ss:$16 sps:$4 sm:$0xff]   ;;  %v18036_v30 = vld [vmem:[#allocation25 + $0x924] ss:$16 sps:$4 sm:$0xff]  }
0x1597   :  { %12217 = vmatpush1.bf16.msra.mxu1 %v17950_v46  ;;  %12363 = vmatpush1.bf16.msra.mxu0 %v17953_v47  ;;  %v18039_v46 = vld [vmem:[#allocation25 + $0x92c] ss:$16 sps:$4 sm:$0xff]   ;;  %v18034_v47 = vld [vmem:[#allocation25 + $0x920] ss:$16 sps:$4 sm:$0xff]  }
0x1598   :  { %12218 = vmatprep.subr.bf16.mxu1 %v17958_v10  ;;  %12364 = vmatprep.subr.bf16.mxu0 %v17961_v48  ;;  %v18037_v10 = vld [vmem:[#allocation25 + $0x928] ss:$16 sps:$4 sm:$0xff]   ;;  %v18042_v48 = vld [vmem:[#allocation25 + $0x944] ss:$16 sps:$4 sm:$0xff]  }
0x159b   :  { %12219 = vmatpush1.bf16.msra.mxu1 %v17956_v49  ;;  %12365 = vmatpush1.bf16.msra.mxu0 %v17959_v17  ;;  %v18045_v49 = vld [vmem:[#allocation25 + $0x94c] ss:$16 sps:$4 sm:$0xff]   ;;  %v18040_v17 = vld [vmem:[#allocation25 + $0x940] ss:$16 sps:$4 sm:$0xff]  }
0x159c   :  { %12220 = vmatprep.subr.bf16.mxu1 %v17964_v50  ;;  %12366 = vmatprep.subr.bf16.mxu0 %v17967_v53  ;;  %v18043_v50 = vld [vmem:[#allocation25 + $0x948] ss:$16 sps:$4 sm:$0xff]   ;;  %v18048_v53 = vld [vmem:[#allocation25 + $0x964] ss:$16 sps:$4 sm:$0xff]  }
0x159f   :  { %12221 = vmatpush1.bf16.msra.mxu1 %v17962_v54  ;;  %12367 = vmatpush1.bf16.msra.mxu0 %v17965_v56  ;;  %v18051_v54 = vld [vmem:[#allocation25 + $0x96c] ss:$16 sps:$4 sm:$0xff]   ;;  %v18046_v56 = vld [vmem:[#allocation25 + $0x960] ss:$16 sps:$4 sm:$0xff]  }
0x15a0   :  { %12222 = vmatprep.subr.bf16.mxu1 %v17970_v58  ;;  %12368 = vmatprep.subr.bf16.mxu0 %v17973_v59  ;;  %v18049_v58 = vld [vmem:[#allocation25 + $0x968] ss:$16 sps:$4 sm:$0xff]   ;;  %v18054_v59 = vld [vmem:[#allocation25 + $0x984] ss:$16 sps:$4 sm:$0xff]  }
0x15a3   :  { %12223 = vmatpush1.bf16.msra.mxu1 %v17968_v63  ;;  %12369 = vmatpush1.bf16.msra.mxu0 %v17971_v9  ;;  %v18057_v63 = vld [vmem:[#allocation25 + $0x98c] ss:$16 sps:$4 sm:$0xff]   ;;  %v18052_v9 = vld [vmem:[#allocation25 + $0x980] ss:$16 sps:$4 sm:$0xff]  }
0x15a4   :  { %12224 = vmatprep.subr.bf16.mxu1 %v17976_v11  ;;  %12370 = vmatprep.subr.bf16.mxu0 %v17979_v12  ;;  %v18055_v11 = vld [vmem:[#allocation25 + $0x988] ss:$16 sps:$4 sm:$0xff]   ;;  %v18060_v12 = vld [vmem:[#allocation25 + $0x9a4] ss:$16 sps:$4 sm:$0xff]  }
0x15a7   :  { %12225 = vmatpush1.bf16.msra.mxu1 %v17974_v13  ;;  %12371 = vmatpush1.bf16.msra.mxu0 %v17977_v57  ;;  %v18063_v13 = vld [vmem:[#allocation25 + $0x9ac] ss:$16 sps:$4 sm:$0xff]   ;;  %v18058_v57 = vld [vmem:[#allocation25 + $0x9a0] ss:$16 sps:$4 sm:$0xff]  }
0x15a8   :  { %12413 = vmatprep.subr.bf16.mxu1 %v20456_v1  ;;  %12486 = vmatprep.subr.bf16.mxu0 %v20458_v60  ;;  %v17980_v1 = vld [vmem:[#allocation25 + $0x800] ss:$16 sps:$4 sm:$0xff]   ;;  %v17983_v60 = vld [vmem:[#allocation25 + $0x808] ss:$16 sps:$4 sm:$0xff]  }
0x15aa   :  { %12227 = vmatmul.mubr.bf16.vlgmr.msra.gmra.mrb[132].mxu1 %v20570_v34  ;;  %12373 = vmatmul.mubr.bf16.vlgmr.msra.gmra.mrb[136].mxu0 %v20570_v34  ;;  %v17998_v34 = vld [vmem:[#allocation25 + $0x860] ss:$16 sps:$4 sm:$0xff]  }
0x15ab   :  { %12414 = vmatpush1.bf16.msra.mxu1 %v20452_v40  ;;  %12487 = vmatpush1.bf16.msra.mxu0 %v20454_v51  ;;  %v17982_v40 = vld [vmem:[#allocation25 + $0x804] ss:$16 sps:$4 sm:$0xff]   ;;  %v17985_v51 = vld [vmem:[#allocation25 + $0x80c] ss:$16 sps:$4 sm:$0xff]  }
0x15ac   :  { %12415 = vmatprep.subr.bf16.mxu1 %v20476_v36  ;;  %12488 = vmatprep.subr.bf16.mxu0 %v20478_v20  ;;  %v18177_v36 = vld [vmem:[#allocation22 + $0x40] sm:$0xff]  }
0x15ad   :  { %12236 = vmatprep.mubr.bf16.mxu1 %v20576_v37  ;;  %12382 = vmatprep.mubr.bf16.mxu0 %v20576_v37  ;;  %v17986_v20 = vld [vmem:[#allocation25 + $0x820] ss:$16 sps:$4 sm:$0xff]   ;;  %v18006_v37 = vld [vmem:[#allocation25 + $0x884] ss:$16 sps:$4 sm:$0xff]  }
0x15af   :  { %12416 = vmatpush1.bf16.msra.mxu1 %v20472_v41  ;;  %12489 = vmatpush1.bf16.msra.mxu0 %v20474_v35  ;;  %v17988_v41 = vld [vmem:[#allocation25 + $0x824] ss:$16 sps:$4 sm:$0xff]   ;;  %v17991_v35 = vld [vmem:[#allocation25 + $0x82c] ss:$16 sps:$4 sm:$0xff]  }
0x15b0   :  { %12417 = vmatprep.subr.bf16.mxu1 %v20496_v7  ;;  %12490 = vmatprep.subr.bf16.mxu0 %v20498_v8  ;;  %v17997_v7 = vld [vmem:[#allocation25 + $0x84c] ss:$16 sps:$4 sm:$0xff]   ;;  %v17992_v8 = vld [vmem:[#allocation25 + $0x840] ss:$16 sps:$4 sm:$0xff]  }
0x15b2   :  { %12237 = vmatmul.mubr.bf16.gmra.mrb[136].mxu1 %v20574_v52  ;;  %12383 = vmatmul.mubr.bf16.gmra.mrb[140].mxu0 %v20574_v52  ;;  %v18001_v52 = vld [vmem:[#allocation25 + $0x868] ss:$16 sps:$4 sm:$0xff]  }
0x15b3   :  { %12418 = vmatpush1.bf16.msra.mxu1 %v20492_v5  ;;  %12491 = vmatpush1.bf16.msra.mxu0 %v20494_v6  ;;  %v17989_v5 = vld [vmem:[#allocation25 + $0x828] ss:$16 sps:$4 sm:$0xff]   ;;  %v17994_v6 = vld [vmem:[#allocation25 + $0x844] ss:$16 sps:$4 sm:$0xff]  }
0x15b4   :  { %12419 = vmatprep.subr.bf16.mxu1 %v20516_v44  ;;  %12492 = vmatprep.subr.bf16.mxu0 %v20518_v45  ;;  %v18003_v44 = vld [vmem:[#allocation25 + $0x86c] ss:$16 sps:$4 sm:$0xff]  }
0x15b5   :  { %12246 = vmatprep.mubr.bf16.mxu1 %v20580_v3  ;;  %12392 = vmatprep.mubr.bf16.mxu0 %v20580_v3  ;;  %v18178_v45 = vld [vmem:[#allocation22 + $0x48] sm:$0xff]   ;;  %v18004_v3 = vld [vmem:[#allocation25 + $0x880] ss:$16 sps:$4 sm:$0xff]  }
0x15b7   :  { %12420 = vmatpush1.bf16.msra.mxu1 %v20512_v61  ;;  %12493 = vmatpush1.bf16.msra.mxu0 %v20514_v28  ;;  %v17995_v61 = vld [vmem:[#allocation25 + $0x848] ss:$16 sps:$4 sm:$0xff]   ;;  %v18000_v28 = vld [vmem:[#allocation25 + $0x864] ss:$16 sps:$4 sm:$0xff]  }
0x15b8   :  { %13344 = vmatprep.subr.bf16.mxu1 %v17982_v40  ;;  %13490 = vmatprep.subr.bf16.mxu0 %v17985_v51  ;;  %v18061_v40 = vld [vmem:[#allocation25 + $0x9a8] ss:$16 sps:$4 sm:$0xff]   ;;  %v18066_v51 = vld [vmem:[#allocation25 + $0x9c4] ss:$16 sps:$4 sm:$0xff]  }
0x15ba   :  { %12247 = vmatmul.mubr.bf16.gmra.mrb[140].mxu1 %v20578_v22  ;;  %12393 = vmatmul.mubr.bf16.gmra.mrb[144].mxu0 %v20578_v22  ;;  %v18009_v22 = vld [vmem:[#allocation25 + $0x88c] ss:$16 sps:$4 sm:$0xff]  }
0x15bb   :  { %12256 = vmatprep.mubr.bf16.mxu1 %v20584_v33  ;;  %12402 = vmatprep.mubr.bf16.mxu0 %v20584_v33  ;;  %v18012_v33 = vld [vmem:[#allocation25 + $0x8a4] ss:$16 sps:$4 sm:$0xff]  }
0x15c2   :  { %12257 = vmatmul.mubr.bf16.gmra.mrb[144].mxu1 %v20582_v4  ;;  %12403 = vmatmul.mubr.bf16.gmra.mrb[148].mxu0 %v20582_v4  ;;  %v18007_v4 = vld [vmem:[#allocation25 + $0x888] ss:$16 sps:$4 sm:$0xff]  }
0x15c3   :  { %12445 = vmatprep.mubr.bf16.mxu1 %v18621_v0  ;;  %12518 = vmatprep.mubr.bf16.mxu0 %v18621_v0 }
0x15ca   :  { %15286 = vmatmul.mubr.msk.bf16.vlgmr.msra.gmra.mrb[148].mxu1 %vm6162_vm5, %v18177_v36  ;;  %15290 = vmatmul.mubr.msk.bf16.vlgmr.msra.gmra.mrb[152].mxu0 %vm6162_vm5, %v18177_v36  ;;  %v18075_v36 = vld [vmem:[#allocation25 + $0x9ec] ss:$16 sps:$4 sm:$0xff]  }
0x15cb   :  { %12455 = vmatprep.mubr.bf16.mxu1 %v18621_v0  ;;  %12528 = vmatprep.mubr.bf16.mxu0 %v18621_v0 }
0x15cc   :  { %13345 = vmatpush1.bf16.msra.mxu1 %v17980_v1  ;;  %13491 = vmatpush1.bf16.msra.mxu0 %v17983_v60  ;;  %v18069_v1 = vld [vmem:[#allocation25 + $0x9cc] ss:$16 sps:$4 sm:$0xff]   ;;  %v18064_v60 = vld [vmem:[#allocation25 + $0x9c0] ss:$16 sps:$4 sm:$0xff]  }
0x15cd   :  { %13346 = vmatprep.subr.bf16.mxu1 %v17988_v41  ;;  %13492 = vmatprep.subr.bf16.mxu0 %v17991_v35  ;;  %v18067_v41 = vld [vmem:[#allocation25 + $0x9c8] ss:$16 sps:$4 sm:$0xff]   ;;  %v18072_v35 = vld [vmem:[#allocation25 + $0x9e4] ss:$16 sps:$4 sm:$0xff]  }
0x15d0   :  { %13347 = vmatpush1.bf16.msra.mxu1 %v17986_v20  ;;  %13493 = vmatpush1.bf16.msra.mxu0 %v17989_v5  ;;  %v18070_v20 = vld [vmem:[#allocation25 + $0x9e0] ss:$16 sps:$4 sm:$0xff]   ;;  %v18073_v5 = vld [vmem:[#allocation25 + $0x9e8] ss:$16 sps:$4 sm:$0xff]  }
0x15d1   :  { %13348 = vmatprep.subr.bf16.mxu1 %v17994_v6  ;;  %13494 = vmatprep.subr.bf16.mxu0 %v17997_v7  ;;  %v18078_v6 = vld [vmem:[#allocation25 + $0xa04] ss:$16 sps:$4 sm:$0xff]   ;;  %v18081_v7 = vld [vmem:[#allocation25 + $0xa0c] ss:$16 sps:$4 sm:$0xff]  }
0x15d2   :  { %15287 = vmatmul.mubr.msk.bf16.gmra.mrb[152].mxu1 %vm6162_vm5, %v18178_v45  ;;  %15291 = vmatmul.mubr.msk.bf16.gmra.mrb[156].mxu0 %vm6162_vm5, %v18178_v45 }
0x15d3   :  { %12465 = vmatprep.mubr.bf16.mxu1 %v18621_v0  ;;  %12538 = vmatprep.mubr.bf16.mxu0 %v18621_v0 }
0x15d4   :  { %13349 = vmatpush1.bf16.msra.mxu1 %v17992_v8  ;;  %13495 = vmatpush1.bf16.msra.mxu0 %v17995_v61 }
0x15d5   :  { %13350 = vmatprep.subr.bf16.mxu1 %v18000_v28  ;;  %13496 = vmatprep.subr.bf16.mxu0 %v18003_v44 }
0x15d8   :  { %13351 = vmatpush1.bf16.msra.mxu1 %v17998_v34  ;;  %13497 = vmatpush1.bf16.msra.mxu0 %v18001_v52 }
0x15d9   :  { %13352 = vmatprep.subr.bf16.mxu1 %v18006_v37  ;;  %13498 = vmatprep.subr.bf16.mxu0 %v18009_v22 }
0x15da   :  { %15288 = vmatmul.mubr.msk.bf16.gmra.mrb[156].mxu1 %vm6162_vm5, %v18179_v42  ;;  %15292 = vmatmul.mubr.msk.bf16.gmra.mrb[160].mxu0 %vm6162_vm5, %v18179_v42 }
0x15db   :  { %12475 = vmatprep.mubr.bf16.mxu1 %v18621_v0  ;;  %12548 = vmatprep.mubr.bf16.mxu0 %v18621_v0  ;;  %v18022_v0 = vld [vmem:[#allocation25 + $0x8e0] ss:$16 sps:$4 sm:$0xff]  }
0x15dc   :  { %13353 = vmatpush1.bf16.msra.mxu1 %v18004_v3  ;;  %13499 = vmatpush1.bf16.msra.mxu0 %v18007_v4 }
0x15dd   :  { %13354 = vmatprep.subr.bf16.mxu1 %v18012_v33  ;;  %13500 = vmatprep.subr.bf16.mxu0 %v18015_v15  ;;  %v18076_v33 = vld [vmem:[#allocation25 + $0xa00] ss:$16 sps:$4 sm:$0xff]   ;;  %v18079_v15 = vld [vmem:[#allocation25 + $0xa08] ss:$16 sps:$4 sm:$0xff]  }
0x15e0   :  { %13355 = vmatpush1.bf16.msra.mxu1 %v18010_v31  ;;  %13501 = vmatpush1.bf16.msra.mxu0 %v18013_v2  ;;  %v18084_v31 = vld [vmem:[#allocation25 + $0xa24] ss:$16 sps:$4 sm:$0xff]   ;;  %v18087_v2 = vld [vmem:[#allocation25 + $0xa2c] ss:$16 sps:$4 sm:$0xff]  }
0x15e1   :  { %13356 = vmatprep.subr.bf16.mxu1 %v18018_v23  ;;  %13502 = vmatprep.subr.bf16.mxu0 %v18021_v24  ;;  %v18082_v23 = vld [vmem:[#allocation25 + $0xa20] ss:$16 sps:$4 sm:$0xff]   ;;  %v18085_v24 = vld [vmem:[#allocation25 + $0xa28] ss:$16 sps:$4 sm:$0xff]  }
0x15e2   :  { %15289 = vmatmul.mubr.msk.bf16.gmra.mrb[160].mxu1 %vm6162_vm5, %v18180_v25  ;;  %15293 = vmatmul.mubr.msk.bf16.gmra.mrb[164].mxu0 %vm6162_vm5, %v18180_v25 }
0x15e4   :  { %13357 = vmatpush1.bf16.msra.mxu1 %v18016_v38  ;;  %13503 = vmatpush1.bf16.msra.mxu0 %v18019_v16 }
0x15e5   :  { %13358 = vmatprep.subr.bf16.mxu1 %v18024_v14  ;;  %13504 = vmatprep.subr.bf16.mxu0 %v18027_v55  ;;  %v18090_v14 = vld [vmem:[#allocation25 + $0xa44] ss:$16 sps:$4 sm:$0xff]   ;;  %v18093_v55 = vld [vmem:[#allocation25 + $0xa4c] ss:$16 sps:$4 sm:$0xff]  }
0x15e8   :  { %13359 = vmatpush1.bf16.msra.mxu1 %v18022_v0  ;;  %13505 = vmatpush1.bf16.msra.mxu0 %v18025_v32 }
0x15e9   :  { %13360 = vmatprep.subr.bf16.mxu1 %v18030_v39  ;;  %13506 = vmatprep.subr.bf16.mxu0 %v18033_v43 }
0x15ec   :  { %13361 = vmatpush1.bf16.msra.mxu1 %v18028_v29  ;;  %13507 = vmatpush1.bf16.msra.mxu0 %v18031_v27 }
0x15ed   :  { %13362 = vmatprep.subr.bf16.mxu1 %v18036_v30  ;;  %13508 = vmatprep.subr.bf16.mxu0 %v18039_v46  ;;  %v18088_v46 = vld [vmem:[#allocation25 + $0xa40] ss:$16 sps:$4 sm:$0xff]  }
0x15f0   :  { %13363 = vmatpush1.bf16.msra.mxu1 %v18034_v47  ;;  %13509 = vmatpush1.bf16.msra.mxu0 %v18037_v10  ;;  %v18091_v47 = vld [vmem:[#allocation25 + $0xa48] ss:$16 sps:$4 sm:$0xff]  }
0x15f1   :  { %13364 = vmatprep.subr.bf16.mxu1 %v18042_v48  ;;  %13510 = vmatprep.subr.bf16.mxu0 %v18045_v49  ;;  %v18096_v49 = vld [vmem:[#allocation25 + $0xa64] ss:$16 sps:$4 sm:$0xff]  }
0x15f4   :  { %13365 = vmatpush1.bf16.msra.mxu1 %v18040_v17  ;;  %13511 = vmatpush1.bf16.msra.mxu0 %v18043_v50  ;;  %v18099_v17 = vld [vmem:[#allocation25 + $0xa6c] ss:$16 sps:$4 sm:$0xff]   ;;  %v18094_v50 = vld [vmem:[#allocation25 + $0xa60] ss:$16 sps:$4 sm:$0xff]  }
0x15f5   :  { %13366 = vmatprep.subr.bf16.mxu1 %v18048_v53  ;;  %13512 = vmatprep.subr.bf16.mxu0 %v18051_v54  ;;  %v18097_v53 = vld [vmem:[#allocation25 + $0xa68] ss:$16 sps:$4 sm:$0xff]  }
0x15f8   :  { %13367 = vmatpush1.bf16.msra.mxu1 %v18046_v56  ;;  %13513 = vmatpush1.bf16.msra.mxu0 %v18049_v58  ;;  %v18102_v58 = vld [vmem:[#allocation25 + $0xa84] ss:$16 sps:$4 sm:$0xff]  }
0x15f9   :  { %13368 = vmatprep.subr.bf16.mxu1 %v18054_v59  ;;  %13514 = vmatprep.subr.bf16.mxu0 %v18057_v63  ;;  %v18105_v59 = vld [vmem:[#allocation25 + $0xa8c] ss:$16 sps:$4 sm:$0xff]  }
0x15fc   :  { %13369 = vmatpush1.bf16.msra.mxu1 %v18052_v9  ;;  %13515 = vmatpush1.bf16.msra.mxu0 %v18055_v11 }
0x15fd   :  { %13370 = vmatprep.subr.bf16.mxu1 %v18060_v12  ;;  %13516 = vmatprep.subr.bf16.mxu0 %v18063_v13 }
0x1600   :  { %13371 = vmatpush1.bf16.msra.mxu1 %v18058_v57  ;;  %13517 = vmatpush1.bf16.msra.mxu0 %v18061_v40 }
0x1601   :  { %13372 = vmatprep.subr.bf16.mxu1 %v18066_v51  ;;  %13518 = vmatprep.subr.bf16.mxu0 %v18069_v1  ;;  %v18100_v1 = vld [vmem:[#allocation25 + $0xa80] ss:$16 sps:$4 sm:$0xff]  }
0x1604   :  { %13373 = vmatpush1.bf16.msra.mxu1 %v18064_v60  ;;  %13519 = vmatpush1.bf16.msra.mxu0 %v18067_v41  ;;  %v18103_v60 = vld [vmem:[#allocation25 + $0xa88] ss:$16 sps:$4 sm:$0xff]  }
0x1605   :  { %13374 = vmatprep.subr.bf16.mxu1 %v18072_v35  ;;  %13520 = vmatprep.subr.bf16.mxu0 %v18075_v36  ;;  %v18108_v36 = vld [vmem:[#allocation25 + $0xaa4] ss:$16 sps:$4 sm:$0xff]  }
0x1608   :  { %13375 = vmatpush1.bf16.msra.mxu1 %v18070_v20  ;;  %13521 = vmatpush1.bf16.msra.mxu0 %v18073_v5  ;;  %v18111_v20 = vld [vmem:[#allocation25 + $0xaac] ss:$16 sps:$4 sm:$0xff]   ;;  %v18106_v5 = vld [vmem:[#allocation25 + $0xaa0] ss:$16 sps:$4 sm:$0xff]  }
0x1609   :  { %13417 = vmatprep.subr.bf16.mxu1 %v18078_v6  ;;  %13563 = vmatprep.subr.bf16.mxu0 %v18081_v7  ;;  %v18109_v6 = vld [vmem:[#allocation25 + $0xaa8] ss:$16 sps:$4 sm:$0xff]  }
0x169d   :  { %v12447_v8 = vpop.f32.mrb[148].mxu1  ;;  %v12520_v61 = vpop.f32.mrb[152].mxu0 }
0x169e   :  { %v12449_v28 = vpop.f32.mrb[149].mxu1  ;;  %v12522_v44 = vpop.f32.mrb[153].mxu0 }
0x169f   :  { %v12451_v45 = vpop.f32.mrb[150].mxu1  ;;  %v12524_v34 = vpop.f32.mrb[154].mxu0 }
0x16a0   :  { %v12559_v52 = vpack.c.bf16 %v12451_v45, %v12447_v8  ;;  %v12453_v37 = vpop.f32.mrb[151].mxu1  ;;  %v20634_v22 = vpack.c.bf16 %v12524_v34, %v12520_v61  ;;  %v12526_v3 = vpop.f32.mrb[155].mxu0  ;;  %v18114_v61 = vld [vmem:[#allocation25 + $0xac4] ss:$16 sps:$4 sm:$0xff]  }
0x16a1   :  { %v12560_v4 = vpack.c.bf16 %v12453_v37, %v12449_v28  ;;  %v20636_v42 = vpack.c.bf16 %v12526_v3, %v12522_v44  ;;  %v18117_v28 = vld [vmem:[#allocation25 + $0xacc] ss:$16 sps:$4 sm:$0xff]  }
0x16a3   :  { %13376 = vmatprep.mubr.bf16.mxu1 %v12560_v4  ;;  %13522 = vmatprep.mubr.bf16.mxu0 %v12560_v4 }
0x16a4   :  { %13377 = vmatmul.mubr.bf16.vlgmr.msra.gmra.mrb[132].mxu1 %v12559_v52  ;;  %13523 = vmatmul.mubr.bf16.vlgmr.msra.gmra.mrb[136].mxu0 %v12559_v52 }
0x16a5   :  { %13418 = vmatpush1.bf16.msra.mxu1 %v18076_v33  ;;  %13564 = vmatpush1.bf16.msra.mxu0 %v18079_v15  ;;  %v12457_v38 = vpop.f32.mrb[152].mxu1  ;;  %v12530_v16 = vpop.f32.mrb[156].mxu0  ;;  %v18112_v15 = vld [vmem:[#allocation25 + $0xac0] ss:$16 sps:$4 sm:$0xff]  }
0x16a6   :  { %13419 = vmatprep.subr.bf16.mxu1 %v18084_v31  ;;  %13565 = vmatprep.subr.bf16.mxu0 %v18087_v2  ;;  %v12459_v25 = vpop.f32.mrb[153].mxu1  ;;  %v12532_v0 = vpop.f32.mrb[157].mxu0  ;;  %v18115_v31 = vld [vmem:[#allocation25 + $0xac8] ss:$16 sps:$4 sm:$0xff]  }
0x16a7   :  { %v12461_v32 = vpop.f32.mrb[154].mxu1  ;;  %v12534_v39 = vpop.f32.mrb[158].mxu0 }
0x16a8   :  { %v12563_v43 = vpack.c.bf16 %v12461_v32, %v12457_v38  ;;  %v12463_v29 = vpop.f32.mrb[155].mxu1  ;;  %v20638_v27 = vpack.c.bf16 %v12534_v39, %v12530_v16  ;;  %v12536_v30 = vpop.f32.mrb[159].mxu0  ;;  %v18123_v38 = vld [vmem:[#allocation25 + $0xaec] ss:$16 sps:$4 sm:$0xff]   ;;  %v18118_v16 = vld [vmem:[#allocation25 + $0xae0] ss:$16 sps:$4 sm:$0xff]  }
0x16a9   :  { %13420 = vmatpush1.bf16.msra.mxu1 %v18082_v23  ;;  %13566 = vmatpush1.bf16.msra.mxu0 %v18085_v24  ;;  %v12564_v10 = vpack.c.bf16 %v12463_v29, %v12459_v25  ;;  %v20640_v48 = vpack.c.bf16 %v12536_v30, %v12532_v0  ;;  %v18120_v24 = vld [vmem:[#allocation25 + $0xae4] ss:$16 sps:$4 sm:$0xff]   ;;  %v18129_v25 = vld [vmem:[#allocation25 + $0xb0c] ss:$16 sps:$4 sm:$0xff]   ;;  %v18124_v0 = vld [vmem:[#allocation25 + $0xb00] ss:$16 sps:$4 sm:$0xff]  }
0x16aa   :  { %13421 = vmatprep.subr.bf16.mxu1 %v18090_v14  ;;  %13567 = vmatprep.subr.bf16.mxu0 %v18093_v55  ;;  %v18121_v14 = vld [vmem:[#allocation25 + $0xae8] ss:$16 sps:$4 sm:$0xff]   ;;  %v18126_v55 = vld [vmem:[#allocation25 + $0xb04] ss:$16 sps:$4 sm:$0xff]   ;;  %v18130_v29 = vld [vmem:[#allocation25 + $0xb20] ss:$16 sps:$4 sm:$0xff]  }
0x16ab   :  { %13386 = vmatprep.mubr.bf16.mxu1 %v12564_v10  ;;  %13532 = vmatprep.mubr.bf16.mxu0 %v12564_v10  ;;  %v18127_v32 = vld [vmem:[#allocation25 + $0xb08] ss:$16 sps:$4 sm:$0xff]   ;;  %v18132_v39 = vld [vmem:[#allocation25 + $0xb24] ss:$16 sps:$4 sm:$0xff]   ;;  %v18136_v10 = vld [vmem:[#allocation25 + $0xb40] ss:$16 sps:$4 sm:$0xff]  }
0x16ac   :  { %13387 = vmatmul.mubr.bf16.gmra.mrb[136].mxu1 %v12563_v43  ;;  %13533 = vmatmul.mubr.bf16.gmra.mrb[140].mxu0 %v12563_v43  ;;  %v18135_v43 = vld [vmem:[#allocation25 + $0xb2c] ss:$16 sps:$4 sm:$0xff]   ;;  %v18133_v30 = vld [vmem:[#allocation25 + $0xb28] ss:$16 sps:$4 sm:$0xff]  }
0x16ad   :  { %13422 = vmatpush1.bf16.msra.mxu1 %v18088_v46  ;;  %13568 = vmatpush1.bf16.msra.mxu0 %v18091_v47  ;;  %v12467_v54 = vpop.f32.mrb[156].mxu1  ;;  %v12540_v56 = vpop.f32.mrb[160].mxu0  ;;  %v18138_v46 = vld [vmem:[#allocation25 + $0xb44] ss:$16 sps:$4 sm:$0xff]   ;;  %v18141_v47 = vld [vmem:[#allocation25 + $0xb4c] ss:$16 sps:$4 sm:$0xff]  }
0x16ae   :  { %13423 = vmatprep.subr.bf16.mxu1 %v18096_v49  ;;  %13569 = vmatprep.subr.bf16.mxu0 %v18099_v17  ;;  %v12469_v63 = vpop.f32.mrb[157].mxu1  ;;  %v12542_v9 = vpop.f32.mrb[161].mxu0  ;;  %v18144_v49 = vld [vmem:[#allocation25 + $0xb64] ss:$16 sps:$4 sm:$0xff]   ;;  %v18147_v17 = vld [vmem:[#allocation25 + $0xb6c] ss:$16 sps:$4 sm:$0xff]  }
0x16af   :  { %v12471_v11 = vpop.f32.mrb[158].mxu1  ;;  %v12544_v12 = vpop.f32.mrb[162].mxu0 }
0x16b0   :  { %v12567_v13 = vpack.c.bf16 %v12471_v11, %v12467_v54  ;;  %v12473_v57 = vpop.f32.mrb[159].mxu1  ;;  %v20642_v40 = vpack.c.bf16 %v12544_v12, %v12540_v56  ;;  %v12546_v51 = vpop.f32.mrb[163].mxu0  ;;  %v18150_v54 = vld [vmem:[#allocation25 + $0xb84] ss:$16 sps:$4 sm:$0xff]   ;;  %v18153_v56 = vld [vmem:[#allocation25 + $0xb8c] ss:$16 sps:$4 sm:$0xff]  }
0x16b1   :  { %13424 = vmatpush1.bf16.msra.mxu1 %v18094_v50  ;;  %13570 = vmatpush1.bf16.msra.mxu0 %v18097_v53  ;;  %v12568_v41 = vpack.c.bf16 %v12473_v57, %v12469_v63  ;;  %v20644_v35 = vpack.c.bf16 %v12546_v51, %v12542_v9  ;;  %v18142_v50 = vld [vmem:[#allocation25 + $0xb60] ss:$16 sps:$4 sm:$0xff]   ;;  %v18145_v53 = vld [vmem:[#allocation25 + $0xb68] ss:$16 sps:$4 sm:$0xff]   ;;  %v18156_v63 = vld [vmem:[#allocation25 + $0xba4] ss:$16 sps:$4 sm:$0xff]  }
0x16b2   :  { %13425 = vmatprep.subr.bf16.mxu1 %v18102_v58  ;;  %13571 = vmatprep.subr.bf16.mxu0 %v18105_v59  ;;  %v18148_v58 = vld [vmem:[#allocation25 + $0xb80] ss:$16 sps:$4 sm:$0xff]   ;;  %v18151_v59 = vld [vmem:[#allocation25 + $0xb88] ss:$16 sps:$4 sm:$0xff]   ;;  %v18159_v9 = vld [vmem:[#allocation25 + $0xbac] ss:$16 sps:$4 sm:$0xff]  }
0x16b3   :  { %13396 = vmatprep.mubr.bf16.mxu1 %v12568_v41  ;;  %13542 = vmatprep.mubr.bf16.mxu0 %v12568_v41  ;;  %v18154_v11 = vld [vmem:[#allocation25 + $0xba0] ss:$16 sps:$4 sm:$0xff]   ;;  %v18157_v12 = vld [vmem:[#allocation25 + $0xba8] ss:$16 sps:$4 sm:$0xff]   ;;  %v18165_v57 = vld [vmem:[#allocation25 + $0xbcc] ss:$16 sps:$4 sm:$0xff]  }
0x16b4   :  { %13397 = vmatmul.mubr.bf16.gmra.mrb[140].mxu1 %v12567_v13  ;;  %13543 = vmatmul.mubr.bf16.gmra.mrb[144].mxu0 %v12567_v13  ;;  %v18162_v13 = vld [vmem:[#allocation25 + $0xbc4] ss:$16 sps:$4 sm:$0xff]   ;;  %v18160_v51 = vld [vmem:[#allocation25 + $0xbc0] ss:$16 sps:$4 sm:$0xff]   ;;  %v18171_v41 = vld [vmem:[#allocation25 + $0xbec] ss:$16 sps:$4 sm:$0xff]  }
0x16b5   :  { %13426 = vmatpush1.bf16.msra.mxu1 %v18100_v1  ;;  %13572 = vmatpush1.bf16.msra.mxu0 %v18103_v60  ;;  %v12477_v7 = vpop.f32.mrb[160].mxu1  ;;  %v12550_v8 = vpop.f32.mrb[164].mxu0  ;;  %v18163_v1 = vld [vmem:[#allocation25 + $0xbc8] ss:$16 sps:$4 sm:$0xff]   ;;  %v18168_v60 = vld [vmem:[#allocation25 + $0xbe4] ss:$16 sps:$4 sm:$0xff]  }
0x16b6   :  { %13427 = vmatprep.subr.bf16.mxu1 %v18108_v36  ;;  %13573 = vmatprep.subr.bf16.mxu0 %v18111_v20  ;;  %v12479_v44 = vpop.f32.mrb[161].mxu1  ;;  %v12552_v45 = vpop.f32.mrb[165].mxu0  ;;  %v18166_v36 = vld [vmem:[#allocation25 + $0xbe0] ss:$16 sps:$4 sm:$0xff]   ;;  %v18169_v20 = vld [vmem:[#allocation25 + $0xbe8] ss:$16 sps:$4 sm:$0xff]  }
0x16b7   :  { %v12481_v34 = vpop.f32.mrb[162].mxu1  ;;  %v12554_v52 = vpop.f32.mrb[166].mxu0 }
0x16b8   :  { %v12571_v37 = vpack.c.bf16 %v12481_v34, %v12477_v7  ;;  %v12483_v3 = vpop.f32.mrb[163].mxu1  ;;  %v20646_v4 = vpack.c.bf16 %v12554_v52, %v12550_v8  ;;  %v12556_v33 = vpop.f32.mrb[167].mxu0 }
0x16b9   :  { %13428 = vmatpush1.bf16.msra.mxu1 %v18106_v5  ;;  %13574 = vmatpush1.bf16.msra.mxu0 %v18109_v6  ;;  %v12572_v2 = vpack.c.bf16 %v12483_v3, %v12479_v44  ;;  %v20648_v23 = vpack.c.bf16 %v12556_v33, %v12552_v45 }
0x16ba   :  { %13429 = vmatprep.subr.bf16.mxu1 %v18114_v61  ;;  %13575 = vmatprep.subr.bf16.mxu0 %v18117_v28 }
0x16bb   :  { %13406 = vmatprep.mubr.bf16.mxu1 %v12572_v2  ;;  %13552 = vmatprep.mubr.bf16.mxu0 %v12572_v2 }
0x16bc   :  { %13407 = vmatmul.mubr.bf16.gmra.mrb[144].mxu1 %v12571_v37  ;;  %13553 = vmatmul.mubr.bf16.gmra.mrb[148].mxu0 %v12571_v37 }
0x16bd   :  { %13430 = vmatpush1.bf16.msra.mxu1 %v18112_v15  ;;  %13576 = vmatpush1.bf16.msra.mxu0 %v18115_v31 }
0x16be   :  { %13431 = vmatprep.subr.bf16.mxu1 %v18120_v24  ;;  %13577 = vmatprep.subr.bf16.mxu0 %v18123_v38 }
0x16bf   :  { %13449 = vmatprep.mubr.bf16.mxu1 %v20636_v42  ;;  %13595 = vmatprep.mubr.bf16.mxu0 %v20636_v42  ;;  %v18139_v42 = vld [vmem:[#allocation25 + $0xb48] ss:$16 sps:$4 sm:$0xff]  }
0x16c1   :  { %13432 = vmatpush1.bf16.msra.mxu1 %v18118_v16  ;;  %13578 = vmatpush1.bf16.msra.mxu0 %v18121_v14 }
0x16c2   :  { %13433 = vmatprep.subr.bf16.mxu1 %v18126_v55  ;;  %13579 = vmatprep.subr.bf16.mxu0 %v18129_v25 }
0x16c5   :  { %13434 = vmatpush1.bf16.msra.mxu1 %v18124_v0  ;;  %13580 = vmatpush1.bf16.msra.mxu0 %v18127_v32 }
0x16c6   :  { %13435 = vmatprep.subr.bf16.mxu1 %v18132_v39  ;;  %13581 = vmatprep.subr.bf16.mxu0 %v18135_v43 }
0x16c9   :  { %13436 = vmatpush1.bf16.msra.mxu1 %v18130_v29  ;;  %13582 = vmatpush1.bf16.msra.mxu0 %v18133_v30 }
0x16ca   :  { %13437 = vmatprep.subr.bf16.mxu1 %v18138_v46  ;;  %13583 = vmatprep.subr.bf16.mxu0 %v18141_v47 }
0x16cd   :  { %13438 = vmatpush1.bf16.msra.mxu1 %v18136_v10  ;;  %13584 = vmatpush1.bf16.msra.mxu0 %v18139_v42 }
0x16ce   :  { %13439 = vmatprep.subr.bf16.mxu1 %v18144_v49  ;;  %13585 = vmatprep.subr.bf16.mxu0 %v18147_v17 }
0x16d1   :  { %13440 = vmatpush1.bf16.msra.mxu1 %v18142_v50  ;;  %13586 = vmatpush1.bf16.msra.mxu0 %v18145_v53 }
0x16d2   :  { %13441 = vmatprep.subr.bf16.mxu1 %v18150_v54  ;;  %13587 = vmatprep.subr.bf16.mxu0 %v18153_v56 }
0x16d5   :  { %13442 = vmatpush1.bf16.msra.mxu1 %v18148_v58  ;;  %13588 = vmatpush1.bf16.msra.mxu0 %v18151_v59 }
0x16d6   :  { %13443 = vmatprep.subr.bf16.mxu1 %v18156_v63  ;;  %13589 = vmatprep.subr.bf16.mxu0 %v18159_v9 }
0x16d9   :  { %13444 = vmatpush1.bf16.msra.mxu1 %v18154_v11  ;;  %13590 = vmatpush1.bf16.msra.mxu0 %v18157_v12 }
0x16da   :  { %13445 = vmatprep.subr.bf16.mxu1 %v18162_v13  ;;  %13591 = vmatprep.subr.bf16.mxu0 %v18165_v57 }
0x16dd   :  { %13446 = vmatpush1.bf16.msra.mxu1 %v18160_v51  ;;  %13592 = vmatpush1.bf16.msra.mxu0 %v18163_v1 }
0x16de   :  { %13447 = vmatprep.subr.bf16.mxu1 %v18168_v60  ;;  %13593 = vmatprep.subr.bf16.mxu0 %v18171_v41 }
0x16e1   :  { %13448 = vmatpush1.bf16.msra.mxu1 %v18166_v36  ;;  %13594 = vmatpush1.bf16.msra.mxu0 %v18169_v20 }
0x16e4   :  { %13450 = vmatmul.mubr.bf16.vlgmr.msra.gmra.mrb[132].mxu1 %v20634_v22  ;;  %13596 = vmatmul.mubr.bf16.vlgmr.msra.gmra.mrb[136].mxu0 %v20634_v22  ;;  %v13668_v22 = vld [vmem:[#allocation28] sm:$0xf] }
0x16e5   :  { %13459 = vmatprep.mubr.bf16.mxu1 %v20640_v48  ;;  %13605 = vmatprep.mubr.bf16.mxu0 %v20640_v48  ;;  %v20667_v48 = vrot.slane %v13668_v22, %v19544_v19 }
0x16ec   :  { %13460 = vmatmul.mubr.bf16.gmra.mrb[136].mxu1 %v20638_v27  ;;  %13606 = vmatmul.mubr.bf16.gmra.mrb[140].mxu0 %v20638_v27  ;;  %v20671_v27 = vrot.slane %v13668_v22, %v10040_v26 }
0x16ed   :  { %13469 = vmatprep.mubr.bf16.mxu1 %v20644_v35  ;;  %13615 = vmatprep.mubr.bf16.mxu0 %v20644_v35  ;;  %v20674_v35 = vrot.slane %v13668_v22, %v19547_v21 }
0x16f4   :  { %13470 = vmatmul.mubr.bf16.gmra.mrb[140].mxu1 %v20642_v40  ;;  %13616 = vmatmul.mubr.bf16.gmra.mrb[144].mxu0 %v20642_v40  ;;  %v20678_v40 = vrot.slane %v13668_v22, %v10044_v62 }
0x16f5   :  { %13479 = vmatprep.mubr.bf16.mxu1 %v20648_v23  ;;  %13625 = vmatprep.mubr.bf16.mxu0 %v20648_v23 }
0x16fc   :  { %13480 = vmatmul.mubr.bf16.gmra.mrb[144].mxu1 %v20646_v4  ;;  %13626 = vmatmul.mubr.bf16.gmra.mrb[148].mxu0 %v20646_v4 }
0x17b7   :  { %v13451_v5 = vpop.f32.mrb[132].mxu1  ;;  %v13597_v6 = vpop.f32.mrb[136].mxu0 }
0x17b8   :  { %v13690_v7 = vadd.f32 %v20667_v48, %v13451_v5  ;;  %v13692_v8 = vadd.f32 %v20671_v27, %v13597_v6  ;;  %v13453_v61 = vpop.f32.mrb[133].mxu1  ;;  %v13599_v19 = vpop.f32.mrb[137].mxu0 }
0x17b9   :  { %v13691_v28 = vadd.f32 %v20674_v35, %v13453_v61  ;;  %v13693_v26 = vadd.f32 %v20678_v40, %v13599_v19  ;;  %v13455_v44 = vpop.f32.mrb[134].mxu1  ;;  %v13601_v45 = vpop.f32.mrb[138].mxu0 }
0x17ba   :  { %v13722_v21 = vmax.f32 %v13690_v7, 0.0  ;;  %v13724_v34 = vmax.f32 %v13692_v8, 0.0  ;;  %v13694_v18 = vadd.f32 %v20667_v48, %v13455_v44  ;;  %v13696_v62 = vadd.f32 %v20671_v27, %v13601_v45  ;;  %v13457_v52 = vpop.f32.mrb[135].mxu1  ;;  %v13603_v37 = vpop.f32.mrb[139].mxu0 }
0x17bb   :  { %v13723_v3 = vmax.f32 %v13691_v28, 0.0  ;;  %v13725_v4 = vmax.f32 %v13693_v26, 0.0  ;;  %v13695_v33 = vadd.f32 %v20674_v35, %v13457_v52  ;;  %v13697_v15 = vadd.f32 %v20678_v40, %v13603_v37 }
0x17bc   :  { %13754 = vst [vmem:[%s20883_s0] sm:$0xff] %v13722_v21  ;;  %13756 = vst [vmem:[%s20883_s0 + $0x10] sm:$0xff] %v13724_v34  ;;  %v13726_v31 = vmax.f32 %v13694_v18, 0.0  ;;  %v13728_v2 = vmax.f32 %v13696_v62, 0.0 }
0x17bd   :  { %13755 = vst [vmem:[%s20883_s0 + $0x8] sm:$0xff] %v13723_v3  ;;  %13757 = vst [vmem:[%s20883_s0 + $0x18] sm:$0xff] %v13725_v4  ;;  %v13727_v23 = vmax.f32 %v13695_v33, 0.0  ;;  %v13729_v24 = vmax.f32 %v13697_v15, 0.0 }
0x17be   :  { %13758 = vst [vmem:[%s20883_s0 + $0x20] sm:$0xff] %v13726_v31  ;;  %13760 = vst [vmem:[%s20883_s0 + $0x30] sm:$0xff] %v13728_v2 }
0x17bf   :  { %13759 = vst [vmem:[%s20883_s0 + $0x28] sm:$0xff] %v13727_v23  ;;  %13761 = vst [vmem:[%s20883_s0 + $0x38] sm:$0xff] %v13729_v24  ;;  %v13461_v38 = vpop.f32.mrb[136].mxu1  ;;  %v13607_v16 = vpop.f32.mrb[140].mxu0 }
0x17c0   :  { %v13698_v14 = vadd.f32 %v20667_v48, %v13461_v38  ;;  %v13700_v55 = vadd.f32 %v20671_v27, %v13607_v16  ;;  %v13463_v25 = vpop.f32.mrb[137].mxu1  ;;  %v13609_v0 = vpop.f32.mrb[141].mxu0 }
0x17c1   :  { %v13699_v32 = vadd.f32 %v20674_v35, %v13463_v25  ;;  %v13701_v39 = vadd.f32 %v20678_v40, %v13609_v0  ;;  %v13465_v43 = vpop.f32.mrb[138].mxu1  ;;  %v13611_v29 = vpop.f32.mrb[142].mxu0 }
0x17c2   :  { %v13730_v30 = vmax.f32 %v13698_v14, 0.0  ;;  %v13732_v46 = vmax.f32 %v13700_v55, 0.0  ;;  %v13702_v47 = vadd.f32 %v20667_v48, %v13465_v43  ;;  %v13704_v10 = vadd.f32 %v20671_v27, %v13611_v29  ;;  %v13467_v42 = vpop.f32.mrb[139].mxu1  ;;  %v13613_v49 = vpop.f32.mrb[143].mxu0 }
0x17c3   :  { %v13731_v17 = vmax.f32 %v13699_v32, 0.0  ;;  %v13733_v50 = vmax.f32 %v13701_v39, 0.0  ;;  %v13703_v53 = vadd.f32 %v20674_v35, %v13467_v42  ;;  %v13705_v54 = vadd.f32 %v20678_v40, %v13613_v49 }
0x17c4   :  { %13762 = vst [vmem:[%s20883_s0 + $0x40] sm:$0xff] %v13730_v30  ;;  %13764 = vst [vmem:[%s20883_s0 + $0x50] sm:$0xff] %v13732_v46  ;;  %v13734_v56 = vmax.f32 %v13702_v47, 0.0  ;;  %v13736_v58 = vmax.f32 %v13704_v10, 0.0 }
0x17c5   :  { %13763 = vst [vmem:[%s20883_s0 + $0x48] sm:$0xff] %v13731_v17  ;;  %13765 = vst [vmem:[%s20883_s0 + $0x58] sm:$0xff] %v13733_v50  ;;  %v13735_v59 = vmax.f32 %v13703_v53, 0.0  ;;  %v13737_v63 = vmax.f32 %v13705_v54, 0.0 }
0x17c6   :  { %13766 = vst [vmem:[%s20883_s0 + $0x60] sm:$0xff] %v13734_v56  ;;  %13768 = vst [vmem:[%s20883_s0 + $0x70] sm:$0xff] %v13736_v58 }
0x17c7   :  { %13767 = vst [vmem:[%s20883_s0 + $0x68] sm:$0xff] %v13735_v59  ;;  %13769 = vst [vmem:[%s20883_s0 + $0x78] sm:$0xff] %v13737_v63  ;;  %v13471_v9 = vpop.f32.mrb[140].mxu1  ;;  %v13617_v11 = vpop.f32.mrb[144].mxu0 }
0x17c8   :  { %v13706_v12 = vadd.f32 %v20667_v48, %v13471_v9  ;;  %v13708_v13 = vadd.f32 %v20671_v27, %v13617_v11  ;;  %v13473_v57 = vpop.f32.mrb[141].mxu1  ;;  %v13619_v51 = vpop.f32.mrb[145].mxu0 }
0x17c9   :  { %v13707_v1 = vadd.f32 %v20674_v35, %v13473_v57  ;;  %v13709_v60 = vadd.f32 %v20678_v40, %v13619_v51  ;;  %v13475_v41 = vpop.f32.mrb[142].mxu1  ;;  %v13621_v36 = vpop.f32.mrb[146].mxu0 }
0x17ca   :  { %v13738_v20 = vmax.f32 %v13706_v12, 0.0  ;;  %v13740_v22 = vmax.f32 %v13708_v13, 0.0  ;;  %v13710_v5 = vadd.f32 %v20667_v48, %v13475_v41  ;;  %v13712_v6 = vadd.f32 %v20671_v27, %v13621_v36  ;;  %v13477_v7 = vpop.f32.mrb[143].mxu1  ;;  %v13623_v8 = vpop.f32.mrb[147].mxu0 }
0x17cb   :  { %v13739_v61 = vmax.f32 %v13707_v1, 0.0  ;;  %v13741_v19 = vmax.f32 %v13709_v60, 0.0  ;;  %v13711_v28 = vadd.f32 %v20674_v35, %v13477_v7  ;;  %v13713_v26 = vadd.f32 %v20678_v40, %v13623_v8 }
0x17cc   :  { %13770 = vst [vmem:[%s20883_s0 + $0x80] sm:$0xff] %v13738_v20  ;;  %13772 = vst [vmem:[%s20883_s0 + $0x90] sm:$0xff] %v13740_v22  ;;  %v13742_v44 = vmax.f32 %v13710_v5, 0.0  ;;  %v13744_v45 = vmax.f32 %v13712_v6, 0.0 }
0x17cd   :  { %13771 = vst [vmem:[%s20883_s0 + $0x88] sm:$0xff] %v13739_v61  ;;  %13773 = vst [vmem:[%s20883_s0 + $0x98] sm:$0xff] %v13741_v19  ;;  %v13743_v21 = vmax.f32 %v13711_v28, 0.0  ;;  %v13745_v34 = vmax.f32 %v13713_v26, 0.0 }
0x17ce   :  { %13774 = vst [vmem:[%s20883_s0 + $0xa0] sm:$0xff] %v13742_v44  ;;  %13776 = vst [vmem:[%s20883_s0 + $0xb0] sm:$0xff] %v13744_v45 }
0x17cf   :  { %13775 = vst [vmem:[%s20883_s0 + $0xa8] sm:$0xff] %v13743_v21  ;;  %13777 = vst [vmem:[%s20883_s0 + $0xb8] sm:$0xff] %v13745_v34  ;;  %v13481_v18 = vpop.f32.mrb[144].mxu1  ;;  %v13627_v62 = vpop.f32.mrb[148].mxu0 }
0x17d0   :  { %v13714_v52 = vadd.f32 %v20667_v48, %v13481_v18  ;;  %v13716_v37 = vadd.f32 %v20671_v27, %v13627_v62  ;;  %v13483_v3 = vpop.f32.mrb[145].mxu1  ;;  %v13629_v4 = vpop.f32.mrb[149].mxu0 }
0x17d1   :  { %v13715_v33 = vadd.f32 %v20674_v35, %v13483_v3  ;;  %v13717_v15 = vadd.f32 %v20678_v40, %v13629_v4  ;;  %v13485_v31 = vpop.f32.mrb[146].mxu1  ;;  %v13631_v2 = vpop.f32.mrb[150].mxu0 }
0x17d2   :  { %v13746_v23 = vmax.f32 %v13714_v52, 0.0  ;;  %v13748_v24 = vmax.f32 %v13716_v37, 0.0  ;;  %v13718_v38 = vadd.f32 %v20667_v48, %v13485_v31  ;;  %v13720_v16 = vadd.f32 %v20671_v27, %v13631_v2  ;;  %v13487_v14 = vpop.f32.mrb[147].mxu1  ;;  %v13633_v55 = vpop.f32.mrb[151].mxu0 }
0x17d3   :  { %v13747_v25 = vmax.f32 %v13715_v33, 0.0  ;;  %v13749_v0 = vmax.f32 %v13717_v15, 0.0  ;;  %v13719_v32 = vadd.f32 %v20674_v35, %v13487_v14  ;;  %v13721_v39 = vadd.f32 %v20678_v40, %v13633_v55 }
0x17d4   :  { %13778 = vst [vmem:[%s20883_s0 + $0xc0] sm:$0xff] %v13746_v23  ;;  %13780 = vst [vmem:[%s20883_s0 + $0xd0] sm:$0xff] %v13748_v24  ;;  %v13750_v43 = vmax.f32 %v13718_v38, 0.0  ;;  %v13752_v48 = vmax.f32 %v13720_v16, 0.0 }
0x17d5   :  { %13779 = vst [vmem:[%s20883_s0 + $0xc8] sm:$0xff] %v13747_v25  ;;  %13781 = vst [vmem:[%s20883_s0 + $0xd8] sm:$0xff] %v13749_v0  ;;  %v13751_v27 = vmax.f32 %v13719_v32, 0.0  ;;  %v13753_v35 = vmax.f32 %v13721_v39, 0.0 }
0x17d6   :  { %13782 = vst [vmem:[%s20883_s0 + $0xe0] sm:$0xff] %v13750_v43  ;;  %13784 = vst [vmem:[%s20883_s0 + $0xf0] sm:$0xff] %v13752_v48 }
0x17d7   :  { %13783 = vst [vmem:[%s20883_s0 + $0xe8] sm:$0xff] %v13751_v27  ;;  %13785 = vst [vmem:[%s20883_s0 + $0xf8] sm:$0xff] %v13753_v35 }
0x17d8   :  { %13790 = vsyncpa [#allocation3], 1 }
0x17d9   :  { %13791 = vsyncpa [#allocation5], 1 }
0x17da   :  { %13792 = vsyncpa [#allocation8], 1 }
0x17db   :  { %13793 = vsyncpa [#allocation11], 1 }
0x17dc   :  { %13794 = vsyncpa [#allocation14], 1 }
0x17dd   :  { %13795 = vsyncpa [#allocation17], 1 }
0x17de   :  { %13796 = vsyncpa [#allocation20], 1 }
0x17df   :  { %13797 = vsyncpa [#allocation23], 1 }
0x17e0   :  { %13798 = vsyncpa [#allocation26], 1 }
0x17e1   :  { %13799 = vsyncpa [#allocation29], 1 }

</bundles_post_ra>
